<compile_context>
chip_gen: v5e
topology: v5e:2x2
jax: 0.10.0
libtpu: 0.0.40
codegen_flags: <defaults>
</compile_context>

<pallas_src>
import math
from functools import partial

import jax
import jax.numpy as jnp
from jax import lax
from jax.experimental import pallas as pl
from jax.experimental.pallas import tpu as pltpu

MIN_NORM = 1e-15
BALL_EPS_F32 = 0.004     # BALL_EPS[torch.float32]


def _round_up(x, m):
    return ((x + m - 1) // m) * m


def _softplus(x):
    # numerically stable softplus (matches F.softplus, beta=1)
    return jnp.maximum(x, 0.0) + jnp.log(1.0 + jnp.exp(-jnp.abs(x)))


def _tanh_clamp(x):
    return jnp.tanh(jnp.clip(x, -15.0, 15.0))


def atth_kernel(head_ref, rot_ref, refl_ref, ctx_ref, rel_ref, c_ref,
                tail_ref, bh_ref, bt_ref, out_ref,
                res_scr, c_scr, sqc_scr, isqc_scr, x2r_scr, *, scale):
    D = head_ref.shape[-1]
    Dh = D // 2

    # ------------------------------------------------------------------
    # Per-batch query math: run once per batch tile (first NEG tile only),
    # results cached in VMEM scratch for all subsequent NEG tiles.
    # ------------------------------------------------------------------
    @pl.when(pl.program_id(1) == 0)
    def _():
        head = head_ref[...]
        he, ho = head[:, :Dh], head[:, Dh:]

        # ---- Givens rotation (rot_mat) ----------------------------------
        rot = rot_ref[...]
        re_, ro_ = rot[:, :Dh], rot[:, Dh:]
        inv_rn = lax.rsqrt(jnp.maximum(re_ * re_ + ro_ * ro_,
                                       MIN_NORM * MIN_NORM))
        ra, rb = re_ * inv_rn, ro_ * inv_rn
        rot_e = ra * he - rb * ho
        rot_o = ra * ho + rb * he

        # ---- Givens reflection (ref_mat) --------------------------------
        refl = refl_ref[...]
        fe, fo = refl[:, :Dh], refl[:, Dh:]
        inv_fn = lax.rsqrt(jnp.maximum(fe * fe + fo * fo,
                                       MIN_NORM * MIN_NORM))
        ga, gb = fe * inv_fn, fo * inv_fn
        ref_e = ga * he + gb * ho
        ref_o = -ga * ho + gb * he

        # ---- attention over the two candidates {ref_q, rot_q} -----------
        ctx = ctx_ref[...]
        ce, co = ctx[:, :Dh], ctx[:, Dh:]
        w_ref = jnp.sum(ce * ref_e + co * ref_o, axis=-1, keepdims=True) * scale
        w_rot = jnp.sum(ce * rot_e + co * rot_o, axis=-1, keepdims=True) * scale
        m = jnp.maximum(w_ref, w_rot)
        e_ref = jnp.exp(w_ref - m)
        e_rot = jnp.exp(w_rot - m)
        inv_sm = 1.0 / (e_ref + e_rot)
        a_ref = e_ref * inv_sm
        a_rot = e_rot * inv_sm
        att_e = a_ref * ref_e + a_rot * rot_e
        att_o = a_ref * ref_o + a_rot * rot_o

        # ---- curvature ----------------------------------------------------
        c = _softplus(c_ref[...])                 # (TB, 1)
        sqrt_c = jnp.sqrt(c)
        inv_sqrt_c = 1.0 / sqrt_c
        maxnorm = (1.0 - BALL_EPS_F32) * inv_sqrt_c

        def expmap0_proj(ue, uo):
            un = jnp.maximum(
                jnp.sqrt(jnp.sum(ue * ue + uo * uo, axis=-1, keepdims=True)),
                MIN_NORM)
            g = _tanh_clamp(sqrt_c * un) / (sqrt_c * un)
            n = g * un                             # post-map norm, analytic
            sc = jnp.where(n > maxnorm, maxnorm / jnp.maximum(n, MIN_NORM), 1.0)
            gs = g * sc
            return ue * gs, uo * gs, n * sc

        lhs_e, lhs_o, lhs_n = expmap0_proj(att_e, att_o)

        rel = rel_ref[...]
        rle, rlo = rel[:, :Dh], rel[:, Dh:]
        y_e, y_o, y_n = expmap0_proj(rle, rlo)

        # ---- Mobius addition + projection --------------------------------
        x2 = lhs_n * lhs_n
        y2 = y_n * y_n
        xy = jnp.sum(lhs_e * y_e + lhs_o * y_o, axis=-1, keepdims=True)
        kx = 1.0 + 2.0 * c * xy + c * y2
        ky = 1.0 - c * x2
        inv_md = 1.0 / jnp.maximum(1.0 + 2.0 * c * xy + c * c * x2 * y2,
                                   MIN_NORM)
        res_e = (kx * lhs_e + ky * y_e) * inv_md
        res_o = (kx * lhs_o + ky * y_o) * inv_md
        rnorm = jnp.maximum(
            jnp.sqrt(jnp.sum(res_e * res_e + res_o * res_o,
                             axis=-1, keepdims=True)),
            MIN_NORM)
        psc = jnp.where(rnorm > maxnorm, maxnorm / rnorm, 1.0)
        res_e = res_e * psc
        res_o = res_o * psc
        fnorm = rnorm * psc

        # ---- re-interleave (even|odd) halves back to natural feature order
        # via a tiny one-hot matmul (once per batch tile, exact 0/1 weights),
        # so the big tail tensor never has to be deinterleaved.
        row = lax.broadcasted_iota(jnp.int32, (Dh, D), 0)
        col = lax.broadcasted_iota(jnp.int32, (Dh, D), 1)
        even_m = (col == 2 * row).astype(jnp.float32)
        odd_m = (col == 2 * row + 1).astype(jnp.float32)
        res_scr[...] = (
            jnp.dot(res_e, even_m, preferred_element_type=jnp.float32)
            + jnp.dot(res_o, odd_m, preferred_element_type=jnp.float32))
        c_scr[...] = c
        sqc_scr[...] = sqrt_c
        isqc_scr[...] = inv_sqrt_c
        x2r_scr[...] = fnorm * fnorm

    # ------------------------------------------------------------------
    # Hyperbolic distance to this tile of tail candidates (runs every step).
    # ------------------------------------------------------------------
    tail = tail_ref[...]                           # (TB, TN, D) natural layout
    res = res_scr[...]                             # (TB, D)
    c = c_scr[...]
    sqrt_c = sqc_scr[...]
    inv_sqrt_c = isqc_scr[...]
    x2r = x2r_scr[...]

    v2 = jnp.sum(tail * tail, axis=-1)                          # (TB, TN)
    inv_vnorm = lax.rsqrt(jnp.maximum(v2, MIN_NORM * MIN_NORM))
    vnorm = v2 * inv_vnorm
    xv = jnp.sum(res[:, None, :] * tail, axis=-1) * inv_vnorm   # (TB, TN)
    gamma = _tanh_clamp(sqrt_c * vnorm) * inv_sqrt_c            # (TB, TN)
    c1 = 1.0 - 2.0 * c * gamma * xv + c * gamma * gamma
    c2 = 1.0 - c * x2r
    sq_arg = jnp.maximum(
        c1 * c1 * x2r + c2 * c2 * gamma * gamma - 2.0 * c1 * c2 * gamma * xv,
        0.0)
    num = jnp.sqrt(sq_arg)
    den = jnp.maximum(1.0 - 2.0 * c * gamma * xv
                      + c * c * gamma * gamma * x2r, MIN_NORM)
    pn = num / den
    art = jnp.clip(sqrt_c * pn, -1.0 + 1e-5, 1.0 - 1e-5)
    dist = 0.5 * jnp.log((1.0 + art) / (1.0 - art))             # artanh
    d = 2.0 * dist * inv_sqrt_c
    out_ref[...] = bh_ref[...] + bt_ref[...] - d * d


def _deinterleave(x):
    # [x0, x1, x2, x3, ...] -> [x0, x2, ... | x1, x3, ...]
    return jnp.concatenate([x[..., 0::2], x[..., 1::2]], axis=-1)


def atth_reverse_forward(params, head, relation, tail,
                         positive_sample, negative_sample):
    B = head.shape[0]
    neg = tail.shape[1]
    D = params["context_vec"].shape[1]
    scale = 1.0 / math.sqrt(D)

    head2 = head.reshape(B, -1).astype(jnp.float32)            # (B, D)
    relation2 = relation.reshape(B, -1).astype(jnp.float32)    # (B, 2D)
    tail3 = tail.reshape(B, neg, -1).astype(jnp.float32)       # (B, neg, D)

    rel_idx = positive_sample[:, 1]
    rd = params["rel_diag"][rel_idx].astype(jnp.float32)       # (B, 2D)
    rot_mat, ref_mat = rd[:, :D], rd[:, D:]
    ctx = params["context_vec"][rel_idx].astype(jnp.float32)   # (B, D)
    c_raw = params["c"][rel_idx].astype(jnp.float32)           # (B, 1)
    bh = params["bh"][positive_sample[:, 0]].astype(jnp.float32)
    pos_bt = params["bt"][positive_sample[:, 2]].astype(jnp.float32)
    neg_bt = params["bt"][negative_sample.reshape(-1)].astype(
        jnp.float32).reshape(B, -1)
    bt = jnp.concatenate([pos_bt, neg_bt], axis=1)             # (B, neg)
    rel = relation2[:, :D]

    # Deinterleave ONLY the small per-batch (B, D) tensors; tail stays natural.
    head_d = _deinterleave(head2)
    rot_d = _deinterleave(rot_mat)
    ref_d = _deinterleave(ref_mat)
    ctx_d = _deinterleave(ctx)
    rel_d = _deinterleave(rel)

    # ---- tiling: lane-dense NEG tiles, ~2 MiB tail blocks -----------------
    NEGp_min = _round_up(neg, 128)
    TN = min(512, NEGp_min)                   # NEG tile, multiple of 128
    NEGp = _round_up(neg, TN)
    tb = max(8, (2 * 1024 * 1024) // (TN * D * 4))
    tb = max(8, (tb // 8) * 8)
    TB = min(tb, 256, _round_up(B, 8))        # batch tile, multiple of 8
    Bp = _round_up(B, TB)

    def pad_b(x):
        if Bp == B:
            return x
        return jnp.pad(x, ((0, Bp - B),) + ((0, 0),) * (x.ndim - 1))

    def pad_bn(x):
        if Bp == B and NEGp == neg:
            return x
        pads = ((0, Bp - B), (0, NEGp - neg)) + ((0, 0),) * (x.ndim - 2)
        return jnp.pad(x, pads)

    head_p, rot_p, ref_p, ctx_p, rel_p, c_p, bh_p = map(
        pad_b, (head_d, rot_d, ref_d, ctx_d, rel_d, c_raw, bh))
    tail_p = pad_bn(tail3)
    bt_p = pad_bn(bt)

    row_D = pl.BlockSpec((TB, D), lambda i, j: (i, 0))
    row_1 = pl.BlockSpec((TB, 1), lambda i, j: (i, 0))
    neg_2d = pl.BlockSpec((TB, TN), lambda i, j: (i, j))
    tail_spec = pl.BlockSpec((TB, TN, D), lambda i, j: (i, j, 0))

    out = pl.pallas_call(
        partial(atth_kernel, scale=scale),
        out_shape=jax.ShapeDtypeStruct((Bp, NEGp), jnp.float32),
        grid_spec=pltpu.PrefetchScalarGridSpec(
            num_scalar_prefetch=0,
            grid=(Bp // TB, NEGp // TN),
            in_specs=[row_D, row_D, row_D, row_D, row_D, row_1,
                      tail_spec, row_1, neg_2d],
            out_specs=neg_2d,
            scratch_shapes=[
                pltpu.VMEM((TB, D), jnp.float32),   # res (natural layout)
                pltpu.VMEM((TB, 1), jnp.float32),   # c
                pltpu.VMEM((TB, 1), jnp.float32),   # sqrt(c)
                pltpu.VMEM((TB, 1), jnp.float32),   # 1/sqrt(c)
                pltpu.VMEM((TB, 1), jnp.float32),   # ||res||^2
            ]),
        compiler_params=pltpu.CompilerParams(
            dimension_semantics=("parallel", "arbitrary"),
            vmem_limit_bytes=64 * 1024 * 1024),
    )(head_p, rot_p, ref_p, ctx_p, rel_p, c_p, tail_p, bh_p, bt_p)
    return out[:B, :neg]


# ------------------------- pure-JAX reference -----------------------------
def reference_forward(params, head, relation, tail,
                      positive_sample, negative_sample):
    B = head.shape[0]
    neg = tail.shape[1]
    D = params["context_vec"].shape[1]
    scale = 1.0 / math.sqrt(D)

    head2 = head.reshape(B, -1)
    relation2 = relation.reshape(B, -1)
    tail2 = tail.reshape(B * neg, -1)

    rel_idx = positive_sample[:, 1]
    c = jax.nn.softplus(params["c"][rel_idx])
    rd = params["rel_diag"][rel_idx]
    rot_mat, ref_mat = rd[:, :D], rd[:, D:]

    def givens_rot(r, x):
        g = r.reshape(B, -1, 2)
        g = g / jnp.maximum(jnp.linalg.norm(g, axis=-1, keepdims=True), MIN_NORM)
        xp = x.reshape(B, -1, 2)
        x_rot = g[:, :, 0:1] * xp + g[:, :, 1:] * jnp.concatenate(
            [-xp[:, :, 1:], xp[:, :, 0:1]], axis=-1)
        return x_rot.reshape(B, -1)

    def givens_ref(r, x):
        g = r.reshape(B, -1, 2)
        g = g / jnp.maximum(jnp.linalg.norm(g, axis=-1, keepdims=True), MIN_NORM)
        xp = x.reshape(B, -1, 2)
        x_ref = (g[:, :, 0:1] * jnp.concatenate([xp[:, :, 0:1], -xp[:, :, 1:]], -1)
                 + g[:, :, 1:] * jnp.concatenate([xp[:, :, 1:], xp[:, :, 0:1]], -1))
        return x_ref.reshape(B, -1)

    rot_q = givens_rot(rot_mat, head2).reshape(B, 1, D)
    ref_q = givens_ref(ref_mat, head2).reshape(B, 1, D)
    cands = jnp.concatenate([ref_q, rot_q], axis=1)
    ctx = params["context_vec"][rel_idx].reshape(B, 1, D)
    att_w = jnp.sum(ctx * cands * scale, axis=-1, keepdims=True)
    att_w = jax.nn.softmax(att_w, axis=1)
    att_q = jnp.sum(att_w * cands, axis=1)

    def project(x, cc):
        norm = jnp.maximum(jnp.linalg.norm(x, axis=-1, keepdims=True), MIN_NORM)
        maxnorm = (1.0 - BALL_EPS_F32) / jnp.sqrt(cc)
        return jnp.where(norm > maxnorm, x / norm * maxnorm, x)

    def expmap0(u, cc):
        sq = jnp.sqrt(cc)
        un = jnp.maximum(jnp.linalg.norm(u, axis=-1, keepdims=True), MIN_NORM)
        g = jnp.tanh(jnp.clip(sq * un, -15, 15)) * u / (sq * un)
        return project(g, cc)

    lhs = expmap0(att_q, c)
    rel = expmap0(relation2[:, :D], c)

    x2 = jnp.sum(lhs * lhs, -1, keepdims=True)
    y2 = jnp.sum(rel * rel, -1, keepdims=True)
    xy = jnp.sum(lhs * rel, -1, keepdims=True)
    num = (1 + 2 * c * xy + c * y2) * lhs + (1 - c * x2) * rel
    den = jnp.maximum(1 + 2 * c * xy + c * c * x2 * y2, MIN_NORM)
    res = project(num / den, c)

    bh = params["bh"][positive_sample[:, 0]]
    pos_bt = params["bt"][positive_sample[:, 2]]
    neg_bt = params["bt"][negative_sample.reshape(-1)].reshape(B, -1)
    bt = jnp.concatenate([pos_bt, neg_bt], axis=1)

    x = jnp.repeat(res, neg, axis=0)
    cc = jnp.repeat(c, neg, axis=0)
    v = tail2
    sq = jnp.sqrt(cc)
    vnorm = jnp.linalg.norm(v, axis=-1, keepdims=True)
    xv = jnp.sum(x * v / vnorm, -1, keepdims=True)
    gamma = jnp.tanh(jnp.clip(sq * vnorm, -15, 15)) / sq
    x2 = jnp.sum(x * x, -1, keepdims=True)
    c1 = 1 - 2 * cc * gamma * xv + cc * gamma ** 2
    c2 = 1 - cc * x2
    numd = jnp.sqrt(c1 ** 2 * x2 + c2 ** 2 * gamma ** 2 - 2 * c1 * c2 * gamma * xv)
    dend = jnp.maximum(1 - 2 * cc * gamma * xv + cc ** 2 * gamma ** 2 * x2, MIN_NORM)
    art = jnp.clip(sq * numd / dend, -1 + 1e-5, 1 - 1e-5)
    dist = 0.5 * (jnp.log1p(art) - jnp.log1p(-art))
    score = -((2 * dist / sq) ** 2)
    pred = (jnp.repeat(bh, neg, axis=0).reshape(-1, 1)
            + bt.reshape(-1, 1) + score).reshape(B, neg)
    return pred


if __name__ == "__main__":
    # small synthetic config
    B, NEG, D = 2, 4, 32
    NENTITY, NRELATION = 16, 5
    INIT_SIZE = 1e-3

    key = jax.random.PRNGKey(0)
    k1, k2, k3, k4, k5, k6, k7, k8, k9 = jax.random.split(key, 9)

    params = {
        # module init shapes; bh/bt given small non-zero values to exercise
        # the bias path (module zero-inits them).
        "bh": 0.01 * jax.random.normal(k1, (NENTITY, 1), jnp.float32),
        "bt": 0.01 * jax.random.normal(k2, (NENTITY, 1), jnp.float32),
        "rel_diag": 2.0 * jax.random.uniform(k3, (NRELATION, 2 * D), jnp.float32) - 1.0,
        "context_vec": INIT_SIZE * jax.random.normal(k4, (NRELATION, D), jnp.float32),
        "c": jnp.ones((NRELATION, 1), jnp.float32),
    }

    # moderate-norm embeddings keep the artanh well-conditioned in float32
    head = 0.1 * jax.random.normal(k5, (B, 1, D), jnp.float32)
    relation = 0.1 * jax.random.normal(k6, (B, 1, 2 * D), jnp.float32)
    tail = 0.1 * jax.random.normal(k7, (B, NEG, D), jnp.float32)
    positive_sample = jnp.stack([
        jax.random.randint(k8, (B,), 0, NENTITY),
        jax.random.randint(k9, (B,), 0, NRELATION),
        jax.random.randint(jax.random.fold_in(key, 7), (B,), 0, NENTITY),
    ], axis=1).astype(jnp.int32)
    negative_sample = jax.random.randint(
        jax.random.fold_in(key, 42), (B, NEG - 1), 0, NENTITY).astype(jnp.int32)

    out = atth_reverse_forward(params, head, relation, tail,
                               positive_sample, negative_sample)
    out = jax.block_until_ready(out)

    ref = reference_forward(params, head, relation, tail,
                            positive_sample, negative_sample)
    assert out.shape == (B, NEG), out.shape
    assert bool(jnp.all(jnp.isfinite(out))), out
    assert jnp.allclose(out, ref, rtol=2e-3, atol=2e-3), (out, ref)

    print("KERNEL_OK")
</pallas_src>

<mosaic_0001>
module attributes {stable_mosaic.version = 11 : i64} {
  func.func @atth_kernel(%arg0: i32, %arg1: i32, %arg2: memref<8x32xf32, #tpu.memory_space<vmem>>, %arg3: memref<8x32xf32, #tpu.memory_space<vmem>>, %arg4: memref<8x32xf32, #tpu.memory_space<vmem>>, %arg5: memref<8x32xf32, #tpu.memory_space<vmem>>, %arg6: memref<8x32xf32, #tpu.memory_space<vmem>>, %arg7: memref<8x1xf32, #tpu.memory_space<vmem>>, %arg8: memref<8x128x32xf32, #tpu.memory_space<vmem>>, %arg9: memref<8x1xf32, #tpu.memory_space<vmem>>, %arg10: memref<8x128xf32, #tpu.memory_space<vmem>>, %arg11: memref<8x128xf32, #tpu.memory_space<vmem>>, %arg12: memref<8x32xf32, #tpu.memory_space<vmem>>, %arg13: memref<8x1xf32, #tpu.memory_space<vmem>>, %arg14: memref<8x1xf32, #tpu.memory_space<vmem>>, %arg15: memref<8x1xf32, #tpu.memory_space<vmem>>, %arg16: memref<8x1xf32, #tpu.memory_space<vmem>>) attributes {dimension_semantics = [#tpu.dimension_semantics<parallel>, #tpu.dimension_semantics<arbitrary>], iteration_bounds = array<i64: 1, 1>, scalar_prefetch = 0 : i64, scratch_operands = 5 : i64, tpu.core_type = #tpu.core_type<tc>, window_params = [{transform_indices = @transform_0, window_bounds = array<i64: 8, 32>}, {transform_indices = @transform_1, window_bounds = array<i64: 8, 32>}, {transform_indices = @transform_2, window_bounds = array<i64: 8, 32>}, {transform_indices = @transform_3, window_bounds = array<i64: 8, 32>}, {transform_indices = @transform_4, window_bounds = array<i64: 8, 32>}, {transform_indices = @transform_5, window_bounds = array<i64: 8, 1>}, {transform_indices = @transform_6, window_bounds = array<i64: 8, 128, 32>}, {transform_indices = @transform_7, window_bounds = array<i64: 8, 1>}, {transform_indices = @transform_8, window_bounds = array<i64: 8, 128>}, {transform_indices = @transform_9, window_bounds = array<i64: 8, 128>}]} {
    %c0_i32 = arith.constant 0 : i32
    %0 = arith.cmpi eq, %arg1, %c0_i32 : i32
    %1 = arith.extui %0 : i1 to i32
    %c0_i32_0 = arith.constant 0 : i32
    %2 = arith.cmpi ne, %1, %c0_i32_0 : i32
    scf.if %2 {
      %c0_37 = arith.constant 0 : index
      %c0_38 = arith.constant 0 : index
      %103 = vector.load %arg2[%c0_37, %c0_38] : memref<8x32xf32, #tpu.memory_space<vmem>>, vector<8x32xf32>
      %104 = vector.extract_strided_slice %103 {offsets = [0, 0], sizes = [8, 16], strides = [1, 1]} : vector<8x32xf32> to vector<8x16xf32>
      %105 = vector.extract_strided_slice %103 {offsets = [0, 16], sizes = [8, 16], strides = [1, 1]} : vector<8x32xf32> to vector<8x16xf32>
      %c0_39 = arith.constant 0 : index
      %c0_40 = arith.constant 0 : index
      %106 = vector.load %arg3[%c0_39, %c0_40] : memref<8x32xf32, #tpu.memory_space<vmem>>, vector<8x32xf32>
      %107 = vector.extract_strided_slice %106 {offsets = [0, 0], sizes = [8, 16], strides = [1, 1]} : vector<8x32xf32> to vector<8x16xf32>
      %108 = vector.extract_strided_slice %106 {offsets = [0, 16], sizes = [8, 16], strides = [1, 1]} : vector<8x32xf32> to vector<8x16xf32>
      %109 = arith.mulf %107, %107 : vector<8x16xf32>
      %110 = arith.mulf %108, %108 : vector<8x16xf32>
      %111 = arith.addf %109, %110 : vector<8x16xf32>
      %cst_41 = arith.constant 1.000000e-30 : f32
      %112 = vector.broadcast %cst_41 : f32 to vector<8x16xf32>
      %113 = arith.maximumf %111, %112 : vector<8x16xf32>
      %114 = math.rsqrt %113 : vector<8x16xf32>
      %115 = arith.mulf %107, %114 : vector<8x16xf32>
      %116 = arith.mulf %108, %114 : vector<8x16xf32>
      %117 = arith.mulf %115, %104 : vector<8x16xf32>
      %118 = arith.mulf %116, %105 : vector<8x16xf32>
      %119 = arith.subf %117, %118 : vector<8x16xf32>
      %120 = arith.mulf %115, %105 : vector<8x16xf32>
      %121 = arith.mulf %116, %104 : vector<8x16xf32>
      %122 = arith.addf %120, %121 : vector<8x16xf32>
      %c0_42 = arith.constant 0 : index
      %c0_43 = arith.constant 0 : index
      %123 = vector.load %arg4[%c0_42, %c0_43] : memref<8x32xf32, #tpu.memory_space<vmem>>, vector<8x32xf32>
      %124 = vector.extract_strided_slice %123 {offsets = [0, 0], sizes = [8, 16], strides = [1, 1]} : vector<8x32xf32> to vector<8x16xf32>
      %125 = vector.extract_strided_slice %123 {offsets = [0, 16], sizes = [8, 16], strides = [1, 1]} : vector<8x32xf32> to vector<8x16xf32>
      %126 = arith.mulf %124, %124 : vector<8x16xf32>
      %127 = arith.mulf %125, %125 : vector<8x16xf32>
      %128 = arith.addf %126, %127 : vector<8x16xf32>
      %cst_44 = arith.constant 1.000000e-30 : f32
      %129 = vector.broadcast %cst_44 : f32 to vector<8x16xf32>
      %130 = arith.maximumf %128, %129 : vector<8x16xf32>
      %131 = math.rsqrt %130 : vector<8x16xf32>
      %132 = arith.mulf %124, %131 : vector<8x16xf32>
      %133 = arith.mulf %125, %131 : vector<8x16xf32>
      %134 = arith.mulf %132, %104 : vector<8x16xf32>
      %135 = arith.mulf %133, %105 : vector<8x16xf32>
      %136 = arith.addf %134, %135 : vector<8x16xf32>
      %cst_45 = arith.constant 0.000000e+00 : f32
      %137 = vector.broadcast %cst_45 : f32 to vector<8x16xf32>
      %138 = arith.subf %137, %132 : vector<8x16xf32>
      %139 = arith.mulf %138, %105 : vector<8x16xf32>
      %140 = arith.mulf %133, %104 : vector<8x16xf32>
      %141 = arith.addf %139, %140 : vector<8x16xf32>
      %c0_46 = arith.constant 0 : index
      %c0_47 = arith.constant 0 : index
      %142 = vector.load %arg5[%c0_46, %c0_47] : memref<8x32xf32, #tpu.memory_space<vmem>>, vector<8x32xf32>
      %143 = vector.extract_strided_slice %142 {offsets = [0, 0], sizes = [8, 16], strides = [1, 1]} : vector<8x32xf32> to vector<8x16xf32>
      %144 = vector.extract_strided_slice %142 {offsets = [0, 16], sizes = [8, 16], strides = [1, 1]} : vector<8x32xf32> to vector<8x16xf32>
      %145 = arith.mulf %143, %136 : vector<8x16xf32>
      %146 = arith.mulf %144, %141 : vector<8x16xf32>
      %147 = arith.addf %145, %146 : vector<8x16xf32>
      %cst_48 = arith.constant dense<0.000000e+00> : vector<8xf32>
      %148 = vector.multi_reduction <add>, %147, %cst_48 [1] : vector<8x16xf32> to vector<8xf32>
      %149 = vector.shape_cast %148 : vector<8xf32> to vector<8x1xf32>
      %cst_49 = arith.constant 0.176776692 : f32
      %150 = vector.broadcast %cst_49 : f32 to vector<8x1xf32>
      %151 = arith.mulf %149, %150 : vector<8x1xf32>
      %152 = arith.mulf %143, %119 : vector<8x16xf32>
      %153 = arith.mulf %144, %122 : vector<8x16xf32>
      %154 = arith.addf %152, %153 : vector<8x16xf32>
      %cst_50 = arith.constant dense<0.000000e+00> : vector<8xf32>
      %155 = vector.multi_reduction <add>, %154, %cst_50 [1] : vector<8x16xf32> to vector<8xf32>
      %156 = vector.shape_cast %155 : vector<8xf32> to vector<8x1xf32>
      %cst_51 = arith.constant 0.176776692 : f32
      %157 = vector.broadcast %cst_51 : f32 to vector<8x1xf32>
      %158 = arith.mulf %156, %157 : vector<8x1xf32>
      %159 = arith.maximumf %151, %158 : vector<8x1xf32>
      %160 = arith.subf %151, %159 : vector<8x1xf32>
      %161 = math.exp %160 : vector<8x1xf32>
      %162 = arith.subf %158, %159 : vector<8x1xf32>
      %163 = math.exp %162 : vector<8x1xf32>
      %164 = arith.addf %161, %163 : vector<8x1xf32>
      %cst_52 = arith.constant 1.000000e+00 : f32
      %165 = vector.broadcast %cst_52 : f32 to vector<8x1xf32>
      %166 = arith.divf %165, %164 : vector<8x1xf32>
      %167 = arith.mulf %161, %166 : vector<8x1xf32>
      %168 = arith.mulf %163, %166 : vector<8x1xf32>
      %169 = vector.broadcast %167 : vector<8x1xf32> to vector<8x16xf32>
      %170 = arith.mulf %169, %136 : vector<8x16xf32>
      %171 = vector.broadcast %168 : vector<8x1xf32> to vector<8x16xf32>
      %172 = arith.mulf %171, %119 : vector<8x16xf32>
      %173 = arith.addf %170, %172 : vector<8x16xf32>
      %174 = vector.broadcast %167 : vector<8x1xf32> to vector<8x16xf32>
      %175 = arith.mulf %174, %141 : vector<8x16xf32>
      %176 = vector.broadcast %168 : vector<8x1xf32> to vector<8x16xf32>
      %177 = arith.mulf %176, %122 : vector<8x16xf32>
      %178 = arith.addf %175, %177 : vector<8x16xf32>
      %c0_53 = arith.constant 0 : index
      %c0_54 = arith.constant 0 : index
      %179 = vector.load %arg7[%c0_53, %c0_54] : memref<8x1xf32, #tpu.memory_space<vmem>>, vector<8x1xf32>
      %cst_55 = arith.constant 0.000000e+00 : f32
      %180 = vector.broadcast %cst_55 : f32 to vector<8x1xf32>
      %181 = arith.maximumf %179, %180 : vector<8x1xf32>
      %182 = math.absf %179 : vector<8x1xf32>
      %cst_56 = arith.constant 0.000000e+00 : f32
      %183 = vector.broadcast %cst_56 : f32 to vector<8x1xf32>
      %184 = arith.subf %183, %182 : vector<8x1xf32>
      %185 = math.exp %184 : vector<8x1xf32>
      %cst_57 = arith.constant 1.000000e+00 : f32
      %186 = vector.broadcast %cst_57 : f32 to vector<8x1xf32>
      %187 = arith.addf %186, %185 : vector<8x1xf32>
      %188 = math.log %187 : vector<8x1xf32>
      %189 = arith.addf %181, %188 : vector<8x1xf32>
      %190 = math.sqrt %189 : vector<8x1xf32>
      %cst_58 = arith.constant 1.000000e+00 : f32
      %191 = vector.broadcast %cst_58 : f32 to vector<8x1xf32>
      %192 = arith.divf %191, %190 : vector<8x1xf32>
      %cst_59 = arith.constant 0.995999991 : f32
      %193 = vector.broadcast %cst_59 : f32 to vector<8x1xf32>
      %194 = arith.mulf %193, %192 : vector<8x1xf32>
      %195 = arith.mulf %173, %173 : vector<8x16xf32>
      %196 = arith.mulf %178, %178 : vector<8x16xf32>
      %197 = arith.addf %195, %196 : vector<8x16xf32>
      %cst_60 = arith.constant dense<0.000000e+00> : vector<8xf32>
      %198 = vector.multi_reduction <add>, %197, %cst_60 [1] : vector<8x16xf32> to vector<8xf32>
      %199 = vector.shape_cast %198 : vector<8xf32> to vector<8x1xf32>
      %200 = math.sqrt %199 : vector<8x1xf32>
      %cst_61 = arith.constant 1.000000e-15 : f32
      %201 = vector.broadcast %cst_61 : f32 to vector<8x1xf32>
      %202 = arith.maximumf %200, %201 : vector<8x1xf32>
      %203 = arith.mulf %190, %202 : vector<8x1xf32>
      %cst_62 = arith.constant -1.500000e+01 : f32
      %cst_63 = arith.constant 1.500000e+01 : f32
      %204 = vector.broadcast %cst_62 : f32 to vector<8x1xf32>
      %205 = arith.maximumf %204, %203 : vector<8x1xf32>
      %206 = vector.broadcast %cst_63 : f32 to vector<8x1xf32>
      %207 = arith.minimumf %206, %205 : vector<8x1xf32>
      %208 = math.tanh %207 : vector<8x1xf32>
      %209 = arith.mulf %190, %202 : vector<8x1xf32>
      %210 = arith.divf %208, %209 : vector<8x1xf32>
      %211 = arith.mulf %210, %202 : vector<8x1xf32>
      %212 = arith.cmpf ogt, %211, %194 : vector<8x1xf32>
      %cst_64 = arith.constant 1.000000e-15 : f32
      %213 = vector.broadcast %cst_64 : f32 to vector<8x1xf32>
      %214 = arith.maximumf %211, %213 : vector<8x1xf32>
      %215 = arith.divf %194, %214 : vector<8x1xf32>
      %cst_65 = arith.constant 1.000000e+00 : f32
      %216 = vector.broadcast %cst_65 : f32 to vector<8x1xf32>
      %217 = arith.select %212, %215, %216 : vector<8x1xi1>, vector<8x1xf32>
      %218 = arith.mulf %210, %217 : vector<8x1xf32>
      %219 = vector.broadcast %218 : vector<8x1xf32> to vector<8x16xf32>
      %220 = arith.mulf %173, %219 : vector<8x16xf32>
      %221 = vector.broadcast %218 : vector<8x1xf32> to vector<8x16xf32>
      %222 = arith.mulf %178, %221 : vector<8x16xf32>
      %223 = arith.mulf %211, %217 : vector<8x1xf32>
      %c0_66 = arith.constant 0 : index
      %c0_67 = arith.constant 0 : index
      %224 = vector.load %arg6[%c0_66, %c0_67] : memref<8x32xf32, #tpu.memory_space<vmem>>, vector<8x32xf32>
      %225 = vector.extract_strided_slice %224 {offsets = [0, 0], sizes = [8, 16], strides = [1, 1]} : vector<8x32xf32> to vector<8x16xf32>
      %226 = vector.extract_strided_slice %224 {offsets = [0, 16], sizes = [8, 16], strides = [1, 1]} : vector<8x32xf32> to vector<8x16xf32>
      %227 = arith.mulf %225, %225 : vector<8x16xf32>
      %228 = arith.mulf %226, %226 : vector<8x16xf32>
      %229 = arith.addf %227, %228 : vector<8x16xf32>
      %cst_68 = arith.constant dense<0.000000e+00> : vector<8xf32>
      %230 = vector.multi_reduction <add>, %229, %cst_68 [1] : vector<8x16xf32> to vector<8xf32>
      %231 = vector.shape_cast %230 : vector<8xf32> to vector<8x1xf32>
      %232 = math.sqrt %231 : vector<8x1xf32>
      %cst_69 = arith.constant 1.000000e-15 : f32
      %233 = vector.broadcast %cst_69 : f32 to vector<8x1xf32>
      %234 = arith.maximumf %232, %233 : vector<8x1xf32>
      %235 = arith.mulf %190, %234 : vector<8x1xf32>
      %cst_70 = arith.constant -1.500000e+01 : f32
      %cst_71 = arith.constant 1.500000e+01 : f32
      %236 = vector.broadcast %cst_70 : f32 to vector<8x1xf32>
      %237 = arith.maximumf %236, %235 : vector<8x1xf32>
      %238 = vector.broadcast %cst_71 : f32 to vector<8x1xf32>
      %239 = arith.minimumf %238, %237 : vector<8x1xf32>
      %240 = math.tanh %239 : vector<8x1xf32>
      %241 = arith.mulf %190, %234 : vector<8x1xf32>
      %242 = arith.divf %240, %241 : vector<8x1xf32>
      %243 = arith.mulf %242, %234 : vector<8x1xf32>
      %244 = arith.cmpf ogt, %243, %194 : vector<8x1xf32>
      %cst_72 = arith.constant 1.000000e-15 : f32
      %245 = vector.broadcast %cst_72 : f32 to vector<8x1xf32>
      %246 = arith.maximumf %243, %245 : vector<8x1xf32>
      %247 = arith.divf %194, %246 : vector<8x1xf32>
      %cst_73 = arith.constant 1.000000e+00 : f32
      %248 = vector.broadcast %cst_73 : f32 to vector<8x1xf32>
      %249 = arith.select %244, %247, %248 : vector<8x1xi1>, vector<8x1xf32>
      %250 = arith.mulf %242, %249 : vector<8x1xf32>
      %251 = vector.broadcast %250 : vector<8x1xf32> to vector<8x16xf32>
      %252 = arith.mulf %225, %251 : vector<8x16xf32>
      %253 = vector.broadcast %250 : vector<8x1xf32> to vector<8x16xf32>
      %254 = arith.mulf %226, %253 : vector<8x16xf32>
      %255 = arith.mulf %243, %249 : vector<8x1xf32>
      %256 = arith.mulf %223, %223 : vector<8x1xf32>
      %257 = arith.mulf %255, %255 : vector<8x1xf32>
      %258 = arith.mulf %220, %252 : vector<8x16xf32>
      %259 = arith.mulf %222, %254 : vector<8x16xf32>
      %260 = arith.addf %258, %259 : vector<8x16xf32>
      %cst_74 = arith.constant dense<0.000000e+00> : vector<8xf32>
      %261 = vector.multi_reduction <add>, %260, %cst_74 [1] : vector<8x16xf32> to vector<8xf32>
      %262 = vector.shape_cast %261 : vector<8xf32> to vector<8x1xf32>
      %cst_75 = arith.constant 2.000000e+00 : f32
      %263 = vector.broadcast %cst_75 : f32 to vector<8x1xf32>
      %264 = arith.mulf %263, %189 : vector<8x1xf32>
      %265 = arith.mulf %264, %262 : vector<8x1xf32>
      %cst_76 = arith.constant 1.000000e+00 : f32
      %266 = vector.broadcast %cst_76 : f32 to vector<8x1xf32>
      %267 = arith.addf %266, %265 : vector<8x1xf32>
      %268 = arith.mulf %189, %257 : vector<8x1xf32>
      %269 = arith.addf %267, %268 : vector<8x1xf32>
      %270 = arith.mulf %189, %256 : vector<8x1xf32>
      %cst_77 = arith.constant 1.000000e+00 : f32
      %271 = vector.broadcast %cst_77 : f32 to vector<8x1xf32>
      %272 = arith.subf %271, %270 : vector<8x1xf32>
      %cst_78 = arith.constant 2.000000e+00 : f32
      %273 = vector.broadcast %cst_78 : f32 to vector<8x1xf32>
      %274 = arith.mulf %273, %189 : vector<8x1xf32>
      %275 = arith.mulf %274, %262 : vector<8x1xf32>
      %cst_79 = arith.constant 1.000000e+00 : f32
      %276 = vector.broadcast %cst_79 : f32 to vector<8x1xf32>
      %277 = arith.addf %276, %275 : vector<8x1xf32>
      %278 = arith.mulf %189, %189 : vector<8x1xf32>
      %279 = arith.mulf %278, %256 : vector<8x1xf32>
      %280 = arith.mulf %279, %257 : vector<8x1xf32>
      %281 = arith.addf %277, %280 : vector<8x1xf32>
      %cst_80 = arith.constant 1.000000e-15 : f32
      %282 = vector.broadcast %cst_80 : f32 to vector<8x1xf32>
      %283 = arith.maximumf %281, %282 : vector<8x1xf32>
      %cst_81 = arith.constant 1.000000e+00 : f32
      %284 = vector.broadcast %cst_81 : f32 to vector<8x1xf32>
      %285 = arith.divf %284, %283 : vector<8x1xf32>
      %286 = vector.broadcast %269 : vector<8x1xf32> to vector<8x16xf32>
      %287 = arith.mulf %286, %220 : vector<8x16xf32>
      %288 = vector.broadcast %272 : vector<8x1xf32> to vector<8x16xf32>
      %289 = arith.mulf %288, %252 : vector<8x16xf32>
      %290 = arith.addf %287, %289 : vector<8x16xf32>
      %291 = vector.broadcast %285 : vector<8x1xf32> to vector<8x16xf32>
      %292 = arith.mulf %290, %291 : vector<8x16xf32>
      %293 = vector.broadcast %269 : vector<8x1xf32> to vector<8x16xf32>
      %294 = arith.mulf %293, %222 : vector<8x16xf32>
      %295 = vector.broadcast %272 : vector<8x1xf32> to vector<8x16xf32>
      %296 = arith.mulf %295, %254 : vector<8x16xf32>
      %297 = arith.addf %294, %296 : vector<8x16xf32>
      %298 = vector.broadcast %285 : vector<8x1xf32> to vector<8x16xf32>
      %299 = arith.mulf %297, %298 : vector<8x16xf32>
      %300 = arith.mulf %292, %292 : vector<8x16xf32>
      %301 = arith.mulf %299, %299 : vector<8x16xf32>
      %302 = arith.addf %300, %301 : vector<8x16xf32>
      %cst_82 = arith.constant dense<0.000000e+00> : vector<8xf32>
      %303 = vector.multi_reduction <add>, %302, %cst_82 [1] : vector<8x16xf32> to vector<8xf32>
      %304 = vector.shape_cast %303 : vector<8xf32> to vector<8x1xf32>
      %305 = math.sqrt %304 : vector<8x1xf32>
      %cst_83 = arith.constant 1.000000e-15 : f32
      %306 = vector.broadcast %cst_83 : f32 to vector<8x1xf32>
      %307 = arith.maximumf %305, %306 : vector<8x1xf32>
      %308 = arith.cmpf ogt, %307, %194 : vector<8x1xf32>
      %309 = arith.divf %194, %307 : vector<8x1xf32>
      %cst_84 = arith.constant 1.000000e+00 : f32
      %310 = vector.broadcast %cst_84 : f32 to vector<8x1xf32>
      %311 = arith.select %308, %309, %310 : vector<8x1xi1>, vector<8x1xf32>
      %312 = vector.broadcast %311 : vector<8x1xf32> to vector<8x16xf32>
      %313 = arith.mulf %292, %312 : vector<8x16xf32>
      %314 = vector.broadcast %311 : vector<8x1xf32> to vector<8x16xf32>
      %315 = arith.mulf %299, %314 : vector<8x16xf32>
      %316 = arith.mulf %307, %311 : vector<8x1xf32>
      %317 = tpu.iota {dimensions = array<i32: 0>} : vector<16x32xi32>
      %318 = tpu.iota {dimensions = array<i32: 1>} : vector<16x32xi32>
      %c2_i32 = arith.constant 2 : i32
      %319 = vector.broadcast %c2_i32 : i32 to vector<16x32xi32>
      %320 = arith.muli %319, %317 : vector<16x32xi32>
      %321 = arith.cmpi eq, %318, %320 : vector<16x32xi32>
      %322 = arith.extui %321 : vector<16x32xi1> to vector<16x32xi32>
      %323 = arith.sitofp %322 : vector<16x32xi32> to vector<16x32xf32>
      %c2_i32_85 = arith.constant 2 : i32
      %324 = vector.broadcast %c2_i32_85 : i32 to vector<16x32xi32>
      %325 = arith.muli %324, %317 : vector<16x32xi32>
      %c1_i32 = arith.constant 1 : i32
      %326 = vector.broadcast %c1_i32 : i32 to vector<16x32xi32>
      %327 = arith.addi %325, %326 : vector<16x32xi32>
      %328 = arith.cmpi eq, %318, %327 : vector<16x32xi32>
      %329 = arith.extui %328 : vector<16x32xi1> to vector<16x32xi32>
      %330 = arith.sitofp %329 : vector<16x32xi32> to vector<16x32xf32>
      %cst_86 = arith.constant dense<0.000000e+00> : vector<8x32xf32>
      %331 = tpu.matmul %313, %323, %cst_86 {dimension_numbers = #tpu.dot_dimension_numbers<[1], [0], [0], [1], [0, 0, 1, 1], [], []>} : vector<8x16xf32>, vector<16x32xf32>, vector<8x32xf32> -> vector<8x32xf32>
      %cst_87 = arith.constant dense<0.000000e+00> : vector<8x32xf32>
      %332 = tpu.matmul %315, %330, %cst_87 {dimension_numbers = #tpu.dot_dimension_numbers<[1], [0], [0], [1], [0, 0, 1, 1], [], []>} : vector<8x16xf32>, vector<16x32xf32>, vector<8x32xf32> -> vector<8x32xf32>
      %333 = arith.addf %331, %332 : vector<8x32xf32>
      %c0_88 = arith.constant 0 : index
      %c0_89 = arith.constant 0 : index
      %334 = vector.load %arg12[%c0_88, %c0_89] : memref<8x32xf32, #tpu.memory_space<vmem>>, vector<8x32xf32>
      tpu.vector_store %arg12[%c0_88, %c0_89], %333 {strides = array<i32>} : memref<8x32xf32, #tpu.memory_space<vmem>>, vector<8x32xf32>,
      %c0_90 = arith.constant 0 : index
      %c0_91 = arith.constant 0 : index
      %335 = vector.load %arg13[%c0_90, %c0_91] : memref<8x1xf32, #tpu.memory_space<vmem>>, vector<8x1xf32>
      tpu.vector_store %arg13[%c0_90, %c0_91], %189 {strides = array<i32>} : memref<8x1xf32, #tpu.memory_space<vmem>>, vector<8x1xf32>,
      %c0_92 = arith.constant 0 : index
      %c0_93 = arith.constant 0 : index
      %336 = vector.load %arg14[%c0_92, %c0_93] : memref<8x1xf32, #tpu.memory_space<vmem>>, vector<8x1xf32>
      tpu.vector_store %arg14[%c0_92, %c0_93], %190 {strides = array<i32>} : memref<8x1xf32, #tpu.memory_space<vmem>>, vector<8x1xf32>,
      %c0_94 = arith.constant 0 : index
      %c0_95 = arith.constant 0 : index
      %337 = vector.load %arg15[%c0_94, %c0_95] : memref<8x1xf32, #tpu.memory_space<vmem>>, vector<8x1xf32>
      tpu.vector_store %arg15[%c0_94, %c0_95], %192 {strides = array<i32>} : memref<8x1xf32, #tpu.memory_space<vmem>>, vector<8x1xf32>,
      %338 = arith.mulf %316, %316 : vector<8x1xf32>
      %c0_96 = arith.constant 0 : index
      %c0_97 = arith.constant 0 : index
      %339 = vector.load %arg16[%c0_96, %c0_97] : memref<8x1xf32, #tpu.memory_space<vmem>>, vector<8x1xf32>
      tpu.vector_store %arg16[%c0_96, %c0_97], %338 {strides = array<i32>} : memref<8x1xf32, #tpu.memory_space<vmem>>, vector<8x1xf32>,
    } else {
    }
    %c0 = arith.constant 0 : index
    %c0_1 = arith.constant 0 : index
    %c0_2 = arith.constant 0 : index
    %3 = vector.load %arg8[%c0, %c0_1, %c0_2] : memref<8x128x32xf32, #tpu.memory_space<vmem>>, vector<8x128x32xf32>
    %c0_3 = arith.constant 0 : index
    %c0_4 = arith.constant 0 : index
    %4 = vector.load %arg12[%c0_3, %c0_4] : memref<8x32xf32, #tpu.memory_space<vmem>>, vector<8x32xf32>
    %c0_5 = arith.constant 0 : index
    %c0_6 = arith.constant 0 : index
    %5 = vector.load %arg13[%c0_5, %c0_6] : memref<8x1xf32, #tpu.memory_space<vmem>>, vector<8x1xf32>
    %c0_7 = arith.constant 0 : index
    %c0_8 = arith.constant 0 : index
    %6 = vector.load %arg14[%c0_7, %c0_8] : memref<8x1xf32, #tpu.memory_space<vmem>>, vector<8x1xf32>
    %c0_9 = arith.constant 0 : index
    %c0_10 = arith.constant 0 : index
    %7 = vector.load %arg15[%c0_9, %c0_10] : memref<8x1xf32, #tpu.memory_space<vmem>>, vector<8x1xf32>
    %c0_11 = arith.constant 0 : index
    %c0_12 = arith.constant 0 : index
    %8 = vector.load %arg16[%c0_11, %c0_12] : memref<8x1xf32, #tpu.memory_space<vmem>>, vector<8x1xf32>
    %9 = arith.mulf %3, %3 : vector<8x128x32xf32>
    %cst = arith.constant dense<0.000000e+00> : vector<8x128xf32>
    %10 = vector.multi_reduction <add>, %9, %cst [2] : vector<8x128x32xf32> to vector<8x128xf32>
    %cst_13 = arith.constant 1.000000e-30 : f32
    %11 = vector.broadcast %cst_13 : f32 to vector<8x128xf32>
    %12 = arith.maximumf %10, %11 : vector<8x128xf32>
    %13 = math.rsqrt %12 : vector<8x128xf32>
    %14 = arith.mulf %10, %13 : vector<8x128xf32>
    %15 = vector.shape_cast %4 : vector<8x32xf32> to vector<8x1x32xf32>
    %16 = vector.broadcast %15 : vector<8x1x32xf32> to vector<8x128x32xf32>
    %17 = arith.mulf %16, %3 : vector<8x128x32xf32>
    %cst_14 = arith.constant dense<0.000000e+00> : vector<8x128xf32>
    %18 = vector.multi_reduction <add>, %17, %cst_14 [2] : vector<8x128x32xf32> to vector<8x128xf32>
    %19 = arith.mulf %18, %13 : vector<8x128xf32>
    %20 = vector.broadcast %6 : vector<8x1xf32> to vector<8x128xf32>
    %21 = arith.mulf %20, %14 : vector<8x128xf32>
    %cst_15 = arith.constant -1.500000e+01 : f32
    %cst_16 = arith.constant 1.500000e+01 : f32
    %22 = vector.broadcast %cst_15 : f32 to vector<8x128xf32>
    %23 = arith.maximumf %22, %21 : vector<8x128xf32>
    %24 = vector.broadcast %cst_16 : f32 to vector<8x128xf32>
    %25 = arith.minimumf %24, %23 : vector<8x128xf32>
    %26 = math.tanh %25 : vector<8x128xf32>
    %27 = vector.broadcast %7 : vector<8x1xf32> to vector<8x128xf32>
    %28 = arith.mulf %26, %27 : vector<8x128xf32>
    %cst_17 = arith.constant 2.000000e+00 : f32
    %29 = vector.broadcast %cst_17 : f32 to vector<8x1xf32>
    %30 = arith.mulf %29, %5 : vector<8x1xf32>
    %31 = vector.broadcast %30 : vector<8x1xf32> to vector<8x128xf32>
    %32 = arith.mulf %31, %28 : vector<8x128xf32>
    %33 = arith.mulf %32, %19 : vector<8x128xf32>
    %cst_18 = arith.constant 1.000000e+00 : f32
    %34 = vector.broadcast %cst_18 : f32 to vector<8x128xf32>
    %35 = arith.subf %34, %33 : vector<8x128xf32>
    %36 = vector.broadcast %5 : vector<8x1xf32> to vector<8x128xf32>
    %37 = arith.mulf %36, %28 : vector<8x128xf32>
    %38 = arith.mulf %37, %28 : vector<8x128xf32>
    %39 = arith.addf %35, %38 : vector<8x128xf32>
    %40 = arith.mulf %5, %8 : vector<8x1xf32>
    %cst_19 = arith.constant 1.000000e+00 : f32
    %41 = vector.broadcast %cst_19 : f32 to vector<8x1xf32>
    %42 = arith.subf %41, %40 : vector<8x1xf32>
    %43 = arith.mulf %39, %39 : vector<8x128xf32>
    %44 = vector.broadcast %8 : vector<8x1xf32> to vector<8x128xf32>
    %45 = arith.mulf %43, %44 : vector<8x128xf32>
    %46 = arith.mulf %42, %42 : vector<8x1xf32>
    %47 = vector.broadcast %46 : vector<8x1xf32> to vector<8x128xf32>
    %48 = arith.mulf %47, %28 : vector<8x128xf32>
    %49 = arith.mulf %48, %28 : vector<8x128xf32>
    %50 = arith.addf %45, %49 : vector<8x128xf32>
    %cst_20 = arith.constant 2.000000e+00 : f32
    %51 = vector.broadcast %cst_20 : f32 to vector<8x128xf32>
    %52 = arith.mulf %51, %39 : vector<8x128xf32>
    %53 = vector.broadcast %42 : vector<8x1xf32> to vector<8x128xf32>
    %54 = arith.mulf %52, %53 : vector<8x128xf32>
    %55 = arith.mulf %54, %28 : vector<8x128xf32>
    %56 = arith.mulf %55, %19 : vector<8x128xf32>
    %57 = arith.subf %50, %56 : vector<8x128xf32>
    %cst_21 = arith.constant 0.000000e+00 : f32
    %58 = vector.broadcast %cst_21 : f32 to vector<8x128xf32>
    %59 = arith.maximumf %57, %58 : vector<8x128xf32>
    %60 = math.sqrt %59 : vector<8x128xf32>
    %cst_22 = arith.constant 2.000000e+00 : f32
    %61 = vector.broadcast %cst_22 : f32 to vector<8x1xf32>
    %62 = arith.mulf %61, %5 : vector<8x1xf32>
    %63 = vector.broadcast %62 : vector<8x1xf32> to vector<8x128xf32>
    %64 = arith.mulf %63, %28 : vector<8x128xf32>
    %65 = arith.mulf %64, %19 : vector<8x128xf32>
    %cst_23 = arith.constant 1.000000e+00 : f32
    %66 = vector.broadcast %cst_23 : f32 to vector<8x128xf32>
    %67 = arith.subf %66, %65 : vector<8x128xf32>
    %68 = arith.mulf %5, %5 : vector<8x1xf32>
    %69 = vector.broadcast %68 : vector<8x1xf32> to vector<8x128xf32>
    %70 = arith.mulf %69, %28 : vector<8x128xf32>
    %71 = arith.mulf %70, %28 : vector<8x128xf32>
    %72 = vector.broadcast %8 : vector<8x1xf32> to vector<8x128xf32>
    %73 = arith.mulf %71, %72 : vector<8x128xf32>
    %74 = arith.addf %67, %73 : vector<8x128xf32>
    %cst_24 = arith.constant 1.000000e-15 : f32
    %75 = vector.broadcast %cst_24 : f32 to vector<8x128xf32>
    %76 = arith.maximumf %74, %75 : vector<8x128xf32>
    %77 = arith.divf %60, %76 : vector<8x128xf32>
    %78 = vector.broadcast %6 : vector<8x1xf32> to vector<8x128xf32>
    %79 = arith.mulf %78, %77 : vector<8x128xf32>
    %cst_25 = arith.constant -0.999989986 : f32
    %cst_26 = arith.constant 0.999989986 : f32
    %80 = vector.broadcast %cst_25 : f32 to vector<8x128xf32>
    %81 = arith.maximumf %80, %79 : vector<8x128xf32>
    %82 = vector.broadcast %cst_26 : f32 to vector<8x128xf32>
    %83 = arith.minimumf %82, %81 : vector<8x128xf32>
    %cst_27 = arith.constant 1.000000e+00 : f32
    %84 = vector.broadcast %cst_27 : f32 to vector<8x128xf32>
    %85 = arith.addf %84, %83 : vector<8x128xf32>
    %cst_28 = arith.constant 1.000000e+00 : f32
    %86 = vector.broadcast %cst_28 : f32 to vector<8x128xf32>
    %87 = arith.subf %86, %83 : vector<8x128xf32>
    %88 = arith.divf %85, %87 : vector<8x128xf32>
    %89 = math.log %88 : vector<8x128xf32>
    %cst_29 = arith.constant 5.000000e-01 : f32
    %90 = vector.broadcast %cst_29 : f32 to vector<8x128xf32>
    %91 = arith.mulf %90, %89 : vector<8x128xf32>
    %cst_30 = arith.constant 2.000000e+00 : f32
    %92 = vector.broadcast %cst_30 : f32 to vector<8x128xf32>
    %93 = arith.mulf %92, %91 : vector<8x128xf32>
    %94 = vector.broadcast %7 : vector<8x1xf32> to vector<8x128xf32>
    %95 = arith.mulf %93, %94 : vector<8x128xf32>
    %c0_31 = arith.constant 0 : index
    %c0_32 = arith.constant 0 : index
    %96 = vector.load %arg9[%c0_31, %c0_32] : memref<8x1xf32, #tpu.memory_space<vmem>>, vector<8x1xf32>
    %c0_33 = arith.constant 0 : index
    %c0_34 = arith.constant 0 : index
    %97 = vector.load %arg10[%c0_33, %c0_34] : memref<8x128xf32, #tpu.memory_space<vmem>>, vector<8x128xf32>
    %98 = vector.broadcast %96 : vector<8x1xf32> to vector<8x128xf32>
    %99 = arith.addf %98, %97 : vector<8x128xf32>
    %100 = arith.mulf %95, %95 : vector<8x128xf32>
    %101 = arith.subf %99, %100 : vector<8x128xf32>
    %c0_35 = arith.constant 0 : index
    %c0_36 = arith.constant 0 : index
    %102 = vector.load %arg11[%c0_35, %c0_36] : memref<8x128xf32, #tpu.memory_space<vmem>>, vector<8x128xf32>
    tpu.vector_store %arg11[%c0_35, %c0_36], %101 {strides = array<i32>} : memref<8x128xf32, #tpu.memory_space<vmem>>, vector<8x128xf32>,
    return
  }
  func.func @transform_0(%arg0: i32, %arg1: i32) -> (i32, i32) {
    %c0_i32 = arith.constant 0 : i32
    %c0_i32_0 = arith.constant 0 : i32
    return %arg0, %c0_i32 : i32, i32
  }
  func.func @transform_1(%arg0: i32, %arg1: i32) -> (i32, i32) {
    %c0_i32 = arith.constant 0 : i32
    %c0_i32_0 = arith.constant 0 : i32
    return %arg0, %c0_i32 : i32, i32
  }
  func.func @transform_2(%arg0: i32, %arg1: i32) -> (i32, i32) {
    %c0_i32 = arith.constant 0 : i32
    %c0_i32_0 = arith.constant 0 : i32
    return %arg0, %c0_i32 : i32, i32
  }
  func.func @transform_3(%arg0: i32, %arg1: i32) -> (i32, i32) {
    %c0_i32 = arith.constant 0 : i32
    %c0_i32_0 = arith.constant 0 : i32
    return %arg0, %c0_i32 : i32, i32
  }
  func.func @transform_4(%arg0: i32, %arg1: i32) -> (i32, i32) {
    %c0_i32 = arith.constant 0 : i32
    %c0_i32_0 = arith.constant 0 : i32
    return %arg0, %c0_i32 : i32, i32
  }
  func.func @transform_5(%arg0: i32, %arg1: i32) -> (i32, i32) {
    %c0_i32 = arith.constant 0 : i32
    %c0_i32_0 = arith.constant 0 : i32
    return %arg0, %c0_i32 : i32, i32
  }
  func.func @transform_6(%arg0: i32, %arg1: i32) -> (i32, i32, i32) {
    %c0_i32 = arith.constant 0 : i32
    %c0_i32_0 = arith.constant 0 : i32
    return %arg0, %arg1, %c0_i32 : i32, i32, i32
  }
  func.func @transform_7(%arg0: i32, %arg1: i32) -> (i32, i32) {
    %c0_i32 = arith.constant 0 : i32
    %c0_i32_0 = arith.constant 0 : i32
    return %arg0, %c0_i32 : i32, i32
  }
  func.func @transform_8(%arg0: i32, %arg1: i32) -> (i32, i32) {
    %c0_i32 = arith.constant 0 : i32
    return %arg0, %arg1 : i32, i32
  }
  func.func @transform_9(%arg0: i32, %arg1: i32) -> (i32, i32) {
    %c0_i32 = arith.constant 0 : i32
    return %arg0, %arg1 : i32, i32
  }
}

</mosaic_0001>

<bundles_post_ra>
// kernel: tpu_custom_call.1
= control target key start
LH: loop header
LB: loop body
LE: loop exit
PB: predicated region body
PF: predicated region fallthrough
CT: control target
= control target key end

     0   :  { %s4831_s13 = smov 16   ;;  %s4832_s14 = smov 112   ;;  %s10477_s0 = inlined_call_operand.vmem [shape: f32[8,32], index: 0, kind: input, shape index: {}]   ;;  %s10478_s1 = inlined_call_operand.vmem [shape: f32[8,32], index: 1, kind: input, shape index: {}]   ;;  %s10479_s2 = inlined_call_operand.vmem [shape: f32[8,32], index: 2, kind: input, shape index: {}]   ;;  %s10480_s3 = inlined_call_operand.vmem [shape: f32[8,32], index: 3, kind: input, shape index: {}]   ;;  %s10481_s4 = inlined_call_operand.vmem [shape: f32[8,32], index: 4, kind: input, shape index: {}]   ;;  %s10482_s5 = inlined_call_operand.vmem [shape: f32[8,1], index: 5, kind: input, shape index: {}]   ;;  %s10483_s6 = inlined_call_operand.vmem [shape: f32[8,128,32], index: 6, kind: input, shape index: {}]   ;;  %s10484_s7 = inlined_call_operand.vmem [shape: f32[8,1], index: 7, kind: input, shape index: {}]   ;;  %s10485_s8 = inlined_call_operand.vmem [shape: f32[8,128], index: 8, kind: input, shape index: {}]   ;;  %s10486_s9 = inlined_call_operand.hbm [shape: f32[8,128], index: 9, kind: output, shape index: {}]  }
   0x1   :  { %v4889_v0 = vld [vmem:[%s10477_s0] sm:$0xff] }
   0x2   :  { %v4894_v1 = vld [vmem:[%s10478_s1] sm:$0xff]  ;;  %74 = vrot.lane.b32.xlu2 %v4889_v0, %s4831_s13  ;;  %70 = vrot.lane.b32.xlu1 %v4889_v0, %s4832_s14 }
   0x3   :  { %v4900_v2 = vmul.f32 %v4894_v1, %v4894_v1  ;;  %v4907_v3 = vld [vmem:[%s10481_s4] sm:$0xff] }
   0x4   :  { %14 = vsyncpa [#allocation8], 0  ;;  %v4914_v4 = vld [vmem:[%s10479_s2] sm:$0xff]  ;;  %v4918_v5 = vmul.f32 %v4907_v3, %v4907_v3  ;;  %vm10583_vm0 = vcmask 261120   ;;  %v543_v9 = vld [vmem:[%s10483_s6 + $0x8] sm:$0xff]  ;;  %vm10584_vm1 = vcmask 130048  }
   0x5   :  { %41 = vrot.lane.b32.xlu0 %v4900_v2, %s4832_s14  ;;  %v4922_v6 = vmul.f32 %v4914_v4, %v4914_v4  ;;  %v542_v7 = vld [vmem:[%s10483_s6] sm:$0xff]  ;;  %v549_v11 = vld [vmem:[%s10483_s6 + $0x38] sm:$0xff]  ;;  %v676_v12 = vmul.f32 %v543_v9, %v543_v9  ;;  %v544_v17 = vld [vmem:[%s10483_s6 + $0x10] sm:$0xff]  ;;  %s4835_s0 = smov [#allocation7]  }
   0x6   :  { %v675_v8 = vmul.f32 %v542_v7, %v542_v7  ;;  %v546_v13 = vld [vmem:[%s10483_s6 + $0x20] sm:$0xff]  ;;  %v682_v14 = vmul.f32 %v549_v11, %v549_v11  ;;  %v552_v19 = vld [vmem:[%s10483_s6 + $0x50] sm:$0xff]  ;;  %v677_v21 = vmul.f32 %v544_v17, %v544_v17  ;;  %v545_v26 = vld [vmem:[%s10483_s6 + $0x18] sm:$0xff]  ;;  %s4335_s1 = sshll.u32 %s4835_s0, 4  ;;  %s4336_s1 = int_to_ptr.vmem [resolvable:$true] %s4335_s1 }
   0x7   :  { %v679_v15 = vmul.f32 %v546_v13, %v546_v13  ;;  %v807_v16 = vsel %vm10583_vm0, %v676_v12, 0.0  ;;  %v548_v22 = vld [vmem:[%s10483_s6 + $0x30] sm:$0xff]  ;;  %v685_v23 = vmul.f32 %v552_v19, %v552_v19  ;;  %v555_v28 = vld [vmem:[%s10483_s6 + $0x68] sm:$0xff]  ;;  %v678_v30 = vmul.f32 %v545_v26, %v545_v26  ;;  %v558_v37 = vld [vmem:[%s10483_s6 + $0x80] sm:$0xff] }
   0x8   :  { %v804_v10 = vsel %vm10583_vm0, %v675_v8, 0.0  ;;  %v825_v18 = vsel %vm10583_vm0, %v682_v14, 0.0  ;;  %v681_v24 = vmul.f32 %v548_v22, %v548_v22  ;;  %v810_v25 = vsel %vm10583_vm0, %v677_v21, 0.0  ;;  %v551_v31 = vld [vmem:[%s10483_s6 + $0x48] sm:$0xff]  ;;  %v554_v40 = vld [vmem:[%s10483_s6 + $0x60] sm:$0xff]  ;;  %v561_v46 = vld [vmem:[%s10483_s6 + $0x98] sm:$0xff] }
   0x9   :  { %v816_v20 = vsel %vm10583_vm0, %v679_v15, 0.0  ;;  %v834_v27 = vsel %vm10583_vm0, %v685_v23, 0.0  ;;  %v688_v32 = vmul.f32 %v555_v28, %v555_v28  ;;  %v684_v33 = vmul.f32 %v551_v31, %v551_v31  ;;  %v547_v35 = vld [vmem:[%s10483_s6 + $0x28] sm:$0xff]  ;;  %v550_v44 = vld [vmem:[%s10483_s6 + $0x40] sm:$0xff]  ;;  %v557_v49 = vld [vmem:[%s10483_s6 + $0x78] sm:$0xff] }
   0xa   :  { %292 = vrot.lane.b32.xlu2 %v4918_v5, %s4832_s14  ;;  %v822_v29 = vsel %vm10583_vm0, %v681_v24, 0.0  ;;  %v813_v34 = vsel %vm10583_vm0, %v678_v30, 0.0  ;;  %v680_v39 = vmul.f32 %v547_v35, %v547_v35  ;;  %v691_v41 = vmul.f32 %v558_v37, %v558_v37  ;;  %v553_v53 = vld [vmem:[%s10483_s6 + $0x58] sm:$0xff]  ;;  %v560_v57 = vld [vmem:[%s10483_s6 + $0x90] sm:$0xff]  ;;  %v563_v7 = vld [vmem:[%s10483_s6 + $0xa8] sm:$0xff] }
   0xb   :  { %v843_v36 = vsel %vm10583_vm0, %v688_v32, 0.0  ;;  %v831_v38 = vsel %vm10583_vm0, %v684_v33, 0.0  ;;  %v687_v42 = vmul.f32 %v554_v40, %v554_v40  ;;  %v683_v48 = vmul.f32 %v550_v44, %v550_v44  ;;  %v556_v60 = vld [vmem:[%s10483_s6 + $0x70] sm:$0xff]  ;;  %v562_v17 = vld [vmem:[%s10483_s6 + $0xa0] sm:$0xff]  ;;  %v565_v37 = vld [vmem:[%s10483_s6 + $0xb8] sm:$0xff] }
   0xc   :  { %v819_v43 = vsel %vm10583_vm0, %v680_v39, 0.0  ;;  %v852_v45 = vsel %vm10583_vm0, %v691_v41, 0.0  ;;  %v694_v50 = vmul.f32 %v561_v46, %v561_v46  ;;  %v690_v51 = vmul.f32 %v557_v49, %v557_v49  ;;  %v566_v41 = vld [vmem:[%s10483_s6 + $0xc0] sm:$0xff] }
   0xd   :  { %86 = vrot.lane.b32.xlu0 %v4922_v6, %s4832_s14  ;;  %v840_v47 = vsel %vm10583_vm0, %v687_v42, 0.0  ;;  %v828_v52 = vsel %vm10583_vm0, %v683_v48, 0.0  ;;  %v686_v56 = vmul.f32 %v553_v53, %v553_v53  ;;  %v693_v58 = vmul.f32 %v560_v57, %v560_v57 }
   0xe   :  { %v861_v54 = vsel %vm10583_vm0, %v694_v50, 0.0  ;;  %v849_v55 = vsel %vm10583_vm0, %v690_v51, 0.0  ;;  %v689_v63 = vmul.f32 %v556_v60, %v556_v60  ;;  %v696_v8 = vmul.f32 %v563_v7, %v563_v7 }
   0xf   :  { %v837_v59 = vsel %vm10583_vm0, %v686_v56, 0.0  ;;  %v858_v61 = vsel %vm10583_vm0, %v693_v58, 0.0  ;;  %v699_v42 = vmul.f32 %v566_v41, %v566_v41  ;;  %v185_v58 = vld [vmem:[%s10482_s5] sm:$0xff]  ;;  %v4833_v7 = vmov 0  }
  0x10   :  { %v846_v9 = vsel %vm10583_vm0, %v689_v63, 0.0  ;;  %v867_v11 = vsel %vm10583_vm0, %v696_v8, 0.0  ;;  %4365 = vset.pattern.permute.xlu1 %v4833_v7  ;;  %4366 = vset.pattern.permute.xlu0 %v4833_v7 }
  0x11   :  { %v876_v44 = vsel %vm10583_vm0, %v699_v42, 0.0  ;;  %4367 = vset.pattern.permute.xlu2 %v4833_v7 }
  0x2c   :  { %805 = vadd.xlane.f32.xlu1 %v804_v10  ;;  %v559_v10 = vld [vmem:[%s10483_s6 + $0x88] sm:$0xff] }
  0x2d   :  { %v692_v13 = vmul.f32 %v559_v10, %v559_v10 }
  0x33   :  { %808 = vadd.xlane.f32.xlu2 %v807_v16  ;;  %v855_v16 = vsel %vm10583_vm0, %v692_v13, 0.0 }
  0x34   :  { %826 = vadd.xlane.f32.xlu1 %v825_v18  ;;  %v695_v18 = vmul.f32 %v562_v17, %v562_v17  ;;  %v186_v17 = vmax.f32 %v185_v58, 0.0 }
  0x36   :  { %v864_v19 = vsel %vm10583_vm0, %v695_v18, 0.0 }
  0x37   :  { %817 = vadd.xlane.f32.xlu0 %v816_v20 }
  0x3b   :  { %811 = vadd.xlane.f32.xlu2 %v810_v25 }
  0x3c   :  { %835 = vadd.xlane.f32.xlu1 %v834_v27 }
  0x3f   :  { %823 = vadd.xlane.f32.xlu0 %v822_v29 }
  0x43   :  { %814 = vadd.xlane.f32.xlu2 %v813_v34 }
  0x44   :  { %844 = vadd.xlane.f32.xlu1 %v843_v36 }
  0x47   :  { %832 = vadd.xlane.f32.xlu0 %v831_v38  ;;  %v698_v38 = vmul.f32 %v565_v37, %v565_v37 }
  0x49   :  { %v873_v39 = vsel %vm10583_vm0, %v698_v38, 0.0 }
  0x4b   :  { %820 = vadd.xlane.f32.xlu2 %v819_v43 }
  0x4c   :  { %853 = vadd.xlane.f32.xlu1 %v852_v45  ;;  %v564_v45 = vld [vmem:[%s10483_s6 + $0xb0] sm:$0xff] }
  0x4d   :  { %v697_v46 = vmul.f32 %v564_v45, %v564_v45 }
  0x4f   :  { %841 = vadd.xlane.f32.xlu0 %v840_v47  ;;  %v870_v49 = vsel %vm10583_vm0, %v697_v46, 0.0 }
  0x53   :  { %829 = vadd.xlane.f32.xlu2 %v828_v52 }
  0x54   :  { %862 = vadd.xlane.f32.xlu1 %v861_v54 }
  0x57   :  { %850 = vadd.xlane.f32.xlu0 %v849_v55 }
  0x5b   :  { %838 = vadd.xlane.f32.xlu2 %v837_v59  ;;  %v187_v59 = vand.u32 2147483647, %v185_v58 }
  0x5c   :  { %v5003_v62 = vpop.permute.xlu2 %74 }
  0x5d   :  { %v188_v60 = vsub.f32 0.0, %v187_v59 }
  0x5f   :  { %859 = vadd.xlane.f32.xlu0 %v858_v61  ;;  %v189_v8 = vmul.f32 1.442695, %v188_v60 }
  0x63   :  { %847 = vadd.xlane.f32.xlu2 %v846_v9 }
  0x64   :  { %v293_v12 = vpop.permute.xlu2 %292 }
  0x65   :  { %v295_v14 = vadd.f32 %v293_v12, %v4918_v5 }
  0x67   :  { %868 = vadd.xlane.f32.xlu0 %v867_v11  ;;  %v296_v15 = vsel %vm10584_vm1, %v295_v14, 0.0 }
  0x68   :  { %297 = vadd.xlane.f32.xlu1 %v296_v15 }
  0x6b   :  { %856 = vadd.xlane.f32.xlu2 %v855_v16 }
  0x73   :  { %865 = vadd.xlane.f32.xlu2 %v864_v19 }
  0x74   :  { %v5034_v40 = vpop.permute.xlu1 %70 }
  0x77   :  { %v42_v20 = vpop.permute.xlu0 %41 }
  0x78   :  { %v44_v21 = vadd.f32 %v42_v20, %v4900_v2 }
  0x7a   :  { %v45_v22 = vmax.f32 %v44_v21, 1e-30 }
  0x7b   :  { %874 = vadd.xlane.f32.xlu2 %v873_v39 }
  0x7c   :  { %4368 = vrsqrt.f32 %v45_v22  ;;  %vm52_vm3 = vweird.f32 %v45_v22 }
  0x7f   :  { %v87_v5 = vpop.permute.xlu0 %86 }
  0x80   :  { %v89_v23 = vadd.f32 %v87_v5, %v4922_v6 }
  0x82   :  { %v4369_v24 = vpop.eup %4368  ;;  %v90_v25 = vmax.f32 %v89_v23, 1e-30 }
  0x83   :  { %v47_v26 = vmul.f32 %v4369_v24, %v45_v22  ;;  %vm53_vm2 = vweird.f32 %v4369_v24 }
  0x84   :  { %4370 = vrsqrt.f32 %v90_v25  ;;  %vm54_vm4 = vmor %vm52_vm3, %vm53_vm2  ;;  %vm97_vm6 = vweird.f32 %v90_v25 }
  0x85   :  { %v48_v27 = vmul.f32 %v4369_v24, %v47_v26 }
  0x87   :  { %v49_v28 = vmul.f32 0.5, %v48_v27 }
  0x89   :  { %v50_v29 = vsub.f32 1.5, %v49_v28 }
  0x8a   :  { %v4371_v30 = vpop.eup %4370 }
  0x8b   :  { %v92_v31 = vmul.f32 %v4371_v30, %v90_v25  ;;  %v51_v32 = vmul.f32 %v4369_v24, %v50_v29  ;;  %vm98_vm5 = vweird.f32 %v4371_v30 }
  0x8c   :  { %vm99_vm7 = vmor %vm97_vm6, %vm98_vm5 }
  0x8d   :  { %v93_v33 = vmul.f32 %v4371_v30, %v92_v31  ;;  %v5022_v2 = vsel %vm54_vm4, %v4369_v24, %v51_v32  ;;  %vm10566_vm4 = vcmask 7168  }
  0x8e   :  { %58 = vrot.lane.b32.xlu0 %v5022_v2, %s4831_s13 }
  0x8f   :  { %v94_v6 = vmul.f32 0.5, %v93_v33 }
  0x91   :  { %v95_v34 = vsub.f32 1.5, %v94_v6 }
  0x93   :  { %v96_v35 = vmul.f32 %v4371_v30, %v95_v34 }
  0x95   :  { %v5026_v36 = vsel %vm99_vm7, %v4371_v30, %v96_v35 }
  0x96   :  { %103 = vrot.lane.b32.xlu1 %v5026_v36, %s4831_s13 }
  0x9f   :  { %v5039_v43 = vpop.xlane.xlu1 %805 }
  0xa6   :  { %v5097_v59 = vpop.xlane.xlu2 %808 }
  0xa7   :  { %v5045_v47 = vpop.xlane.xlu1 %826 }
  0xaa   :  { %v5047_v48 = vpop.xlane.xlu0 %817 }
  0xaf   :  { %v5050_v50 = vpop.xlane.xlu1 %835 }
  0xb2   :  { %v5052_v51 = vpop.xlane.xlu0 %823 }
  0xb7   :  { %v5054_v52 = vpop.xlane.xlu1 %844 }
  0xb8   :  { %877 = vadd.xlane.f32.xlu0 %v876_v44 }
  0xba   :  { %v5056_v53 = vpop.xlane.xlu0 %832 }
  0xbf   :  { %v5058_v54 = vpop.xlane.xlu1 %853 }
  0xc0   :  { %871 = vadd.xlane.f32.xlu1 %v870_v49 }
  0xc2   :  { %v5060_v55 = vpop.xlane.xlu0 %841 }
  0xc7   :  { %v5062_v56 = vpop.xlane.xlu1 %862 }
  0xca   :  { %v5064_v57 = vpop.xlane.xlu0 %850 }
  0xcb   :  { %10781 = vst [vmem:[#allocation10_spill] sm:$0xff] %v5064_v57 }
  0xd2   :  { %v5069_v63 = vpop.xlane.xlu0 %859 }
  0xda   :  { %v5071_v11 = vpop.xlane.xlu0 %868 }
  0xdb   :  { %v298_v61 = vpop.xlane.xlu1 %297  ;;  %10782 = vst [vmem:[#allocation11_spill] sm:$0xff] %v5071_v11 }
  0xdc   :  { %4372 = vrsqrt.f32 %v298_v61  ;;  %vm306_vm8 = vcmp.eq.f32.partialorder %v298_v61, inf  ;;  %v309_v6 = vand.u32 2147483648, %v298_v61  ;;  %vm308_vm9 = vcmp.eq.f32.partialorder %v298_v61, 0.0 }
  0xdd   :  { %4374 = vpow2.f32 %v189_v8 }
  0xe2   :  { %v4373_v9 = vpop.eup %4372 }
  0xe3   :  { %v4375_v10 = vpop.eup %4374  ;;  %v300_v13 = vmul.f32 %v4373_v9, %v298_v61 }
  0xe4   :  { %v191_v12 = vadd.f32 1.0, %v4375_v10 }
  0xe5   :  { %v301_v14 = vmul.f32 %v4373_v9, %v300_v13 }
  0xe6   :  { %4376 = vlog2.f32 %v191_v12 }
  0xe7   :  { %v302_v22 = vmul.f32 0.5, %v301_v14 }
  0xe9   :  { %v303_v23 = vsub.f32 1.5, %v302_v22 }
  0xeb   :  { %v304_v28 = vmul.f32 %v4373_v9, %v303_v23 }
  0xec   :  { %v4377_v18 = vpop.eup %4376 }
  0xed   :  { %v193_v21 = vmul.f32 0.6931472, %v4377_v18  ;;  %v305_v31 = vmul.f32 %v304_v28, %v298_v61 }
  0xef   :  { %v5078_v5 = vadd.f32 %v193_v21, %v186_v17  ;;  %v307_v34 = vsel %vm306_vm8, %v298_v61, %v305_v31 }
  0xf0   :  { %v310_v38 = vsel %vm308_vm9, %v309_v6, %v307_v34 }
  0xf1   :  { %10783 = vst [vmem:[#allocation12_spill] sm:$0xff] %v5078_v5  ;;  %4378 = vrsqrt.f32 %v5078_v5  ;;  %vm202_vm10 = vcmp.eq.f32.partialorder %v5078_v5, inf  ;;  %vm204_vm11 = vcmp.eq.f32.partialorder %v5078_v5, 0.0  ;;  %v311_v41 = vmax.f32 %v310_v38, 1e-15  ;;  %v574_v38 = vld [vmem:[%s10483_s6 + $0x100] sm:$0xff] }
  0xf2   :  { %537 = vst.msk [vmem:[#allocation3] sm:$0xff] %vm10566_vm4, %v5078_v5 }
  0xf7   :  { %v4379_v29 = vpop.eup %4378 }
  0xf8   :  { %v196_v30 = vmul.f32 %v4379_v29, %v5078_v5 }
  0xfa   :  { %v197_v32 = vmul.f32 %v4379_v29, %v196_v30 }
  0xfc   :  { %v198_v33 = vmul.f32 0.5, %v197_v32 }
  0xfe   :  { %v199_v35 = vsub.f32 1.5, %v198_v33  ;;  %v571_v33 = vld [vmem:[%s10483_s6 + $0xe8] sm:$0xff] }
  0xff   :  { %v704_v6 = vmul.f32 %v571_v33, %v571_v33 }
 0x100   :  { %v59_v15 = vpop.permute.xlu0 %58  ;;  %v200_v37 = vmul.f32 %v4379_v29, %v199_v35 }
 0x101   :  { %v61_v16 = vmul.f32 %v59_v15, %v4894_v1  ;;  %v891_v35 = vsel %vm10583_vm0, %v704_v6, 0.0  ;;  %v572_v6 = vld [vmem:[%s10483_s6 + $0xf0] sm:$0xff] }
 0x102   :  { %v201_v39 = vmul.f32 %v200_v37, %v5078_v5 }
 0x103   :  { %v63_v19 = vmul.f32 %v61_v16, %v4889_v0  ;;  %v77_v20 = vmul.f32 %v5003_v62, %v61_v16 }
 0x104   :  { %v203_v42 = vsel %vm202_vm10, %v5078_v5, %v201_v39 }
 0x105   :  { %79 = vrot.lane.b32.xlu2 %v77_v20, %s4832_s14  ;;  %65 = vrot.lane.b32.xlu1 %v63_v19, %s4832_s14 }
 0x108   :  { %v104_v24 = vpop.permute.xlu1 %103 }
 0x109   :  { %v106_v25 = vmul.f32 %v104_v24, %v4914_v4 }
 0x10b   :  { %v108_v26 = vmul.f32 %v106_v25, %v4889_v0  ;;  %v116_v27 = vmul.f32 %v106_v25, %v5003_v62  ;;  %v205_v62 = vand.u32 2147483648, %v5078_v5  ;;  %v5112_v25 = vpop.xlane.xlu2 %811  ;;  %v5672_v5 = vmax.f32 %v5052_v51, 1e-30 }
 0x10d   :  { %118 = vrot.lane.b32.xlu0 %v116_v27, %s4832_s14  ;;  %110 = vrot.lane.b32.xlu2 %v108_v26, %s4832_s14  ;;  %v5092_v44 = vsel %vm204_vm11, %v205_v62, %v203_v42  ;;  %v568_v27 = vld [vmem:[%s10483_s6 + $0xd0] sm:$0xff] }
 0x10e   :  { %10784 = vst [vmem:[#allocation13_spill] sm:$0xff] %v5092_v44  ;;  %4380 = vrcp.f32 %v5092_v44  ;;  %v312_v45 = vmul.f32 %v311_v41, %v5092_v44  ;;  %vm212_vm12 = vweird.f32 %v5092_v44  ;;  %v218_v7 = vand.u32 2147483648, %v5092_v44 }
 0x10f   :  { %v216_v10 = vand.u32 2147483647, %v5092_v44  ;;  %538 = vst.msk [vmem:[#allocation4] sm:$0xff] %vm10566_vm4, %v5092_v44  ;;  %v701_v29 = vmul.f32 %v568_v27, %v568_v27  ;;  %v586_v27 = vld [vmem:[%s10483_s6 + $0x160] sm:$0xff] }
 0x110   :  { %4382 = vrcp.f32 %v312_v45  ;;  %v4347_v61 = vclamps-f32 %v312_v45, 15.0  ;;  %v327_v15 = vand.u32 2147483648, %v312_v45  ;;  %v219_v16 = vor.u32 1.1754944e-38, %v218_v7 }
 0x111   :  { %v325_v18 = vand.u32 2147483647, %v312_v45  ;;  %vm217_vm2 = vcmp.eq.f32.partialorder %v216_v10, 8.507059e+37  ;;  %vm321_vm3 = vweird.f32 %v312_v45  ;;  %v882_v31 = vsel %vm10583_vm0, %v701_v29, 0.0 }
 0x112   :  { %4384 = vtanh.f32 %v4347_v61  ;;  %v328_v21 = vor.u32 1.1754944e-38, %v327_v15 }
 0x113   :  { %vm326_vm6 = vcmp.eq.f32.partialorder %v325_v18, 8.507059e+37  ;;  %v5122_v34 = vpop.xlane.xlu2 %814  ;;  %v580_v18 = vld [vmem:[%s10483_s6 + $0x130] sm:$0xff] }
 0x114   :  { %v4381_v46 = vpop.eup %4380 }
 0x115   :  { %v208_v49 = vmul.f32 %v4381_v46, %v5092_v44  ;;  %vm213_vm13 = vweird.f32 %v4381_v46 }
 0x116   :  { %v4383_v58 = vpop.eup %4382  ;;  %vm5102_vm14 = vmor %vm212_vm12, %vm213_vm13 }
 0x117   :  { %v209_v60 = vsub.f32 1.0, %v208_v49  ;;  %v317_v8 = vmul.f32 %v4383_v58, %v312_v45  ;;  %vm322_vm15 = vweird.f32 %v4383_v58 }
 0x118   :  { %vm323_vm5 = vmor %vm321_vm3, %vm322_vm15  ;;  %v4385_v24 = vpop.eup %4384 }
 0x119   :  { %v210_v9 = vmul.f32 %v4381_v46, %v209_v60  ;;  %v318_v13 = vsub.f32 1.0, %v317_v8  ;;  %v577_v8 = vld [vmem:[%s10483_s6 + $0x118] sm:$0xff] }
 0x11b   :  { %v211_v14 = vadd.f32 %v4381_v46, %v210_v9  ;;  %v319_v17 = vmul.f32 %v4383_v58, %v318_v13  ;;  %v5128_v49 = vpop.xlane.xlu2 %820  ;;  %v710_v13 = vmul.f32 %v577_v8, %v577_v8 }
 0x11d   :  { %v215_v19 = vsel %vm5102_vm14, %v4381_v46, %v211_v14  ;;  %v320_v20 = vadd.f32 %v4383_v58, %v319_v17  ;;  %v909_v17 = vsel %vm10583_vm0, %v710_v13, 0.0 }
 0x11e   :  { %v220_v22 = vsel %vm217_vm2, %v219_v16, %v215_v19 }
 0x11f   :  { %v324_v23 = vsel %vm323_vm5, %v4383_v58, %v320_v20  ;;  %539 = vst.msk [vmem:[#allocation5] sm:$0xff] %vm10566_vm4, %v220_v22  ;;  %v5131_v61 = vmul.f32 0.996, %v220_v22  ;;  %v713_v20 = vmul.f32 %v580_v18, %v580_v18  ;;  %v583_v22 = vld [vmem:[%s10483_s6 + $0x148] sm:$0xff]  ;;  %vm10587_vm4 = vcmask 458112  }
 0x120   :  { %v329_v26 = vsel %vm326_vm6, %v328_v21, %v324_v23 }
 0x121   :  { %v330_v28 = vmul.f32 %v4385_v24, %v329_v26  ;;  %10787 = vst [vmem:[#allocation14_spill] sm:$0xff] %v5131_v61  ;;  %v918_v21 = vsel %vm10583_vm0, %v713_v20, 0.0  ;;  %v716_v24 = vmul.f32 %v583_v22, %v583_v22  ;;  %v581_v22 = vld [vmem:[%s10483_s6 + $0x138] sm:$0xff] }
 0x123   :  { %v331_v30 = vmul.f32 %v330_v28, %v311_v41  ;;  %v707_v41 = vmul.f32 %v574_v38, %v574_v38  ;;  %v5144_v19 = vpop.xlane.xlu2 %829  ;;  %v927_v26 = vsel %vm10583_vm0, %v716_v24, 0.0 }
 0x125   :  { %v333_v32 = vmax.f32 %v331_v30, 1e-15  ;;  %v900_v60 = vsel %vm10583_vm0, %v707_v41, 0.0  ;;  %vm332_vm11 = vcmp.gt.f32.partialorder %v331_v30, %v5131_v61 }
 0x127   :  { %4386 = vrcp.f32 %v333_v32  ;;  %v345_v42 = vand.u32 2147483648, %v333_v32  ;;  %v343_v46 = vand.u32 2147483647, %v333_v32  ;;  %vm339_vm8 = vweird.f32 %v333_v32 }
 0x129   :  { %v346_v7 = vor.u32 1.1754944e-38, %v345_v42  ;;  %vm344_vm10 = vcmp.eq.f32.partialorder %v343_v46, 8.507059e+37 }
 0x12b   :  { %v5150_v23 = vpop.xlane.xlu2 %838  ;;  %v5175_v41 = vpop.xlane.xlu0 %877 }
 0x12c   :  { %10789 = vst [vmem:[#allocation16_spill] sm:$0xff] %v5175_v41 }
 0x12d   :  { %v4387_v37 = vpop.eup %4386 }
 0x12e   :  { %v335_v62 = vmul.f32 %v4387_v37, %v333_v32  ;;  %vm340_vm7 = vweird.f32 %v4387_v37 }
 0x12f   :  { %vm341_vm9 = vmor %vm339_vm8, %vm340_vm7 }
 0x130   :  { %v336_v39 = vsub.f32 1.0, %v335_v62 }
 0x132   :  { %v337_v45 = vmul.f32 %v4387_v37, %v336_v39  ;;  %v5173_v39 = vmul.f32 %v5026_v36, %v4914_v4 }
 0x133   :  { %v5156_v29 = vpop.xlane.xlu2 %847  ;;  %v5202_v13 = vpop.xlane.xlu1 %871 }
 0x134   :  { %v338_v58 = vadd.f32 %v4387_v37, %v337_v45  ;;  %v114_v42 = vsub.f32 0.0, %v5173_v39  ;;  %10791 = vst [vmem:[#allocation18_spill] sm:$0xff] %v5202_v13 }
 0x136   :  { %883 = vadd.xlane.f32.xlu2 %v882_v31  ;;  %v342_v9 = vsel %vm341_vm9, %v4387_v37, %v338_v58  ;;  %v705_v37 = vmul.f32 %v572_v6, %v572_v6  ;;  %v115_v46 = vmul.f32 %v114_v42, %v5034_v40 }
 0x137   :  { %v347_v10 = vsel %vm344_vm10, %v346_v7, %v342_v9  ;;  %v5185_v7 = vmul.f32 %v5022_v2, %v4894_v1  ;;  %v575_v9 = vld [vmem:[%s10483_s6 + $0x108] sm:$0xff] }
 0x138   :  { %v348_v12 = vmul.f32 %v347_v10, %v5131_v61  ;;  %v894_v38 = vsel %vm10583_vm0, %v705_v37, 0.0  ;;  %v708_v10 = vmul.f32 %v575_v9, %v575_v9  ;;  %v567_v2 = vld [vmem:[%s10483_s6 + $0xc8] sm:$0xff] }
 0x139   :  { %v73_v36 = vmul.f32 %v5034_v40, %v5185_v7  ;;  %v578_v40 = vld [vmem:[%s10483_s6 + $0x120] sm:$0xff] }
 0x13a   :  { %v349_v14 = vsel %vm332_vm11, %v348_v12, 1.0  ;;  %v903_v1 = vsel %vm10583_vm0, %v708_v10, 0.0  ;;  %v700_v12 = vmul.f32 %v567_v2, %v567_v2  ;;  %v582_v2 = vld [vmem:[%s10483_s6 + $0x140] sm:$0xff] }
 0x13b   :  { %v350_v15 = vmul.f32 %v349_v14, %v330_v28  ;;  %v5138_v16 = vmul.f32 %v349_v14, %v331_v30  ;;  %v719_v28 = vmul.f32 %v586_v27, %v586_v27  ;;  %v569_v30 = vld [vmem:[%s10483_s6 + $0xd8] sm:$0xff] }
 0x13c   :  { %v702_v32 = vmul.f32 %v569_v30, %v569_v30  ;;  %v879_v14 = vsel %vm10583_vm0, %v700_v12, 0.0  ;;  %v573_v27 = vld [vmem:[%s10483_s6 + $0xf8] sm:$0xff]  ;;  %v715_v12 = vmul.f32 %v582_v2, %v582_v2 }
 0x13d   :  { %10788 = vst [vmem:[#allocation15_spill] sm:$0xff] %v5138_v16  ;;  %353 = vperm.xlu1 %4365, %v350_v15   ;;  %v936_v31 = vsel %vm10583_vm0, %v719_v28, 0.0  ;;  %v711_v15 = vmul.f32 %v578_v40, %v578_v40  ;;  %v706_v30 = vmul.f32 %v573_v27, %v573_v27 }
 0x13e   :  { %892 = vadd.xlane.f32.xlu2 %v891_v35  ;;  %v885_v33 = vsel %vm10583_vm0, %v702_v32, 0.0  ;;  %v5166_v35 = vpop.xlane.xlu2 %856  ;;  %v924_v40 = vsel %vm10583_vm0, %v715_v12, 0.0 }
 0x13f   :  { %886 = vadd.xlane.f32.xlu0 %v885_v33  ;;  %v912_v18 = vsel %vm10583_vm0, %v711_v15, 0.0  ;;  %v584_v33 = vld [vmem:[%s10483_s6 + $0x150] sm:$0xff]  ;;  %v897_v6 = vsel %vm10583_vm0, %v706_v30, 0.0 }
 0x140   :  { %v717_v37 = vmul.f32 %v584_v33, %v584_v33 }
 0x142   :  { %v930_v42 = vsel %vm10583_vm0, %v717_v37, 0.0 }
 0x146   :  { %901 = vadd.xlane.f32.xlu2 %v900_v60  ;;  %v5169_v62 = vpop.xlane.xlu2 %865 }
 0x147   :  { %895 = vadd.xlane.f32.xlu0 %v894_v38  ;;  %v576_v38 = vld [vmem:[%s10483_s6 + $0x110] sm:$0xff] }
 0x14e   :  { %910 = vadd.xlane.f32.xlu2 %v909_v17  ;;  %v5178_v45 = vpop.xlane.xlu2 %874  ;;  %v570_v17 = vld [vmem:[%s10483_s6 + $0xe0] sm:$0xff] }
 0x14f   :  { %10790 = vst [vmem:[#allocation17_spill] sm:$0xff] %v5178_v45  ;;  %904 = vadd.xlane.f32.xlu0 %v903_v1  ;;  %v703_v20 = vmul.f32 %v570_v17, %v570_v17 }
 0x151   :  { %v888_v24 = vsel %vm10583_vm0, %v703_v20, 0.0 }
 0x156   :  { %919 = vadd.xlane.f32.xlu2 %v918_v21 }
 0x157   :  { %913 = vadd.xlane.f32.xlu0 %v912_v18  ;;  %v122_v18 = vld [vmem:[%s10480_s3] sm:$0xff]  ;;  %s4337_s3 = sshll.u32 %s10486_s9, 4  ;;  %s4338_s3 = int_to_ptr.hbm [resolvable:$true] %s4337_s3 }
 0x15e   :  { %928 = vadd.xlane.f32.xlu2 %v927_v26  ;;  %v714_v26 = vmul.f32 %v581_v22, %v581_v22 }
 0x15f   :  { %v80_v4 = vpop.permute.xlu2 %79 }
 0x160   :  { %v5191_v8 = vadd.f32 %v80_v4, %v73_v36  ;;  %v921_v28 = vsel %vm10583_vm0, %v714_v26, 0.0  ;;  %v579_v36 = vld [vmem:[%s10483_s6 + $0x128] sm:$0xff] }
 0x161   :  { %922 = vadd.xlane.f32.xlu0 %v921_v28  ;;  %v712_v10 = vmul.f32 %v579_v36, %v579_v36 }
 0x163   :  { %v915_v1 = vsel %vm10583_vm0, %v712_v10, 0.0 }
 0x166   :  { %937 = vadd.xlane.f32.xlu2 %v936_v31 }
 0x169   :  { %931 = vadd.xlane.f32.xlu0 %v930_v42 }
 0x177   :  { %v5212_v21 = vpop.permute.xlu1 %65 }
 0x17f   :  { %v119_v58 = vpop.permute.xlu0 %118 }
 0x180   :  { %v5181_v60 = vadd.f32 %v119_v58, %v115_v46  ;;  %v709_v46 = vmul.f32 %v576_v38, %v576_v38 }
 0x182   :  { %125 = vrot.lane.b32.xlu1 %v5181_v60, %s4831_s13  ;;  %v906_v58 = vsel %vm10583_vm0, %v709_v46, 0.0  ;;  %v107_v46 = vmul.f32 %v5173_v39, %v4889_v0  ;;  %v590_v39 = vld [vmem:[%s10483_s6 + $0x180] sm:$0xff] }
 0x18a   :  { %141 = vrot.lane.b32.xlu1 %v5191_v8, %s4831_s13 }
 0x1af   :  { %v354_v31 = vpop.permute.xlu1 %353 }
 0x1b0   :  { %v5223_v32 = vmul.f32 %v354_v31, %v4907_v3  ;;  %v587_v3 = vld [vmem:[%s10483_s6 + $0x168] sm:$0xff] }
 0x1b1   :  { %v720_v4 = vmul.f32 %v587_v3, %v587_v3  ;;  %v589_v3 = vld [vmem:[%s10483_s6 + $0x178] sm:$0xff] }
 0x1b2   :  { %10792 = vst [vmem:[#allocation19_spill] sm:$0xff] %v5223_v32  ;;  %362 = vrot.lane.b32.xlu2 %v5223_v32, %s4832_s14 }
 0x1b3   :  { %v939_v9 = vsel %vm10583_vm0, %v720_v4, 0.0  ;;  %v722_v4 = vmul.f32 %v589_v3, %v589_v3 }
 0x1b4   :  { %880 = vadd.xlane.f32.xlu1 %v879_v14  ;;  %940 = vadd.xlane.f32.xlu0 %v939_v9  ;;  %v585_v14 = vld [vmem:[%s10483_s6 + $0x158] sm:$0xff] }
 0x1b5   :  { %v718_v15 = vmul.f32 %v585_v14, %v585_v14  ;;  %v945_v10 = vsel %vm10583_vm0, %v722_v4, 0.0 }
 0x1b7   :  { %v933_v17 = vsel %vm10583_vm0, %v718_v15, 0.0  ;;  %v723_v15 = vmul.f32 %v590_v39, %v590_v39 }
 0x1bc   :  { %889 = vadd.xlane.f32.xlu1 %v888_v24  ;;  %v111_v24 = vpop.permute.xlu2 %110 }
 0x1c4   :  { %898 = vadd.xlane.f32.xlu1 %v897_v6  ;;  %v5257_v28 = vpop.xlane.xlu2 %883 }
 0x1c5   :  { %10793 = vst [vmem:[#allocation20_spill] sm:$0xff] %v5257_v28 }
 0x1cc   :  { %907 = vadd.xlane.f32.xlu1 %v906_v58  ;;  %v5259_v30 = vpop.xlane.xlu2 %892  ;;  %v5278_v58 = vadd.f32 %v111_v24, %v107_v46  ;;  %v588_v24 = vld [vmem:[%s10483_s6 + $0x170] sm:$0xff] }
 0x1cd   :  { %10794 = vst [vmem:[#allocation21_spill] sm:$0xff] %v5259_v30  ;;  %v721_v3 = vmul.f32 %v588_v24, %v588_v24  ;;  %v599_v24 = vld [vmem:[%s10483_s6 + $0x1c8] sm:$0xff]  ;;  %v5730_v30 = vmax.f32 %v5128_v49, 1e-30 }
 0x1ce   :  { %v123_v36 = vmul.f32 %v122_v18, %v5278_v58 }
 0x1d4   :  { %916 = vadd.xlane.f32.xlu1 %v915_v1  ;;  %v5261_v31 = vpop.xlane.xlu2 %901  ;;  %v62_v1 = vmul.f32 %v5185_v7, %v4889_v0 }
 0x1d5   :  { %10795 = vst [vmem:[#allocation22_spill] sm:$0xff] %v5261_v31 }
 0x1d6   :  { %v5285_v12 = vsub.f32 %v62_v1, %v5212_v21  ;;  %v591_v1 = vld [vmem:[%s10483_s6 + $0x188] sm:$0xff] }
 0x1d8   :  { %v139_v0 = vmul.f32 %v122_v18, %v5285_v12 }
 0x1dc   :  { %925 = vadd.xlane.f32.xlu1 %v924_v40  ;;  %v5263_v33 = vpop.xlane.xlu2 %910  ;;  %v592_v40 = vld [vmem:[%s10483_s6 + $0x190] sm:$0xff] }
 0x1dd   :  { %10796 = vst [vmem:[#allocation23_spill] sm:$0xff] %v5263_v33 }
 0x1e4   :  { %934 = vadd.xlane.f32.xlu1 %v933_v17  ;;  %v5265_v6 = vpop.xlane.xlu2 %919  ;;  %v725_v17 = vmul.f32 %v592_v40, %v592_v40  ;;  %v596_v40 = vld [vmem:[%s10483_s6 + $0x1b0] sm:$0xff] }
 0x1e5   :  { %10797 = vst [vmem:[#allocation24_spill] sm:$0xff] %v5265_v6 }
 0x1ec   :  { %v5267_v37 = vpop.xlane.xlu2 %928 }
 0x1ed   :  { %10798 = vst [vmem:[#allocation25_spill] sm:$0xff] %v5267_v37 }
 0x1f4   :  { %v126_v20 = vpop.permute.xlu1 %125  ;;  %v5269_v38 = vpop.xlane.xlu2 %937 }
 0x1f5   :  { %v128_v22 = vmul.f32 %v126_v20, %v122_v18  ;;  %10799 = vst [vmem:[#allocation26_spill] sm:$0xff] %v5269_v38  ;;  %v954_v20 = vsel %vm10583_vm0, %v725_v17, 0.0 }
 0x1f7   :  { %130 = vrot.lane.b32.xlu2 %v128_v22, %s4832_s14  ;;  %v595_v22 = vld [vmem:[%s10483_s6 + $0x1a8] sm:$0xff] }
 0x1f8   :  { %v728_v46 = vmul.f32 %v595_v22, %v595_v22 }
 0x1fc   :  { %v142_v26 = vpop.permute.xlu1 %141 }
 0x1fd   :  { %v144_v27 = vmul.f32 %v142_v26, %v122_v18  ;;  %v948_v26 = vsel %vm10583_vm0, %v723_v15, 0.0  ;;  %v593_v18 = vld [vmem:[%s10483_s6 + $0x198] sm:$0xff]  ;;  %v729_v15 = vmul.f32 %v596_v40, %v596_v40  ;;  %v607_v40 = vld [vmem:[%s10483_s6 + $0x208] sm:$0xff] }
 0x1fe   :  { %v726_v4 = vmul.f32 %v593_v18, %v593_v18 }
 0x1ff   :  { %146 = vrot.lane.b32.xlu2 %v144_v27, %s4832_s14 }
 0x20c   :  { %v5271_v42 = vpop.permute.xlu2 %362 }
 0x20d   :  { %10800 = vst [vmem:[#allocation27_spill] sm:$0xff] %v5271_v42 }
 0x228   :  { %946 = vadd.xlane.f32.xlu2 %v945_v10  ;;  %v942_v10 = vsel %vm10583_vm0, %v721_v3, 0.0 }
 0x230   :  { %955 = vadd.xlane.f32.xlu2 %v954_v20  ;;  %v594_v20 = vld [vmem:[%s10483_s6 + $0x1a0] sm:$0xff] }
 0x251   :  { %v131_v9 = vpop.permute.xlu2 %130 }
 0x252   :  { %v133_v2 = vadd.f32 %v131_v9, %v123_v36  ;;  %v963_v36 = vsel %vm10583_vm0, %v728_v46, 0.0  ;;  %v598_v9 = vld [vmem:[%s10483_s6 + $0x1c0] sm:$0xff]  ;;  %v604_v46 = vld [vmem:[%s10483_s6 + $0x1f0] sm:$0xff] }
 0x253   :  { %964 = vadd.xlane.f32.xlu2 %v963_v36  ;;  %v731_v39 = vmul.f32 %v598_v9, %v598_v9  ;;  %v737_v9 = vmul.f32 %v604_v46, %v604_v46 }
 0x254   :  { %v135_v14 = vsel %vm10584_vm1, %v133_v2, 0.0  ;;  %v957_v2 = vsel %vm10583_vm0, %v726_v4, 0.0  ;;  %v597_v4 = vld [vmem:[%s10483_s6 + $0x1b8] sm:$0xff] }
 0x255   :  { %136 = vadd.xlane.f32.xlu0 %v135_v14  ;;  %v724_v14 = vmul.f32 %v591_v1, %v591_v1  ;;  %v972_v17 = vsel %vm10583_vm0, %v731_v39, 0.0  ;;  %v730_v1 = vmul.f32 %v597_v4, %v597_v4  ;;  %v990_v39 = vsel %vm10583_vm0, %v737_v9, 0.0 }
 0x259   :  { %v147_v7 = vpop.permute.xlu2 %146 }
 0x25a   :  { %v149_v21 = vadd.f32 %v147_v7, %v139_v0  ;;  %v601_v0 = vld [vmem:[%s10483_s6 + $0x1d8] sm:$0xff]  ;;  %v951_v7 = vsel %vm10583_vm0, %v724_v14, 0.0  ;;  %v969_v14 = vsel %vm10583_vm0, %v730_v1, 0.0 }
 0x25b   :  { %973 = vadd.xlane.f32.xlu2 %v972_v17  ;;  %v734_v22 = vmul.f32 %v601_v0, %v601_v0  ;;  %v740_v0 = vmul.f32 %v607_v40, %v607_v40 }
 0x25c   :  { %v150_v27 = vsel %vm10584_vm1, %v149_v21, 0.0  ;;  %v966_v21 = vsel %vm10583_vm0, %v729_v15, 0.0  ;;  %v600_v15 = vld [vmem:[%s10483_s6 + $0x1d0] sm:$0xff] }
 0x25d   :  { %151 = vadd.xlane.f32.xlu1 %v150_v27  ;;  %949 = vadd.xlane.f32.xlu0 %v948_v26  ;;  %v727_v26 = vmul.f32 %v594_v20, %v594_v20  ;;  %v732_v27 = vmul.f32 %v599_v24, %v599_v24  ;;  %v981_v18 = vsel %vm10583_vm0, %v734_v22, 0.0  ;;  %v733_v20 = vmul.f32 %v600_v15, %v600_v15  ;;  %v610_v24 = vld [vmem:[%s10483_s6 + $0x220] sm:$0xff] }
 0x25e   :  { %v999_v22 = vsel %vm10583_vm0, %v740_v0, 0.0  ;;  %v743_v46 = vmul.f32 %v610_v24, %v610_v24  ;;  %v609_v24 = vld [vmem:[%s10483_s6 + $0x218] sm:$0xff] }
 0x25f   :  { %v960_v3 = vsel %vm10583_vm0, %v727_v26, 0.0  ;;  %v975_v36 = vsel %vm10583_vm0, %v732_v27, 0.0  ;;  %v978_v26 = vsel %vm10583_vm0, %v733_v20, 0.0  ;;  %v603_v27 = vld [vmem:[%s10483_s6 + $0x1e8] sm:$0xff]  ;;  %v616_v20 = vld [vmem:[%s10483_s6 + $0x250] sm:$0xff] }
 0x260   :  { %v736_v4 = vmul.f32 %v603_v27, %v603_v27  ;;  %v1008_v9 = vsel %vm10583_vm0, %v743_v46, 0.0  ;;  %v749_v27 = vmul.f32 %v616_v20, %v616_v20  ;;  %v742_v46 = vmul.f32 %v609_v24, %v609_v24  ;;  %v622_v20 = vld [vmem:[%s10483_s6 + $0x280] sm:$0xff] }
 0x262   :  { %v987_v1 = vsel %vm10583_vm0, %v736_v4, 0.0  ;;  %v1026_v4 = vsel %vm10583_vm0, %v749_v27, 0.0 }
 0x263   :  { %982 = vadd.xlane.f32.xlu2 %v981_v18 }
 0x265   :  { %943 = vadd.xlane.f32.xlu1 %v942_v10  ;;  %958 = vadd.xlane.f32.xlu0 %v957_v2  ;;  %v602_v10 = vld [vmem:[%s10483_s6 + $0x1e0] sm:$0xff] }
 0x266   :  { %v735_v2 = vmul.f32 %v602_v10, %v602_v10  ;;  %v613_v10 = vld [vmem:[%s10483_s6 + $0x238] sm:$0xff] }
 0x267   :  { %v746_v40 = vmul.f32 %v613_v10, %v613_v10  ;;  %v1005_v10 = vsel %vm10583_vm0, %v742_v46, 0.0  ;;  %v620_v46 = vld [vmem:[%s10483_s6 + $0x270] sm:$0xff] }
 0x268   :  { %v984_v17 = vsel %vm10583_vm0, %v735_v2, 0.0  ;;  %v606_v2 = vld [vmem:[%s10483_s6 + $0x200] sm:$0xff] }
 0x269   :  { %v739_v15 = vmul.f32 %v606_v2, %v606_v2 }
 0x26b   :  { %991 = vadd.xlane.f32.xlu2 %v990_v39 }
 0x26d   :  { %952 = vadd.xlane.f32.xlu1 %v951_v7  ;;  %967 = vadd.xlane.f32.xlu0 %v966_v21  ;;  %v605_v7 = vld [vmem:[%s10483_s6 + $0x1f8] sm:$0xff] }
 0x26e   :  { %v738_v21 = vmul.f32 %v605_v7, %v605_v7  ;;  %v1017_v7 = vsel %vm10583_vm0, %v746_v40, 0.0  ;;  %v617_v40 = vld [vmem:[%s10483_s6 + $0x258] sm:$0xff] }
 0x270   :  { %v993_v18 = vsel %vm10583_vm0, %v738_v21, 0.0  ;;  %v996_v21 = vsel %vm10583_vm0, %v739_v15, 0.0 }
 0x273   :  { %1000 = vadd.xlane.f32.xlu2 %v999_v22  ;;  %v5386_v22 = vpop.xlane.xlu0 %886 }
 0x274   :  { %10802 = vst [vmem:[#allocation29_spill] sm:$0xff] %v5386_v22 }
 0x275   :  { %961 = vadd.xlane.f32.xlu1 %v960_v3  ;;  %976 = vadd.xlane.f32.xlu0 %v975_v36  ;;  %v608_v3 = vld [vmem:[%s10483_s6 + $0x210] sm:$0xff] }
 0x276   :  { %v741_v36 = vmul.f32 %v608_v3, %v608_v3 }
 0x278   :  { %v1002_v39 = vsel %vm10583_vm0, %v741_v36, 0.0  ;;  %v619_v36 = vld [vmem:[%s10483_s6 + $0x268] sm:$0xff] }
 0x27b   :  { %1009 = vadd.xlane.f32.xlu2 %v1008_v9 }
 0x27d   :  { %970 = vadd.xlane.f32.xlu1 %v969_v14  ;;  %985 = vadd.xlane.f32.xlu0 %v984_v17  ;;  %v611_v14 = vld [vmem:[%s10483_s6 + $0x228] sm:$0xff]  ;;  %v5379_v17 = vpop.xlane.xlu1 %880 }
 0x27e   :  { %10801 = vst [vmem:[#allocation28_spill] sm:$0xff] %v5379_v17  ;;  %v744_v0 = vmul.f32 %v611_v14, %v611_v14  ;;  %v5409_v14 = vpop.xlane.xlu0 %895 }
 0x27f   :  { %10804 = vst [vmem:[#allocation31_spill] sm:$0xff] %v5409_v14 }
 0x283   :  { %1018 = vadd.xlane.f32.xlu2 %v1017_v7 }
 0x285   :  { %979 = vadd.xlane.f32.xlu1 %v978_v26  ;;  %994 = vadd.xlane.f32.xlu0 %v993_v18  ;;  %v1011_v26 = vsel %vm10583_vm0, %v744_v0, 0.0  ;;  %v614_v18 = vld [vmem:[%s10483_s6 + $0x240] sm:$0xff]  ;;  %v5399_v9 = vpop.xlane.xlu1 %889  ;;  %v750_v0 = vmul.f32 %v617_v40, %v617_v40 }
 0x286   :  { %v747_v3 = vmul.f32 %v614_v18, %v614_v18  ;;  %10803 = vst [vmem:[#allocation30_spill] sm:$0xff] %v5399_v9  ;;  %v755_v18 = vmul.f32 %v622_v20, %v622_v20 }
 0x287   :  { %v1029_v27 = vsel %vm10583_vm0, %v750_v0, 0.0  ;;  %v623_v0 = vld [vmem:[%s10483_s6 + $0x288] sm:$0xff] }
 0x288   :  { %v1020_v2 = vsel %vm10583_vm0, %v747_v3, 0.0 }
 0x28b   :  { %1027 = vadd.xlane.f32.xlu2 %v1026_v4  ;;  %v5425_v4 = vpop.xlane.xlu0 %904 }
 0x28c   :  { %10806 = vst [vmem:[#allocation33_spill] sm:$0xff] %v5425_v4 }
 0x28d   :  { %988 = vadd.xlane.f32.xlu1 %v987_v1  ;;  %1003 = vadd.xlane.f32.xlu0 %v1002_v39  ;;  %v612_v1 = vld [vmem:[%s10483_s6 + $0x230] sm:$0xff]  ;;  %v752_v39 = vmul.f32 %v619_v36, %v619_v36  ;;  %v5416_v24 = vpop.xlane.xlu1 %898  ;;  %v753_v36 = vmul.f32 %v620_v46, %v620_v46  ;;  %v621_v46 = vld [vmem:[%s10483_s6 + $0x278] sm:$0xff] }
 0x28e   :  { %v745_v15 = vmul.f32 %v612_v1, %v612_v1  ;;  %10805 = vst [vmem:[#allocation32_spill] sm:$0xff] %v5416_v24 }
 0x28f   :  { %v1035_v7 = vsel %vm10583_vm0, %v752_v39, 0.0  ;;  %v618_v39 = vld [vmem:[%s10483_s6 + $0x260] sm:$0xff]  ;;  %v1038_v40 = vsel %vm10583_vm0, %v753_v36, 0.0 }
 0x290   :  { %v751_v20 = vmul.f32 %v618_v39, %v618_v39  ;;  %v626_v36 = vld [vmem:[%s10483_s6 + $0x2a0] sm:$0xff] }
 0x293   :  { %1036 = vadd.xlane.f32.xlu2 %v1035_v7 }
 0x295   :  { %997 = vadd.xlane.f32.xlu1 %v996_v21  ;;  %1012 = vadd.xlane.f32.xlu0 %v1011_v26  ;;  %v1014_v21 = vsel %vm10583_vm0, %v745_v15, 0.0  ;;  %v615_v26 = vld [vmem:[%s10483_s6 + $0x248] sm:$0xff]  ;;  %v5439_v7 = vpop.xlane.xlu1 %907 }
 0x296   :  { %v748_v3 = vmul.f32 %v615_v26, %v615_v26  ;;  %10807 = vst [vmem:[#allocation34_spill] sm:$0xff] %v5439_v7  ;;  %v756_v26 = vmul.f32 %v623_v0, %v623_v0  ;;  %v10841_v7 = vlaneseq }
 0x298   :  { %v1023_v1 = vsel %vm10583_vm0, %v748_v3, 0.0  ;;  %v1047_v3 = vsel %vm10583_vm0, %v756_v26, 0.0 }
 0x29d   :  { %1006 = vadd.xlane.f32.xlu1 %v1005_v10  ;;  %1021 = vadd.xlane.f32.xlu0 %v1020_v2  ;;  %v1044_v10 = vsel %vm10583_vm0, %v755_v18, 0.0  ;;  %v625_v2 = vld [vmem:[%s10483_s6 + $0x298] sm:$0xff]  ;;  %v1032_v18 = vsel %vm10583_vm0, %v751_v20, 0.0 }
 0x29e   :  { %1045 = vadd.xlane.f32.xlu2 %v1044_v10  ;;  %v758_v15 = vmul.f32 %v625_v2, %v625_v2  ;;  %v754_v10 = vmul.f32 %v621_v46, %v621_v46  ;;  %v759_v2 = vmul.f32 %v626_v36, %v626_v36  ;;  %v627_v46 = vld [vmem:[%s10483_s6 + $0x2a8] sm:$0xff]  ;;  %v629_v36 = vld [vmem:[%s10483_s6 + $0x2b8] sm:$0xff] }
 0x2a0   :  { %v1056_v0 = vsel %vm10583_vm0, %v759_v2, 0.0  ;;  %v762_v2 = vmul.f32 %v629_v36, %v629_v36 }
 0x2a5   :  { %1015 = vadd.xlane.f32.xlu1 %v1014_v21  ;;  %1030 = vadd.xlane.f32.xlu0 %v1029_v27  ;;  %v5441_v21 = vpop.xlane.xlu0 %913  ;;  %v1053_v27 = vsel %vm10583_vm0, %v758_v15, 0.0  ;;  %v624_v15 = vld [vmem:[%s10483_s6 + $0x290] sm:$0xff] }
 0x2a6   :  { %10808 = vst [vmem:[#allocation35_spill] sm:$0xff] %v5441_v21  ;;  %1054 = vadd.xlane.f32.xlu2 %v1053_v27  ;;  %v757_v20 = vmul.f32 %v624_v15, %v624_v15 }
 0x2a8   :  { %v1050_v27 = vsel %vm10583_vm0, %v757_v20, 0.0 }
 0x2ad   :  { %1024 = vadd.xlane.f32.xlu1 %v1023_v1  ;;  %1039 = vadd.xlane.f32.xlu0 %v1038_v40  ;;  %v5452_v1 = vpop.xlane.xlu1 %916  ;;  %v5454_v39 = vpop.xlane.xlu0 %922  ;;  %v1041_v40 = vsel %vm10583_vm0, %v754_v10, 0.0 }
 0x2ae   :  { %10809 = vst [vmem:[#allocation36_spill] sm:$0xff] %v5452_v1 }
 0x2af   :  { %10810 = vst [vmem:[#allocation37_spill] sm:$0xff] %v5454_v39 }
 0x2b5   :  { %1033 = vadd.xlane.f32.xlu1 %v1032_v18  ;;  %1048 = vadd.xlane.f32.xlu0 %v1047_v3  ;;  %v5461_v26 = vpop.xlane.xlu1 %925  ;;  %v5464_v18 = vpop.xlane.xlu0 %931  ;;  %v628_v3 = vld [vmem:[%s10483_s6 + $0x2b0] sm:$0xff] }
 0x2b6   :  { %10811 = vst [vmem:[#allocation38_spill] sm:$0xff] %v5461_v26  ;;  %v761_v10 = vmul.f32 %v628_v3, %v628_v3  ;;  %v630_v3 = vld [vmem:[%s10483_s6 + $0x2c0] sm:$0xff] }
 0x2b7   :  { %10812 = vst [vmem:[#allocation39_spill] sm:$0xff] %v5464_v18 }
 0x2b8   :  { %v1062_v15 = vsel %vm10583_vm0, %v761_v10, 0.0 }
 0x2b9   :  { %1063 = vadd.xlane.f32.xlu2 %v1062_v15 }
 0x2bd   :  { %1042 = vadd.xlane.f32.xlu1 %v1041_v40  ;;  %1057 = vadd.xlane.f32.xlu0 %v1056_v0  ;;  %v760_v40 = vmul.f32 %v627_v46, %v627_v46  ;;  %v1065_v0 = vsel %vm10583_vm0, %v762_v2, 0.0  ;;  %v5478_v42 = vpop.xlane.xlu1 %934  ;;  %v5480_v32 = vpop.xlane.xlu0 %940 }
 0x2be   :  { %10813 = vst [vmem:[#allocation40_spill] sm:$0xff] %v5478_v42 }
 0x2bf   :  { %v1059_v20 = vsel %vm10583_vm0, %v760_v40, 0.0  ;;  %10814 = vst [vmem:[#allocation41_spill] sm:$0xff] %v5480_v32 }
 0x2c5   :  { %1051 = vadd.xlane.f32.xlu1 %v1050_v27  ;;  %1066 = vadd.xlane.f32.xlu0 %v1065_v0  ;;  %v763_v27 = vmul.f32 %v630_v3, %v630_v3 }
 0x2c7   :  { %v1068_v10 = vsel %vm10583_vm0, %v763_v27, 0.0 }
 0x2c8   :  { %v137_v46 = vpop.xlane.xlu0 %136 }
 0x2c9   :  { %v138_v2 = vmul.f32 0.17677669, %v137_v46  ;;  %v5488_v46 = vpop.xlane.xlu2 %946 }
 0x2ca   :  { %10816 = vst [vmem:[#allocation43_spill] sm:$0xff] %v5488_v46 }
 0x2cd   :  { %1060 = vadd.xlane.f32.xlu1 %v1059_v20 }
 0x2d0   :  { %v152_v61 = vpop.xlane.xlu1 %151 }
 0x2d1   :  { %v153_v36 = vmul.f32 0.17677669, %v152_v61 }
 0x2d3   :  { %v154_v15 = vmax.f32 %v138_v2, %v153_v36 }
 0x2d5   :  { %1069 = vadd.xlane.f32.xlu1 %v1068_v10  ;;  %v155_v0 = vsub.f32 %v138_v2, %v154_v15  ;;  %v158_v40 = vsub.f32 %v153_v36, %v154_v15 }
 0x2d7   :  { %v156_v44 = vmul.f32 1.442695, %v155_v0  ;;  %v159_v42 = vmul.f32 1.442695, %v158_v40 }
 0x2d8   :  { %v5486_v3 = vpop.xlane.xlu1 %943 }
 0x2d9   :  { %4388 = vpow2.f32 %v156_v44  ;;  %10815 = vst [vmem:[#allocation42_spill] sm:$0xff] %v5486_v3 }
 0x2da   :  { %4390 = vpow2.f32 %v159_v42 }
 0x2df   :  { %v4389_v20 = vpop.eup %4388 }
 0x2e0   :  { %v4391_v32 = vpop.eup %4390  ;;  %v5490_v10 = vpop.xlane.xlu1 %952 }
 0x2e1   :  { %v161_v26 = vadd.f32 %v4391_v32, %v4389_v20  ;;  %10817 = vst [vmem:[#allocation44_spill] sm:$0xff] %v5490_v10  ;;  %v5498_v10 = vpop.xlane.xlu0 %949 }
 0x2e2   :  { %10819 = vst [vmem:[#allocation46_spill] sm:$0xff] %v5498_v10 }
 0x2e3   :  { %4392 = vrcp.f32 %v161_v26  ;;  %vm167_vm13 = vweird.f32 %v161_v26  ;;  %v171_v36 = vand.u32 2147483647, %v161_v26  ;;  %v173_v44 = vand.u32 2147483648, %v161_v26 }
 0x2e5   :  { %v174_v2 = vor.u32 1.1754944e-38, %v173_v44  ;;  %vm172_vm15 = vcmp.eq.f32.partialorder %v171_v36, 8.507059e+37 }
 0x2e9   :  { %v4393_v18 = vpop.eup %4392 }
 0x2ea   :  { %v163_v1 = vmul.f32 %v4393_v18, %v161_v26  ;;  %vm168_vm12 = vweird.f32 %v4393_v18  ;;  %v5500_v26 = vpop.xlane.xlu1 %961 }
 0x2eb   :  { %vm169_vm14 = vmor %vm167_vm13, %vm168_vm12  ;;  %10820 = vst [vmem:[#allocation47_spill] sm:$0xff] %v5500_v26 }
 0x2ec   :  { %v164_v61 = vsub.f32 1.0, %v163_v1 }
 0x2ee   :  { %v165_v39 = vmul.f32 %v4393_v18, %v164_v61 }
 0x2f0   :  { %v166_v27 = vadd.f32 %v4393_v18, %v165_v39  ;;  %v5494_v39 = vpop.xlane.xlu2 %955 }
 0x2f1   :  { %10818 = vst [vmem:[#allocation45_spill] sm:$0xff] %v5494_v39  ;;  %v5666_v39 = vmax.f32 %v5122_v34, 1e-30 }
 0x2f2   :  { %v170_v42 = vsel %vm169_vm14, %v4393_v18, %v166_v27  ;;  %v632_v18 = vld [vmem:[%s10483_s6 + $0x2d0] sm:$0xff] }
 0x2f3   :  { %v175_v15 = vsel %vm172_vm15, %v174_v2, %v170_v42  ;;  %v635_v2 = vld [vmem:[%s10483_s6 + $0x2e8] sm:$0xff] }
 0x2f4   :  { %v177_v0 = vmul.f32 %v4389_v20, %v175_v15  ;;  %v178_v40 = vmul.f32 %v4391_v32, %v175_v15  ;;  %v636_v15 = vld [vmem:[%s10483_s6 + $0x2f0] sm:$0xff] }
 0x2f6   :  { %v179_v3 = vmul.f32 %v177_v0, %v5278_v58  ;;  %v182_v1 = vmul.f32 %v177_v0, %v5181_v60  ;;  %v180_v61 = vmul.f32 %v178_v40, %v5285_v12  ;;  %v183_v46 = vmul.f32 %v178_v40, %v5191_v8  ;;  %v633_v60 = vld [vmem:[%s10483_s6 + $0x2d8] sm:$0xff] }
 0x2f7   :  { %v765_v12 = vmul.f32 %v632_v18, %v632_v18  ;;  %v766_v27 = vmul.f32 %v633_v60, %v633_v60  ;;  %v768_v18 = vmul.f32 %v635_v2, %v635_v2  ;;  %v769_v60 = vmul.f32 %v636_v15, %v636_v15 }
 0x2f8   :  { %v5505_v20 = vadd.f32 %v180_v61, %v179_v3  ;;  %v5507_v32 = vadd.f32 %v183_v46, %v182_v1  ;;  %v631_v3 = vld [vmem:[%s10483_s6 + $0x2c8] sm:$0xff]  ;;  %v5528_v0 = vpop.xlane.xlu2 %964  ;;  %v5530_v1 = vpop.xlane.xlu0 %958 }
 0x2f9   :  { %v1074_v44 = vsel %vm10583_vm0, %v765_v12, 0.0  ;;  %v1077_v46 = vsel %vm10583_vm0, %v766_v27, 0.0  ;;  %10823 = vst [vmem:[#allocation50_spill] sm:$0xff] %v5528_v0  ;;  %v764_v40 = vmul.f32 %v631_v3, %v631_v3  ;;  %v5532_v61 = vpop.xlane.xlu1 %970  ;;  %v634_v27 = vld [vmem:[%s10483_s6 + $0x2e0] sm:$0xff] }
 0x2fa   :  { %10821 = vst [vmem:[#allocation48_spill] sm:$0xff] %v5505_v20  ;;  %v223_v58 = vmul.f32 %v5505_v20, %v5505_v20  ;;  %v224_v8 = vmul.f32 %v5507_v32, %v5507_v32  ;;  %1075 = vadd.xlane.f32.xlu0 %v1074_v44  ;;  %1078 = vadd.xlane.f32.xlu1 %v1077_v46  ;;  %v639_v44 = vld [vmem:[%s10483_s6 + $0x308] sm:$0xff] }
 0x2fb   :  { %10822 = vst [vmem:[#allocation49_spill] sm:$0xff] %v5507_v32  ;;  %v1071_v12 = vsel %vm10583_vm0, %v764_v40, 0.0  ;;  %v767_v3 = vmul.f32 %v634_v27, %v634_v27  ;;  %v772_v2 = vmul.f32 %v639_v44, %v639_v44 }
 0x2fc   :  { %v225_v36 = vadd.f32 %v224_v8, %v223_v58  ;;  %10824 = vst [vmem:[#allocation51_spill] sm:$0xff] %v5530_v1  ;;  %v1083_v58 = vsel %vm10583_vm0, %v768_v18, 0.0  ;;  %v1086_v8 = vsel %vm10583_vm0, %v769_v60, 0.0  ;;  %v637_v60 = vld [vmem:[%s10483_s6 + $0x2f8] sm:$0xff] }
 0x2fd   :  { %10825 = vst [vmem:[#allocation52_spill] sm:$0xff] %v5532_v61  ;;  %v1080_v18 = vsel %vm10583_vm0, %v767_v3, 0.0  ;;  %v640_v3 = vld [vmem:[%s10483_s6 + $0x310] sm:$0xff] }
 0x2fe   :  { %v226_v42 = vsel %vm10584_vm1, %v225_v36, 0.0  ;;  %v638_v36 = vld [vmem:[%s10483_s6 + $0x300] sm:$0xff]  ;;  %vm10600_vm1 = vcmask 786112  }
 0x2ff   :  { %227 = vadd.xlane.f32.xlu2 %v226_v42  ;;  %v771_v42 = vmul.f32 %v638_v36, %v638_v36 }
 0x300   :  { %v5546_v46 = vpop.xlane.xlu2 %973  ;;  %v5548_v15 = vpop.xlane.xlu0 %967 }
 0x301   :  { %10826 = vst [vmem:[#allocation53_spill] sm:$0xff] %v5546_v46  ;;  %v5550_v40 = vpop.xlane.xlu1 %979  ;;  %v649_v46 = vld [vmem:[%s10483_s6 + $0x358] sm:$0xff] }
 0x302   :  { %1084 = vadd.xlane.f32.xlu0 %v1083_v58  ;;  %1087 = vadd.xlane.f32.xlu1 %v1086_v8  ;;  %10827 = vst [vmem:[#allocation54_spill] sm:$0xff] %v5548_v15  ;;  %v1092_v58 = vsel %vm10583_vm0, %v771_v42, 0.0  ;;  %v1095_v8 = vsel %vm10583_vm0, %v772_v2, 0.0  ;;  %v641_v42 = vld [vmem:[%s10483_s6 + $0x318] sm:$0xff]  ;;  %v642_v2 = vld [vmem:[%s10483_s6 + $0x320] sm:$0xff]  ;;  %v782_v10 = vmul.f32 %v649_v46, %v649_v46 }
 0x303   :  { %10828 = vst [vmem:[#allocation55_spill] sm:$0xff] %v5550_v40 }
 0x307   :  { %1072 = vadd.xlane.f32.xlu2 %v1071_v12  ;;  %v770_v12 = vmul.f32 %v637_v60, %v637_v60  ;;  %v774_v60 = vmul.f32 %v641_v42, %v641_v42 }
 0x308   :  { %v5558_v27 = vpop.xlane.xlu2 %982  ;;  %v5561_v44 = vpop.xlane.xlu0 %976 }
 0x309   :  { %10829 = vst [vmem:[#allocation56_spill] sm:$0xff] %v5558_v27  ;;  %v1089_v36 = vsel %vm10583_vm0, %v770_v12, 0.0  ;;  %v5563_v32 = vpop.xlane.xlu1 %988  ;;  %v643_v27 = vld [vmem:[%s10483_s6 + $0x328] sm:$0xff] }
 0x30a   :  { %1093 = vadd.xlane.f32.xlu0 %v1092_v58  ;;  %1096 = vadd.xlane.f32.xlu1 %v1095_v8  ;;  %10830 = vst [vmem:[#allocation57_spill] sm:$0xff] %v5561_v44  ;;  %v775_v58 = vmul.f32 %v642_v2, %v642_v2  ;;  %v1101_v8 = vsel %vm10583_vm0, %v774_v60, 0.0 }
 0x30b   :  { %10831 = vst [vmem:[#allocation58_spill] sm:$0xff] %v5563_v32 }
 0x30c   :  { %v1104_v12 = vsel %vm10583_vm0, %v775_v58, 0.0 }
 0x30f   :  { %1081 = vadd.xlane.f32.xlu2 %v1080_v18  ;;  %v773_v18 = vmul.f32 %v640_v3, %v640_v3  ;;  %v645_v3 = vld [vmem:[%s10483_s6 + $0x338] sm:$0xff] }
 0x310   :  { %v5577_v32 = vpop.xlane.xlu2 %991  ;;  %v5588_v42 = vpop.xlane.xlu0 %985  ;;  %v778_v58 = vmul.f32 %v645_v3, %v645_v3  ;;  %v5614_v3 = vmax.f32 %v5047_v48, 1e-30 }
 0x311   :  { %v1098_v20 = vsel %vm10583_vm0, %v773_v18, 0.0  ;;  %10832 = vst [vmem:[#allocation59_spill] sm:$0xff] %v5577_v32  ;;  %v5590_v2 = vpop.xlane.xlu1 %997  ;;  %v776_v18 = vmul.f32 %v643_v27, %v643_v27  ;;  %v5597_v32 = vmax.f32 %v5097_v59, 1e-30 }
 0x312   :  { %1102 = vadd.xlane.f32.xlu0 %v1101_v8  ;;  %1105 = vadd.xlane.f32.xlu1 %v1104_v12  ;;  %10833 = vst [vmem:[#allocation60_spill] sm:$0xff] %v5588_v42  ;;  %v5593_v8 = vmax.f32 %v5039_v43, 1e-30  ;;  %v1113_v44 = vsel %vm10583_vm0, %v778_v58, 0.0  ;;  %v5602_v42 = vmax.f32 %v5045_v47, 1e-30  ;;  %vm1362_vm10 = vweird.f32 %v5614_v3 }
 0x313   :  { %10834 = vst [vmem:[#allocation61_spill] sm:$0xff] %v5590_v2  ;;  %v1107_v12 = vsel %vm10583_vm0, %v776_v18, 0.0  ;;  %v5623_v18 = vmax.f32 %v5112_v25, 1e-30  ;;  %vm1332_vm3 = vweird.f32 %v5597_v32 }
 0x314   :  { %4394 = vrsqrt.f32 %v5593_v8  ;;  %vm1322_vm2 = vweird.f32 %v5593_v8  ;;  %vm1392_vm7 = vweird.f32 %v5602_v42 }
 0x315   :  { %4396 = vrsqrt.f32 %v5597_v32  ;;  %vm1342_vm12 = vweird.f32 %v5623_v18 }
 0x316   :  { %4398 = vrsqrt.f32 %v5602_v42 }
 0x317   :  { %1090 = vadd.xlane.f32.xlu2 %v1089_v36  ;;  %v644_v36 = vld [vmem:[%s10483_s6 + $0x330] sm:$0xff]  ;;  %4400 = vrsqrt.f32 %v5614_v3 }
 0x318   :  { %v777_v60 = vmul.f32 %v644_v36, %v644_v36  ;;  %v5608_v27 = vpop.xlane.xlu0 %994  ;;  %4402 = vrsqrt.f32 %v5623_v18 }
 0x319   :  { %10836 = vst [vmem:[#allocation63_spill] sm:$0xff] %v5608_v27  ;;  %v5610_v36 = vpop.xlane.xlu1 %1006  ;;  %v648_v27 = vld [vmem:[%s10483_s6 + $0x350] sm:$0xff] }
 0x31a   :  { %v1110_v40 = vsel %vm10583_vm0, %v777_v60, 0.0  ;;  %1114 = vadd.xlane.f32.xlu1 %v1113_v44  ;;  %10837 = vst [vmem:[#allocation64_spill] sm:$0xff] %v5610_v36  ;;  %v647_v44 = vld [vmem:[%s10483_s6 + $0x348] sm:$0xff]  ;;  %v781_v61 = vmul.f32 %v648_v27, %v648_v27 }
 0x31b   :  { %1111 = vadd.xlane.f32.xlu0 %v1110_v40  ;;  %v646_v40 = vld [vmem:[%s10483_s6 + $0x340] sm:$0xff]  ;;  %v780_v58 = vmul.f32 %v647_v44, %v647_v44  ;;  %v5639_v44 = vmax.f32 %v5050_v50, 1e-30 }
 0x31c   :  { %v779_v60 = vmul.f32 %v646_v40, %v646_v40 }
 0x31d   :  { %v1119_v40 = vsel %vm10583_vm0, %v780_v58, 0.0  ;;  %4404 = vrsqrt.f32 %v5639_v44  ;;  %vm1422_vm14 = vweird.f32 %v5639_v44 }
 0x31e   :  { %4406 = vrsqrt.f32 %v5666_v39 }
 0x31f   :  { %1099 = vadd.xlane.f32.xlu2 %v1098_v20  ;;  %v5605_v20 = vpop.xlane.xlu2 %1000  ;;  %4408 = vrsqrt.f32 %v5672_v5 }
 0x320   :  { %10835 = vst [vmem:[#allocation62_spill] sm:$0xff] %v5605_v20  ;;  %v1116_v20 = vsel %vm10583_vm0, %v779_v60, 0.0  ;;  %v651_v60 = vld [vmem:[%s10483_s6 + $0x368] sm:$0xff]  ;;  %4410 = vrsqrt.f32 %v5730_v30 }
 0x321   :  { %v5660_v15 = vpop.xlane.xlu1 %1015 }
 0x322   :  { %10840 = vst [vmem:[#allocation67_spill] sm:$0xff] %v5660_v15  ;;  %v5675_v15 = vand.u32 127, %v10841_v7  ;;  %v652_v7 = vld [vmem:[%s10483_s6 + $0x370] sm:$0xff] }
 0x323   :  { %1120 = vadd.xlane.f32.xlu0 %v1119_v40  ;;  %v5658_v40 = vpop.xlane.xlu0 %1003  ;;  %v785_v22 = vmul.f32 %v652_v7, %v652_v7 }
 0x324   :  { %10839 = vst [vmem:[#allocation66_spill] sm:$0xff] %v5658_v40  ;;  %v784_v40 = vmul.f32 %v651_v60, %v651_v60  ;;  %v5717_v38 = vadd.s32 4294967272, %v5675_v15 }
 0x325   :  { %10842 = vst [vmem:[#allocation68_spill] sm:$0xff] %v5675_v15 }
 0x326   :  { %10847 = vst [vmem:[#allocation73_spill] sm:$0xff] %v5717_v38 }
 0x327   :  { %1108 = vadd.xlane.f32.xlu2 %v1107_v12  ;;  %v5625_v12 = vpop.eup %4394  ;;  %v5646_v26 = vpop.xlane.xlu2 %1009 }
 0x328   :  { %v5631_v36 = vpop.eup %4396  ;;  %v1317_v0 = vmul.f32 %v5625_v12, %v5593_v8  ;;  %10838 = vst [vmem:[#allocation65_spill] sm:$0xff] %v5646_v26  ;;  %v1122_v26 = vsel %vm10583_vm0, %v781_v61, 0.0  ;;  %vm1323_vm5 = vweird.f32 %v5625_v12 }
 0x329   :  { %v5635_v2 = vpop.eup %4398  ;;  %v1327_v27 = vmul.f32 %v5631_v36, %v5597_v32  ;;  %1123 = vadd.xlane.f32.xlu1 %v1122_v26  ;;  %v1125_v26 = vsel %vm10583_vm0, %v782_v10, 0.0  ;;  %v5692_v10 = vadd.s32 4294967288, %v5675_v15  ;;  %vm1333_vm6 = vweird.f32 %v5631_v36  ;;  %vm5748_vm9 = vmor %vm1322_vm2, %vm1323_vm5 }
 0x32a   :  { %v1387_v58 = vmul.f32 %v5635_v2, %v5602_v42  ;;  %v5663_v1 = vpop.eup %4400  ;;  %v1318_v61 = vmul.f32 %v5625_v12, %v1317_v0  ;;  %v1131_v0 = vsel %vm10583_vm0, %v784_v40, 0.0  ;;  %v5702_v40 = vadd.s32 4294967280, %v5675_v15  ;;  %vm5765_vm11 = vmor %vm1332_vm3, %vm1333_vm6 }
 0x32b   :  { %v5668_v24 = vpop.eup %4402  ;;  %v1328_v9 = vmul.f32 %v5631_v36, %v1327_v27  ;;  %10843 = vst [vmem:[#allocation69_spill] sm:$0xff] %v5692_v10  ;;  %vm1393_vm8 = vweird.f32 %v5635_v2  ;;  %v5788_v32 = vmax.f32 %v5054_v52, 1e-30  ;;  %vm1363_vm15 = vweird.f32 %v5663_v1 }
 0x32c   :  { %v1388_v14 = vmul.f32 %v5635_v2, %v1387_v58  ;;  %v1337_v16 = vmul.f32 %v5668_v24, %v5623_v18  ;;  %v1319_v60 = vmul.f32 0.5, %v1318_v61  ;;  %v5689_v27 = vpop.eup %4404  ;;  %10844 = vst [vmem:[#allocation70_spill] sm:$0xff] %v5702_v40  ;;  %vm5781_vm13 = vmor %vm1392_vm7, %vm1393_vm8  ;;  %vm1343_vm2 = vweird.f32 %v5668_v24 }
 0x32d   :  { %v1417_v17 = vmul.f32 %v5689_v27, %v5639_v44  ;;  %vm3526_vm3 = vcmask 130112   ;;  %vm1364_vm5 = vmor %vm1362_vm10, %vm1363_vm15  ;;  %4412 = vrsqrt.f32 %v5788_v32  ;;  %vm1423_vm7 = vweird.f32 %v5689_v27 }
 0x32e   :  { %v1389_v58 = vmul.f32 0.5, %v1388_v14  ;;  %v1338_v61 = vmul.f32 %v5668_v24, %v1337_v16  ;;  %v5714_v14 = vadd.s32 4294967240, %v5675_v15  ;;  %v5719_v16 = vpop.xlane.xlu0 %1012  ;;  %vm1344_vm6 = vmor %vm1342_vm12, %vm1343_vm2  ;;  %vm10780_vm8 = vcmask 195712  }
 0x32f   :  { %1117 = vadd.xlane.f32.xlu2 %v1116_v20  ;;  %v650_v20 = vld [vmem:[%s10483_s6 + $0x360] sm:$0xff]  ;;  %v5706_v4 = vpop.xlane.xlu2 %1018  ;;  %10848 = vst [vmem:[#allocation74_spill] sm:$0xff] %v5719_v16  ;;  %vm1382_vm12 = vweird.f32 %v5672_v5  ;;  %v5892_v44 = vadd.s32 4294967248, %v5675_v15  ;;  %vm1372_vm15 = vweird.f32 %v5730_v30 }
 0x330   :  { %v783_v21 = vmul.f32 %v650_v20, %v650_v20  ;;  %v1357_v20 = vmul.f32 %v5663_v1, %v5614_v3  ;;  %10845 = vst [vmem:[#allocation71_spill] sm:$0xff] %v5706_v4  ;;  %v5723_v4 = vpop.eup %4406  ;;  %v1390_v31 = vsub.f32 1.5, %v1389_v58  ;;  %v1339_v41 = vmul.f32 0.5, %v1338_v61 }
 0x331   :  { %1132 = vadd.xlane.f32.xlu1 %v1131_v0  ;;  %10846 = vst [vmem:[#allocation72_spill] sm:$0xff] %v5714_v14  ;;  %v1320_v0 = vsub.f32 1.5, %v1319_v60  ;;  %v5727_v6 = vpop.eup %4408  ;;  %v1347_v7 = vmul.f32 %v5723_v4, %v5666_v39  ;;  %v1418_v58 = vmul.f32 %v5689_v27, %v1417_v17  ;;  %vm1353_vm10 = vweird.f32 %v5723_v4 }
 0x332   :  { %v1128_v46 = vsel %vm10583_vm0, %v783_v21, 0.0  ;;  %v1329_v21 = vmul.f32 0.5, %v1328_v9  ;;  %v654_v9 = vld [vmem:[%s10483_s6 + $0x380] sm:$0xff]  ;;  %v1391_v61 = vmul.f32 %v5635_v2, %v1390_v31 }
 0x333   :  { %1129 = vadd.xlane.f32.xlu0 %v1128_v46  ;;  %v1358_v46 = vmul.f32 %v5663_v1, %v1357_v20  ;;  %v5721_v20 = vpop.xlane.xlu1 %1024  ;;  %v787_v28 = vmul.f32 %v654_v9, %v654_v9  ;;  %v655_v9 = vld [vmem:[%s10483_s6 + $0x388] sm:$0xff]  ;;  %v1348_v31 = vmul.f32 %v5723_v4, %v1347_v7  ;;  %v657_v7 = vld [vmem:[%s10483_s6 + $0x398] sm:$0xff] }
 0x334   :  { %10849 = vst [vmem:[#allocation75_spill] sm:$0xff] %v5721_v20  ;;  %v1330_v33 = vsub.f32 1.5, %v1329_v21  ;;  %v1134_v20 = vsel %vm10583_vm0, %v785_v22, 0.0  ;;  %v1321_v21 = vmul.f32 %v5625_v12, %v1320_v0 }
 0x335   :  { %v1359_v16 = vmul.f32 0.5, %v1358_v46  ;;  %v1140_v60 = vsel %vm10583_vm0, %v787_v28, 0.0  ;;  %v5757_v28 = vadd.s32 4294967216, %v5675_v15 }
 0x336   :  { %v1331_v17 = vmul.f32 %v5631_v36, %v1330_v33  ;;  %v656_v33 = vld [vmem:[%s10483_s6 + $0x390] sm:$0xff]  ;;  %v5806_v45 = vpop.xlane.xlu0 %1021 }
 0x337   :  { %1126 = vadd.xlane.f32.xlu2 %v1125_v26  ;;  %v653_v26 = vld [vmem:[%s10483_s6 + $0x378] sm:$0xff]  ;;  %10853 = vst [vmem:[#allocation77_spill] sm:$0xff] %v5757_v28  ;;  %v1360_v46 = vsub.f32 1.5, %v1359_v16  ;;  %v5793_v16 = vsel %vm5748_vm9, %v5625_v12, %v1321_v21  ;;  %v5797_v0 = vpop.xlane.xlu2 %1027  ;;  %v788_v21 = vmul.f32 %v655_v9, %v655_v9  ;;  %v789_v22 = vmul.f32 %v656_v33, %v656_v33 }
 0x338   :  { %v786_v37 = vmul.f32 %v653_v26, %v653_v26  ;;  %v1340_v26 = vsub.f32 1.5, %v1339_v41  ;;  %10858 = vst [vmem:[#allocation78_spill] sm:$0xff] %v5793_v16  ;;  %vm1352_vm9 = vweird.f32 %v5666_v39  ;;  %v659_v39 = vld [vmem:[%s10483_s6 + $0x3a8] sm:$0xff] }
 0x339   :  { %1141 = vadd.xlane.f32.xlu1 %v1140_v60  ;;  %10859 = vst [vmem:[#allocation79_spill] sm:$0xff] %v5797_v0  ;;  %v5804_v60 = vmax.f32 %v5144_v19, 1e-30  ;;  %v5819_v0 = vsel %vm5781_vm13, %v5635_v2, %v1391_v61  ;;  %v1361_v57 = vmul.f32 %v5663_v1, %v1360_v46  ;;  %v2596_v2 = vmul.f32 %v5793_v16, %v5039_v43 }
 0x33a   :  { %v1137_v13 = vsel %vm10583_vm0, %v786_v37, 0.0  ;;  %v1377_v37 = vmul.f32 %v5727_v6, %v5672_v5  ;;  %10860 = vst [vmem:[#allocation80_spill] sm:$0xff] %v5806_v45  ;;  %v5822_v45 = vpop.eup %4410  ;;  %v1143_v46 = vsel %vm10583_vm0, %v788_v21, 0.0  ;;  %v1146_v9 = vsel %vm10583_vm0, %v789_v22, 0.0 }
 0x33b   :  { %1138 = vadd.xlane.f32.xlu0 %v1137_v13  ;;  %v5753_v13 = vadd.s32 4294967264, %v5675_v15  ;;  %v5808_v12 = vpop.xlane.xlu1 %1033  ;;  %10863 = vst [vmem:[#allocation83_spill] sm:$0xff] %v5819_v0  ;;  %4414 = vrsqrt.f32 %v5804_v60  ;;  %v5848_v43 = vmul.f32 %v5819_v0, %v5045_v47  ;;  %v5851_v18 = vsel %vm1364_vm5, %v5663_v1, %v1361_v57 }
 0x33c   :  { %v1378_v42 = vmul.f32 %v5727_v6, %v1377_v37  ;;  %10861 = vst [vmem:[#allocation81_spill] sm:$0xff] %v5808_v12  ;;  %v1341_v37 = vmul.f32 %v5668_v24, %v1340_v26  ;;  %v1349_v12 = vmul.f32 0.5, %v1348_v31  ;;  %v5839_v26 = vadd.s32 4294967256, %v5675_v15 }
 0x33d   :  { %10852 = vst [vmem:[#allocation76_spill] sm:$0xff] %v5753_v13  ;;  %v1367_v33 = vmul.f32 %v5822_v45, %v5730_v30  ;;  %v3523_v47 = vperm.slane %v2596_v2, %v5675_v15  ;;  %vm1383_vm13 = vweird.f32 %v5727_v6  ;;  %vm10779_vm5 = vcmask 261312  }
 0x33e   :  { %10864 = vst [vmem:[#allocation84_spill] sm:$0xff] %v5839_v26  ;;  %v1379_v3 = vmul.f32 0.5, %v1378_v42  ;;  %v1350_v41 = vsub.f32 1.5, %v1349_v12  ;;  %v5866_v42 = vpop.eup %4412  ;;  %v5897_v2 = vpop.xlane.xlu0 %1030  ;;  %vm1384_vm2 = vmor %vm1382_vm12, %vm1383_vm13  ;;  %vm1402_vm12 = vweird.f32 %v5804_v60 }
 0x33f   :  { %1135 = vadd.xlane.f32.xlu2 %v1134_v20  ;;  %v1419_v20 = vmul.f32 0.5, %v1418_v58  ;;  %v5813_v58 = vsel %vm5765_vm11, %v5631_v36, %v1331_v17  ;;  %v5830_v36 = vmax.f32 %v5056_v53, 1e-30  ;;  %v790_v17 = vmul.f32 %v657_v7, %v657_v7  ;;  %10865 = vst [vmem:[#allocation85_spill] sm:$0xff] %v5851_v18  ;;  %vm1424_vm11 = vmor %vm1422_vm14, %vm1423_vm7  ;;  %v5884_v22 = vpop.xlane.xlu2 %1036 }
 0x340   :  { %10862 = vst [vmem:[#allocation82_spill] sm:$0xff] %v5813_v58  ;;  %v2597_v61 = vmul.f32 %v5813_v58, %v5097_v59  ;;  %v5857_v59 = vsel %vm1344_vm6, %v5668_v24, %v1341_v37  ;;  %v1380_v1 = vsub.f32 1.5, %v1379_v3  ;;  %v5873_v7 = vmul.f32 %v5851_v18, %v5047_v48  ;;  %vm5905_vm14 = vmor %vm1352_vm9, %vm1353_vm10 }
 0x341   :  { %v1420_v8 = vsub.f32 1.5, %v1419_v20  ;;  %10866 = vst [vmem:[#allocation86_spill] sm:$0xff] %v5857_v59  ;;  %4416 = vrsqrt.f32 %v5830_v36  ;;  %v1149_v31 = vsel %vm10583_vm0, %v790_v17, 0.0  ;;  %v5864_v20 = vmax.f32 %v5058_v54, 1e-30  ;;  %v5886_v37 = vpop.eup %4414 }
 0x342   :  { %1150 = vadd.xlane.f32.xlu1 %v1149_v31  ;;  %v3525_v24 = vperm.slane %v2597_v61, %v5692_v10  ;;  %v2598_v12 = vmul.f32 %v5857_v59, %v5112_v25  ;;  %v1368_v21 = vmul.f32 %v5822_v45, %v1367_v33  ;;  %10867 = vst [vmem:[#allocation87_spill] sm:$0xff] %v5884_v22  ;;  %v5895_v25 = vadd.s32 4294967192, %v5675_v15  ;;  %v658_v33 = vld [vmem:[%s10483_s6 + $0x3a0] sm:$0xff] }
 0x343   :  { %1147 = vadd.xlane.f32.xlu0 %v1146_v9  ;;  %v1421_v57 = vmul.f32 %v5689_v27, %v1420_v8  ;;  %v1351_v17 = vmul.f32 %v5723_v4, %v1350_v41  ;;  %10869 = vst [vmem:[#allocation89_spill] sm:$0xff] %v5897_v2  ;;  %v5899_v8 = vpop.xlane.xlu1 %1042  ;;  %v1447_v9 = vmul.f32 %v5866_v42, %v5788_v32  ;;  %4418 = vrsqrt.f32 %v5864_v20 }
 0x344   :  { %10868 = vst [vmem:[#allocation88_spill] sm:$0xff] %v5895_v25  ;;  %v3529_v48 = vperm.slane %v2598_v12, %v5702_v40  ;;  %v1397_v31 = vmul.f32 %v5886_v37, %v5804_v60  ;;  %v791_v18 = vmul.f32 %v658_v33, %v658_v33  ;;  %v792_v58 = vmul.f32 %v659_v39, %v659_v39  ;;  %v668_v60 = vld [vmem:[%s10483_s6 + $0x3f0] sm:$0xff] }
 0x345   :  { %10870 = vst [vmem:[#allocation90_spill] sm:$0xff] %v5899_v8  ;;  %v5910_v61 = vsel %vm1424_vm11, %v5689_v27, %v1421_v57  ;;  %v3527_v27 = vsel %vm3526_vm3, %v3525_v24, %v3523_v47  ;;  %v5933_v57 = vmax.f32 %v5150_v23, 1e-30  ;;  %v1369_v47 = vmul.f32 0.5, %v1368_v21 }
 0x346   :  { %10873 = vst [vmem:[#allocation91_spill] sm:$0xff] %v5910_v61  ;;  %v5940_v24 = vadd.s32 4294967232, %v5675_v15  ;;  %v5947_v5 = vsel %vm5905_vm14, %v5723_v4, %v1351_v17  ;;  %v5951_v0 = vmul.f32 %v5910_v61, %v5050_v50  ;;  %v1448_v21 = vmul.f32 %v5866_v42, %v1447_v9  ;;  %v661_v4 = vld [vmem:[%s10483_s6 + $0x3b8] sm:$0xff]  ;;  %v662_v50 = vld [vmem:[%s10483_s6 + $0x3c0] sm:$0xff] }
 0x347   :  { %1144 = vadd.xlane.f32.xlu2 %v1143_v46  ;;  %v1381_v46 = vmul.f32 %v5727_v6, %v1380_v1  ;;  %v5922_v41 = vpop.eup %4416  ;;  %v660_v1 = vld [vmem:[%s10483_s6 + $0x3b0] sm:$0xff]  ;;  %10875 = vst [vmem:[#allocation93_spill] sm:$0xff] %v5947_v5  ;;  %4420 = vrsqrt.f32 %v5933_v57  ;;  %v5967_v17 = vmax.f32 %v5060_v55, 1e-30  ;;  %v1155_v3 = vsel %vm10583_vm0, %v792_v58, 0.0  ;;  %v5979_v61 = vpop.xlane.xlu2 %1045 }
 0x348   :  { %10874 = vst [vmem:[#allocation92_spill] sm:$0xff] %v5940_v24  ;;  %v1407_v16 = vmul.f32 %v5922_v41, %v5830_v36  ;;  %v793_v59 = vmul.f32 %v660_v1, %v660_v1  ;;  %v2599_v33 = vmul.f32 %v5947_v5, %v5122_v34  ;;  %v1370_v39 = vsub.f32 1.5, %v1369_v47  ;;  %v665_v5 = vld [vmem:[%s10483_s6 + $0x3d8] sm:$0xff] }
 0x349   :  { %v5954_v12 = vsel %vm1384_vm2, %v5727_v6, %v1381_v46  ;;  %v1152_v6 = vsel %vm10583_vm0, %v791_v18, 0.0  ;;  %v663_v46 = vld [vmem:[%s10483_s6 + $0x3c8] sm:$0xff]  ;;  %v5974_v9 = vpop.eup %4418  ;;  %v1398_v1 = vmul.f32 %v5886_v37, %v1397_v31  ;;  %10877 = vst [vmem:[#allocation95_spill] sm:$0xff] %v5979_v61  ;;  %v3531_v58 = vsel %vm10780_vm8, %v3529_v48, %v3527_v27 }
 0x34a   :  { %10876 = vst [vmem:[#allocation94_spill] sm:$0xff] %v5954_v12  ;;  %v1158_v18 = vsel %vm10583_vm0, %v793_v59, 0.0  ;;  %vm1452_vm6 = vweird.f32 %v5788_v32  ;;  %v5985_v8 = vadd.s32 4294967224, %v5675_v15  ;;  %v794_v34 = vmul.f32 %v661_v4, %v661_v4  ;;  %v6000_v4 = vpop.xlane.xlu0 %1039 }
 0x34b   :  { %1156 = vadd.xlane.f32.xlu0 %v1155_v3  ;;  %v5987_v22 = vpop.xlane.xlu1 %1051  ;;  %1159 = vadd.xlane.f32.xlu1 %v1158_v18  ;;  %v795_v47 = vmul.f32 %v662_v50, %v662_v50  ;;  %vm1373_vm7 = vweird.f32 %v5822_v45  ;;  %v796_v3 = vmul.f32 %v663_v46, %v663_v46  ;;  %vm10678_vm9 = vcmask 326912   ;;  %10880 = vst [vmem:[#allocation98_spill] sm:$0xff] %v6000_v4 }
 0x34c   :  { %10878 = vst [vmem:[#allocation96_spill] sm:$0xff] %v5985_v8  ;;  %v5994_v59 = vmul.f32 %v5954_v12, %v5052_v51  ;;  %v1408_v48 = vmul.f32 %v5922_v41, %v1407_v16  ;;  %v1477_v27 = vmul.f32 %v5974_v9, %v5864_v20  ;;  %4422 = vrsqrt.f32 %v5967_v17  ;;  %vm6009_vm11 = vmor %vm1372_vm15, %vm1373_vm7  ;;  %v664_v12 = vld [vmem:[%s10483_s6 + $0x3d0] sm:$0xff] }
 0x34d   :  { %10879 = vst [vmem:[#allocation97_spill] sm:$0xff] %v5987_v22  ;;  %v3533_v50 = vperm.slane %v2599_v33, %v5717_v38  ;;  %v1371_v18 = vmul.f32 %v5822_v45, %v1370_v39  ;;  %vm1453_vm10 = vweird.f32 %v5866_v42  ;;  %v6005_v46 = vpop.eup %4420  ;;  %v6015_v16 = vmax.f32 %v5166_v35, 1e-30 }
 0x34e   :  { %v1161_v33 = vsel %vm10583_vm0, %v794_v34, 0.0  ;;  %v1164_v39 = vsel %vm10583_vm0, %v795_v47, 0.0  ;;  %vm1412_vm13 = vweird.f32 %v5830_v36  ;;  %v1167_v30 = vsel %vm10583_vm0, %v796_v3, 0.0  ;;  %v666_v3 = vld [vmem:[%s10483_s6 + $0x3e0] sm:$0xff]  ;;  %vm6070_vm7 = vmor %vm1452_vm6, %vm1453_vm10 }
 0x34f   :  { %1153 = vadd.xlane.f32.xlu2 %v1152_v6  ;;  %v1449_v6 = vmul.f32 0.5, %v1448_v21  ;;  %v1399_v21 = vmul.f32 0.5, %v1398_v1  ;;  %v6021_v1 = vmax.f32 %v5069_v63, 1e-30  ;;  %v1409_v47 = vmul.f32 0.5, %v1408_v48 }
 0x350   :  { %v6034_v4 = vmax.f32 %v5062_v56, 1e-30  ;;  %v3535_v22 = vsel %vm10779_vm5, %v3533_v50, %v3531_v58  ;;  %vm10646_vm14 = vcmask 392512   ;;  %v6043_v61 = vsel %vm6009_vm11, %v5822_v45, %v1371_v18  ;;  %v6057_v45 = vpop.xlane.xlu2 %1054 }
 0x351   :  { %v1450_v31 = vsub.f32 1.5, %v1449_v6  ;;  %v1478_v6 = vmul.f32 %v5974_v9, %v1477_v27  ;;  %10883 = vst [vmem:[#allocation99_spill] sm:$0xff] %v6043_v61  ;;  %v1400_v2 = vsub.f32 1.5, %v1399_v21  ;;  %v1427_v48 = vmul.f32 %v6005_v46, %v5933_v57 }
 0x352   :  { %v6047_v27 = vpop.eup %4422  ;;  %v6050_v34 = vmax.f32 %v5156_v29, 1e-30  ;;  %4424 = vrsqrt.f32 %v6015_v16  ;;  %v797_v58 = vmul.f32 %v664_v12, %v664_v12  ;;  %v798_v50 = vmul.f32 %v665_v5, %v665_v5  ;;  %10884 = vst [vmem:[#allocation100_spill] sm:$0xff] %v6057_v45  ;;  %v6062_v12 = vpop.xlane.xlu0 %1048 }
 0x353   :  { %1165 = vadd.xlane.f32.xlu0 %v1164_v39  ;;  %1168 = vadd.xlane.f32.xlu1 %v1167_v30  ;;  %v1451_v51 = vmul.f32 %v5866_v42, %v1450_v31  ;;  %vm1403_vm15 = vweird.f32 %v5886_v37  ;;  %vm1482_vm2 = vweird.f32 %v5864_v20  ;;  %4426 = vrsqrt.f32 %v6021_v1  ;;  %10885 = vst [vmem:[#allocation101_spill] sm:$0xff] %v6062_v12  ;;  %v6064_v5 = vpop.xlane.xlu1 %1060 }
 0x354   :  { %v799_v18 = vmul.f32 %v666_v3, %v666_v3  ;;  %v2601_v21 = vmul.f32 %v6043_v61, %v5128_v49  ;;  %v1479_v39 = vmul.f32 0.5, %v1478_v6  ;;  %4428 = vrsqrt.f32 %v6034_v4  ;;  %10886 = vst [vmem:[#allocation102_spill] sm:$0xff] %v6064_v5  ;;  %vm6093_vm6 = vmor %vm1402_vm12, %vm1403_vm15 }
 0x355   :  { %vm1413_vm11 = vweird.f32 %v5922_v41  ;;  %v6076_v49 = vadd.s32 4294967208, %v5675_v15  ;;  %v1428_v30 = vmul.f32 %v6005_v46, %v1427_v48  ;;  %v1401_v6 = vmul.f32 %v5886_v37, %v1400_v2 }
 0x356   :  { %4430 = vrsqrt.f32 %v6050_v34  ;;  %v1170_v32 = vsel %vm10583_vm0, %v797_v58, 0.0  ;;  %v1173_v3 = vsel %vm10583_vm0, %v798_v50, 0.0  ;;  %v10890_v61 = vperm.slane %v5873_v7, %v5753_v13  ;;  %v667_v7 = vld [vmem:[%s10483_s6 + $0x3e8] sm:$0xff]  ;;  %v669_v13 = vld [vmem:[%s10483_s6 + $0x3f8] sm:$0xff]  ;;  %vm6128_vm10 = vmor %vm1412_vm13, %vm1413_vm11 }
 0x357   :  { %1162 = vadd.xlane.f32.xlu2 %v1161_v33  ;;  %v1410_v33 = vsub.f32 1.5, %v1409_v47  ;;  %10889 = vst [vmem:[#allocation103_spill] sm:$0xff] %v6076_v49  ;;  %v1437_v47 = vmul.f32 %v6047_v27, %v5967_v17  ;;  %v6098_v2 = vadd.s32 4294967200, %v5675_v15  ;;  %v6101_v58 = vmax.f32 %v5169_v62, 1e-30 }
 0x358   :  { %v3539_v5 = vsel %vm10678_vm9, %v10890_v61, %v3535_v22  ;;  %v1176_v50 = vsel %vm10583_vm0, %v799_v18, 0.0  ;;  %v6110_v22 = vpop.eup %4424  ;;  %v3541_v61 = vperm.slane %v2601_v21, %v5839_v26  ;;  %v6116_v45 = vsel %vm6070_vm7, %v5866_v42, %v1451_v51 }
 0x359   :  { %10893 = vst [vmem:[#allocation104_spill] sm:$0xff] %v6098_v2  ;;  %v1411_v12 = vmul.f32 %v5922_v41, %v1410_v33  ;;  %v1480_v18 = vsub.f32 1.5, %v1479_v39  ;;  %v6122_v38 = vpop.eup %4426  ;;  %vm1483_vm12 = vweird.f32 %v5974_v9  ;;  %v1429_v42 = vmul.f32 0.5, %v1428_v30 }
 0x35a   :  { %10894 = vst [vmem:[#allocation105_spill] sm:$0xff] %v6116_v45  ;;  %vm1432_vm15 = vweird.f32 %v5933_v57  ;;  %v1438_v51 = vmul.f32 %v6047_v27, %v1437_v47  ;;  %v6135_v33 = vpop.eup %4428  ;;  %vm10586_vm7 = vcmask 523712   ;;  %v6140_v36 = vsel %vm6093_vm6, %v5886_v37, %v1401_v6 }
 0x35b   :  { %1174 = vadd.xlane.f32.xlu0 %v1173_v3  ;;  %10897 = vst [vmem:[#allocation106_spill] sm:$0xff] %v6140_v36  ;;  %v6143_v39 = vmax.f32 %v5071_v11, 1e-30  ;;  %1177 = vadd.xlane.f32.xlu1 %v1176_v50  ;;  %v800_v31 = vmul.f32 %v667_v7, %v667_v7  ;;  %v801_v30 = vmul.f32 %v668_v60, %v668_v60  ;;  %vm10585_vm13 = vcmask 589312  }
 0x35c   :  { %v6147_v26 = vmul.f32 %v6116_v45, %v5054_v52  ;;  %v1487_v47 = vmul.f32 %v6110_v22, %v6015_v16  ;;  %4432 = vrsqrt.f32 %v6101_v58  ;;  %v6152_v3 = vpop.eup %4430  ;;  %v3543_v37 = vsel %vm10646_vm14, %v3541_v61, %v3539_v5  ;;  %v6168_v5 = vpop.xlane.xlu2 %1063  ;;  %v10905_v45 = vld [vmem:[#allocation17_spill] sm:$0xff] }
 0x35d   :  { %v6158_v6 = vsel %vm6128_vm10, %v5922_v41, %v1411_v12  ;;  %v1481_v48 = vmul.f32 %v5974_v9, %v1480_v18  ;;  %v1497_v52 = vmul.f32 %v6122_v38, %v6021_v1  ;;  %v2604_v50 = vmul.f32 %v6140_v36, %v5144_v19  ;;  %10899 = vst [vmem:[#allocation108_spill] sm:$0xff] %v6168_v5  ;;  %vm6174_vm10 = vmor %vm1482_vm2, %vm1483_vm12  ;;  %v10902_v12 = vld [vmem:[#allocation10_spill] sm:$0xff]  ;;  %v6182_v61 = vpop.xlane.xlu0 %1057  ;;  %v6184_v18 = vpop.xlane.xlu1 %1069 }
 0x35e   :  { %10898 = vst [vmem:[#allocation107_spill] sm:$0xff] %v6158_v6  ;;  %v1430_v7 = vsub.f32 1.5, %v1429_v42  ;;  %v1439_v60 = vmul.f32 0.5, %v1438_v51  ;;  %vm1442_vm11 = vweird.f32 %v5967_v17  ;;  %vm10589_vm6 = vcmask 654912  }
 0x35f   :  { %1171 = vadd.xlane.f32.xlu2 %v1170_v32  ;;  %v802_v32 = vmul.f32 %v669_v13, %v669_v13  ;;  %v1507_v13 = vmul.f32 %v6135_v33, %v6034_v4  ;;  %v6179_v19 = vmax.f32 %v10902_v12, 1e-30  ;;  %4434 = vrsqrt.f32 %v6143_v39  ;;  %10903 = vst [vmem:[#allocation109_spill] sm:$0xff] %v6182_v61 }
 0x360   :  { %10904 = vst [vmem:[#allocation110_spill] sm:$0xff] %v6184_v18  ;;  %v1179_v21 = vsel %vm10583_vm0, %v800_v31, 0.0  ;;  %v1182_v42 = vsel %vm10583_vm0, %v801_v30, 0.0  ;;  %v1457_v20 = vmul.f32 %v6152_v3, %v6050_v34  ;;  %v1488_v51 = vmul.f32 %v6110_v22, %v1487_v47  ;;  %v10907_v18 = vld [vmem:[#allocation18_spill] sm:$0xff] }
 0x361   :  { %v6192_v36 = vmax.f32 %v10905_v45, 1e-30  ;;  %v1185_v5 = vsel %vm10583_vm0, %v802_v32, 0.0  ;;  %v6198_v61 = vadd.s32 4294967184, %v5675_v15  ;;  %v1498_v31 = vmul.f32 %v6122_v38, %v1497_v52 }
 0x362   :  { %v6202_v30 = vmax.f32 %v10907_v18, 1e-30  ;;  %v6204_v11 = vpop.eup %4432  ;;  %v10908_v47 = vperm.slane %v5994_v59, %v5892_v44  ;;  %v2605_v32 = vmul.f32 %v6158_v6, %v5056_v53  ;;  %v6215_v12 = vsel %vm6174_vm10, %v5974_v9, %v1481_v48  ;;  %v10923_v6 = vld [vmem:[#allocation20_spill] sm:$0xff] }
 0x363   :  { %10906 = vst [vmem:[#allocation111_spill] sm:$0xff] %v6198_v61  ;;  %vm1433_vm2 = vweird.f32 %v6005_v46  ;;  %1183 = vadd.xlane.f32.xlu0 %v1182_v42  ;;  %v3553_v52 = vperm.slane %v2604_v50, %v5940_v24  ;;  %v1431_v18 = vmul.f32 %v6005_v46, %v1430_v7  ;;  %v1508_v59 = vmul.f32 %v6135_v33, %v1507_v13 }
 0x364   :  { %v3547_v45 = vsel %vm10587_vm4, %v10908_v47, %v3543_v37  ;;  %10909 = vst [vmem:[#allocation112_spill] sm:$0xff] %v6215_v12  ;;  %4436 = vrsqrt.f32 %v6179_v19  ;;  %1186 = vadd.xlane.f32.xlu1 %v1185_v5  ;;  %vm10603_vm12 = vcmask 720512   ;;  %v1440_v53 = vsub.f32 1.5, %v1439_v60  ;;  %vm6228_vm10 = vmor %vm1432_vm15, %vm1433_vm2  ;;  %v10912_v60 = vld [vmem:[#allocation16_spill] sm:$0xff] }
 0x365   :  { %v1458_v37 = vmul.f32 %v6152_v3, %v1457_v20  ;;  %v1489_v41 = vmul.f32 0.5, %v1488_v51  ;;  %4438 = vrsqrt.f32 %v6192_v36  ;;  %v6224_v9 = vpop.eup %4434  ;;  %v1499_v50 = vmul.f32 0.5, %v1498_v31 }
 0x366   :  { %v1517_v7 = vmul.f32 %v6204_v11, %v6101_v58  ;;  %4440 = vrsqrt.f32 %v6202_v30  ;;  %v6236_v13 = vmax.f32 %v10912_v60, 1e-30  ;;  %v10913_v5 = vperm.slane %v5848_v43, %v5714_v14 }
 0x367   :  { %1180 = vadd.xlane.f32.xlu2 %v1179_v21  ;;  %v3557_v57 = vperm.slane %v2605_v32, %v5985_v8  ;;  %vm1443_vm15 = vweird.f32 %v6047_v27  ;;  %vm1512_vm2 = vweird.f32 %v6034_v4  ;;  %v6246_v42 = vadd.s32 4294967176, %v5675_v15 }
 0x368   :  { %v3551_v21 = vsel %vm10586_vm7, %v10913_v5, %v3547_v45  ;;  %v6253_v31 = vmul.f32 %v6215_v12, %v5058_v54  ;;  %v1509_v43 = vmul.f32 0.5, %v1508_v59  ;;  %vm1513_vm0 = vweird.f32 %v6135_v33  ;;  %v10926_v54 = vld [vmem:[#allocation21_spill] sm:$0xff] }
 0x369   :  { %10914 = vst [vmem:[#allocation16_spill] sm:$0xff] %v6246_v42  ;;  %v3555_v51 = vsel %vm10585_vm13, %v3553_v52, %v3551_v21  ;;  %v6261_v47 = vsel %vm6228_vm10, %v6005_v46, %v1431_v18  ;;  %v1441_v32 = vmul.f32 %v6047_v27, %v1440_v53  ;;  %v1459_v5 = vmul.f32 0.5, %v1458_v37  ;;  %vm6272_vm13 = vmor %vm1442_vm11, %vm1443_vm15  ;;  %v6278_v18 = vpop.xlane.xlu0 %1066 }
 0x36a   :  { %10916 = vst [vmem:[#allocation114_spill] sm:$0xff] %v6261_v47  ;;  %v1527_v52 = vmul.f32 %v6224_v9, %v6143_v39  ;;  %v6266_v21 = vpop.eup %4436  ;;  %v1490_v59 = vsub.f32 1.5, %v1489_v41  ;;  %v1500_v48 = vsub.f32 1.5, %v1499_v50  ;;  %v1518_v46 = vmul.f32 %v6204_v11, %v1517_v7 }
 0x36b   :  { %4442 = vrsqrt.f32 %v6236_v13  ;;  %10919 = vst [vmem:[#allocation115_spill] sm:$0xff] %v6278_v18  ;;  %v6280_v53 = vpop.eup %4438  ;;  %v3559_v37 = vsel %vm10589_vm6, %v3557_v57, %v3555_v51  ;;  %vm1462_vm10 = vweird.f32 %v6050_v34  ;;  %vm1492_vm7 = vweird.f32 %v6015_v16 }
 0x36c   :  { %vm1493_vm11 = vweird.f32 %v6110_v22  ;;  %v6286_v17 = vpop.eup %4440  ;;  %v2607_v41 = vmul.f32 %v6261_v47, %v5150_v23  ;;  %v1510_v50 = vsub.f32 1.5, %v1509_v43  ;;  %vm1502_vm15 = vweird.f32 %v6021_v1 }
 0x36d   :  { %v6256_v45 = vpop.xlane.xlu1 %1078  ;;  %vm1503_vm4 = vweird.f32 %v6122_v38  ;;  %v6295_v7 = vsel %vm6272_vm13, %v6047_v27, %v1441_v32  ;;  %v1460_v57 = vsub.f32 1.5, %v1459_v5  ;;  %v1467_v16 = vmul.f32 %v6266_v21, %v6179_v19  ;;  %vm6301_vm6 = vmor %vm1492_vm7, %vm1493_vm11 }
 0x36e   :  { %10915 = vst [vmem:[#allocation113_spill] sm:$0xff] %v6256_v45  ;;  %v1528_v51 = vmul.f32 %v6224_v9, %v1527_v52  ;;  %v1491_v12 = vmul.f32 %v6110_v22, %v1490_v59  ;;  %v1501_v1 = vmul.f32 %v6122_v38, %v1500_v48  ;;  %v1519_v43 = vmul.f32 0.5, %v1518_v46  ;;  %vm6311_vm13 = vmor %vm1502_vm15, %vm1503_vm4 }
 0x36f   :  { %10920 = vst [vmem:[#allocation116_spill] sm:$0xff] %v6295_v7  ;;  %v6307_v47 = vmax.f32 %v10923_v6, 1e-30  ;;  %v1537_v5 = vmul.f32 %v6286_v17, %v6202_v30  ;;  %v1547_v52 = vmul.f32 %v6280_v53, %v6192_v36  ;;  %v6320_v59 = vmax.f32 %v10926_v54, 1e-30  ;;  %vm6343_vm7 = vmor %vm1512_vm2, %vm1513_vm0 }
 0x370   :  { %v10927_v46 = vperm.slane %v5951_v0, %v5757_v28  ;;  %v3565_v45 = vperm.slane %v2607_v41, %v6076_v49  ;;  %v6331_v18 = vmul.f32 %v6295_v7, %v5060_v55  ;;  %vm1463_vm4 = vweird.f32 %v6152_v3  ;;  %v10971_v7 = vld [vmem:[#allocation18_spill] sm:$0xff] }
 0x371   :  { %v6322_v48 = vpop.eup %4442  ;;  %v1511_v8 = vmul.f32 %v6135_v33, %v1510_v50  ;;  %v1461_v54 = vmul.f32 %v6152_v3, %v1460_v57  ;;  %v1468_v6 = vmul.f32 %v6266_v21, %v1467_v16  ;;  %v1529_v24 = vmul.f32 0.5, %v1528_v51  ;;  %v6358_v50 = vpop.xlane.xlu0 %1075  ;;  %vm1464_vm2 = vmor %vm1462_vm10, %vm1463_vm4 }
 0x372   :  { %v6248_v20 = vpop.xlane.xlu2 %227  ;;  %v3563_v27 = vsel %vm10603_vm12, %v10927_v46, %v3559_v37  ;;  %v6350_v55 = vsel %vm6301_vm6, %v6110_v22, %v1491_v12  ;;  %v6355_v37 = vsel %vm6311_vm13, %v6122_v38, %v1501_v1  ;;  %v1520_v41 = vsub.f32 1.5, %v1519_v43  ;;  %10933 = vst [vmem:[#allocation120_spill] sm:$0xff] %v6358_v50  ;;  %v10937_v43 = vld [vmem:[#allocation22_spill] sm:$0xff] }
 0x373   :  { %10931 = vst [vmem:[#allocation118_spill] sm:$0xff] %v6350_v55  ;;  %4444 = vrsqrt.f32 %v6307_v47  ;;  %vm10669_vm0 = vcmask 851712   ;;  %vm1472_vm11 = vweird.f32 %v6179_v19  ;;  %v1538_v22 = vmul.f32 %v6286_v17, %v1537_v5  ;;  %v10966_v19 = vld [vmem:[#allocation10_spill] sm:$0xff] }
 0x374   :  { %10932 = vst [vmem:[#allocation119_spill] sm:$0xff] %v6355_v37  ;;  %v1548_v12 = vmul.f32 %v6280_v53, %v1547_v52  ;;  %v1557_v38 = vmul.f32 %v6322_v48, %v6236_v13  ;;  %4446 = vrsqrt.f32 %v6320_v59  ;;  %v3567_v57 = vsel %vm10600_vm1, %v3565_v45, %v3563_v27 }
 0x375   :  { %v6360_v4 = vpop.xlane.xlu1 %1087  ;;  %v3569_v16 = vperm.slane %v6331_v18, %v6098_v2  ;;  %vm1522_vm6 = vweird.f32 %v6101_v58  ;;  %vm1523_vm10 = vweird.f32 %v6204_v11  ;;  %v6378_v34 = vsel %vm6343_vm7, %v6135_v33, %v1511_v8 }
 0x376   :  { %10934 = vst [vmem:[#allocation121_spill] sm:$0xff] %v6360_v4  ;;  %v1469_v51 = vmul.f32 0.5, %v1468_v6  ;;  %v2613_v23 = vmul.f32 %v6350_v55, %v5166_v35  ;;  %v1530_v1 = vsub.f32 1.5, %v1529_v24  ;;  %vm10668_vm15 = vcmask 917312   ;;  %vm6391_vm4 = vmor %vm1522_vm6, %vm1523_vm10  ;;  %v10940_v6 = vld [vmem:[#allocation23_spill] sm:$0xff]  ;;  %v10972_v4 = vld [vmem:[#allocation17_spill] sm:$0xff] }
 0x377   :  { %10935 = vst [vmem:[#allocation122_spill] sm:$0xff] %v6378_v34  ;;  %v6383_v45 = vsel %vm1464_vm2, %v6152_v3, %v1461_v54  ;;  %v2614_v18 = vmul.f32 %v6355_v37, %v5069_v63  ;;  %v1521_v58 = vmul.f32 %v6204_v11, %v1520_v41  ;;  %v6389_v27 = vmax.f32 %v10937_v43, 1e-30  ;;  %v10941_v63 = vld [vmem:[#allocation24_spill] sm:$0xff] }
 0x378   :  { %10936 = vst [vmem:[#allocation123_spill] sm:$0xff] %v6383_v45  ;;  %vm10625_vm13 = vcmask 982912   ;;  %v1539_v33 = vmul.f32 0.5, %v1538_v22  ;;  %v1549_v35 = vmul.f32 0.5, %v1548_v12  ;;  %v1558_v24 = vmul.f32 %v6322_v48, %v1557_v38 }
 0x379   :  { %v6397_v3 = vmax.f32 %v10940_v6, 1e-30  ;;  %v6399_v32 = vpop.eup %4444  ;;  %vm1473_vm7 = vweird.f32 %v6266_v21  ;;  %vm1532_vm2 = vweird.f32 %v6143_v39  ;;  %vm1533_vm1 = vweird.f32 %v6224_v9 }
 0x37a   :  { %v6337_v14 = vpop.xlane.xlu2 %1072  ;;  %v6405_v5 = vmax.f32 %v10941_v63, 1e-30  ;;  %v6407_v52 = vpop.eup %4446  ;;  %v2610_v54 = vmul.f32 %v6383_v45, %v5156_v29  ;;  %v1470_v46 = vsub.f32 1.5, %v1469_v51  ;;  %v3585_v0 = vperm.slane %v2613_v23, %v5692_v10  ;;  %vm6428_vm10 = vmor %vm1532_vm2, %vm1533_vm1 }
 0x37b   :  { %10928 = vst [vmem:[#allocation117_spill] sm:$0xff] %v6337_v14  ;;  %v1531_v41 = vmul.f32 %v6224_v9, %v1530_v1  ;;  %v3587_v22 = vperm.slane %v2614_v18, %v5702_v40  ;;  %v6417_v12 = vsel %vm6391_vm4, %v6204_v11, %v1521_v58  ;;  %vm1552_vm6 = vweird.f32 %v6192_v36  ;;  %v6438_v1 = vpop.xlane.xlu0 %1084  ;;  %vm6457_vm12 = vmor %vm1472_vm11, %vm1473_vm7  ;;  %v10955_v36 = vld [vmem:[#allocation73_spill] sm:$0xff] }
 0x37c   :  { %10942 = vst [vmem:[#allocation22_spill] sm:$0xff] %v6417_v12  ;;  %4448 = vrsqrt.f32 %v6389_v27  ;;  %v1540_v38 = vsub.f32 1.5, %v1539_v33  ;;  %v1550_v37 = vsub.f32 1.5, %v1549_v35  ;;  %v1559_v55 = vmul.f32 0.5, %v1558_v24 }
 0x37d   :  { %4450 = vrsqrt.f32 %v6397_v3  ;;  %vm1553_vm4 = vweird.f32 %v6280_v53  ;;  %v1577_v11 = vmul.f32 %v6399_v32, %v6307_v47  ;;  %v1607_v23 = vmul.f32 %v6407_v52, %v6320_v59  ;;  %10946 = vst [vmem:[#allocation24_spill] sm:$0xff] %v6438_v1  ;;  %v6440_v18 = vpop.xlane.xlu1 %1096  ;;  %v10986_v1 = vld [vmem:[#allocation30_spill] sm:$0xff] }
 0x37e   :  { %4452 = vrsqrt.f32 %v6405_v5  ;;  %10947 = vst [vmem:[#allocation124_spill] sm:$0xff] %v6440_v18  ;;  %v2615_v39 = vmul.f32 %v6378_v34, %v5062_v56  ;;  %v10948_v58 = vperm.slane %v6253_v31, %v5675_v15  ;;  %vm1542_vm1 = vweird.f32 %v6202_v30  ;;  %vm6474_vm11 = vmor %vm1552_vm6, %vm1553_vm4  ;;  %v10959_v34 = vld [vmem:[#allocation11_spill] sm:$0xff] }
 0x37f   :  { %vm1543_vm2 = vweird.f32 %v6286_v17  ;;  %v3571_v33 = vsel %vm10669_vm0, %v3569_v16, %v3567_v57  ;;  %v3577_v35 = vperm.slane %v2610_v54, %v6198_v61  ;;  %v1471_v24 = vmul.f32 %v6266_v21, %v1470_v46  ;;  %v11002_v61 = vld [vmem:[#allocation35_spill] sm:$0xff] }
 0x380   :  { %v3586_v8 = vsel %vm3526_vm3, %v3585_v0, %v10948_v58  ;;  %v2616_v31 = vmul.f32 %v6417_v12, %v5169_v62  ;;  %v6466_v30 = vsel %vm6428_vm10, %v6224_v9, %v1531_v41  ;;  %v1541_v57 = vmul.f32 %v6286_v17, %v1540_v38  ;;  %vm1544_vm7 = vmor %vm1542_vm1, %vm1543_vm2  ;;  %v10954_v41 = vld [vmem:[#allocation25_spill] sm:$0xff] }
 0x381   :  { %10951 = vst [vmem:[#allocation125_spill] sm:$0xff] %v6466_v30  ;;  %v1551_v16 = vmul.f32 %v6280_v53, %v1550_v37  ;;  %v1560_v54 = vsub.f32 1.5, %v1559_v55  ;;  %v3588_v62 = vsel %vm10780_vm8, %v3587_v22, %v3586_v8  ;;  %v1578_v9 = vmul.f32 %v6399_v32, %v1577_v11 }
 0x382   :  { %v6422_v29 = vpop.xlane.xlu2 %1081  ;;  %v6478_v46 = vpop.eup %4448  ;;  %v1608_v0 = vmul.f32 %v6407_v52, %v1607_v23  ;;  %v6484_v37 = vmax.f32 %v10954_v41, 1e-30  ;;  %v3589_v51 = vperm.slane %v2615_v39, %v10955_v36  ;;  %v10956_v58 = vperm.slane %v6147_v26, %v5895_v25  ;;  %v10958_v39 = vld [vmem:[#allocation76_spill] sm:$0xff] }
 0x383   :  { %10943 = vst [vmem:[#allocation23_spill] sm:$0xff] %v6422_v29  ;;  %v6486_v38 = vpop.eup %4450  ;;  %vm1562_vm6 = vweird.f32 %v6236_v13  ;;  %vm1563_vm10 = vweird.f32 %v6322_v48  ;;  %v6503_v23 = vsel %vm6457_vm12, %v6266_v21, %v1471_v24  ;;  %v3591_v8 = vperm.slane %v2616_v31, %v10958_v39  ;;  %v10964_v31 = vld [vmem:[#allocation29_spill] sm:$0xff]  ;;  %v10983_v29 = vld [vmem:[#allocation92_spill] sm:$0xff] }
 0x384   :  { %v3575_v55 = vsel %vm10668_vm15, %v10956_v58, %v3571_v33  ;;  %v6495_v22 = vpop.eup %4452  ;;  %10957 = vst [vmem:[#allocation25_spill] sm:$0xff] %v6503_v23  ;;  %v2617_v26 = vmul.f32 %v6466_v30, %v10959_v34  ;;  %v3590_v33 = vsel %vm10779_vm5, %v3589_v51, %v3588_v62  ;;  %v6510_v13 = vsel %vm1544_vm7, %v6286_v17, %v1541_v57  ;;  %vm6518_vm4 = vmor %vm1562_vm6, %vm1563_vm10  ;;  %v10968_v51 = vld [vmem:[#allocation28_spill] sm:$0xff]  ;;  %v6544_v30 = vpop.xlane.xlu0 %1093 }
 0x385   :  { %v6498_v11 = vsel %vm10625_vm13, %v3577_v35, %v3575_v55  ;;  %10960 = vst [vmem:[#allocation73_spill] sm:$0xff] %v6510_v13  ;;  %v6515_v35 = vsel %vm6474_vm11, %v6280_v53, %v1551_v16  ;;  %v1561_v58 = vmul.f32 %v6322_v48, %v1560_v54  ;;  %v1579_v24 = vmul.f32 0.5, %v1578_v9  ;;  %v10967_v9 = vld [vmem:[#allocation84_spill] sm:$0xff]  ;;  %v6546_v12 = vpop.xlane.xlu1 %1105 }
 0x386   :  { %10961 = vst [vmem:[#allocation11_spill] sm:$0xff] %v6515_v35  ;;  %v1609_v56 = vmul.f32 0.5, %v1608_v0  ;;  %v1637_v34 = vmul.f32 %v6478_v46, %v6389_v27  ;;  %4454 = vrsqrt.f32 %v6484_v37  ;;  %v1667_v17 = vmul.f32 %v6486_v38, %v6397_v3 }
 0x387   :  { %v1697_v53 = vmul.f32 %v6495_v22, %v6405_v5  ;;  %v6530_v57 = vmax.f32 %v10964_v31, 1e-30  ;;  %4456 = vrsqrt.f32 %v6248_v20  ;;  %v6537_v54 = vmul.f32 %v6503_v23, %v10966_v19  ;;  %10969 = vst [vmem:[#allocation10_spill] sm:$0xff] %v6544_v30 }
 0x388   :  { %v3592_v62 = vsel %vm10678_vm9, %v3591_v8, %v3590_v33  ;;  %v3593_v0 = vperm.slane %v2617_v26, %v10967_v9  ;;  %v6542_v55 = vmax.f32 %v10968_v51, 1e-30  ;;  %10970 = vst [vmem:[#allocation28_spill] sm:$0xff] %v6546_v12  ;;  %v2618_v45 = vmul.f32 %v6510_v13, %v10971_v7  ;;  %v10974_v13 = vld [vmem:[#allocation26_spill] sm:$0xff] }
 0x389   :  { %v6557_v8 = vsel %vm6518_vm4, %v6322_v48, %v1561_v58  ;;  %vm1582_vm12 = vweird.f32 %v6307_v47  ;;  %v1580_v26 = vsub.f32 1.5, %v1579_v24  ;;  %vm1583_vm1 = vweird.f32 %v6399_v32 }
 0x38a   :  { %v6533_v16 = vpop.xlane.xlu2 %1090  ;;  %10973 = vst [vmem:[#allocation18_spill] sm:$0xff] %v6557_v8  ;;  %v1610_v33 = vsub.f32 1.5, %v1609_v56  ;;  %v1638_v19 = vmul.f32 %v6478_v46, %v1637_v34  ;;  %v1668_v23 = vmul.f32 %v6486_v38, %v1667_v17  ;;  %v1698_v7 = vmul.f32 %v6495_v22, %v1697_v53  ;;  %v10975_v17 = vld [vmem:[#allocation33_spill] sm:$0xff]  ;;  %vm6593_vm6 = vmor %vm1582_vm12, %vm1583_vm1 }
 0x38b   :  { %10965 = vst [vmem:[#allocation29_spill] sm:$0xff] %v6533_v16  ;;  %v6552_v16 = vmul.f32 %v6515_v35, %v10972_v4  ;;  %v6565_v4 = vmax.f32 %v10974_v13, 1e-30  ;;  %4458 = vrsqrt.f32 %v6530_v57  ;;  %v6572_v48 = vmul.f32 %v6557_v8, %v10912_v60  ;;  %v10976_v60 = vld [vmem:[#allocation72_spill] sm:$0xff] }
 0x38c   :  { %v6568_v21 = vpop.eup %4454  ;;  %vm1612_vm2 = vweird.f32 %v6320_v59  ;;  %vm1613_vm11 = vweird.f32 %v6407_v52  ;;  %4460 = vrsqrt.f32 %v6542_v55  ;;  %v3581_v24 = vperm.slane %v6537_v54, %v6246_v42 }
 0x38d   :  { %v6577_v58 = vpop.eup %4456  ;;  %v3594_v56 = vsel %vm10646_vm14, %v3593_v0, %v3592_v62  ;;  %v3595_v34 = vperm.slane %v2618_v45, %v5892_v44  ;;  %v6584_v53 = vmax.f32 %v10975_v17, 1e-30  ;;  %vm10645_vm7 = vcmask 1048512   ;;  %vm6598_vm10 = vmor %vm1612_vm2, %vm1613_vm11  ;;  %v6642_v42 = vpop.xlane.xlu1 %1114 }
 0x38e   :  { %v3597_v59 = vperm.slane %v6552_v16, %v10976_v60  ;;  %v1581_v8 = vmul.f32 %v6399_v32, %v1580_v26  ;;  %v1611_v54 = vmul.f32 %v6407_v52, %v1610_v33  ;;  %v1639_v45 = vmul.f32 0.5, %v1638_v19  ;;  %v10981_v26 = vld [vmem:[#allocation15_spill] sm:$0xff]  ;;  %10991 = vst [vmem:[#allocation126_spill] sm:$0xff] %v6642_v42  ;;  %v10997_v42 = vld [vmem:[#allocation34_spill] sm:$0xff] }
 0x38f   :  { %v1669_v0 = vmul.f32 0.5, %v1668_v23  ;;  %v1699_v12 = vmul.f32 0.5, %v1698_v7  ;;  %v1727_v16 = vmul.f32 %v6568_v21, %v6484_v37  ;;  %4462 = vrsqrt.f32 %v6565_v4  ;;  %v10984_v33 = vld [vmem:[#allocation31_spill] sm:$0xff] }
 0x390   :  { %v6607_v47 = vmul.f32 %v10981_v26, %v10981_v26  ;;  %v3599_v18 = vperm.slane %v6572_v48, %v10983_v29  ;;  %v6612_v19 = vmax.f32 %v10984_v33, 1e-30  ;;  %v230_v30 = vmul.f32 %v6577_v58, %v6248_v20 }
 0x391   :  { %v6616_v23 = vpop.eup %4458  ;;  %vm10985_vm4 = vcmask 458112   ;;  %vm1642_vm12 = vweird.f32 %v6389_v27  ;;  %4464 = vrsqrt.f32 %v6584_v53  ;;  %v6622_v26 = vmax.f32 %v10986_v1, 1e-30 }
 0x392   :  { %10982 = vst [vmem:[#allocation17_spill] sm:$0xff] %v6607_v47  ;;  %v3596_v7 = vsel %vm10985_vm4, %v3595_v34, %v3594_v56  ;;  %v6624_v14 = vpop.xlane.xlu2 %1099  ;;  %v6626_v48 = vpop.eup %4460  ;;  %v6631_v50 = vsel %vm6593_vm6, %v6399_v32, %v1581_v8  ;;  %v6636_v56 = vsel %vm6598_vm10, %v6407_v52, %v1611_v54  ;;  %vm1643_vm1 = vweird.f32 %v6478_v46 }
 0x393   :  { %10987 = vst [vmem:[#allocation26_spill] sm:$0xff] %v6624_v14  ;;  %vm1672_vm2 = vweird.f32 %v6397_v3  ;;  %v6640_v34 = vpop.xlane.xlu0 %1102  ;;  %v1640_v14 = vsub.f32 1.5, %v1639_v45  ;;  %v1670_v29 = vsub.f32 1.5, %v1669_v0  ;;  %v1700_v60 = vsub.f32 1.5, %v1699_v12  ;;  %v10993_v45 = vld [vmem:[#allocation20_spill] sm:$0xff]  ;;  %v10994_v0 = vld [vmem:[#allocation21_spill] sm:$0xff]  ;;  %vm6670_vm13 = vmor %vm1642_vm12, %vm1643_vm1 }
 0x394   :  { %10988 = vst [vmem:[#allocation33_spill] sm:$0xff] %v6631_v50  ;;  %v1728_v35 = vmul.f32 %v6568_v21, %v1727_v16  ;;  %vm1673_vm11 = vweird.f32 %v6486_v38  ;;  %v1587_v32 = vmul.f32 %v6616_v23, %v6530_v57  ;;  %4466 = vrsqrt.f32 %v6612_v19 }
 0x395   :  { %10989 = vst [vmem:[#allocation15_spill] sm:$0xff] %v6636_v56  ;;  %v231_v52 = vmul.f32 %v6577_v58, %v230_v30  ;;  %v6650_v8 = vpop.eup %4462  ;;  %vm1702_vm6 = vweird.f32 %v6405_v5  ;;  %vm1703_vm10 = vweird.f32 %v6495_v22  ;;  %v1567_v12 = vmul.f32 %v6626_v48, %v6542_v55 }
 0x396   :  { %10990 = vst [vmem:[#allocation30_spill] sm:$0xff] %v6640_v34  ;;  %4468 = vrsqrt.f32 %v6622_v26  ;;  %vm10992_vm4 = vcmask 523712   ;;  %v6660_v62 = vmul.f32 %v6631_v50, %v10993_v45  ;;  %v6664_v30 = vmul.f32 %v6636_v56, %v10994_v0  ;;  %vm6692_vm12 = vmor %vm1702_vm6, %vm1703_vm10 }
 0x397   :  { %v3598_v54 = vsel %vm10992_vm4, %v3597_v59, %v3596_v7  ;;  %v6675_v34 = vmax.f32 %v10997_v42, 1e-30  ;;  %v6677_v59 = vpop.eup %4464  ;;  %v1641_v7 = vmul.f32 %v6478_v46, %v1640_v14  ;;  %v1671_v45 = vmul.f32 %v6486_v38, %v1670_v29  ;;  %vm6685_vm4 = vmor %vm1672_vm2, %vm1673_vm11 }
 0x398   :  { %v1701_v27 = vmul.f32 %v6495_v22, %v1700_v60  ;;  %v1729_v56 = vmul.f32 0.5, %v1728_v35  ;;  %v1757_v14 = vmul.f32 %v6650_v8, %v6565_v4  ;;  %v1588_v29 = vmul.f32 %v6616_v23, %v1587_v32  ;;  %v11005_v35 = vld [vmem:[#allocation12_spill] sm:$0xff] }
 0x399   :  { %v6700_v3 = vmax.f32 %v11002_v61, 1e-30  ;;  %v232_v9 = vmul.f32 0.5, %v231_v52  ;;  %v6704_v39 = vsel %vm10645_vm7, %v3581_v24, %v6498_v11  ;;  %vm11004_vm1 = vcmask 589312  }
 0x39a   :  { %11003 = vst [vmem:[#allocation20_spill] sm:$0xff] %v6704_v39  ;;  %v6707_v60 = vsel %vm11004_vm1, %v3599_v18, %v3598_v54  ;;  %v1568_v5 = vmul.f32 %v6626_v48, %v1567_v12  ;;  %v6712_v40 = vmul.f32 %v6607_v47, %v11005_v35  ;;  %v6714_v33 = vpop.eup %4466  ;;  %v1647_v11 = vmul.f32 %v6677_v59, %v6584_v53  ;;  %v6740_v32 = vpop.xlane.xlu2 %1108 }
 0x39b   :  { %4470 = vrsqrt.f32 %v6675_v34  ;;  %v6728_v24 = vsel %vm6670_vm13, %v6478_v46, %v1641_v7  ;;  %v6733_v12 = vsel %vm6685_vm4, %v6486_v38, %v1671_v45  ;;  %v6738_v54 = vsel %vm6692_vm12, %v6495_v22, %v1701_v27  ;;  %11010 = vst [vmem:[#allocation128_spill] sm:$0xff] %v6740_v32  ;;  %v6744_v46 = vpop.xlane.xlu0 %1111  ;;  %v11013_v38 = vld [vmem:[#allocation32_spill] sm:$0xff]  ;;  %v11014_v27 = vld [vmem:[#allocation37_spill] sm:$0xff] }
 0x39c   :  { %11006 = vst [vmem:[#allocation21_spill] sm:$0xff] %v6712_v40  ;;  %v6723_v18 = vpop.eup %4468  ;;  %v1730_v52 = vsub.f32 1.5, %v1729_v56  ;;  %v1758_v39 = vmul.f32 %v6650_v8, %v1757_v14  ;;  %v1589_v40 = vmul.f32 0.5, %v1588_v29  ;;  %4472 = vrsqrt.f32 %v6700_v3  ;;  %v6746_v16 = vpop.xlane.xlu1 %1123 }
 0x39d   :  { %11007 = vst [vmem:[#allocation34_spill] sm:$0xff] %v6728_v24  ;;  %v233_v7 = vsub.f32 1.5, %v232_v9  ;;  %vm1732_vm13 = vweird.f32 %v6484_v37  ;;  %vm1733_vm2 = vweird.f32 %v6568_v21  ;;  %v1569_v50 = vmul.f32 0.5, %v1568_v5 }
 0x39e   :  { %11008 = vst [vmem:[#allocation35_spill] sm:$0xff] %v6733_v12  ;;  %v6751_v22 = vmax.f32 %v11013_v38, 1e-30  ;;  %v1617_v56 = vmul.f32 %v6714_v33, %v6612_v19  ;;  %v1648_v45 = vmul.f32 %v6677_v59, %v1647_v11  ;;  %v1597_v0 = vmul.f32 %v6723_v18, %v6622_v26  ;;  %vm1734_vm11 = vmor %vm1732_vm13, %vm1733_vm2 }
 0x39f   :  { %11009 = vst [vmem:[#allocation127_spill] sm:$0xff] %v6738_v54  ;;  %v6759_v14 = vmax.f32 %v11014_v27, 1e-30  ;;  %v6763_v9 = vmul.f32 %v6728_v24, %v10937_v43  ;;  %v6767_v29 = vmul.f32 %v6733_v12, %v10940_v6  ;;  %v6771_v5 = vmul.f32 %v6738_v54, %v10941_v63 }
 0x3a0   :  { %11011 = vst [vmem:[#allocation129_spill] sm:$0xff] %v6744_v46  ;;  %v1731_v32 = vmul.f32 %v6568_v21, %v1730_v52  ;;  %v1759_v47 = vmul.f32 0.5, %v1758_v39  ;;  %v1590_v35 = vsub.f32 1.5, %v1589_v40  ;;  %v234_v43 = vmul.f32 %v6577_v58, %v233_v7 }
 0x3a1   :  { %11012 = vst [vmem:[#allocation130_spill] sm:$0xff] %v6746_v16  ;;  %v11015_v16 = vld [vmem:[#allocation36_spill] sm:$0xff]  ;;  %v6776_v46 = vpop.eup %4470  ;;  %vm1592_vm6 = vweird.f32 %v6530_v57  ;;  %vm1593_vm10 = vweird.f32 %v6616_v23  ;;  %v1570_v6 = vsub.f32 1.5, %v1569_v50  ;;  %4474 = vrsqrt.f32 %v6751_v22 }
 0x3a2   :  { %v6774_v11 = vmax.f32 %v11015_v16, 1e-30  ;;  %v6787_v63 = vpop.eup %4472  ;;  %v1618_v52 = vmul.f32 %v6714_v33, %v1617_v56  ;;  %v1649_v39 = vmul.f32 0.5, %v1648_v45  ;;  %v1598_v40 = vmul.f32 %v6723_v18, %v1597_v0  ;;  %vm6810_vm1 = vmor %vm1592_vm6, %vm1593_vm10 }
 0x3a3   :  { %4476 = vrsqrt.f32 %v6759_v14  ;;  %vm1572_vm4 = vweird.f32 %v6542_v55  ;;  %vm1573_vm12 = vweird.f32 %v6626_v48  ;;  %v1657_v37 = vmul.f32 %v6776_v46, %v6675_v34  ;;  %v6830_v45 = vpop.xlane.xlu0 %1120 }
 0x3a4   :  { %4478 = vrsqrt.f32 %v6774_v11  ;;  %v6798_v58 = vsel %vm1734_vm11, %v6568_v21, %v1731_v32  ;;  %v1760_v7 = vsub.f32 1.5, %v1759_v47  ;;  %v1591_v50 = vmul.f32 %v6616_v23, %v1590_v35  ;;  %v6817_v35 = vpop.xlane.xlu2 %1117  ;;  %vm6826_vm2 = vmor %vm1572_vm4, %vm1573_vm12  ;;  %11022 = vst [vmem:[#allocation36_spill] sm:$0xff] %v6830_v45  ;;  %v6832_v12 = vpop.xlane.xlu1 %1132 }
 0x3a5   :  { %11016 = vst [vmem:[#allocation32_spill] sm:$0xff] %v6798_v58  ;;  %v235_v56 = vmul.f32 %v234_v43, %v6248_v20  ;;  %v1571_v21 = vmul.f32 %v6626_v48, %v1570_v6  ;;  %v1677_v47 = vmul.f32 %v6787_v63, %v6700_v3  ;;  %vm1762_vm13 = vweird.f32 %v6565_v4  ;;  %v11036_v4 = vld [vmem:[#allocation13_spill] sm:$0xff] }
 0x3a6   :  { %11019 = vst [vmem:[#allocation37_spill] sm:$0xff] %v6817_v35  ;;  %v1619_v43 = vmul.f32 0.5, %v1618_v52  ;;  %v1650_v0 = vsub.f32 1.5, %v1649_v39  ;;  %v1599_v6 = vmul.f32 0.5, %v1598_v40  ;;  %v6838_v32 = vmul.f32 %v6798_v58, %v10954_v41 }
 0x3a7   :  { %11023 = vst [vmem:[#allocation131_spill] sm:$0xff] %v6832_v12  ;;  %v6834_v24 = vpop.eup %4474  ;;  %vm1763_vm11 = vweird.f32 %v6650_v8  ;;  %v1658_v52 = vmul.f32 %v6776_v46, %v1657_v37  ;;  %vm236_vm6 = vcmp.eq.f32.partialorder %v6248_v20, inf  ;;  %v1761_v39 = vmul.f32 %v6650_v8, %v1760_v7 }
 0x3a8   :  { %11024 = vst [vmem:[#allocation132_spill] sm:$0xff] %v6838_v32  ;;  %v6849_v40 = vsel %vm6810_vm1, %v6616_v23, %v1591_v50  ;;  %vm1652_vm10 = vweird.f32 %v6584_v53  ;;  %v237_v41 = vsel %vm236_vm6, %v6248_v20, %v235_v56  ;;  %vm1653_vm4 = vweird.f32 %v6677_v59 }
 0x3a9   :  { %v6843_v55 = vpop.eup %4476  ;;  %11025 = vst [vmem:[#allocation133_spill] sm:$0xff] %v6849_v40  ;;  %v6859_v37 = vsel %vm6826_vm2, %v6626_v48, %v1571_v21  ;;  %v1678_v7 = vmul.f32 %v6787_v63, %v1677_v47  ;;  %v239_v12 = vand.u32 2147483648, %v6248_v20  ;;  %v1620_v54 = vsub.f32 1.5, %v1619_v43  ;;  %vm1654_vm2 = vmor %vm1652_vm10, %vm1653_vm4  ;;  %v11027_v21 = vld [vmem:[#allocation39_spill] sm:$0xff]  ;;  %v11028_v43 = vld [vmem:[#allocation38_spill] sm:$0xff] }
 0x3aa   :  { %v6853_v58 = vpop.eup %4478  ;;  %11026 = vst [vmem:[#allocation134_spill] sm:$0xff] %v6859_v37  ;;  %v1651_v23 = vmul.f32 %v6677_v59, %v1650_v0  ;;  %v1600_v50 = vsub.f32 1.5, %v1599_v6  ;;  %vm238_vm12 = vcmp.eq.f32.partialorder %v6248_v20, 0.0  ;;  %vm1602_vm1 = vweird.f32 %v6622_v26 }
 0x3ab   :  { %v1659_v56 = vmul.f32 0.5, %v1658_v52  ;;  %v1707_v45 = vmul.f32 %v6843_v55, %v6759_v14  ;;  %v6868_v35 = vsel %vm238_vm12, %v239_v12, %v237_v41  ;;  %v2621_v48 = vmul.f32 %v6859_v37, %v10968_v51  ;;  %v11033_v37 = vld [vmem:[#allocation96_spill] sm:$0xff]  ;;  %vm1764_vm12 = vmor %vm1762_vm13, %vm1763_vm11 }
 0x3ac   :  { %vm1603_vm6 = vweird.f32 %v6723_v18  ;;  %v1627_v0 = vmul.f32 %v6834_v24, %v6751_v22  ;;  %v1687_v20 = vmul.f32 %v6853_v58, %v6774_v11  ;;  %vm1622_vm7 = vweird.f32 %v6612_v19  ;;  %v6912_v26 = vpop.xlane.xlu1 %1141 }
 0x3ad   :  { %vm1623_vm14 = vweird.f32 %v6714_v33  ;;  %v1679_v12 = vmul.f32 0.5, %v1678_v7  ;;  %v6882_v47 = vmax.f32 %v11027_v21, 1e-30  ;;  %v6886_v53 = vmul.f32 %v6849_v40, %v10964_v31  ;;  %vm6899_vm10 = vmor %vm1602_vm1, %vm1603_vm6 }
 0x3ae   :  { %v1601_v51 = vmul.f32 %v6723_v18, %v1600_v50  ;;  %v6890_v57 = vmax.f32 %v11028_v43, 1e-30  ;;  %v1621_v52 = vmul.f32 %v6714_v33, %v1620_v54  ;;  %v6895_v41 = vsel %vm1654_vm2, %v6677_v59, %v1651_v23  ;;  %v6904_v50 = vpop.xlane.xlu2 %1126  ;;  %v6910_v54 = vpop.xlane.xlu0 %1129  ;;  %vm1624_vm13 = vmor %vm1622_vm7, %vm1623_vm14 }
 0x3af   :  { %11029 = vst [vmem:[#allocation38_spill] sm:$0xff] %v6895_v41  ;;  %v1660_v31 = vsub.f32 1.5, %v1659_v56  ;;  %v1708_v40 = vmul.f32 %v6843_v55, %v1707_v45  ;;  %v3601_v21 = vperm.slane %v2621_v48, %v11033_v37  ;;  %v1628_v6 = vmul.f32 %v6834_v24, %v1627_v0 }
 0x3b0   :  { %11032 = vst [vmem:[#allocation135_spill] sm:$0xff] %v6904_v50  ;;  %vm1662_vm4 = vweird.f32 %v6675_v34  ;;  %v1688_v59 = vmul.f32 %v6853_v58, %v1687_v20  ;;  %vm1663_vm1 = vweird.f32 %v6776_v46  ;;  %v1680_v45 = vsub.f32 1.5, %v1679_v12 }
 0x3b1   :  { %11034 = vst [vmem:[#allocation136_spill] sm:$0xff] %v6910_v54  ;;  %4480 = vrsqrt.f32 %v6882_v47  ;;  %v6921_v23 = vmax.f32 %v6912_v26, 1e-30  ;;  %v2629_v56 = vmul.f32 %v6895_v41, %v10975_v17  ;;  %v6928_v48 = vsel %vm6899_vm10, %v6723_v18, %v1601_v51  ;;  %vm1664_vm6 = vmor %vm1662_vm4, %vm1663_vm1 }
 0x3b2   :  { %11035 = vst [vmem:[#allocation137_spill] sm:$0xff] %v6928_v48  ;;  %4482 = vrsqrt.f32 %v6890_v57  ;;  %v11037_v0 = vmax.f32 %v6868_v35, 1e-15  ;;  %v1661_v12 = vmul.f32 %v6776_v46, %v1660_v31  ;;  %vm1682_vm11 = vweird.f32 %v6700_v3 }
 0x3b3   :  { %vm1683_vm2 = vweird.f32 %v6787_v63  ;;  %v1709_v17 = vmul.f32 0.5, %v1708_v40  ;;  %v6944_v18 = vsel %vm1764_vm12, %v6650_v8, %v1761_v39  ;;  %v3605_v51 = vperm.slane %v6886_v53, %v6076_v49  ;;  %v11041_v53 = vld [vmem:[#allocation41_spill] sm:$0xff] }
 0x3b4   :  { %v6934_v20 = vmul.f32 %v11037_v0, %v11036_v4  ;;  %11038 = vst [vmem:[#allocation13_spill] sm:$0xff] %v6944_v18  ;;  %v1629_v7 = vmul.f32 0.5, %v1628_v6  ;;  %v1689_v19 = vmul.f32 0.5, %v1688_v59  ;;  %vm11039_vm14 = vcmask 654912   ;;  %vm1684_vm7 = vmor %vm1682_vm11, %vm1683_vm2 }
 0x3b5   :  { %v3602_v31 = vsel %vm11039_vm14, %v3601_v21, %v6707_v60  ;;  %v2624_v3 = vmul.f32 %v6928_v48, %v10986_v1  ;;  %v1681_v40 = vmul.f32 %v6787_v63, %v1680_v45  ;;  %4484 = vrsqrt.f32 %v6921_v23  ;;  %v11043_v21 = vld [vmem:[#allocation40_spill] sm:$0xff] }
 0x3b6   :  { %v6959_v8 = vsel %vm1624_vm13, %v6714_v33, %v1621_v52  ;;  %v3616_v39 = vperm.slane %v2629_v56, %v5692_v10  ;;  %v6963_v34 = vmax.f32 %v11041_v53, 1e-30  ;;  %4486 = vrcp.f32 %v6934_v20 }
 0x3b7   :  { %11040 = vst [vmem:[#allocation138_spill] sm:$0xff] %v6959_v8  ;;  %v6966_v6 = vpop.eup %4480  ;;  %vm1632_vm10 = vweird.f32 %v6751_v22  ;;  %v6970_v1 = vsel %vm1664_vm6, %v6776_v46, %v1661_v12  ;;  %v1710_v60 = vsub.f32 1.5, %v1709_v17  ;;  %v6973_v59 = vmax.f32 %v11043_v21, 1e-30  ;;  %v6995_v17 = vpop.xlane.xlu0 %1138 }
 0x3b8   :  { %11042 = vst [vmem:[#allocation139_spill] sm:$0xff] %v6970_v1  ;;  %v6975_v33 = vpop.eup %4482  ;;  %v11044_v52 = vperm.slane %v6660_v62, %v5757_v28  ;;  %vm11045_vm4 = vcmask 720512   ;;  %v1630_v56 = vsub.f32 1.5, %v1629_v7  ;;  %vm1633_vm12 = vweird.f32 %v6834_v24  ;;  %v6993_v62 = vpop.xlane.xlu2 %1135 }
 0x3b9   :  { %v1690_v4 = vsub.f32 1.5, %v1689_v19  ;;  %v3607_v0 = vperm.slane %v2624_v3, %v6098_v2  ;;  %v6984_v46 = vsel %vm1684_vm7, %v6787_v63, %v1681_v40  ;;  %vm1712_vm1 = vweird.f32 %v6759_v14  ;;  %11047 = vst [vmem:[#allocation141_spill] sm:$0xff] %v6993_v62  ;;  %vm7001_vm6 = vmor %vm1632_vm10, %vm1633_vm12  ;;  %v11082_v2 = vld [vmem:[#allocation14_spill] sm:$0xff] }
 0x3ba   :  { %v3604_v45 = vsel %vm11045_vm4, %v11044_v52, %v3602_v31  ;;  %11046 = vst [vmem:[#allocation140_spill] sm:$0xff] %v6984_v46  ;;  %vm1713_vm13 = vweird.f32 %v6843_v55  ;;  %v2630_v12 = vmul.f32 %v6970_v1, %v10997_v42  ;;  %vm1692_vm11 = vweird.f32 %v6774_v11  ;;  %v11052_v1 = vld [vmem:[#allocation31_spill] sm:$0xff] }
 0x3bb   :  { %vm1693_vm2 = vweird.f32 %v6853_v58  ;;  %4488 = vrsqrt.f32 %v6963_v34  ;;  %11048 = vst [vmem:[#allocation142_spill] sm:$0xff] %v6995_v17  ;;  %v6997_v7 = vpop.eup %4484  ;;  %v1711_v42 = vmul.f32 %v6843_v55, %v1710_v60  ;;  %v1717_v19 = vmul.f32 %v6975_v33, %v6890_v57  ;;  %vm1714_vm14 = vmor %vm1712_vm1, %vm1713_vm13 }
 0x3bc   :  { %v1737_v31 = vmul.f32 %v6966_v6, %v6882_v47  ;;  %4490 = vrsqrt.f32 %v6973_v59  ;;  %v4487_v3 = vpop.eup %4486  ;;  %v7013_v40 = vmul.f32 %v6944_v18, %v10974_v13  ;;  %v1631_v22 = vmul.f32 %v6834_v24, %v1630_v56  ;;  %vm1694_vm10 = vmor %vm1692_vm11, %vm1693_vm2  ;;  %v11056_v18 = vld [vmem:[#allocation70_spill] sm:$0xff] }
 0x3bd   :  { %v7018_v52 = vmul.f32 %v6984_v46, %v11002_v61  ;;  %v1691_v60 = vmul.f32 %v6853_v58, %v1690_v4  ;;  %v7027_v41 = vmul.f32 %v6959_v8, %v11052_v1  ;;  %vm11054_vm7 = vcmask 786112  }
 0x3be   :  { %11051 = vst [vmem:[#allocation143_spill] sm:$0xff] %v7013_v40  ;;  %v3606_v13 = vsel %vm11054_vm7, %v3605_v51, %v3604_v45  ;;  %v2437_v61 = vmul.f32 %v6997_v7, %v6921_v23  ;;  %v4346_v56 = vclamps-f32 %v6934_v20, 15.0  ;;  %v11055_v14 = vperm.slane %v6763_v9, %v5675_v15 }
 0x3bf   :  { %11053 = vst [vmem:[#allocation31_spill] sm:$0xff] %v7027_v41  ;;  %v3608_v1 = vsel %vm10669_vm0, %v3607_v0, %v3606_v13  ;;  %v3618_v46 = vperm.slane %v2630_v12, %v11056_v18  ;;  %v247_v51 = vmul.f32 %v4487_v3, %v6934_v20  ;;  %v7045_v45 = vsel %vm1714_vm14, %v6843_v55, %v1711_v42 }
 0x3c0   :  { %v3617_v4 = vsel %vm3526_vm3, %v3616_v39, %v11055_v14  ;;  %11057 = vst [vmem:[#allocation144_spill] sm:$0xff] %v7045_v45  ;;  %v1718_v11 = vmul.f32 %v6975_v33, %v1717_v19  ;;  %v1738_v8 = vmul.f32 %v6966_v6, %v1737_v31  ;;  %v2438_v48 = vmul.f32 %v6997_v7, %v2437_v61  ;;  %v11059_v39 = vld [vmem:[#allocation76_spill] sm:$0xff] }
 0x3c1   :  { %v7050_v17 = vpop.eup %4488  ;;  %v7055_v9 = vsel %vm7001_vm6, %v6834_v24, %v1631_v22  ;;  %v3622_v0 = vperm.slane %v7018_v52, %v11059_v39  ;;  %v7060_v12 = vsel %vm1694_vm10, %v6853_v58, %v1691_v60  ;;  %v248_v55 = vsub.f32 1.0, %v247_v51 }
 0x3c2   :  { %11058 = vst [vmem:[#allocation145_spill] sm:$0xff] %v7055_v9  ;;  %v7062_v42 = vpop.eup %4490  ;;  %v2439_v19 = vmul.f32 0.5, %v2438_v48  ;;  %4492 = vtanh.f32 %v4346_v56  ;;  %v255_v31 = vand.u32 2147483647, %v6934_v20  ;;  %v257_v13 = vand.u32 2147483648, %v6934_v20 }
 0x3c3   :  { %11060 = vst [vmem:[#allocation76_spill] sm:$0xff] %v7060_v12  ;;  %v3619_v61 = vsel %vm10780_vm8, %v3618_v46, %v3617_v4  ;;  %v7069_v24 = vmul.f32 %v7045_v45, %v11014_v27  ;;  %v249_v63 = vmul.f32 %v4487_v3, %v248_v55  ;;  %vm252_vm4 = vweird.f32 %v4487_v3  ;;  %v7078_v46 = vpop.xlane.xlu2 %1144  ;;  %v7080_v27 = vpop.xlane.xlu0 %1147  ;;  %v11063_v45 = vld [vmem:[#allocation84_spill] sm:$0xff] }
 0x3c4   :  { %v2633_v58 = vmul.f32 %v7060_v12, %v11015_v16  ;;  %v1719_v22 = vmul.f32 0.5, %v1718_v11  ;;  %v1739_v52 = vmul.f32 0.5, %v1738_v8  ;;  %v1767_v48 = vmul.f32 %v7050_v17, %v6963_v34  ;;  %v7086_v4 = vpop.xlane.xlu1 %1150 }
 0x3c5   :  { %11061 = vst [vmem:[#allocation146_spill] sm:$0xff] %v7069_v24  ;;  %v1747_v60 = vmul.f32 %v7062_v42, %v6973_v59  ;;  %v2440_v56 = vsub.f32 1.5, %v2439_v19  ;;  %v250_v14 = vadd.f32 %v4487_v3, %v249_v63  ;;  %vm251_vm12 = vweird.f32 %v6934_v20 }
 0x3c6   :  { %vm2442_vm1 = vweird.f32 %v6921_v23  ;;  %vm253_vm13 = vmor %vm251_vm12, %vm252_vm4  ;;  %vm256_vm11 = vcmp.eq.f32.partialorder %v255_v31, 8.507059e+37  ;;  %v258_v16 = vor.u32 1.1754944e-38, %v257_v13  ;;  %v7084_v8 = vmax.f32 %v7078_v46, 1e-30 }
 0x3c7   :  { %vm2443_vm2 = vweird.f32 %v6997_v7  ;;  %v254_v51 = vsel %vm253_vm13, %v4487_v3, %v250_v14  ;;  %v7090_v11 = vmax.f32 %v7080_v27, 1e-30  ;;  %v7093_v20 = vmax.f32 %v7086_v4, 1e-30 }
 0x3c8   :  { %v4493_v55 = vpop.eup %4492  ;;  %v11062_v19 = vperm.slane %v6767_v29, %v10955_v36  ;;  %v1740_v13 = vsub.f32 1.5, %v1739_v52  ;;  %v259_v63 = vsel %vm256_vm11, %v258_v16, %v254_v51  ;;  %4494 = vrsqrt.f32 %v7084_v8  ;;  %vm2444_vm6 = vmor %vm2442_vm1, %vm2443_vm2  ;;  %v11069_v51 = vld [vmem:[#allocation72_spill] sm:$0xff] }
 0x3c9   :  { %v3624_v12 = vperm.slane %v2633_v58, %v11063_v45  ;;  %v2441_v3 = vmul.f32 %v6997_v7, %v2440_v56  ;;  %v7102_v14 = vmul.f32 %v4493_v55, %v259_v63  ;;  %4496 = vrsqrt.f32 %v7090_v11 }
 0x3ca   :  { %v3621_v31 = vsel %vm10779_vm5, %v11062_v19, %v3619_v61  ;;  %v1720_v62 = vsub.f32 1.5, %v1719_v22  ;;  %v1748_v54 = vmul.f32 %v7062_v42, %v1747_v60  ;;  %v1768_v50 = vmul.f32 %v7050_v17, %v1767_v48 }
 0x3cb   :  { %4498 = vrsqrt.f32 %v7093_v20  ;;  %v11065_v52 = vmax.f32 %v6868_v35, 1e-15  ;;  %v11066_v23 = vperm.slane %v6664_v30, %v5895_v25  ;;  %v7131_v56 = vmul.f32 %v7055_v9, %v11013_v38  ;;  %v7148_v63 = vpop.xlane.xlu2 %1153 }
 0x3cc   :  { %v3623_v16 = vsel %vm10678_vm9, %v3622_v0, %v3621_v31  ;;  %vm11070_vm14 = vcmask 392512   ;;  %v7140_v19 = vmul.f32 %v6966_v6, %v1740_v13  ;;  %v7143_v30 = vsel %vm2444_vm6, %v6997_v7, %v2441_v3  ;;  %v11072_v3 = vld [vmem:[#allocation46_spill] sm:$0xff] }
 0x3cd   :  { %v7121_v48 = vmul.f32 %v7102_v14, %v11065_v52  ;;  %v7127_v60 = vsel %vm10668_vm15, %v11066_v23, %v3608_v1  ;;  %11068 = vst [vmem:[#allocation148_spill] sm:$0xff] %v7131_v56  ;;  %v7137_v35 = vsel %vm11070_vm14, %v3624_v12, %v3623_v16  ;;  %v7153_v0 = vmul.f32 %v6975_v33, %v1720_v62  ;;  %v7162_v52 = vpop.xlane.xlu0 %1156  ;;  %v11073_v16 = vld [vmem:[#allocation45_spill] sm:$0xff] }
 0x3ce   :  { %11067 = vst [vmem:[#allocation147_spill] sm:$0xff] %v7127_v60  ;;  %v7150_v38 = vpop.eup %4494  ;;  %v7155_v31 = vmul.f32 0.5, %v1748_v54  ;;  %v7157_v12 = vmul.f32 0.5, %v1768_v50  ;;  %v7160_v13 = vmax.f32 %v7148_v63, 1e-30  ;;  %v7178_v50 = vmul.f32 %v7143_v30, %v6912_v26 }
 0x3cf   :  { %11071 = vst [vmem:[#allocation149_spill] sm:$0xff] %v7143_v30  ;;  %v7146_v1 = vmax.f32 %v7121_v48, 1e-15  ;;  %v4497_v7 = vpop.eup %4496  ;;  %v7165_v23 = vmax.f32 %v11072_v3, 1e-30  ;;  %v2447_v29 = vmul.f32 %v7150_v38, %v7084_v8  ;;  %vm2452_vm7 = vweird.f32 %v7084_v8 }
 0x3d0   :  { %v7168_v61 = vmax.f32 %v11073_v16, 1e-30  ;;  %v7172_v62 = vmax.f32 %v7162_v52, 1e-30  ;;  %v2457_v55 = vmul.f32 %v4497_v7, %v7090_v11  ;;  %vm2462_vm10 = vweird.f32 %v7090_v11  ;;  %v7192_v16 = vpop.xlane.xlu1 %1159 }
 0x3d1   :  { %4500 = vrcp.f32 %v7146_v1  ;;  %v7174_v54 = vpop.eup %4498  ;;  %v273_v22 = vand.u32 2147483647, %v7146_v1  ;;  %vm2472_vm4 = vweird.f32 %v7093_v20  ;;  %v275_v40 = vand.u32 2147483648, %v7146_v1 }
 0x3d2   :  { %v2467_v9 = vmul.f32 %v7174_v54, %v7093_v20  ;;  %v2448_v26 = vmul.f32 %v7150_v38, %v2447_v29  ;;  %v2458_v30 = vmul.f32 %v4497_v7, %v2457_v55  ;;  %4502 = vrsqrt.f32 %v7160_v13 }
 0x3d3   :  { %vm2453_vm12 = vweird.f32 %v7150_v38  ;;  %4504 = vrsqrt.f32 %v7172_v62  ;;  %v7198_v25 = vmax.f32 %v7192_v16, 1e-30  ;;  %vm2463_vm1 = vweird.f32 %v4497_v7 }
 0x3d4   :  { %v2468_v3 = vmul.f32 %v7174_v54, %v2467_v9  ;;  %v2449_v53 = vmul.f32 0.5, %v2448_v26  ;;  %v2459_v21 = vmul.f32 0.5, %v2458_v30  ;;  %vm269_vm13 = vweird.f32 %v7146_v1  ;;  %vm7214_vm6 = vmor %vm2452_vm7, %vm2453_vm12  ;;  %v7218_v26 = vpop.xlane.xlu2 %1162 }
 0x3d5   :  { %vm2473_vm11 = vweird.f32 %v7174_v54  ;;  %4506 = vrsqrt.f32 %v7198_v25  ;;  %vm7206_vm2 = vcmp.eq.f32.partialorder %v273_v22, 8.507059e+37  ;;  %v276_v56 = vor.u32 1.1754944e-38, %v275_v40  ;;  %vm7222_vm14 = vmor %vm2462_vm10, %vm2463_vm1 }
 0x3d6   :  { %v2469_v55 = vmul.f32 0.5, %v2468_v3  ;;  %v2450_v58 = vsub.f32 1.5, %v2449_v53  ;;  %v2460_v3 = vsub.f32 1.5, %v2459_v21  ;;  %vm2482_vm15 = vweird.f32 %v7160_v13  ;;  %vm7238_vm10 = vmor %vm2472_vm4, %vm2473_vm11 }
 0x3d7   :  { %v4501_v29 = vpop.eup %4500  ;;  %vm2492_vm0 = vweird.f32 %v7172_v62  ;;  %v7229_v53 = vmax.f32 %v7218_v26, 1e-30  ;;  %vm262_vm12 = vcmp.gt.f32.partialorder %v7121_v48, %v11082_v2  ;;  %vm2502_vm1 = vweird.f32 %v7198_v25 }
 0x3d8   :  { %v265_v9 = vmul.f32 %v4501_v29, %v7146_v1  ;;  %v2470_v32 = vsub.f32 1.5, %v2469_v55  ;;  %v7231_v40 = vpop.eup %4502  ;;  %vm270_vm7 = vweird.f32 %v4501_v29  ;;  %v2451_v21 = vmul.f32 %v7150_v38, %v2450_v58  ;;  %v7242_v55 = vpop.xlane.xlu0 %1165 }
 0x3d9   :  { %v2461_v41 = vmul.f32 %v4497_v7, %v2460_v3  ;;  %v4505_v60 = vpop.eup %4504  ;;  %v2477_v58 = vmul.f32 %v7231_v40, %v7160_v13  ;;  %4508 = vrsqrt.f32 %v7229_v53  ;;  %v7252_v20 = vmax.f32 %v7242_v55, 1e-30  ;;  %vm271_vm4 = vmor %vm269_vm13, %vm270_vm7 }
 0x3da   :  { %v266_v8 = vsub.f32 1.0, %v265_v9  ;;  %v2471_v9 = vmul.f32 %v7174_v54, %v2470_v32  ;;  %v7257_v49 = vsel %vm7214_vm6, %v7150_v38, %v2451_v21  ;;  %v2487_v32 = vmul.f32 %v4505_v60, %v7172_v62 }
 0x3db   :  { %11083 = vst [vmem:[#allocation150_spill] sm:$0xff] %v7257_v49  ;;  %v7261_v28 = vsel %vm7222_vm14, %v4497_v7, %v2461_v41  ;;  %v7264_v37 = vpop.eup %4506  ;;  %vm1743_vm11 = vweird.f32 %v6966_v6  ;;  %v2478_v41 = vmul.f32 %v7231_v40, %v2477_v58  ;;  %vm1722_vm6 = vweird.f32 %v6890_v57 }
 0x3dc   :  { %v267_v3 = vmul.f32 %v4501_v29, %v266_v8  ;;  %11084 = vst [vmem:[#allocation151_spill] sm:$0xff] %v7261_v28  ;;  %v2709_v8 = vmul.f32 %v7257_v49, %v7078_v46  ;;  %v2710_v30 = vmul.f32 %v7261_v28, %v7080_v27  ;;  %v7275_v38 = vsel %vm7238_vm10, %v7174_v54, %v2471_v9 }
 0x3dd   :  { %11085 = vst [vmem:[#allocation152_spill] sm:$0xff] %v7275_v38  ;;  %vm1723_vm14 = vweird.f32 %v6975_v33  ;;  %v2711_v22 = vmul.f32 %v7275_v38, %v7086_v4  ;;  %vm2483_vm9 = vweird.f32 %v7231_v40  ;;  %v2488_v46 = vmul.f32 %v4505_v60, %v2487_v32  ;;  %v11114_v38 = vld [vmem:[#allocation92_spill] sm:$0xff] }
 0x3de   :  { %v268_v7 = vadd.f32 %v4501_v29, %v267_v3  ;;  %v3771_v27 = vperm.slane %v2709_v8, %v5692_v10  ;;  %v3773_v54 = vperm.slane %v2710_v30, %v11056_v18  ;;  %v2479_v21 = vmul.f32 0.5, %v2478_v41  ;;  %vm2484_vm13 = vmor %vm2482_vm15, %vm2483_vm9 }
 0x3df   :  { %v2497_v11 = vmul.f32 %v7264_v37, %v7198_v25  ;;  %v3775_v58 = vperm.slane %v2711_v22, %v10955_v36  ;;  %v2489_v3 = vmul.f32 0.5, %v2488_v46  ;;  %vm2493_vm10 = vweird.f32 %v4505_v60  ;;  %v7291_v4 = vpop.eup %4508  ;;  %v7313_v46 = vpop.xlane.xlu1 %1168  ;;  %v11105_v25 = vld [vmem:[#allocation43_spill] sm:$0xff] }
 0x3e0   :  { %v272_v9 = vsel %vm271_vm4, %v4501_v29, %v268_v7  ;;  %v11086_v1 = vperm.slane %v7178_v50, %v5675_v15  ;;  %v2480_v30 = vsub.f32 1.5, %v2479_v21  ;;  %v2507_v24 = vmul.f32 %v7291_v4, %v7229_v53  ;;  %vm1724_vm4 = vmor %vm1722_vm6, %vm1723_vm14 }
 0x3e1   :  { %v277_v32 = vsel %vm7206_vm2, %v276_v56, %v272_v9  ;;  %v2498_v41 = vmul.f32 %v7264_v37, %v2497_v11  ;;  %v2490_v7 = vsub.f32 1.5, %v2489_v3  ;;  %vm2494_vm2 = vmor %vm2492_vm0, %vm2493_vm10  ;;  %vm2503_vm7 = vweird.f32 %v7264_v37 }
 0x3e2   :  { %v3772_v8 = vsel %vm3526_vm3, %v3771_v27, %v11086_v1  ;;  %v278_v28 = vmul.f32 %v277_v32, %v11082_v2  ;;  %v2481_v50 = vmul.f32 %v7231_v40, %v2480_v30  ;;  %vm2512_vm9 = vweird.f32 %v7229_v53  ;;  %vm7331_vm0 = vmor %vm2502_vm1, %vm2503_vm7  ;;  %v11153_v2 = vld [vmem:[#allocation132_spill] sm:$0xff] }
 0x3e3   :  { %v3774_v29 = vsel %vm10780_vm8, %v3773_v54, %v3772_v8  ;;  %v2499_v22 = vmul.f32 0.5, %v2498_v41  ;;  %v2491_v27 = vmul.f32 %v4505_v60, %v2490_v7  ;;  %v2508_v54 = vmul.f32 %v7291_v4, %v2507_v24  ;;  %v7361_v41 = vpop.xlane.xlu0 %1174 }
 0x3e4   :  { %v3776_v56 = vsel %vm10779_vm5, %v3775_v58, %v3774_v29  ;;  %v279_v13 = vsel %vm262_vm12, %v278_v28, 1.0  ;;  %v7323_v62 = vsel %vm2484_vm13, %v7231_v40, %v2481_v50  ;;  %4510 = vrsqrt.f32 %v7252_v20 }
 0x3e5   :  { %v280_v21 = vmul.f32 %v279_v13, %v7102_v14  ;;  %v288_v11 = vmul.f32 %v279_v13, %v7121_v48  ;;  %11087 = vst [vmem:[#allocation153_spill] sm:$0xff] %v7323_v62  ;;  %v2500_v9 = vsub.f32 1.5, %v2499_v22  ;;  %v2712_v58 = vmul.f32 %v7323_v62, %v7148_v63  ;;  %v7352_v63 = vld [vmem:[#allocation3] sm:$0xff] }
 0x3e6   :  { %v7327_v3 = vsel %vm2494_vm2, %v4505_v60, %v2491_v27  ;;  %v2509_v32 = vmul.f32 0.5, %v2508_v54  ;;  %vm2513_vm15 = vweird.f32 %v7291_v4  ;;  %v7342_v60 = vpop.xlane.xlu2 %1171  ;;  %vm11091_vm12 = vweird.f32 %v6882_v47  ;;  %v11094_v47 = vld [vmem:[#allocation12_spill] sm:$0xff] }
 0x3e7   :  { %11088 = vst [vmem:[#allocation154_spill] sm:$0xff] %v7327_v3  ;;  %v7336_v14 = vmul.f32 %v288_v11, %v288_v11  ;;  %283 = vperm.xlu0 %4366, %v280_v21   ;;  %v2713_v48 = vmul.f32 %v7327_v3, %v7162_v52  ;;  %v2501_v40 = vmul.f32 %v7264_v37, %v2500_v9  ;;  %vm7348_vm1 = vmor %vm11091_vm12, %vm1743_vm11  ;;  %v7356_v52 = vmax.f32 %v7313_v46, 1e-30 }
 0x3e8   :  { %v3777_v1 = vperm.slane %v2712_v58, %v11059_v39  ;;  %v2510_v8 = vsub.f32 1.5, %v2509_v32  ;;  %v7359_v30 = vmax.f32 %v7342_v60, 1e-30  ;;  %v7376_v50 = vmax.f32 %v7361_v41, 1e-30  ;;  %vm2514_vm6 = vmor %vm2512_vm9, %vm2513_vm15  ;;  %v11103_v58 = vld [vmem:[#allocation44_spill] sm:$0xff] }
 0x3e9   :  { %v375_v29 = vmul.f32 %v7336_v14, %v11094_v47  ;;  %v3779_v7 = vperm.slane %v2713_v48, %v11063_v45  ;;  %v7373_v24 = vsel %vm7331_vm0, %v7264_v37, %v2501_v40  ;;  %vm11096_vm11 = vcmask 326912  }
 0x3ea   :  { %11095 = vst [vmem:[#allocation155_spill] sm:$0xff] %v7373_v24  ;;  %v3778_v22 = vsel %vm11096_vm11, %v3777_v1, %v3776_v56  ;;  %v2714_v13 = vmul.f32 %v7373_v24, %v7192_v16  ;;  %v2511_v57 = vmul.f32 %v7291_v4, %v2510_v8  ;;  %4512 = vrsqrt.f32 %v7356_v52  ;;  %v4511_v56 = vpop.eup %4510 }
 0x3eb   :  { %v376_v27 = vsub.f32 1.0, %v375_v29  ;;  %v3826_v37 = vmul.f32 2.0, %v7352_v63  ;;  %vm11097_vm14 = vcmask 392512   ;;  %4514 = vrsqrt.f32 %v7359_v30 }
 0x3ec   :  { %v3780_v54 = vsel %vm11097_vm14, %v3779_v7, %v3778_v22  ;;  %v7392_v16 = vsel %vm1724_vm4, %v6975_v33, %v7153_v0  ;;  %v7398_v53 = vsel %vm7348_vm1, %v6966_v6, %v7140_v19  ;;  %v3781_v21 = vperm.slane %v2714_v13, %v5892_v44  ;;  %v7414_v19 = vpop.xlane.xlu1 %1177 }
 0x3ed   :  { %11098 = vst [vmem:[#allocation156_spill] sm:$0xff] %v7392_v16  ;;  %4516 = vrsqrt.f32 %v7376_v50  ;;  %v11100_v11 = vperm.slane %v6771_v5, %v5892_v44  ;;  %vm11101_vm10 = vcmask 458112   ;;  %405 = vperm.xlu1 %4365, %v376_v27   ;;  %v7411_v0 = vsel %vm2514_vm6, %v7291_v4, %v2511_v57  ;;  %v11106_v57 = vld [vmem:[#allocation51_spill] sm:$0xff] }
 0x3ee   :  { %11099 = vst [vmem:[#allocation157_spill] sm:$0xff] %v7398_v53  ;;  %v2517_v6 = vmul.f32 %v4511_v56, %v7252_v20  ;;  %4518 = vrsqrt.f32 %v7165_v23  ;;  %v7418_v28 = vmax.f32 %v11103_v58, 1e-30  ;;  %vm11104_vm13 = vmmov %vm11101_vm10  ;;  %v7428_v32 = vmul.f32 %v7392_v16, %v11028_v43  ;;  %v11141_v16 = vld [vmem:[#allocation16_spill] sm:$0xff] }
 0x3ef   :  { %v7407_v9 = vsel %vm11101_vm10, %v11100_v11, %v7137_v35  ;;  %11102 = vst [vmem:[#allocation158_spill] sm:$0xff] %v7411_v0  ;;  %v7421_v5 = vsel %vm11104_vm13, %v3781_v21, %v3780_v54  ;;  %v7424_v35 = vmax.f32 %v7414_v19, 1e-30  ;;  %4520 = vrsqrt.f32 %v7168_v61  ;;  %3829 = vperm.xlu0 %4366, %v3826_v37  }
 0x3f0   :  { %v2518_v48 = vmul.f32 %v4511_v56, %v2517_v6  ;;  %v4513_v40 = vpop.eup %4512  ;;  %v7433_v1 = vmax.f32 %v11105_v25, 1e-30  ;;  %v2715_v8 = vmul.f32 %v7411_v0, %v7218_v26  ;;  %v377_v29 = vmul.f32 %v11094_v47, %v11094_v47  ;;  %v672_v26 = vld [vmem:[#allocation4] sm:$0xff] }
 0x3f1   :  { %4522 = vrsqrt.f32 %v7424_v35  ;;  %v7440_v43 = vpop.eup %4514  ;;  %vm2522_vm2 = vweird.f32 %v7252_v20  ;;  %vm2523_vm7 = vweird.f32 %v4511_v56  ;;  %v2527_v22 = vmul.f32 %v4513_v40, %v7356_v52 }
 0x3f2   :  { %v2519_v7 = vmul.f32 0.5, %v2518_v48  ;;  %4524 = vrsqrt.f32 %v7418_v28  ;;  %v7448_v27 = vmax.f32 %v11106_v57, 1e-30  ;;  %vm2532_vm9 = vweird.f32 %v7356_v52  ;;  %vm7461_vm15 = vmor %vm2522_vm2, %vm2523_vm7 }
 0x3f3   :  { %v7444_v13 = vpop.eup %4516  ;;  %v2537_v37 = vmul.f32 %v7440_v43, %v7359_v30  ;;  %v2528_v21 = vmul.f32 %v4513_v40, %v2527_v22  ;;  %vm2542_vm0 = vweird.f32 %v7359_v30  ;;  %v3783_v48 = vperm.slane %v2715_v8, %v11069_v51 }
 0x3f4   :  { %v2520_v54 = vsub.f32 1.5, %v2519_v7  ;;  %v2547_v11 = vmul.f32 %v7444_v13, %v7376_v50  ;;  %v7456_v6 = vpop.eup %4518  ;;  %vm2552_vm12 = vweird.f32 %v7376_v50  ;;  %v378_v7 = vmul.f32 %v377_v29, %v7336_v14 }
 0x3f5   :  { %v2538_v4 = vmul.f32 %v7440_v43, %v2537_v37  ;;  %v7468_v22 = vpop.eup %4520  ;;  %3390 = vperm.xlu1 %4365, %v672_v26   ;;  %v2529_v3 = vmul.f32 0.5, %v2528_v21  ;;  %vm2533_vm1 = vweird.f32 %v4513_v40  ;;  %vm1752_vm4 = vweird.f32 %v6973_v59  ;;  %v11109_v37 = vld [vmem:[#allocation17_spill] sm:$0xff] }
 0x3f6   :  { %v2521_v0 = vmul.f32 %v4511_v56, %v2520_v54  ;;  %v2548_v8 = vmul.f32 %v7444_v13, %v2547_v11  ;;  %vm1753_vm11 = vweird.f32 %v7062_v42  ;;  %vm2543_vm6 = vweird.f32 %v7440_v43  ;;  %v11112_v11 = vld [vmem:[#allocation42_spill] sm:$0xff]  ;;  %vm2534_vm2 = vmor %vm2532_vm9, %vm2533_vm1 }
 0x3f7   :  { %v4523_v24 = vpop.eup %4522  ;;  %v2539_v20 = vmul.f32 0.5, %v2538_v4  ;;  %vm2553_vm14 = vweird.f32 %v7444_v13  ;;  %v7476_v14 = vmul.f32 %v378_v7, %v11109_v37  ;;  %vm1772_vm10 = vweird.f32 %v6963_v34  ;;  %vm2544_vm7 = vmor %vm2542_vm0, %vm2543_vm6 }
 0x3f8   :  { %vm1773_vm13 = vweird.f32 %v7050_v17  ;;  %v7482_v29 = vsel %vm7461_vm15, %v4511_v56, %v2521_v0  ;;  %v2530_v26 = vsub.f32 1.5, %v2529_v3  ;;  %v2549_v54 = vmul.f32 0.5, %v2548_v8  ;;  %v7485_v4 = vpop.eup %4524  ;;  %vm2554_vm9 = vmor %vm2552_vm12, %vm2553_vm14 }
 0x3f9   :  { %11110 = vst [vmem:[#allocation44_spill] sm:$0xff] %v7476_v14  ;;  %v2557_v21 = vmul.f32 %v4523_v24, %v7424_v35  ;;  %v7488_v62 = vmax.f32 %v11112_v11, 1e-30  ;;  %v1797_v7 = vmul.f32 %v7456_v6, %v7165_v23  ;;  %v2716_v37 = vmul.f32 %v7482_v29, %v7242_v55 }
 0x3fa   :  { %11111 = vst [vmem:[#allocation43_spill] sm:$0xff] %v7482_v29  ;;  %v2540_v56 = vsub.f32 1.5, %v2539_v20  ;;  %4526 = vrsqrt.f32 %v7448_v27  ;;  %v2531_v3 = vmul.f32 %v4513_v40, %v2530_v26  ;;  %v2550_v33 = vsub.f32 1.5, %v2549_v54 }
 0x3fb   :  { %v2558_v0 = vmul.f32 %v4523_v24, %v2557_v21  ;;  %vm11113_vm15 = vcmask 523712   ;;  %v3785_v55 = vperm.slane %v2716_v37, %v11114_v38  ;;  %vm2562_vm1 = vweird.f32 %v7424_v35 }
 0x3fc   :  { %v3784_v8 = vsel %vm11113_vm15, %v3783_v48, %v7421_v5  ;;  %v2541_v29 = vmul.f32 %v7440_v43, %v2540_v56  ;;  %v7511_v52 = vsel %vm2534_vm2, %v4513_v40, %v2531_v3  ;;  %v2551_v30 = vmul.f32 %v7444_v13, %v2550_v33  ;;  %v11116_v5 = vld [vmem:[#allocation47_spill] sm:$0xff]  ;;  %vm7556_vm2 = vmor %vm1752_vm4, %vm1753_vm11 }
 0x3fd   :  { %11115 = vst [vmem:[#allocation51_spill] sm:$0xff] %v7511_v52  ;;  %v2559_v20 = vmul.f32 0.5, %v2558_v0  ;;  %vm2563_vm0 = vweird.f32 %v4523_v24  ;;  %4528 = vrsqrt.f32 %v7488_v62  ;;  %v7516_v48 = vmax.f32 %v11116_v5, 1e-30  ;;  %4221 = vperm.xlu1 %4365, %v7352_v63   ;;  %vm1774_vm4 = vmor %vm1772_vm10, %vm1773_vm13 }
 0x3fe   :  { %v2717_v26 = vmul.f32 %v7511_v52, %v7313_v46  ;;  %v7521_v54 = vsel %vm2544_vm7, %v7440_v43, %v2541_v29  ;;  %vm11118_vm12 = vcmask 589312   ;;  %v7528_v21 = vsel %vm2554_vm9, %v7444_v13, %v2551_v30  ;;  %v11120_v46 = vld [vmem:[#allocation96_spill] sm:$0xff]  ;;  %vm2564_vm6 = vmor %vm2562_vm1, %vm2563_vm0  ;;  %v11122_v29 = vld [vmem:[#allocation50_spill] sm:$0xff] }
 0x3ff   :  { %11117 = vst [vmem:[#allocation17_spill] sm:$0xff] %v7521_v54  ;;  %v3786_v50 = vsel %vm11118_vm12, %v3785_v55, %v3784_v8  ;;  %v2718_v40 = vmul.f32 %v7521_v54, %v7342_v60  ;;  %v2560_v37 = vsub.f32 1.5, %v2559_v20  ;;  %v1798_v56 = vmul.f32 %v7456_v6, %v1797_v7  ;;  %v11123_v7 = vld [vmem:[#allocation77_spill] sm:$0xff]  ;;  %v11125_v30 = vld [vmem:[#allocation103_spill] sm:$0xff]  ;;  %vm11145_vm13 = vmmov %vm11113_vm15 }
 0x400   :  { %11119 = vst [vmem:[#allocation42_spill] sm:$0xff] %v7528_v21  ;;  %v1807_v3 = vmul.f32 %v7485_v4, %v7418_v28  ;;  %v3787_v33 = vperm.slane %v2717_v26, %v11120_v46  ;;  %v2719_v43 = vmul.f32 %v7528_v21, %v7361_v41  ;;  %v7538_v63 = vpop.eup %4526  ;;  %v11121_v60 = vsub.f32 1.5, %v7155_v31  ;;  %v11137_v21 = vld [vmem:[#allocation31_spill] sm:$0xff]  ;;  %vm11147_vm15 = vmmov %vm11118_vm12 }
 0x401   :  { %v7544_v0 = vmax.f32 %v11122_v29, 1e-30  ;;  %v3789_v8 = vperm.slane %v2718_v40, %v11123_v7  ;;  %v2561_v55 = vmul.f32 %v4523_v24, %v2560_v37  ;;  %4530 = vrsqrt.f32 %v7433_v1  ;;  %v11138_v54 = vld [vmem:[#allocation111_spill] sm:$0xff] }
 0x402   :  { %v1751_v13 = vmul.f32 %v7062_v42, %v11121_v60  ;;  %v1817_v41 = vmul.f32 %v7468_v22, %v7168_v61  ;;  %vm11124_vm14 = vcmask 654912   ;;  %v3791_v20 = vperm.slane %v2719_v43, %v11125_v30 }
 0x403   :  { %v3788_v35 = vsel %vm11124_vm14, %v3787_v33, %v3786_v50  ;;  %v11128_v26 = vsub.f32 1.5, %v7157_v12  ;;  %4532 = vrsqrt.f32 %v7516_v48  ;;  %vm11129_vm7 = vcmask 720512   ;;  %v7567_v50 = vpop.eup %4528  ;;  %vm11155_vm1 = vmmov %vm11124_vm14 }
 0x404   :  { %v3790_v37 = vsel %vm11129_vm7, %v3789_v8, %v3788_v35  ;;  %v7565_v60 = vsel %vm2564_vm6, %v4523_v24, %v2561_v55  ;;  %v3630_v33 = vperm.slane %v7428_v32, %v11114_v38  ;;  %v1799_v59 = vmul.f32 0.5, %v1798_v56  ;;  %v11131_v8 = vld [vmem:[#allocation54_spill] sm:$0xff]  ;;  %v11133_v35 = vld [vmem:[#allocation39_spill] sm:$0xff] }
 0x405   :  { %v1771_v40 = vmul.f32 %v7050_v17, %v11128_v26  ;;  %11130 = vst [vmem:[#allocation47_spill] sm:$0xff] %v7565_v60  ;;  %v1808_v12 = vmul.f32 %v7485_v4, %v1807_v3  ;;  %v2720_v43 = vmul.f32 %v7565_v60, %v7414_v19  ;;  %v1827_v24 = vmul.f32 %v7538_v63, %v7448_v27  ;;  %v11135_v3 = vld [vmem:[#allocation104_spill] sm:$0xff]  ;;  %v11136_v60 = vld [vmem:[#allocation147_spill] sm:$0xff] }
 0x406   :  { %4534 = vrsqrt.f32 %v7544_v0  ;;  %v7582_v55 = vmax.f32 %v11131_v8, 1e-30  ;;  %vm11132_vm11 = vcmask 786112   ;;  %v2638_v34 = vmul.f32 %v7398_v53, %v11133_v35  ;;  %v11143_v35 = vld [vmem:[#allocation146_spill] sm:$0xff] }
 0x407   :  { %v3792_v32 = vsel %vm11132_vm11, %v3791_v20, %v3790_v37  ;;  %v7590_v56 = vsel %vm7556_vm2, %v7062_v42, %v1751_v13  ;;  %v1818_v19 = vmul.f32 %v7468_v22, %v1817_v41  ;;  %v3793_v26 = vperm.slane %v2720_v43, %v11135_v3  ;;  %v11142_v20 = vld [vmem:[#allocation148_spill] sm:$0xff]  ;;  %v7609_v41 = vpop.eup %4530 }
 0x408   :  { %11134 = vst [vmem:[#allocation50_spill] sm:$0xff] %v7590_v56  ;;  %v11139_v52 = vperm.slane %v11137_v21, %v11138_v54  ;;  %vm11140_vm10 = vcmask 982912   ;;  %v3613_v37 = vperm.slane %v11142_v20, %v11141_v16  ;;  %v11144_v53 = vperm.slane %v11143_v35, %v11069_v51  ;;  %v11150_v20 = vld [vmem:[#allocation40_spill] sm:$0xff] }
 0x409   :  { %v7607_v13 = vsel %vm1774_vm4, %v7050_v17, %v1771_v40  ;;  %v1777_v21 = vmul.f32 %v7567_v50, %v7488_v62  ;;  %vm11148_vm9 = vcmask 851712   ;;  %v7617_v43 = vpop.eup %4532  ;;  %v2639_v35 = vmul.f32 %v7590_v56, %v11150_v20  ;;  %v11151_v40 = vld [vmem:[#allocation41_spill] sm:$0xff] }
 0x40a   :  { %v3612_v49 = vsel %vm11140_vm10, %v11139_v52, %v11136_v60  ;;  %v3629_v42 = vsel %vm11145_vm13, %v11144_v53, %v7407_v9  ;;  %11146 = vst [vmem:[#allocation54_spill] sm:$0xff] %v7607_v13  ;;  %v1809_v52 = vmul.f32 0.5, %v1808_v12  ;;  %v7615_v60 = vsel %vm11148_vm9, %v3793_v26, %v3792_v32 }
 0x40b   :  { %v3631_v31 = vsel %vm11147_vm15, %v3630_v33, %v3629_v42  ;;  %11149 = vst [vmem:[#allocation39_spill] sm:$0xff] %v7615_v60  ;;  %v1800_v53 = vsub.f32 1.5, %v1799_v59  ;;  %v1828_v17 = vmul.f32 %v7538_v63, %v1827_v24  ;;  %4536 = vrsqrt.f32 %v7582_v55  ;;  %v11152_v42 = vld [vmem:[#allocation53_spill] sm:$0xff] }
 0x40c   :  { %v3634_v9 = vperm.slane %v2638_v34, %v11123_v7  ;;  %v7626_v33 = vmul.f32 %v7607_v13, %v11151_v40  ;;  %v1819_v12 = vmul.f32 0.5, %v1818_v19  ;;  %v7629_v32 = vmax.f32 %v11152_v42, 1e-30  ;;  %v7631_v26 = vpop.eup %4534  ;;  %v11156_v13 = vld [vmem:[#allocation52_spill] sm:$0xff] }
 0x40d   :  { %v11154_v20 = vperm.slane %v11153_v2, %v11120_v46  ;;  %v1787_v24 = vmul.f32 %v7609_v41, %v7433_v1  ;;  %vm1802_vm0 = vweird.f32 %v7165_v23  ;;  %vm1803_vm12 = vweird.f32 %v7456_v6 }
 0x40e   :  { %v1778_v34 = vmul.f32 %v7567_v50, %v1777_v21  ;;  %v1810_v19 = vsub.f32 1.5, %v1809_v52  ;;  %v1837_v40 = vmul.f32 %v7617_v43, %v7516_v48  ;;  %v7645_v56 = vmax.f32 %v11156_v13, 1e-30  ;;  %vm7650_vm14 = vmor %vm1802_vm0, %vm1803_vm12 }
 0x40f   :  { %v3633_v59 = vsel %vm11155_vm1, %v11154_v20, %v3631_v31  ;;  %v3636_v2 = vperm.slane %v2639_v35, %v11125_v30  ;;  %v1801_v31 = vmul.f32 %v7456_v6, %v1800_v53  ;;  %vm1812_vm6 = vweird.f32 %v7418_v28  ;;  %v11159_v53 = vld [vmem:[#allocation57_spill] sm:$0xff] }
 0x410   :  { %v1829_v20 = vmul.f32 0.5, %v1828_v17  ;;  %vm1813_vm2 = vweird.f32 %v7485_v4  ;;  %v1820_v21 = vsub.f32 1.5, %v1819_v12  ;;  %v1847_v52 = vmul.f32 %v7631_v26, %v7544_v0 }
 0x411   :  { %4538 = vrsqrt.f32 %v7629_v32  ;;  %v7658_v60 = vpop.eup %4536  ;;  %v1788_v35 = vmul.f32 %v7609_v41, %v1787_v24  ;;  %vm1822_vm7 = vweird.f32 %v7168_v61  ;;  %vm1823_vm4 = vweird.f32 %v7468_v22  ;;  %v11163_v24 = vld [vmem:[#allocation88_spill] sm:$0xff]  ;;  %vm1814_vm13 = vmor %vm1812_vm6, %vm1813_vm2  ;;  %v11167_v61 = vld [vmem:[#allocation46_spill] sm:$0xff] }
 0x412   :  { %v7664_v17 = vmax.f32 %v11159_v53, 1e-30  ;;  %v1779_v14 = vmul.f32 0.5, %v1778_v34  ;;  %v1811_v47 = vmul.f32 %v7485_v4, %v1810_v19  ;;  %v1838_v12 = vmul.f32 %v7617_v43, %v1837_v40  ;;  %vm1824_vm9 = vmor %vm1822_vm7, %vm1823_vm4 }
 0x413   :  { %4540 = vrsqrt.f32 %v7645_v56  ;;  %vm11160_vm11 = vcmask 1048512   ;;  %vm11162_vm10 = vcmask 720512   ;;  %v7678_v53 = vsel %vm7650_vm14, %v7456_v6, %v1801_v31 }
 0x414   :  { %v7670_v30 = vsel %vm11160_vm11, %v3613_v37, %v3612_v49  ;;  %v3635_v7 = vsel %vm11162_vm10, %v3634_v9, %v3633_v59  ;;  %11164 = vst [vmem:[#allocation31_spill] sm:$0xff] %v7678_v53  ;;  %v1821_v34 = vmul.f32 %v7468_v22, %v1820_v21  ;;  %v1830_v19 = vsub.f32 1.5, %v1829_v20 }
 0x415   :  { %11161 = vst [vmem:[#allocation147_spill] sm:$0xff] %v7670_v30  ;;  %v1848_v49 = vmul.f32 %v7631_v26, %v1847_v52  ;;  %v1857_v37 = vmul.f32 %v7658_v60, %v7582_v55  ;;  %vm11165_vm15 = vcmask 786112   ;;  %v1789_v59 = vmul.f32 0.5, %v1788_v35  ;;  %v11169_v35 = vld [vmem:[#allocation55_spill] sm:$0xff] }
 0x416   :  { %v7689_v9 = vsel %vm11165_vm15, %v3636_v2, %v3635_v7  ;;  %vm1832_vm1 = vweird.f32 %v7448_v27  ;;  %4542 = vrsqrt.f32 %v7664_v17  ;;  %v1780_v6 = vsub.f32 1.5, %v1779_v14 }
 0x417   :  { %v7697_v28 = vpop.eup %4538  ;;  %v7700_v40 = vsel %vm1814_vm13, %v7485_v4, %v1811_v47  ;;  %vm1833_vm0 = vweird.f32 %v7538_v63  ;;  %v1839_v7 = vmul.f32 0.5, %v1838_v12  ;;  %vm1782_vm12 = vweird.f32 %v7488_v62 }
 0x418   :  { %11166 = vst [vmem:[#allocation148_spill] sm:$0xff] %v7700_v40  ;;  %vm1792_vm6 = vweird.f32 %v7433_v1  ;;  %vm1793_vm14 = vweird.f32 %v7609_v41  ;;  %v2644_v2 = vmul.f32 %v7678_v53, %v11167_v61  ;;  %v7711_v20 = vsel %vm1824_vm9, %v7468_v22, %v1821_v34  ;;  %vm1834_vm2 = vmor %vm1832_vm1, %vm1833_vm0 }
 0x419   :  { %v7708_v31 = vpop.eup %4540  ;;  %11168 = vst [vmem:[#allocation146_spill] sm:$0xff] %v7711_v20  ;;  %v1831_v47 = vmul.f32 %v7538_v63, %v1830_v19  ;;  %v1849_v14 = vmul.f32 0.5, %v1848_v49  ;;  %v1858_v4 = vmul.f32 %v7658_v60, %v1857_v37  ;;  %v1790_v23 = vsub.f32 1.5, %v1789_v59  ;;  %v11170_v49 = vld [vmem:[#allocation45_spill] sm:$0xff]  ;;  %vm7769_vm0 = vmor %vm1792_vm6, %vm1793_vm14 }
 0x41a   :  { %v2645_v21 = vmul.f32 %v7700_v40, %v11103_v58  ;;  %v1877_v52 = vmul.f32 %v7697_v28, %v7629_v32  ;;  %v7722_v12 = vmax.f32 %v11169_v35, 1e-30  ;;  %v1781_v22 = vmul.f32 %v7567_v50, %v1780_v6 }
 0x41b   :  { %vm1783_vm7 = vweird.f32 %v7567_v50  ;;  %v1840_v34 = vsub.f32 1.5, %v1839_v7  ;;  %vm1852_vm4 = vweird.f32 %v7544_v0  ;;  %v3646_v58 = vperm.slane %v2644_v2, %v5675_v15 }
 0x41c   :  { %v7727_v19 = vpop.eup %4542  ;;  %v2646_v27 = vmul.f32 %v7711_v20, %v11170_v49  ;;  %vm1842_vm11 = vweird.f32 %v7516_v48  ;;  %v1867_v37 = vmul.f32 %v7708_v31, %v7645_v56  ;;  %v7736_v59 = vsel %vm1834_vm2, %v7538_v63, %v1831_v47  ;;  %vm1784_vm13 = vmor %vm1782_vm12, %vm1783_vm7  ;;  %v11172_v49 = vld [vmem:[#allocation56_spill] sm:$0xff]  ;;  %v11173_v47 = vld [vmem:[#allocation61_spill] sm:$0xff] }
 0x41d   :  { %11171 = vst [vmem:[#allocation40_spill] sm:$0xff] %v7736_v59  ;;  %vm1843_vm10 = vweird.f32 %v7617_v43  ;;  %v1850_v6 = vsub.f32 1.5, %v1849_v14  ;;  %v1859_v7 = vmul.f32 0.5, %v1858_v4  ;;  %v3647_v61 = vperm.slane %v2645_v21, %v5692_v10  ;;  %v11174_v21 = vld [vmem:[#allocation62_spill] sm:$0xff] }
 0x41e   :  { %v1878_v2 = vmul.f32 %v7697_v28, %v1877_v52  ;;  %4544 = vrsqrt.f32 %v7722_v12  ;;  %v7745_v46 = vmax.f32 %v11172_v49, 1e-30  ;;  %v1841_v40 = vmul.f32 %v7617_v43, %v1840_v34  ;;  %vm1844_vm9 = vmor %vm1842_vm11, %vm1843_vm10 }
 0x41f   :  { %vm1853_vm15 = vweird.f32 %v7631_v26  ;;  %v1887_v63 = vmul.f32 %v7727_v19, %v7664_v17  ;;  %v7752_v14 = vmax.f32 %v11173_v47, 1e-30  ;;  %v1791_v62 = vmul.f32 %v7609_v41, %v1790_v23 }
 0x420   :  { %vm1862_vm1 = vweird.f32 %v7582_v55  ;;  %v1868_v4 = vmul.f32 %v7708_v31, %v1867_v37  ;;  %v7760_v52 = vmax.f32 %v11174_v21, 1e-30  ;;  %v7763_v34 = vsel %vm1784_vm13, %v7567_v50, %v1781_v22  ;;  %vm7780_vm12 = vmor %vm1852_vm4, %vm1853_vm15 }
 0x421   :  { %11175 = vst [vmem:[#allocation41_spill] sm:$0xff] %v7763_v34  ;;  %v3649_v48 = vperm.slane %v2646_v27, %v11056_v18  ;;  %v2647_v23 = vmul.f32 %v7736_v59, %v11106_v57  ;;  %v1851_v37 = vmul.f32 %v7631_v26, %v1850_v6  ;;  %v3648_v20 = vsel %vm3526_vm3, %v3647_v61, %v3646_v58  ;;  %v11181_v57 = vld [vmem:[#allocation66_spill] sm:$0xff] }
 0x422   :  { %v1860_v1 = vsub.f32 1.5, %v1859_v7  ;;  %v1879_v22 = vmul.f32 0.5, %v1878_v2  ;;  %4546 = vrsqrt.f32 %v7745_v46  ;;  %v7786_v30 = vsel %vm1844_vm9, %v7617_v43, %v1841_v40  ;;  %v11182_v43 = vld [vmem:[#allocation143_spill] sm:$0xff] }
 0x423   :  { %11180 = vst [vmem:[#allocation53_spill] sm:$0xff] %v7786_v30  ;;  %v1888_v27 = vmul.f32 %v7727_v19, %v1887_v63  ;;  %4548 = vrsqrt.f32 %v7752_v14  ;;  %v7791_v6 = vmax.f32 %v11181_v57, 1e-30  ;;  %v7797_v0 = vmul.f32 %v7763_v34, %v11112_v11 }
 0x424   :  { %v7793_v58 = vpop.eup %4544  ;;  %vm1863_vm6 = vweird.f32 %v7658_v60  ;;  %v1869_v7 = vmul.f32 0.5, %v1868_v4  ;;  %4550 = vrsqrt.f32 %v7760_v52  ;;  %v11183_v40 = vperm.slane %v11182_v43, %v11135_v3 }
 0x425   :  { %vm11184_vm14 = vcmask 851712   ;;  %v7809_v2 = vsel %vm7769_vm0, %v7609_v41, %v1791_v62  ;;  %v3651_v63 = vperm.slane %v2647_v23, %v10955_v36  ;;  %v7815_v11 = vsel %vm7780_vm12, %v7631_v26, %v1851_v37  ;;  %vm7826_vm2 = vmor %vm1862_vm1, %vm1863_vm6  ;;  %v11191_v23 = vld [vmem:[#allocation64_spill] sm:$0xff] }
 0x426   :  { %v3639_v61 = vsel %vm11184_vm14, %v11183_v40, %v7689_v9  ;;  %11185 = vst [vmem:[#allocation132_spill] sm:$0xff] %v7809_v2  ;;  %v3650_v4 = vsel %vm10780_vm8, %v3649_v48, %v3648_v20  ;;  %v2648_v59 = vmul.f32 %v7786_v30, %v11116_v5  ;;  %v1861_v43 = vmul.f32 %v7658_v60, %v1860_v1  ;;  %v11187_v9 = vld [vmem:[#allocation60_spill] sm:$0xff] }
 0x427   :  { %11186 = vst [vmem:[#allocation52_spill] sm:$0xff] %v7815_v11  ;;  %v7822_v40 = vmax.f32 %v11187_v9, 1e-30  ;;  %v1880_v53 = vsub.f32 1.5, %v1879_v22  ;;  %v1889_v62 = vmul.f32 0.5, %v1888_v27  ;;  %v1897_v26 = vmul.f32 %v7793_v58, %v7722_v12 }
 0x428   :  { %4552 = vrsqrt.f32 %v7791_v6  ;;  %v7833_v20 = vpop.eup %4546  ;;  %v3642_v5 = vperm.slane %v7797_v0, %v11138_v54  ;;  %v7839_v48 = vmul.f32 %v7809_v2, %v11105_v25  ;;  %v1870_v55 = vsub.f32 1.5, %v1869_v7 }
 0x429   :  { %v7842_v37 = vmax.f32 %v11191_v23, 1e-30  ;;  %v7844_v50 = vpop.eup %4548  ;;  %v2649_v1 = vmul.f32 %v7815_v11, %v11122_v29  ;;  %vm1872_vm7 = vweird.f32 %v7645_v56  ;;  %vm1882_vm4 = vweird.f32 %v7629_v32 }
 0x42a   :  { %11190 = vst [vmem:[#allocation46_spill] sm:$0xff] %v7839_v48  ;;  %vm1883_vm11 = vweird.f32 %v7697_v28  ;;  %v7851_v22 = vpop.eup %4550  ;;  %v3652_v25 = vsel %vm10779_vm5, %v3651_v63, %v3650_v4  ;;  %v7857_v27 = vsel %vm7826_vm2, %v7658_v60, %v1861_v43  ;;  %vm1873_vm10 = vweird.f32 %v7708_v31  ;;  %v11193_v43 = vld [vmem:[#allocation65_spill] sm:$0xff] }
 0x42b   :  { %11192 = vst [vmem:[#allocation55_spill] sm:$0xff] %v7857_v27  ;;  %4554 = vrsqrt.f32 %v7822_v40  ;;  %v3653_v29 = vperm.slane %v2648_v59, %v11059_v39  ;;  %v1881_v0 = vmul.f32 %v7697_v28, %v1880_v53  ;;  %v1890_v32 = vsub.f32 1.5, %v1889_v62  ;;  %vm1884_vm13 = vmor %vm1882_vm4, %vm1883_vm11 }
 0x42c   :  { %v1898_v7 = vmul.f32 %v7793_v58, %v1897_v26  ;;  %v1871_v30 = vmul.f32 %v7708_v31, %v1870_v55  ;;  %v1907_v63 = vmul.f32 %v7833_v20, %v7745_v46  ;;  %v1957_v60 = vmul.f32 %v7844_v50, %v7752_v14  ;;  %vm1874_vm15 = vmor %vm1872_vm7, %vm1873_vm10 }
 0x42d   :  { %4556 = vrsqrt.f32 %v7842_v37  ;;  %vm1892_vm9 = vweird.f32 %v7664_v17  ;;  %vm1893_vm1 = vweird.f32 %v7727_v19  ;;  %v1967_v59 = vmul.f32 %v7851_v22, %v7760_v52 }
 0x42e   :  { %v7870_v4 = vpop.eup %4552  ;;  %v7879_v41 = vmax.f32 %v11193_v43, 1e-30  ;;  %v11194_v53 = vperm.slane %v7626_v33, %v11163_v24  ;;  %vm11195_vm0 = vcmask 917312   ;;  %v3655_v56 = vperm.slane %v2649_v1, %v11063_v45  ;;  %vm1894_vm6 = vmor %vm1892_vm9, %vm1893_vm1 }
 0x42f   :  { %v2650_v17 = vmul.f32 %v7857_v27, %v11131_v8  ;;  %vm11196_vm12 = vcmask 326912   ;;  %v7892_v11 = vsel %vm1884_vm13, %v7697_v28, %v1881_v0  ;;  %v1891_v34 = vmul.f32 %v7727_v19, %v1890_v32 }
 0x430   :  { %v3641_v62 = vsel %vm11195_vm0, %v11194_v53, %v3639_v61  ;;  %v3654_v55 = vsel %vm11196_vm12, %v3653_v29, %v3652_v25  ;;  %11197 = vst [vmem:[#allocation45_spill] sm:$0xff] %v7892_v11  ;;  %v1899_v2 = vmul.f32 0.5, %v1898_v7  ;;  %v7898_v33 = vsel %vm1874_vm15, %v7708_v31, %v1871_v30  ;;  %v11201_v29 = vld [vmem:[#allocation74_spill] sm:$0xff] }
 0x431   :  { %v7895_v54 = vpop.eup %4554  ;;  %11198 = vst [vmem:[#allocation56_spill] sm:$0xff] %v7898_v33  ;;  %v1908_v61 = vmul.f32 %v7833_v20, %v1907_v63  ;;  %v1958_v1 = vmul.f32 %v7844_v50, %v1957_v60  ;;  %v1977_v8 = vmul.f32 %v7870_v4, %v7791_v6  ;;  %vm11199_vm14 = vcmask 982912  }
 0x432   :  { %v7905_v25 = vsel %vm11199_vm14, %v3642_v5, %v3641_v62  ;;  %v1968_v28 = vmul.f32 %v7851_v22, %v1967_v59  ;;  %4558 = vrsqrt.f32 %v7879_v41  ;;  %v7910_v0 = vmax.f32 %v11201_v29, 1e-30 }
 0x433   :  { %11200 = vst [vmem:[#allocation61_spill] sm:$0xff] %v7905_v25  ;;  %v7912_v30 = vpop.eup %4556  ;;  %v3657_v31 = vperm.slane %v2650_v17, %v5892_v44  ;;  %v7917_v32 = vmul.f32 %v7892_v11, %v11152_v42  ;;  %vm1902_vm2 = vweird.f32 %v7722_v12  ;;  %vm1912_vm7 = vweird.f32 %v7745_v46  ;;  %v11211_v12 = vld [vmem:[#allocation71_spill] sm:$0xff] }
 0x434   :  { %vm11202_vm4 = vcmask 392512   ;;  %v2651_v7 = vmul.f32 %v7898_v33, %v11156_v13  ;;  %v7925_v63 = vsel %vm1894_vm6, %v7727_v19, %v1891_v34  ;;  %v1917_v60 = vmul.f32 %v7895_v54, %v7822_v40 }
 0x435   :  { %v3656_v5 = vsel %vm11202_vm4, %v3655_v56, %v3654_v55  ;;  %11203 = vst [vmem:[#allocation62_spill] sm:$0xff] %v7925_v63  ;;  %v1900_v59 = vsub.f32 1.5, %v1899_v2  ;;  %v1909_v53 = vmul.f32 0.5, %v1908_v61  ;;  %v1959_v62 = vmul.f32 0.5, %v1958_v1  ;;  %v11204_v56 = vld [vmem:[#allocation67_spill] sm:$0xff]  ;;  %v11206_v61 = vld [vmem:[#allocation57_spill] sm:$0xff] }
 0x436   :  { %v1978_v42 = vmul.f32 %v7870_v4, %v1977_v8  ;;  %v1969_v17 = vmul.f32 0.5, %v1968_v28  ;;  %v1987_v26 = vmul.f32 %v7912_v30, %v7842_v37  ;;  %4560 = vrsqrt.f32 %v7910_v0  ;;  %v11207_v28 = vld [vmem:[#allocation58_spill] sm:$0xff] }
 0x437   :  { %v7934_v55 = vmax.f32 %v11204_v56, 1e-30  ;;  %vm11205_vm11 = vcmask 458112   ;;  %v3661_v19 = vperm.slane %v7917_v32, %v11114_v38  ;;  %vm1903_vm10 = vweird.f32 %v7793_v58  ;;  %v11208_v32 = vld [vmem:[#allocation59_spill] sm:$0xff] }
 0x438   :  { %v3658_v13 = vsel %vm11205_vm11, %v3657_v31, %v3656_v5  ;;  %vm1913_vm13 = vweird.f32 %v7833_v20  ;;  %v7941_v34 = vpop.eup %4558  ;;  %v3659_v2 = vperm.slane %v2651_v7, %v11069_v51  ;;  %v2653_v1 = vmul.f32 %v7925_v63, %v11206_v61  ;;  %vm7956_vm15 = vmor %vm1902_vm2, %vm1903_vm10 }
 0x439   :  { %v1918_v8 = vmul.f32 %v7895_v54, %v1917_v60  ;;  %v7948_v33 = vmax.f32 %v11207_v28, 1e-30  ;;  %v1901_v31 = vmul.f32 %v7793_v58, %v1900_v59  ;;  %v1910_v5 = vsub.f32 1.5, %v1909_v53  ;;  %vm7987_vm2 = vmor %vm1912_vm7, %vm1913_vm13 }
 0x43a   :  { %v7952_v11 = vmax.f32 %v11208_v32, 1e-30  ;;  %v1960_v27 = vsub.f32 1.5, %v1959_v62  ;;  %v1970_v7 = vsub.f32 1.5, %v1969_v17  ;;  %v1979_v61 = vmul.f32 0.5, %v1978_v42  ;;  %v11213_v42 = vld [vmem:[#allocation96_spill] sm:$0xff] }
 0x43b   :  { %v1988_v60 = vmul.f32 %v7912_v30, %v1987_v26  ;;  %4562 = vrsqrt.f32 %v7934_v55  ;;  %vm1922_vm9 = vweird.f32 %v7822_v40  ;;  %vm1962_vm1 = vweird.f32 %v7752_v14  ;;  %v11221_v14 = vld [vmem:[#allocation80_spill] sm:$0xff] }
 0x43c   :  { %vm1963_vm0 = vweird.f32 %v7844_v50  ;;  %v1997_v59 = vmul.f32 %v7941_v34, %v7879_v41  ;;  %v7968_v53 = vmax.f32 %v11211_v12, 1e-30  ;;  %v7970_v62 = vpop.eup %4560  ;;  %v1919_v17 = vmul.f32 0.5, %v1918_v8 }
 0x43d   :  { %4564 = vrsqrt.f32 %v7948_v33  ;;  %vm1972_vm12 = vweird.f32 %v7760_v52  ;;  %vm1973_vm6 = vweird.f32 %v7851_v22  ;;  %vm11212_vm14 = vcmask 523712   ;;  %vm7994_vm4 = vmor %vm1962_vm1, %vm1963_vm0 }
 0x43e   :  { %v3660_v26 = vsel %vm11212_vm14, %v3659_v2, %v3658_v13  ;;  %v3663_v63 = vperm.slane %v2653_v1, %v11213_v42  ;;  %v7980_v25 = vsel %vm7956_vm15, %v7793_v58, %v1901_v31  ;;  %v1911_v16 = vmul.f32 %v7833_v20, %v1910_v5  ;;  %vm7999_vm11 = vmor %vm1972_vm12, %vm1973_vm6 }
 0x43f   :  { %11214 = vst [vmem:[#allocation66_spill] sm:$0xff] %v7980_v25  ;;  %v1961_v52 = vmul.f32 %v7844_v50, %v1960_v27  ;;  %v1971_v58 = vmul.f32 %v7851_v22, %v1970_v7  ;;  %v1980_v48 = vsub.f32 1.5, %v1979_v61  ;;  %v1989_v2 = vmul.f32 0.5, %v1988_v60 }
 0x440   :  { %v1998_v46 = vmul.f32 %v7941_v34, %v1997_v59  ;;  %v2007_v31 = vmul.f32 %v7970_v62, %v7910_v0  ;;  %4566 = vrsqrt.f32 %v7968_v53  ;;  %v8008_v27 = vmax.f32 %v11221_v14, 1e-30 }
 0x441   :  { %v8010_v5 = vpop.eup %4562  ;;  %v2654_v7 = vmul.f32 %v7980_v25, %v11169_v35  ;;  %v1920_v61 = vsub.f32 1.5, %v1919_v17  ;;  %vm1982_vm7 = vweird.f32 %v7791_v6  ;;  %vm1983_vm10 = vweird.f32 %v7870_v4 }
 0x442   :  { %vm11222_vm13 = vcmask 589312   ;;  %v8020_v59 = vsel %vm7987_vm2, %v7833_v20, %v1911_v16  ;;  %vm1923_vm15 = vweird.f32 %v7895_v54  ;;  %4568 = vrsqrt.f32 %v7952_v11  ;;  %vm8037_vm1 = vmor %vm1982_vm7, %vm1983_vm10 }
 0x443   :  { %v3662_v60 = vsel %vm11222_vm13, %v3661_v19, %v3660_v26  ;;  %11223 = vst [vmem:[#allocation143_spill] sm:$0xff] %v8020_v59  ;;  %v8024_v42 = vpop.eup %4564  ;;  %v8029_v35 = vsel %vm7994_vm4, %v7844_v50, %v1961_v52  ;;  %v8034_v6 = vsel %vm7999_vm11, %v7851_v22, %v1971_v58  ;;  %v1981_v19 = vmul.f32 %v7870_v4, %v1980_v48  ;;  %v11229_v52 = vld [vmem:[#allocation77_spill] sm:$0xff]  ;;  %v11230_v58 = vld [vmem:[#allocation75_spill] sm:$0xff]  ;;  %vm8063_vm14 = vmor %vm1922_vm9, %vm1923_vm15 }
 0x444   :  { %11224 = vst [vmem:[#allocation60_spill] sm:$0xff] %v8029_v35  ;;  %v1990_v16 = vsub.f32 1.5, %v1989_v2  ;;  %v1999_v17 = vmul.f32 0.5, %v1998_v46  ;;  %v2008_v26 = vmul.f32 %v7970_v62, %v2007_v31  ;;  %v2017_v8 = vmul.f32 %v8010_v5, %v7934_v55  ;;  %v11233_v31 = vld [vmem:[#allocation63_spill] sm:$0xff] }
 0x445   :  { %11225 = vst [vmem:[#allocation64_spill] sm:$0xff] %v8034_v6  ;;  %4570 = vrsqrt.f32 %v8008_v27  ;;  %vm11228_vm0 = vcmask 654912   ;;  %v3665_v22 = vperm.slane %v2654_v7, %v11229_v52  ;;  %v1921_v13 = vmul.f32 %v7895_v54, %v1920_v61 }
 0x446   :  { %v3664_v50 = vsel %vm11228_vm0, %v3663_v63, %v3662_v60  ;;  %v8049_v48 = vmax.f32 %v11230_v58, 1e-30  ;;  %v8051_v2 = vpop.eup %4566  ;;  %v2655_v1 = vmul.f32 %v8020_v59, %v11172_v49  ;;  %v1927_v46 = vmul.f32 %v8024_v42, %v7948_v33 }
 0x447   :  { %vm1992_vm12 = vweird.f32 %v7842_v37  ;;  %vm1993_vm6 = vweird.f32 %v7912_v30  ;;  %v8068_v7 = vmax.f32 %v11233_v31, 1e-30  ;;  %v2660_v49 = vmul.f32 %v8029_v35, %v11173_v47 }
 0x448   :  { %v2661_v61 = vmul.f32 %v8034_v6, %v11174_v21  ;;  %v8077_v37 = vsel %vm8037_vm1, %v7870_v4, %v1981_v19  ;;  %v8079_v60 = vpop.eup %4568  ;;  %v1991_v40 = vmul.f32 %v7912_v30, %v1990_v16  ;;  %v2000_v25 = vsub.f32 1.5, %v1999_v17  ;;  %vm1994_vm2 = vmor %vm1992_vm12, %vm1993_vm6  ;;  %v11236_v21 = vld [vmem:[#allocation79_spill] sm:$0xff] }
 0x449   :  { %11234 = vst [vmem:[#allocation65_spill] sm:$0xff] %v8077_v37  ;;  %v2009_v59 = vmul.f32 0.5, %v2008_v26  ;;  %v2018_v31 = vmul.f32 %v8010_v5, %v2017_v8  ;;  %vm11235_vm9 = vcmask 720512   ;;  %v2027_v47 = vmul.f32 %v8051_v2, %v7968_v53 }
 0x44a   :  { %v3666_v52 = vsel %vm11235_vm9, %v3665_v22, %v3664_v50  ;;  %4572 = vrsqrt.f32 %v8049_v48  ;;  %v8088_v20 = vmax.f32 %v11236_v21, 1e-30  ;;  %v8095_v19 = vsel %vm8063_vm14, %v7895_v54, %v1921_v13 }
 0x44b   :  { %v8090_v4 = vpop.eup %4570  ;;  %11237 = vst [vmem:[#allocation74_spill] sm:$0xff] %v8095_v19  ;;  %v1928_v16 = vmul.f32 %v8024_v42, %v1927_v46  ;;  %vm2002_vm4 = vweird.f32 %v7879_v41  ;;  %vm2003_vm11 = vweird.f32 %v7941_v34  ;;  %v1937_v17 = vmul.f32 %v8079_v60, %v7952_v11 }
 0x44c   :  { %v3677_v26 = vperm.slane %v2660_v49, %v5675_v15  ;;  %v3678_v8 = vperm.slane %v2661_v61, %v5692_v10  ;;  %v2662_v50 = vmul.f32 %v8077_v37, %v11181_v57  ;;  %v8107_v22 = vsel %vm1994_vm2, %v7912_v30, %v1991_v40  ;;  %vm8110_vm7 = vmor %vm2002_vm4, %vm2003_vm11  ;;  %v11241_v61 = vld [vmem:[#allocation89_spill] sm:$0xff]  ;;  %v11242_v30 = vld [vmem:[#allocation103_spill] sm:$0xff] }
 0x44d   :  { %11238 = vst [vmem:[#allocation67_spill] sm:$0xff] %v8107_v22  ;;  %v2001_v54 = vmul.f32 %v7941_v34, %v2000_v25  ;;  %v2010_v13 = vsub.f32 1.5, %v2009_v59  ;;  %v2019_v46 = vmul.f32 0.5, %v2018_v31  ;;  %v2028_v63 = vmul.f32 %v8051_v2, %v2027_v47 }
 0x44e   :  { %v2037_v49 = vmul.f32 %v8090_v4, %v8008_v27  ;;  %4574 = vrsqrt.f32 %v8088_v20  ;;  %v8119_v57 = vmax.f32 %v11241_v61, 1e-30  ;;  %v3667_v40 = vperm.slane %v2655_v1, %v11242_v30 }
 0x44f   :  { %v2656_v25 = vmul.f32 %v8095_v19, %v11187_v9  ;;  %v1929_v59 = vmul.f32 0.5, %v1928_v16  ;;  %4576 = vrsqrt.f32 %v8068_v7  ;;  %v1938_v47 = vmul.f32 %v8079_v60, %v1937_v17 }
 0x450   :  { %v8125_v31 = vpop.eup %4572  ;;  %v3680_v37 = vperm.slane %v2662_v50, %v11056_v18  ;;  %vm2012_vm10 = vweird.f32 %v7910_v0  ;;  %vm2013_vm13 = vweird.f32 %v7970_v62  ;;  %v3679_v35 = vsel %vm3526_vm3, %v3678_v8, %v3677_v26 }
 0x451   :  { %v2663_v1 = vmul.f32 %v8107_v22, %v11191_v23  ;;  %v8137_v9 = vsel %vm8110_vm7, %v7941_v34, %v2001_v54  ;;  %v2011_v16 = vmul.f32 %v7970_v62, %v2010_v13  ;;  %v2020_v6 = vsub.f32 1.5, %v2019_v46  ;;  %vm2014_vm12 = vmor %vm2012_vm10, %vm2013_vm13  ;;  %v8233_v22 = vpop.xlane.xlu1 %1186 }
 0x452   :  { %11243 = vst [vmem:[#allocation57_spill] sm:$0xff] %v8137_v9  ;;  %v2029_v17 = vmul.f32 0.5, %v2028_v63  ;;  %v2038_v50 = vmul.f32 %v8090_v4, %v2037_v49  ;;  %4578 = vrsqrt.f32 %v8119_v57  ;;  %vm11244_vm15 = vcmask 786112  }
 0x453   :  { %v3668_v0 = vsel %vm11244_vm15, %v3667_v40, %v3666_v52  ;;  %vm1932_vm1 = vweird.f32 %v7948_v33  ;;  %vm1933_vm0 = vweird.f32 %v8024_v42  ;;  %v2047_v23 = vmul.f32 %v8125_v31, %v8049_v48  ;;  %11260 = vst [vmem:[#allocation79_spill] sm:$0xff] %v8233_v22 }
 0x454   :  { %v8147_v34 = vpop.eup %4574  ;;  %v3669_v26 = vperm.slane %v2656_v25, %v11135_v3  ;;  %v1930_v8 = vsub.f32 1.5, %v1929_v59  ;;  %vm2022_vm6 = vweird.f32 %v7934_v55  ;;  %vm2023_vm14 = vweird.f32 %v8010_v5  ;;  %vm1934_vm13 = vmor %vm1932_vm1, %vm1933_vm0 }
 0x455   :  { %v8152_v54 = vpop.eup %4576  ;;  %v1939_v52 = vmul.f32 0.5, %v1938_v47  ;;  %v3681_v13 = vsel %vm10780_vm8, %v3680_v37, %v3679_v35  ;;  %v3682_v46 = vperm.slane %v2663_v1, %v10955_v36  ;;  %v2664_v41 = vmul.f32 %v8137_v9, %v11193_v43  ;;  %vm8164_vm4 = vmor %vm2022_vm6, %vm2023_vm14  ;;  %v11248_v37 = vld [vmem:[#allocation81_spill] sm:$0xff] }
 0x456   :  { %v8159_v63 = vsel %vm2014_vm12, %v7970_v62, %v2011_v16  ;;  %v2021_v49 = vmul.f32 %v8010_v5, %v2020_v6  ;;  %v2030_v40 = vsub.f32 1.5, %v2029_v17  ;;  %v2039_v25 = vmul.f32 0.5, %v2038_v50 }
 0x457   :  { %11245 = vst [vmem:[#allocation58_spill] sm:$0xff] %v8159_v63  ;;  %vm1942_vm9 = vweird.f32 %v7952_v11  ;;  %vm1943_vm2 = vweird.f32 %v8079_v60  ;;  %v2048_v35 = vmul.f32 %v8125_v31, %v2047_v23  ;;  %v2057_v43 = vmul.f32 %v8147_v34, %v8088_v20  ;;  %v8187_v23 = vpop.xlane.xlu0 %1183 }
 0x458   :  { %v8172_v62 = vmax.f32 %v11248_v37, 1e-30  ;;  %v8174_v59 = vpop.eup %4578  ;;  %vm11249_vm11 = vcmask 851712   ;;  %v1947_v47 = vmul.f32 %v8152_v54, %v8068_v7  ;;  %vm2032_vm7 = vweird.f32 %v7968_v53  ;;  %11250 = vst [vmem:[#allocation59_spill] sm:$0xff] %v8187_v23 }
 0x459   :  { %v8177_v6 = vsel %vm11249_vm11, %v3669_v26, %v3668_v0  ;;  %vm2033_vm10 = vweird.f32 %v8051_v2  ;;  %v1931_v1 = vmul.f32 %v8024_v42, %v1930_v8  ;;  %v1940_v16 = vsub.f32 1.5, %v1939_v52 }
 0x45a   :  { %v3683_v17 = vsel %vm10779_vm5, %v3682_v46, %v3681_v13  ;;  %v2665_v50 = vmul.f32 %v8159_v63, %v11201_v29  ;;  %v3684_v0 = vperm.slane %v2664_v41, %v11059_v39  ;;  %v8197_v53 = vsel %vm8164_vm4, %v8010_v5, %v2021_v49  ;;  %vm2034_vm15 = vmor %vm2032_vm7, %vm2033_vm10  ;;  %v11252_v5 = vld [vmem:[#allocation95_spill] sm:$0xff] }
 0x45b   :  { %11251 = vst [vmem:[#allocation71_spill] sm:$0xff] %v8197_v53  ;;  %v2031_v26 = vmul.f32 %v8051_v2, %v2030_v40  ;;  %v2040_v8 = vsub.f32 1.5, %v2039_v25  ;;  %v2049_v52 = vmul.f32 0.5, %v2048_v35  ;;  %v2058_v29 = vmul.f32 %v8147_v34, %v2057_v43  ;;  %v11254_v25 = vld [vmem:[#allocation101_spill] sm:$0xff]  ;;  %vm1944_vm7 = vmor %vm1942_vm9, %vm1943_vm2 }
 0x45c   :  { %v2067_v13 = vmul.f32 %v8174_v59, %v8119_v57  ;;  %4580 = vrsqrt.f32 %v8172_v62  ;;  %v1948_v33 = vmul.f32 %v8152_v54, %v1947_v47  ;;  %vm2042_vm1 = vweird.f32 %v8008_v27 }
 0x45d   :  { %vm2043_vm0 = vweird.f32 %v8090_v4  ;;  %v8208_v46 = vmax.f32 %v11252_v5, 1e-30  ;;  %v8211_v41 = vsel %vm1934_vm13, %v8024_v42, %v1931_v1  ;;  %v3686_v49 = vperm.slane %v2665_v50, %v11063_v45  ;;  %v11271_v42 = vld [vmem:[#allocation27_spill] sm:$0xff] }
 0x45e   :  { %11253 = vst [vmem:[#allocation80_spill] sm:$0xff] %v8211_v41  ;;  %v2666_v40 = vmul.f32 %v8197_v53, %v11204_v56  ;;  %v8217_v55 = vmax.f32 %v11254_v25, 1e-30  ;;  %v1941_v35 = vmul.f32 %v8079_v60, %v1940_v16  ;;  %vm11255_vm12 = vcmask 326912   ;;  %vm8225_vm6 = vmor %vm2042_vm1, %vm2043_vm0  ;;  %v11259_v53 = vld [vmem:[#allocation87_spill] sm:$0xff] }
 0x45f   :  { %v3685_v27 = vsel %vm11255_vm12, %v3684_v0, %v3683_v17  ;;  %v8222_v43 = vsel %vm2034_vm15, %v8051_v2, %v2031_v26  ;;  %v2041_v47 = vmul.f32 %v8090_v4, %v2040_v8  ;;  %v2050_v1 = vsub.f32 1.5, %v2049_v52  ;;  %v11261_v2 = vld [vmem:[#allocation97_spill] sm:$0xff]  ;;  %v284_v52 = vpop.permute.xlu0 %283 }
 0x460   :  { %11256 = vst [vmem:[#allocation75_spill] sm:$0xff] %v8222_v43  ;;  %v2059_v50 = vmul.f32 0.5, %v2058_v29  ;;  %v2068_v56 = vmul.f32 %v8174_v59, %v2067_v13  ;;  %v8231_v63 = vmax.f32 %v11259_v53, 1e-30  ;;  %v8237_v16 = vmul.f32 %v8211_v41, %v11207_v28  ;;  %v11264_v13 = vld [vmem:[#allocation48_spill] sm:$0xff] }
 0x461   :  { %vm2052_vm14 = vweird.f32 %v8049_v48  ;;  %4582 = vrsqrt.f32 %v8208_v46  ;;  %v8242_v17 = vmax.f32 %v11261_v2, 1e-30  ;;  %vm11262_vm4 = vcmask 392512  }
 0x462   :  { %v8244_v0 = vpop.eup %4580  ;;  %v3687_v26 = vsel %vm11262_vm4, %v3686_v49, %v3685_v27  ;;  %v3688_v8 = vperm.slane %v2666_v40, %v5892_v44  ;;  %vm2053_vm11 = vweird.f32 %v8125_v31  ;;  %4584 = vrsqrt.f32 %v8217_v55  ;;  %v11266_v40 = vld [vmem:[#allocation49_spill] sm:$0xff] }
 0x463   :  { %v2667_v28 = vmul.f32 %v8222_v43, %v11211_v12  ;;  %v8259_v29 = vsel %vm8225_vm6, %v8090_v4, %v2041_v47  ;;  %v8262_v49 = vmul.f32 %v284_v52, %v11264_v13  ;;  %v8265_v27 = vmul.f32 %v284_v52, %v11266_v40  ;;  %vm8271_vm9 = vmor %vm2052_vm14, %vm2053_vm11  ;;  %v11270_v4 = vld [vmem:[#allocation19_spill] sm:$0xff]  ;;  %v11273_v52 = vld [vmem:[#allocation100_spill] sm:$0xff] }
 0x464   :  { %11263 = vst [vmem:[#allocation89_spill] sm:$0xff] %v8259_v29  ;;  %v2051_v9 = vmul.f32 %v8125_v31, %v2050_v1  ;;  %v2060_v41 = vsub.f32 1.5, %v2059_v50  ;;  %v2069_v19 = vmul.f32 0.5, %v2068_v56  ;;  %4586 = vrsqrt.f32 %v8231_v63 }
 0x465   :  { %11265 = vst [vmem:[#allocation103_spill] sm:$0xff] %v8262_v49  ;;  %v2077_v12 = vmul.f32 %v8244_v0, %v8172_v62  ;;  %4588 = vrsqrt.f32 %v8242_v17  ;;  %v360_v47 = vmul.f32 %v11270_v4, %v8262_v49  ;;  %v365_v1 = vmul.f32 %v11271_v42, %v8265_v27 }
 0x466   :  { %11267 = vst [vmem:[#allocation81_spill] sm:$0xff] %v8265_v27  ;;  %v3671_v50 = vperm.slane %v8237_v16, %v11163_v24  ;;  %v8285_v48 = vsel %vm1944_vm7, %v8079_v60, %v1941_v35  ;;  %v8287_v56 = vmul.f32 0.5, %v1948_v33  ;;  %v8290_v13 = vmax.f32 %v11273_v52, 1e-30 }
 0x467   :  { %11272 = vst [vmem:[#allocation95_spill] sm:$0xff] %v8285_v48  ;;  %v8292_v40 = vpop.eup %4582  ;;  %vm11274_vm2 = vcmask 458112   ;;  %vm2062_vm10 = vweird.f32 %v8088_v20  ;;  %vm2063_vm13 = vweird.f32 %v8147_v34  ;;  %v366_v42 = vadd.f32 %v365_v1, %v360_v47 }
 0x468   :  { %v3689_v43 = vsel %vm11274_vm2, %v3688_v8, %v3687_v26  ;;  %v8297_v27 = vpop.eup %4584  ;;  %v3690_v16 = vperm.slane %v2667_v28, %v11069_v51  ;;  %v2668_v60 = vmul.f32 %v8259_v29, %v11221_v14  ;;  %v8305_v33 = vsel %vm8271_vm9, %v8125_v31, %v2051_v9  ;;  %v406_v26 = vpop.permute.xlu1 %405  ;;  %vm2064_vm1 = vmor %vm2062_vm10, %vm2063_vm13 }
 0x469   :  { %11275 = vst [vmem:[#allocation101_spill] sm:$0xff] %v8305_v33  ;;  %v2061_v35 = vmul.f32 %v8147_v34, %v2060_v41  ;;  %v2070_v8 = vsub.f32 1.5, %v2069_v19  ;;  %v2078_v49 = vmul.f32 %v8244_v0, %v2077_v12  ;;  %v8310_v47 = vmul.f32 %v406_v26, %v11270_v4  ;;  %v11278_v19 = vld [vmem:[#allocation109_spill] sm:$0xff]  ;;  %v11279_v12 = vld [vmem:[#allocation98_spill] sm:$0xff] }
 0x46a   :  { %vm11277_vm15 = vcmask 130048   ;;  %v8313_v28 = vpop.eup %4586  ;;  %v2658_v14 = vmul.f32 %v8285_v48, %v11208_v32  ;;  %v2117_v31 = vmul.f32 %v8292_v40, %v8208_v46  ;;  %4590 = vrsqrt.f32 %v8290_v13  ;;  %v11282_v48 = vld [vmem:[#allocation102_spill] sm:$0xff] }
 0x46b   :  { %11276 = vst [vmem:[#allocation87_spill] sm:$0xff] %v8310_v47  ;;  %v367_v1 = vsel %vm11277_vm15, %v366_v42, 0.0  ;;  %v8323_v9 = vmax.f32 %v11278_v19, 1e-30  ;;  %v8325_v41 = vpop.eup %4588  ;;  %v1950_v11 = vsub.f32 1.5, %v8287_v56  ;;  %vm2072_vm0 = vweird.f32 %v8119_v57  ;;  %418 = vrot.lane.b32.xlu1 %v8310_v47, %s4832_s14 }
 0x46c   :  { %368 = vadd.xlane.f32.xlu2 %v367_v1  ;;  %v8330_v32 = vmax.f32 %v11279_v12, 1e-30  ;;  %v2127_v20 = vmul.f32 %v8297_v27, %v8217_v55  ;;  %vm11280_vm12 = vcmask 523712   ;;  %v3692_v42 = vperm.slane %v2668_v60, %v11114_v38 }
 0x46d   :  { %v3691_v4 = vsel %vm11280_vm12, %v3690_v16, %v3689_v43  ;;  %v2669_v26 = vmul.f32 %v8305_v33, %v11230_v58  ;;  %vm2073_vm6 = vweird.f32 %v8174_v59  ;;  %v8342_v56 = vsel %vm2064_vm1, %v8147_v34, %v2061_v35  ;;  %v11284_v34 = vld [vmem:[#allocation111_spill] sm:$0xff] }
 0x46e   :  { %11281 = vst [vmem:[#allocation97_spill] sm:$0xff] %v8342_v56  ;;  %v2071_v1 = vmul.f32 %v8174_v59, %v2070_v8  ;;  %v2079_v29 = vmul.f32 0.5, %v2078_v49  ;;  %v8346_v22 = vmax.f32 %v11282_v48, 1e-30  ;;  %v2087_v47 = vmul.f32 %v8313_v28, %v8231_v63  ;;  %vm2074_vm7 = vmor %vm2072_vm0, %vm2073_vm6 }
 0x46f   :  { %v2118_v43 = vmul.f32 %v8292_v40, %v2117_v31  ;;  %v2137_v16 = vmul.f32 %v8325_v41, %v8242_v17  ;;  %4592 = vrsqrt.f32 %v8323_v9  ;;  %vm11283_vm14 = vcmask 917312   ;;  %v11287_v31 = vld [vmem:[#allocation96_spill] sm:$0xff] }
 0x470   :  { %v3672_v58 = vsel %vm11283_vm14, %v3671_v50, %v8177_v6  ;;  %v3673_v60 = vperm.slane %v2658_v14, %v11284_v34  ;;  %vm1952_vm4 = vweird.f32 %v8068_v7  ;;  %vm1953_vm11 = vweird.f32 %v8152_v54  ;;  %v8363_v35 = vpop.eup %4590  ;;  %v11286_v50 = vld [vmem:[#allocation108_spill] sm:$0xff]  ;;  %v11288_v34 = vld [vmem:[#allocation90_spill] sm:$0xff] }
 0x471   :  { %4594 = vrsqrt.f32 %v8330_v32  ;;  %v2128_v49 = vmul.f32 %v8297_v27, %v2127_v20  ;;  %vm11285_vm9 = vcmask 589312   ;;  %v2670_v6 = vmul.f32 %v8342_v56, %v11236_v21 }
 0x472   :  { %v3693_v8 = vsel %vm11285_vm9, %v3692_v42, %v3691_v4  ;;  %vm2082_vm2 = vweird.f32 %v8172_v62  ;;  %v8370_v14 = vmax.f32 %v11286_v50, 1e-30  ;;  %v3694_v33 = vperm.slane %v2669_v26, %v11287_v31  ;;  %vm8431_vm9 = vmor %vm1952_vm4, %vm1953_vm11 }
 0x473   :  { %v2080_v57 = vsub.f32 1.5, %v2079_v29  ;;  %v8374_v23 = vmax.f32 %v11288_v34, 1e-30  ;;  %4596 = vrsqrt.f32 %v8346_v22  ;;  %v8378_v20 = vsel %vm2074_vm7, %v8174_v59, %v2071_v1  ;;  %v11290_v29 = vld [vmem:[#allocation115_spill] sm:$0xff] }
 0x474   :  { %11289 = vst [vmem:[#allocation48_spill] sm:$0xff] %v8378_v20  ;;  %v2088_v4 = vmul.f32 %v8313_v28, %v2087_v47  ;;  %v2119_v42 = vmul.f32 0.5, %v2118_v43  ;;  %v2138_v21 = vmul.f32 %v8325_v41, %v2137_v16  ;;  %vm2083_vm10 = vweird.f32 %v8244_v0  ;;  %v11293_v47 = vld [vmem:[#allocation77_spill] sm:$0xff] }
 0x475   :  { %v2129_v56 = vmul.f32 0.5, %v2128_v49  ;;  %v2147_v26 = vmul.f32 %v8363_v35, %v8290_v13  ;;  %v8386_v31 = vmax.f32 %v11290_v29, 1e-30  ;;  %v8388_v38 = vpop.eup %4592  ;;  %vm11291_vm13 = vcmask 982912   ;;  %vm2084_vm1 = vmor %vm2082_vm2, %vm2083_vm10 }
 0x476   :  { %v8391_v51 = vsel %vm11291_vm13, %v3673_v60, %v3672_v58  ;;  %v1951_v59 = vmul.f32 %v8152_v54, %v1950_v11  ;;  %v3696_v1 = vperm.slane %v2670_v6, %v11293_v47  ;;  %4598 = vrsqrt.f32 %v8370_v14  ;;  %v11295_v6 = vld [vmem:[#allocation110_spill] sm:$0xff] }
 0x477   :  { %11292 = vst [vmem:[#allocation49_spill] sm:$0xff] %v8391_v51  ;;  %v8396_v43 = vpop.eup %4594  ;;  %vm11294_vm15 = vcmask 654912   ;;  %v2671_v49 = vmul.f32 %v8378_v20, %v11241_v61  ;;  %v2081_v34 = vmul.f32 %v8244_v0, %v2080_v57  ;;  %4600 = vrsqrt.f32 %v8374_v23 }
 0x478   :  { %v3695_v16 = vsel %vm11294_vm15, %v3694_v33, %v3693_v8  ;;  %v2089_v58 = vmul.f32 0.5, %v2088_v4  ;;  %v2120_v11 = vsub.f32 1.5, %v2119_v42  ;;  %v2139_v60 = vmul.f32 0.5, %v2138_v21  ;;  %v673_v42 = vld [vmem:[#allocation5] sm:$0xff] }
 0x479   :  { %v8406_v51 = vmax.f32 %v11295_v6, 1e-30  ;;  %v8408_v47 = vpop.eup %4596  ;;  %v2130_v12 = vsub.f32 1.5, %v2129_v56  ;;  %v2148_v33 = vmul.f32 %v8363_v35, %v2147_v26  ;;  %v2157_v61 = vmul.f32 %v8388_v38, %v8323_v9 }
 0x47a   :  { %4602 = vrsqrt.f32 %v8386_v31  ;;  %vm11296_vm0 = vcmask 720512   ;;  %v2097_v62 = vmul.f32 %v8396_v43, %v8330_v32  ;;  %vm2122_vm12 = vweird.f32 %v8208_v46 }
 0x47b   :  { %v3697_v8 = vsel %vm11296_vm0, %v3696_v1, %v3695_v16  ;;  %vm2123_vm6 = vweird.f32 %v8292_v40  ;;  %v3698_v57 = vperm.slane %v2671_v49, %v11242_v30  ;;  %v8421_v56 = vsel %vm2084_vm1, %v8244_v0, %v2081_v34 }
 0x47c   :  { %11297 = vst [vmem:[#allocation19_spill] sm:$0xff] %v8421_v56  ;;  %vm2132_vm14 = vweird.f32 %v8217_v55  ;;  %vm2133_vm7 = vweird.f32 %v8297_v27  ;;  %v8425_v4 = vpop.eup %4598  ;;  %v2121_v46 = vmul.f32 %v8292_v40, %v2120_v11  ;;  %v2140_v21 = vsub.f32 1.5, %v2139_v60  ;;  %vm2124_vm2 = vmor %vm2122_vm12, %vm2123_vm6 }
 0x47d   :  { %v2167_v0 = vmul.f32 %v8408_v47, %v8346_v22  ;;  %4604 = vrsqrt.f32 %v8406_v51  ;;  %v8439_v34 = vpop.eup %4600  ;;  %v2090_v26 = vsub.f32 1.5, %v2089_v58  ;;  %v2131_v1 = vmul.f32 %v8297_v27, %v2130_v12  ;;  %vm2134_vm4 = vmor %vm2132_vm14, %vm2133_vm7 }
 0x47e   :  { %v2149_v16 = vmul.f32 0.5, %v2148_v33  ;;  %v2158_v7 = vmul.f32 %v8388_v38, %v2157_v61  ;;  %v8445_v49 = vmul.f32 %v8421_v56, %v11248_v37  ;;  %v2098_v11 = vmul.f32 %v8396_v43, %v2097_v62 }
 0x47f   :  { %vm2142_vm11 = vweird.f32 %v8242_v17  ;;  %vm2143_vm10 = vweird.f32 %v8325_v41  ;;  %v8459_v12 = vsel %vm8431_vm9, %v8152_v54, %v1951_v59  ;;  %vm2092_vm13 = vweird.f32 %v8231_v63 }
 0x480   :  { %v8454_v58 = vpop.eup %4602  ;;  %11300 = vst [vmem:[#allocation27_spill] sm:$0xff] %v8459_v12  ;;  %vm2093_vm15 = vweird.f32 %v8313_v28  ;;  %v2177_v37 = vmul.f32 %v8425_v4, %v8370_v14  ;;  %vm11301_vm1 = vcmask 786112   ;;  %v8469_v17 = vsel %vm2124_vm2, %v8292_v40, %v2121_v46  ;;  %vm2144_vm0 = vmor %vm2142_vm11, %vm2143_vm10 }
 0x481   :  { %v8466_v55 = vsel %vm11301_vm1, %v3698_v57, %v3697_v8  ;;  %11302 = vst [vmem:[#allocation100_spill] sm:$0xff] %v8469_v17  ;;  %v2141_v60 = vmul.f32 %v8325_v41, %v2140_v21  ;;  %v2168_v33 = vmul.f32 %v8408_v47, %v2167_v0  ;;  %v2107_v54 = vmul.f32 %v8439_v34, %v8374_v23  ;;  %vm2094_vm12 = vmor %vm2092_vm13, %vm2093_vm15 }
 0x482   :  { %v8476_v59 = vsel %vm2134_vm4, %v8297_v27, %v2131_v1  ;;  %v2150_v61 = vsub.f32 1.5, %v2149_v16  ;;  %v2159_v62 = vmul.f32 0.5, %v2158_v7  ;;  %v2091_v8 = vmul.f32 %v8313_v28, %v2090_v26  ;;  %v11305_v16 = vld [vmem:[#allocation120_spill] sm:$0xff] }
 0x483   :  { %11303 = vst [vmem:[#allocation109_spill] sm:$0xff] %v8476_v59  ;;  %v8478_v56 = vpop.eup %4604  ;;  %v8483_v57 = vmul.f32 0.5, %v2098_v11  ;;  %v2187_v46 = vmul.f32 %v8454_v58, %v8386_v31  ;;  %v2676_v27 = vmul.f32 %v8469_v17, %v11252_v5  ;;  %vm2152_vm6 = vweird.f32 %v8290_v13  ;;  %v11341_v17 = vld [vmem:[#allocation28_spill] sm:$0xff] }
 0x484   :  { %vm2153_vm14 = vweird.f32 %v8363_v35  ;;  %v2178_v21 = vmul.f32 %v8425_v4, %v2177_v37  ;;  %v2677_v0 = vmul.f32 %v8476_v59, %v11254_v25  ;;  %v8499_v26 = vsel %vm2144_vm0, %v8325_v41, %v2141_v60  ;;  %3822 = vperm.xlu2 %4367, %v673_v42   ;;  %v11308_v42 = vld [vmem:[#allocation117_spill] sm:$0xff] }
 0x485   :  { %11304 = vst [vmem:[#allocation102_spill] sm:$0xff] %v8499_v26  ;;  %v2169_v1 = vmul.f32 0.5, %v2168_v33  ;;  %v8502_v7 = vmax.f32 %v11305_v16, 1e-30  ;;  %v2108_v63 = vmul.f32 %v8439_v34, %v2107_v54  ;;  %v2151_v5 = vmul.f32 %v8363_v35, %v2150_v61  ;;  %vm2154_vm7 = vmor %vm2152_vm6, %vm2153_vm14  ;;  %v11307_v54 = vld [vmem:[#allocation113_spill] sm:$0xff] }
 0x486   :  { %v2160_v13 = vsub.f32 1.5, %v2159_v62  ;;  %v2197_v11 = vmul.f32 %v8478_v56, %v8406_v51  ;;  %v8509_v37 = vsel %vm2094_vm12, %v8313_v28, %v2091_v8  ;;  %vm2162_vm9 = vweird.f32 %v8323_v9 }
 0x487   :  { %11306 = vst [vmem:[#allocation108_spill] sm:$0xff] %v8509_v37  ;;  %vm2163_vm2 = vweird.f32 %v8388_v38  ;;  %v2188_v25 = vmul.f32 %v8454_v58, %v2187_v46  ;;  %v3708_v41 = vperm.slane %v2676_v27, %v5675_v15  ;;  %v2678_v60 = vmul.f32 %v8499_v26, %v11261_v2  ;;  %v11313_v26 = vld [vmem:[#allocation124_spill] sm:$0xff] }
 0x488   :  { %v2179_v33 = vmul.f32 0.5, %v2178_v21  ;;  %v8518_v61 = vmax.f32 %v11307_v54, 1e-30  ;;  %v3709_v62 = vperm.slane %v2677_v0, %v5692_v10  ;;  %v2170_v28 = vsub.f32 1.5, %v2169_v1  ;;  %vm2164_vm15 = vmor %vm2162_vm9, %vm2163_vm2 }
 0x489   :  { %v8522_v8 = vmax.f32 %v11308_v42, 1e-30  ;;  %4606 = vrsqrt.f32 %v8502_v7  ;;  %vm2102_vm4 = vweird.f32 %v8330_v32  ;;  %vm2103_vm11 = vweird.f32 %v8396_v43 }
 0x48a   :  { %v2109_v46 = vmul.f32 0.5, %v2108_v63  ;;  %v8528_v27 = vsel %vm2154_vm7, %v8363_v35, %v2151_v5  ;;  %v2161_v2 = vmul.f32 %v8388_v38, %v2160_v13  ;;  %v2198_v21 = vmul.f32 %v8478_v56, %v2197_v11  ;;  %v11310_v63 = vld [vmem:[#allocation24_spill] sm:$0xff] }
 0x48b   :  { %11309 = vst [vmem:[#allocation115_spill] sm:$0xff] %v8528_v27  ;;  %vm2112_vm10 = vweird.f32 %v8374_v23  ;;  %vm2113_vm13 = vweird.f32 %v8439_v34  ;;  %vm2172_vm1 = vweird.f32 %v8346_v22  ;;  %vm2173_vm0 = vweird.f32 %v8408_v47 }
 0x48c   :  { %vm2182_vm12 = vweird.f32 %v8370_v14  ;;  %v2189_v35 = vmul.f32 0.5, %v2188_v25  ;;  %v3711_v0 = vperm.slane %v2678_v60, %v11056_v18  ;;  %v2180_v1 = vsub.f32 1.5, %v2179_v33  ;;  %vm2174_vm6 = vmor %vm2172_vm1, %vm2173_vm0  ;;  %v11312_v60 = vld [vmem:[#allocation10_spill] sm:$0xff] }
 0x48d   :  { %4608 = vrsqrt.f32 %v8518_v61  ;;  %v8544_v5 = vmax.f32 %v11310_v63, 1e-30  ;;  %v3710_v13 = vsel %vm3526_vm3, %v3709_v62, %v3708_v41  ;;  %v2679_v9 = vmul.f32 %v8528_v27, %v11273_v52 }
 0x48e   :  { %v2171_v22 = vmul.f32 %v8408_v47, %v2170_v28  ;;  %4610 = vrsqrt.f32 %v8522_v8  ;;  %v8552_v11 = vsel %vm2164_vm15, %v8388_v38, %v2161_v2  ;;  %vm2183_vm14 = vweird.f32 %v8425_v4 }
 0x48f   :  { %11311 = vst [vmem:[#allocation110_spill] sm:$0xff] %v8552_v11  ;;  %v2199_v25 = vmul.f32 0.5, %v2198_v21  ;;  %v8556_v33 = vmax.f32 %v11312_v60, 1e-30  ;;  %v8558_v40 = vpop.eup %4606  ;;  %v2100_v41 = vsub.f32 1.5, %v8483_v57  ;;  %v2110_v62 = vsub.f32 1.5, %v2109_v46  ;;  %vm2184_vm9 = vmor %vm2182_vm12, %vm2183_vm14 }
 0x490   :  { %v2190_v52 = vsub.f32 1.5, %v2189_v35  ;;  %v8562_v28 = vmax.f32 %v11313_v26, 1e-30  ;;  %v3712_v27 = vsel %vm10780_vm8, %v3711_v0, %v3710_v13  ;;  %v2181_v38 = vmul.f32 %v8425_v4, %v2180_v1  ;;  %v11315_v1 = vld [vmem:[#allocation23_spill] sm:$0xff]  ;;  %vm8613_vm12 = vmor %vm2102_vm4, %vm2103_vm11 }
 0x491   :  { %vm2192_vm7 = vweird.f32 %v8386_v31  ;;  %4612 = vrsqrt.f32 %v8544_v5  ;;  %v3713_v2 = vperm.slane %v2679_v9, %v10955_v36  ;;  %v2680_v21 = vmul.f32 %v8552_v11, %v11278_v19 }
 0x492   :  { %v8572_v57 = vsel %vm2174_vm6, %v8408_v47, %v2171_v22  ;;  %vm2193_vm2 = vweird.f32 %v8454_v58  ;;  %v2200_v35 = vsub.f32 1.5, %v2199_v25  ;;  %v2217_v0 = vmul.f32 %v8558_v40, %v8502_v7  ;;  %vm8628_vm6 = vmor %vm2112_vm10, %vm2113_vm13 }
 0x493   :  { %11314 = vst [vmem:[#allocation120_spill] sm:$0xff] %v8572_v57  ;;  %v8579_v46 = vpop.eup %4608  ;;  %v8584_v13 = vmax.f32 %v11315_v1, 1e-30  ;;  %4614 = vrsqrt.f32 %v8556_v33  ;;  %v8591_v47 = vmul.f32 %v8509_v37, %v11259_v53  ;;  %v2101_v14 = vmul.f32 %v8396_v43, %v2100_v41  ;;  %vm8603_vm15 = vmor %vm2192_vm7, %vm2193_vm2 }
 0x494   :  { %v8587_v19 = vpop.eup %4610  ;;  %v2191_v9 = vmul.f32 %v8454_v58, %v2190_v52  ;;  %4616 = vrsqrt.f32 %v8562_v28  ;;  %v2681_v22 = vmul.f32 %v8572_v57, %v11282_v48  ;;  %v8599_v25 = vsel %vm2184_vm9, %v8425_v4, %v2181_v38 }
 0x495   :  { %11316 = vst [vmem:[#allocation113_spill] sm:$0xff] %v8591_v47  ;;  %vm2202_vm1 = vweird.f32 %v8406_v51  ;;  %vm2203_vm0 = vweird.f32 %v8478_v56  ;;  %v2111_v48 = vmul.f32 %v8439_v34, %v2110_v62  ;;  %v3714_v31 = vsel %vm10779_vm5, %v3713_v2, %v3712_v27  ;;  %v11324_v2 = vld [vmem:[#allocation63_spill] sm:$0xff] }
 0x496   :  { %11317 = vst [vmem:[#allocation117_spill] sm:$0xff] %v8599_v25  ;;  %v3715_v4 = vperm.slane %v2680_v21, %v11059_v39  ;;  %v2227_v41 = vmul.f32 %v8579_v46, %v8518_v61  ;;  %v2201_v38 = vmul.f32 %v8478_v56, %v2200_v35  ;;  %v2207_v27 = vmul.f32 %v8587_v19, %v8522_v8  ;;  %vm2204_vm4 = vmor %vm2202_vm1, %vm2203_vm0  ;;  %v11327_v35 = vld [vmem:[#allocation121_spill] sm:$0xff] }
 0x497   :  { %v8622_v52 = vpop.eup %4612  ;;  %v2218_v62 = vmul.f32 %v8558_v40, %v2217_v0  ;;  %4618 = vrsqrt.f32 %v8584_v13  ;;  %v8639_v21 = vmul.f32 %v8459_v12, %v11324_v2  ;;  %v2682_v23 = vmul.f32 %v8599_v25, %v11286_v50 }
 0x498   :  { %v8646_v57 = vsel %vm8603_vm15, %v8454_v58, %v2191_v9  ;;  %v8653_v0 = vmax.f32 %v11327_v35, 1e-30  ;;  %v11329_v2 = vperm.slane %v8445_v49, %v11135_v3  ;;  %vm11330_vm11 = vcmask 851712  }
 0x499   :  { %11325 = vst [vmem:[#allocation24_spill] sm:$0xff] %v8639_v21  ;;  %v8655_v59 = vpop.eup %4614  ;;  %v8669_v51 = vsel %vm8613_vm12, %v8396_v43, %v2101_v14  ;;  %v3717_v11 = vperm.slane %v2681_v22, %v11063_v45  ;;  %v8677_v25 = vsel %vm8628_vm6, %v8439_v34, %v2111_v48  ;;  %vm11334_vm10 = vcmask 326912   ;;  %v11336_v48 = vld [vmem:[#allocation26_spill] sm:$0xff]  ;;  %v11353_v21 = vld [vmem:[#allocation129_spill] sm:$0xff] }
 0x49a   :  { %11326 = vst [vmem:[#allocation10_spill] sm:$0xff] %v8646_v57  ;;  %v8662_v50 = vsel %vm11330_vm11, %v11329_v2, %v8466_v55  ;;  %v8672_v9 = vpop.eup %4616  ;;  %v3716_v49 = vsel %vm11334_vm10, %v3715_v4, %v3714_v31  ;;  %v2228_v55 = vmul.f32 %v8579_v46, %v2227_v41  ;;  %v2247_v2 = vmul.f32 %v8622_v52, %v8544_v5  ;;  %v11337_v41 = vld [vmem:[#allocation98_spill] sm:$0xff] }
 0x49b   :  { %11328 = vst [vmem:[#allocation124_spill] sm:$0xff] %v8653_v0  ;;  %v2683_v43 = vmul.f32 %v8646_v57, %v11290_v29  ;;  %v8686_v14 = vsel %vm2204_vm4, %v8478_v56, %v2201_v38  ;;  %v2208_v22 = vmul.f32 %v8587_v19, %v2207_v27  ;;  %v2219_v53 = vmul.f32 0.5, %v2218_v62  ;;  %v11340_v27 = vld [vmem:[#allocation30_spill] sm:$0xff] }
 0x49c   :  { %11331 = vst [vmem:[#allocation23_spill] sm:$0xff] %v8662_v50  ;;  %v3719_v32 = vperm.slane %v2682_v23, %v5892_v44  ;;  %4620 = vrsqrt.f32 %v8653_v0  ;;  %v2277_v34 = vmul.f32 %v8655_v59, %v8556_v33  ;;  %v8694_v31 = vmax.f32 %v11336_v48, 1e-30 }
 0x49d   :  { %11332 = vst [vmem:[#allocation63_spill] sm:$0xff] %v8669_v51  ;;  %v8696_v4 = vpop.eup %4618  ;;  %v8700_v29 = vmul.f32 %v8669_v51, %v11337_v41  ;;  %vm11339_vm13 = vcmask 392512   ;;  %v2287_v38 = vmul.f32 %v8672_v9, %v8562_v28  ;;  %v8706_v62 = vmax.f32 %v11340_v27, 1e-30  ;;  %v11342_v41 = vld [vmem:[#allocation90_spill] sm:$0xff] }
 0x49e   :  { %11333 = vst [vmem:[#allocation159_spill] sm:$0xff] %v8677_v25  ;;  %v3718_v56 = vsel %vm11339_vm13, %v3717_v11, %v3716_v49  ;;  %v8710_v23 = vmul.f32 %v8686_v14, %v11295_v6  ;;  %v2229_v58 = vmul.f32 0.5, %v2228_v55  ;;  %v2248_v57 = vmul.f32 %v8622_v52, %v2247_v2  ;;  %v11344_v11 = vld [vmem:[#allocation72_spill] sm:$0xff] }
 0x49f   :  { %11335 = vst [vmem:[#allocation160_spill] sm:$0xff] %v8686_v14  ;;  %v8714_v37 = vmax.f32 %v11341_v17, 1e-30  ;;  %v8718_v51 = vmul.f32 %v8677_v25, %v11342_v41  ;;  %v3721_v49 = vperm.slane %v2683_v43, %v11344_v11  ;;  %v2209_v20 = vmul.f32 0.5, %v2208_v22  ;;  %v11346_v22 = vld [vmem:[#allocation92_spill] sm:$0xff] }
 0x4a0   :  { %11338 = vst [vmem:[#allocation26_spill] sm:$0xff] %v8700_v29  ;;  %v2220_v12 = vsub.f32 1.5, %v2219_v53  ;;  %vm11345_vm14 = vcmask 458112   ;;  %v2237_v6 = vmul.f32 %v8696_v4, %v8584_v13  ;;  %v2278_v55 = vmul.f32 %v8655_v59, %v2277_v34 }
 0x4a1   :  { %11343 = vst [vmem:[#allocation98_spill] sm:$0xff] %v8718_v51  ;;  %v3720_v29 = vsel %vm11345_vm14, %v3719_v32, %v3718_v56  ;;  %4622 = vrsqrt.f32 %v8694_v31  ;;  %vm2222_vm7 = vweird.f32 %v8502_v7  ;;  %vm2223_vm9 = vweird.f32 %v8558_v40 }
 0x4a2   :  { %v2288_v2 = vmul.f32 %v8672_v9, %v2287_v38  ;;  %4624 = vrsqrt.f32 %v8706_v62  ;;  %v8730_v43 = vpop.eup %4620  ;;  %v2230_v32 = vsub.f32 1.5, %v2229_v58  ;;  %v2249_v56 = vmul.f32 0.5, %v2248_v57  ;;  %vm8738_vm1 = vmor %vm2222_vm7, %vm2223_vm9  ;;  %v11350_v58 = vld [vmem:[#allocation128_spill] sm:$0xff]  ;;  %v11354_v38 = vld [vmem:[#allocation126_spill] sm:$0xff] }
 0x4a3   :  { %4626 = vrsqrt.f32 %v8714_v37  ;;  %vm11347_vm2 = vcmask 523712   ;;  %v2210_v41 = vsub.f32 1.5, %v2209_v20  ;;  %v2221_v7 = vmul.f32 %v8558_v40, %v2220_v12 }
 0x4a4   :  { %v3722_v34 = vsel %vm11347_vm2, %v3721_v49, %v3720_v29  ;;  %vm2232_vm15 = vweird.f32 %v8518_v61  ;;  %vm2233_vm0 = vweird.f32 %v8579_v46  ;;  %v2238_v14 = vmul.f32 %v8696_v4, %v2237_v6 }
 0x4a5   :  { %v2279_v53 = vmul.f32 0.5, %v2278_v55  ;;  %v8745_v57 = vmax.f32 %v11350_v58, 1e-30  ;;  %vm2212_vm12 = vweird.f32 %v8522_v8  ;;  %vm2252_vm6 = vweird.f32 %v8544_v5  ;;  %vm2234_vm7 = vmor %vm2232_vm15, %vm2233_vm0 }
 0x4a6   :  { %v2257_v20 = vmul.f32 %v8730_v43, %v8653_v0  ;;  %v2289_v12 = vmul.f32 0.5, %v2288_v2  ;;  %vm2213_vm4 = vweird.f32 %v8587_v19  ;;  %v2231_v49 = vmul.f32 %v8579_v46, %v2230_v32  ;;  %v11352_v2 = vld [vmem:[#allocation29_spill] sm:$0xff] }
 0x4a7   :  { %v8751_v29 = vpop.eup %4622  ;;  %v2250_v25 = vsub.f32 1.5, %v2249_v56  ;;  %vm2253_vm11 = vweird.f32 %v8622_v52  ;;  %v2211_v55 = vmul.f32 %v8587_v19, %v2210_v41  ;;  %v8762_v51 = vsel %vm8738_vm1, %v8558_v40, %v2221_v7  ;;  %vm2214_vm13 = vmor %vm2212_vm12, %vm2213_vm4 }
 0x4a8   :  { %v8756_v6 = vpop.eup %4624  ;;  %11351 = vst [vmem:[#allocation30_spill] sm:$0xff] %v8762_v51  ;;  %vm2242_vm10 = vweird.f32 %v8584_v13  ;;  %v8766_v47 = vmax.f32 %v11352_v2, 1e-30  ;;  %v2239_v32 = vmul.f32 0.5, %v2238_v14  ;;  %v2280_v56 = vsub.f32 1.5, %v2279_v53  ;;  %vm8803_vm15 = vmor %vm2252_vm6, %vm2253_vm11  ;;  %v11370_v13 = vld [vmem:[#allocation96_spill] sm:$0xff] }
 0x4a9   :  { %v8768_v50 = vpop.eup %4626  ;;  %4628 = vrsqrt.f32 %v8745_v57  ;;  %v8772_v35 = vmax.f32 %v11353_v21, 1e-30  ;;  %v2258_v40 = vmul.f32 %v8730_v43, %v2257_v20  ;;  %vm2282_vm14 = vweird.f32 %v8556_v33  ;;  %v11361_v33 = vld [vmem:[#allocation37_spill] sm:$0xff] }
 0x4aa   :  { %v2290_v41 = vsub.f32 1.5, %v2289_v12  ;;  %v2297_v7 = vmul.f32 %v8751_v29, %v8694_v31  ;;  %v2251_v14 = vmul.f32 %v8622_v52, %v2250_v25  ;;  %vm2283_vm9 = vweird.f32 %v8655_v59  ;;  %v11369_v12 = vld [vmem:[#allocation77_spill] sm:$0xff] }
 0x4ab   :  { %vm2292_vm2 = vweird.f32 %v8562_v28  ;;  %v2307_v8 = vmul.f32 %v8756_v6, %v8706_v62  ;;  %4630 = vrsqrt.f32 %v8766_v47  ;;  %vm2293_vm1 = vweird.f32 %v8672_v9  ;;  %vm8818_vm0 = vmor %vm2282_vm14, %vm2283_vm9 }
 0x4ac   :  { %v2317_v53 = vmul.f32 %v8768_v50, %v8714_v37  ;;  %v8794_v20 = vmax.f32 %v11354_v38, 1e-30  ;;  %v8797_v61 = vsel %vm2214_vm13, %v8587_v19, %v2211_v55  ;;  %v2240_v25 = vsub.f32 1.5, %v2239_v32  ;;  %vm2294_vm6 = vmor %vm2292_vm2, %vm2293_vm1 }
 0x4ad   :  { %11355 = vst [vmem:[#allocation28_spill] sm:$0xff] %v8797_v61  ;;  %v2281_v2 = vmul.f32 %v8655_v59, %v2280_v56  ;;  %4632 = vrsqrt.f32 %v8772_v35  ;;  %v8811_v3 = vmul.f32 %v8762_v51, %v11305_v16  ;;  %v8814_v19 = vsel %vm2234_vm7, %v8579_v46, %v2231_v49 }
 0x4ae   :  { %11358 = vst [vmem:[#allocation90_spill] sm:$0xff] %v8814_v19  ;;  %v2291_v5 = vmul.f32 %v8672_v9, %v2290_v41  ;;  %v2298_v32 = vmul.f32 %v8751_v29, %v2297_v7  ;;  %vm2243_vm12 = vweird.f32 %v8696_v4  ;;  %v2259_v0 = vmul.f32 0.5, %v2258_v40 }
 0x4af   :  { %v8824_v56 = vpop.eup %4628  ;;  %v2308_v16 = vmul.f32 %v8756_v6, %v2307_v8  ;;  %v8833_v46 = vmax.f32 %v11361_v33, 1e-30  ;;  %v11362_v49 = vperm.slane %v8710_v23, %v11346_v22  ;;  %vm11363_vm4 = vcmask 589312   ;;  %vm2244_vm11 = vmor %vm2242_vm10, %vm2243_vm12 }
 0x4b0   :  { %v2685_v7 = vmul.f32 %v8797_v61, %v11308_v42  ;;  %v2318_v40 = vmul.f32 %v8768_v50, %v2317_v53  ;;  %4634 = vrsqrt.f32 %v8794_v20  ;;  %v8845_v28 = vmul.f32 %v8814_v19, %v11307_v54 }
 0x4b1   :  { %v3724_v41 = vsel %vm11363_vm4, %v11362_v49, %v3722_v34  ;;  %v2241_v8 = vmul.f32 %v8696_v4, %v2240_v25  ;;  %v8851_v51 = vsel %vm8803_vm15, %v8622_v52, %v2251_v14  ;;  %v8856_v23 = vsel %vm8818_vm0, %v8655_v59, %v2281_v2  ;;  %v8858_v42 = vpop.eup %4630  ;;  %v11368_v25 = vld [vmem:[#allocation36_spill] sm:$0xff] }
 0x4b2   :  { %11364 = vst [vmem:[#allocation72_spill] sm:$0xff] %v8845_v28  ;;  %v8863_v54 = vsel %vm2294_vm6, %v8672_v9, %v2291_v5  ;;  %v2299_v34 = vmul.f32 0.5, %v2298_v32  ;;  %v2327_v53 = vmul.f32 %v8824_v56, %v8745_v57  ;;  %v8868_v52 = vmax.f32 %v11368_v25, 1e-30  ;;  %v11383_v28 = vld [vmem:[#allocation59_spill] sm:$0xff] }
 0x4b3   :  { %11365 = vst [vmem:[#allocation92_spill] sm:$0xff] %v8851_v51  ;;  %v8870_v14 = vpop.eup %4632  ;;  %v2260_v2 = vsub.f32 1.5, %v2259_v0  ;;  %v2309_v55 = vmul.f32 0.5, %v2308_v16  ;;  %4636 = vrsqrt.f32 %v8833_v46  ;;  %v3725_v49 = vperm.slane %v2685_v7, %v11370_v13  ;;  %v11373_v16 = vld [vmem:[#allocation130_spill] sm:$0xff] }
 0x4b4   :  { %11366 = vst [vmem:[#allocation128_spill] sm:$0xff] %v8856_v23  ;;  %v8878_v9 = vmul.f32 %v8851_v51, %v11310_v63  ;;  %v2692_v5 = vmul.f32 %v8856_v23, %v11312_v60  ;;  %v2319_v32 = vmul.f32 0.5, %v2318_v40  ;;  %v8883_v19 = vsel %vm2244_vm11, %v8696_v4, %v2241_v8  ;;  %v11374_v23 = vld [vmem:[#allocation135_spill] sm:$0xff] }
 0x4b5   :  { %11367 = vst [vmem:[#allocation129_spill] sm:$0xff] %v8863_v54  ;;  %v2267_v59 = vmul.f32 %v8858_v42, %v8766_v47  ;;  %v2693_v0 = vmul.f32 %v8863_v54, %v11313_v26  ;;  %v8890_v61 = vmax.f32 %v11373_v16, 1e-30  ;;  %v2300_v63 = vsub.f32 1.5, %v2299_v34 }
 0x4b6   :  { %11371 = vst [vmem:[#allocation126_spill] sm:$0xff] %v8878_v9  ;;  %v8892_v7 = vpop.eup %4634  ;;  %v2328_v51 = vmul.f32 %v8824_v56, %v2327_v53  ;;  %v2337_v60 = vmul.f32 %v8870_v14, %v8772_v35  ;;  %4638 = vrsqrt.f32 %v8868_v52  ;;  %vm2302_vm10 = vweird.f32 %v8694_v31 }
 0x4b7   :  { %11372 = vst [vmem:[#allocation37_spill] sm:$0xff] %v8883_v19  ;;  %v2310_v4 = vsub.f32 1.5, %v2309_v55  ;;  %vm2312_vm13 = vweird.f32 %v8706_v62  ;;  %vm2322_vm14 = vweird.f32 %v8714_v37  ;;  %v3739_v26 = vperm.slane %v2692_v5, %v5675_v15  ;;  %v11377_v62 = vld [vmem:[#allocation136_spill] sm:$0xff] }
 0x4b8   :  { %vm2303_vm7 = vweird.f32 %v8751_v29  ;;  %vm2313_vm9 = vweird.f32 %v8756_v6  ;;  %v2320_v40 = vsub.f32 1.5, %v2319_v32  ;;  %v3740_v34 = vperm.slane %v2693_v0, %v5692_v10 }
 0x4b9   :  { %v8904_v8 = vpop.eup %4636  ;;  %vm2323_vm2 = vweird.f32 %v8768_v50  ;;  %v2347_v53 = vmul.f32 %v8892_v7, %v8794_v20  ;;  %4640 = vrsqrt.f32 %v8890_v61  ;;  %v2301_v55 = vmul.f32 %v8751_v29, %v2300_v63  ;;  %vm2304_vm1 = vmor %vm2302_vm10, %vm2303_vm7 }
 0x4ba   :  { %v2329_v54 = vmul.f32 0.5, %v2328_v51  ;;  %v2338_v5 = vmul.f32 %v8870_v14, %v2337_v60  ;;  %v8914_v15 = vmax.f32 %v11374_v23, 1e-30  ;;  %v8921_v10 = vmul.f32 %v8730_v43, %v2260_v2  ;;  %vm2314_vm0 = vmor %vm2312_vm13, %vm2313_vm9 }
 0x4bb   :  { %v2311_v51 = vmul.f32 %v8756_v6, %v2310_v4  ;;  %vm11375_vm15 = vcmask 654912   ;;  %v8934_v32 = vmul.f32 %v8858_v42, %v2267_v59  ;;  %v2321_v2 = vmul.f32 %v8768_v50, %v2320_v40  ;;  %vm2324_vm12 = vmor %vm2322_vm14, %vm2323_vm2 }
 0x4bc   :  { %v8928_v63 = vpop.eup %4638  ;;  %v8931_v60 = vsel %vm11375_vm15, %v3725_v49, %v3724_v41  ;;  %v2357_v31 = vmul.f32 %v8904_v8, %v8833_v46  ;;  %v8945_v4 = vmul.f32 %v8883_v19, %v11315_v1  ;;  %v3741_v41 = vsel %vm3526_vm3, %v3740_v34, %v3739_v26  ;;  %v8960_v1 = vpop.xlane.xlu2 %1180 }
 0x4bd   :  { %v2348_v59 = vmul.f32 %v8892_v7, %v2347_v53  ;;  %v8954_v49 = vmax.f32 %v11377_v62, 1e-30  ;;  %v8957_v40 = vsel %vm2304_vm1, %v8751_v29, %v2301_v55  ;;  %v2330_v0 = vsub.f32 1.5, %v2329_v54  ;;  %v11381_v53 = vld [vmem:[#allocation131_spill] sm:$0xff] }
 0x4be   :  { %11376 = vst [vmem:[#allocation36_spill] sm:$0xff] %v8945_v4  ;;  %v2339_v9 = vmul.f32 0.5, %v2338_v5  ;;  %4642 = vrsqrt.f32 %v8914_v15  ;;  %v8965_v34 = vsel %vm2314_vm0, %v8756_v6, %v2311_v51  ;;  %vm2332_vm6 = vweird.f32 %v8745_v57 }
 0x4bf   :  { %11378 = vst [vmem:[#allocation77_spill] sm:$0xff] %v8957_v40  ;;  %v8962_v26 = vpop.eup %4640  ;;  %vm2342_vm4 = vweird.f32 %v8772_v35  ;;  %v2367_v37 = vmul.f32 %v8928_v63, %v8868_v52  ;;  %v8972_v29 = vsel %vm2324_vm12, %v8768_v50, %v2321_v2  ;;  %vm2333_vm11 = vweird.f32 %v8824_v56 }
 0x4c0   :  { %11379 = vst [vmem:[#allocation96_spill] sm:$0xff] %v8965_v34  ;;  %v2358_v54 = vmul.f32 %v8904_v8, %v2357_v31  ;;  %v8977_v55 = vmax.f32 %v11381_v53, 1e-30  ;;  %v2694_v6 = vmul.f32 %v8957_v40, %v11336_v48  ;;  %v2349_v5 = vmul.f32 0.5, %v2348_v59  ;;  %vm2334_vm13 = vmor %vm2332_vm6, %vm2333_vm11  ;;  %v11382_v40 = vld [vmem:[#allocation141_spill] sm:$0xff] }
 0x4c1   :  { %11380 = vst [vmem:[#allocation130_spill] sm:$0xff] %v8972_v29  ;;  %4644 = vrsqrt.f32 %v8954_v49  ;;  %v8983_v51 = vmax.f32 %v8960_v1, 1e-30  ;;  %v2331_v19 = vmul.f32 %v8824_v56, %v2330_v0  ;;  %v2340_v50 = vsub.f32 1.5, %v2339_v9 }
 0x4c2   :  { %vm2352_vm10 = vweird.f32 %v8794_v20  ;;  %v2377_v2 = vmul.f32 %v8962_v26, %v8890_v61  ;;  %v2695_v31 = vmul.f32 %v8965_v34, %v11340_v27  ;;  %v2696_v48 = vmul.f32 %v8972_v29, %v11341_v17 }
 0x4c3   :  { %v2368_v59 = vmul.f32 %v8928_v63, %v2367_v37  ;;  %v8997_v24 = vmax.f32 %v11382_v40, 1e-30  ;;  %vm2343_vm14 = vweird.f32 %v8870_v14  ;;  %v2359_v0 = vmul.f32 0.5, %v2358_v54  ;;  %v11385_v54 = vld [vmem:[#allocation142_spill] sm:$0xff] }
 0x4c4   :  { %v8999_v9 = vpop.eup %4642  ;;  %4646 = vrsqrt.f32 %v8977_v55  ;;  %v9004_v27 = vmax.f32 %v11383_v28, 1e-30  ;;  %v3742_v17 = vperm.slane %v2694_v6, %v11056_v18  ;;  %v2350_v29 = vsub.f32 1.5, %v2349_v5  ;;  %vm2344_vm9 = vmor %vm2342_vm4, %vm2343_vm14 }
 0x4c5   :  { %vm2353_vm7 = vweird.f32 %v8892_v7  ;;  %4648 = vrsqrt.f32 %v8983_v51  ;;  %v9010_v57 = vsel %vm2334_vm13, %v8824_v56, %v2331_v19  ;;  %v2341_v37 = vmul.f32 %v8870_v14, %v2340_v50  ;;  %v11386_v19 = vld [vmem:[#allocation79_spill] sm:$0xff] }
 0x4c6   :  { %11384 = vst [vmem:[#allocation135_spill] sm:$0xff] %v9010_v57  ;;  %v2378_v34 = vmul.f32 %v8962_v26, %v2377_v2  ;;  %v9015_v40 = vmax.f32 %v11385_v54, 1e-30  ;;  %v2369_v6 = vmul.f32 0.5, %v2368_v59  ;;  %v2387_v5 = vmul.f32 %v8999_v9, %v8914_v15  ;;  %vm2354_vm15 = vmor %vm2352_vm10, %vm2353_vm7 }
 0x4c7   :  { %v9017_v4 = vpop.eup %4644  ;;  %4650 = vrsqrt.f32 %v8997_v24  ;;  %v9025_v56 = vmax.f32 %v11386_v19, 1e-30  ;;  %v3744_v50 = vperm.slane %v2695_v31, %v10955_v36  ;;  %v2360_v2 = vsub.f32 1.5, %v2359_v0 }
 0x4c8   :  { %vm2362_vm2 = vweird.f32 %v8833_v46  ;;  %4652 = vrsqrt.f32 %v9004_v27  ;;  %v3743_v18 = vsel %vm10780_vm8, %v3742_v17, %v3741_v41  ;;  %v2697_v35 = vmul.f32 %v9010_v57, %v11350_v58 }
 0x4c9   :  { %v2351_v59 = vmul.f32 %v8892_v7, %v2350_v29  ;;  %vm2363_vm1 = vweird.f32 %v8904_v8  ;;  %v9038_v19 = vsel %vm2344_vm9, %v8870_v14, %v2341_v37  ;;  %v2379_v31 = vmul.f32 0.5, %v2378_v34 }
 0x4ca   :  { %v9035_v54 = vpop.eup %4646  ;;  %11387 = vst [vmem:[#allocation136_spill] sm:$0xff] %v9038_v19  ;;  %v2397_v41 = vmul.f32 %v9017_v4, %v8954_v49  ;;  %4654 = vrsqrt.f32 %v9015_v40  ;;  %v3746_v29 = vperm.slane %v2696_v48, %v11059_v39  ;;  %v2370_v0 = vsub.f32 1.5, %v2369_v6  ;;  %vm2364_vm12 = vmor %vm2362_vm2, %vm2363_vm1 }
 0x4cb   :  { %v9047_v58 = vpop.eup %4648  ;;  %v2388_v17 = vmul.f32 %v8999_v9, %v2387_v5  ;;  %4656 = vrsqrt.f32 %v9025_v56  ;;  %v9053_v14 = vmul.f32 0.5, %v8934_v32  ;;  %v3745_v20 = vsel %vm10779_vm5, %v3744_v50, %v3743_v18 }
 0x4cc   :  { %v2361_v34 = vmul.f32 %v8904_v8, %v2360_v2  ;;  %vm2372_vm0 = vweird.f32 %v8868_v52  ;;  %v2698_v57 = vmul.f32 %v9038_v19, %v11353_v21  ;;  %v9063_v48 = vsel %vm2354_vm15, %v8892_v7, %v2351_v59 }
 0x4cd   :  { %v9058_v37 = vpop.eup %4650  ;;  %11388 = vst [vmem:[#allocation131_spill] sm:$0xff] %v9063_v48  ;;  %vm2373_vm6 = vweird.f32 %v8928_v63  ;;  %v2407_v18 = vmul.f32 %v9035_v54, %v8977_v55  ;;  %v3748_v6 = vperm.slane %v2697_v35, %v11063_v45  ;;  %v2380_v5 = vsub.f32 1.5, %v2379_v31 }
 0x4ce   :  { %v9072_v32 = vpop.eup %4652  ;;  %v2398_v21 = vmul.f32 %v9017_v4, %v2397_v41  ;;  %v2567_v7 = vmul.f32 %v9047_v58, %v8983_v51  ;;  %vm11389_vm4 = vcmask 326912   ;;  %v2371_v46 = vmul.f32 %v8928_v63, %v2370_v0  ;;  %vm2374_vm10 = vmor %vm2372_vm0, %vm2373_vm6 }
 0x4cf   :  { %v3747_v50 = vsel %vm11389_vm4, %v3746_v29, %v3745_v20  ;;  %vm2382_vm11 = vweird.f32 %v8890_v61  ;;  %v2389_v2 = vmul.f32 0.5, %v2388_v17  ;;  %v2699_v19 = vmul.f32 %v9063_v48, %v11354_v38 }
 0x4d0   :  { %v9081_v59 = vpop.eup %4654  ;;  %v9086_v35 = vsel %vm2364_vm12, %v8904_v8, %v2361_v34  ;;  %vm2383_vm13 = vweird.f32 %v8962_v26  ;;  %v2417_v31 = vmul.f32 %v9058_v37, %v8997_v24  ;;  %v2270_v29 = vsub.f32 1.5, %v9053_v14 }
 0x4d1   :  { %v9093_v41 = vpop.eup %4656  ;;  %v3750_v0 = vperm.slane %v2698_v57, %v5892_v44  ;;  %v2408_v17 = vmul.f32 %v9035_v54, %v2407_v18  ;;  %v2577_v38 = vmul.f32 %v9072_v32, %v9004_v27  ;;  %vm11390_vm14 = vcmask 392512   ;;  %vm2384_vm7 = vmor %vm2382_vm11, %vm2383_vm13 }
 0x4d2   :  { %v3749_v8 = vsel %vm11390_vm14, %v3748_v6, %v3747_v50  ;;  %v2381_v52 = vmul.f32 %v8962_v26, %v2380_v5  ;;  %v2399_v20 = vmul.f32 0.5, %v2398_v21  ;;  %v2568_v34 = vmul.f32 %v9047_v58, %v2567_v7 }
 0x4d3   :  { %v2700_v48 = vmul.f32 %v9086_v35, %v11361_v33  ;;  %v9106_v45 = vsel %vm2374_vm10, %v8928_v63, %v2371_v46  ;;  %v2390_v57 = vsub.f32 1.5, %v2389_v2  ;;  %v2427_v14 = vmul.f32 %v9081_v59, %v9015_v40  ;;  %v11391_v33 = vld [vmem:[#allocation124_spill] sm:$0xff] }
 0x4d4   :  { %v3752_v18 = vperm.slane %v2699_v19, %v11344_v11  ;;  %vm2392_vm9 = vweird.f32 %v8914_v15  ;;  %v2418_v6 = vmul.f32 %v9058_v37, %v2417_v31  ;;  %v2587_v5 = vmul.f32 %v9093_v41, %v9025_v56 }
 0x4d5   :  { %vm2262_vm2 = vweird.f32 %v11391_v33  ;;  %vm2263_vm1 = vweird.f32 %v8730_v43  ;;  %vm11392_vm15 = vcmask 458112   ;;  %vm2393_vm0 = vweird.f32 %v8999_v9 }
 0x4d6   :  { %v3751_v61 = vsel %vm11392_vm15, %v3750_v0, %v3749_v8  ;;  %v2409_v63 = vmul.f32 0.5, %v2408_v17  ;;  %v2578_v21 = vmul.f32 %v9072_v32, %v2577_v38  ;;  %v2701_v19 = vmul.f32 %v9106_v45, %v11368_v25  ;;  %vm2394_vm10 = vmor %vm2392_vm9, %vm2393_vm0 }
 0x4d7   :  { %v9125_v7 = vsel %vm2384_vm7, %v8962_v26, %v2381_v52  ;;  %v2400_v50 = vsub.f32 1.5, %v2399_v20  ;;  %v2569_v46 = vmul.f32 0.5, %v2568_v34  ;;  %v3754_v2 = vperm.slane %v2700_v48, %v11346_v22 }
 0x4d8   :  { %v2391_v31 = vmul.f32 %v8999_v9, %v2390_v57  ;;  %vm2402_vm12 = vweird.f32 %v8954_v49  ;;  %v2428_v0 = vmul.f32 %v9081_v59, %v2427_v14  ;;  %vm2272_vm6 = vweird.f32 %v8766_v47 }
 0x4d9   :  { %vm2273_vm4 = vweird.f32 %v8858_v42  ;;  %vm11393_vm11 = vcmask 523712   ;;  %vm2403_vm13 = vweird.f32 %v9017_v4  ;;  %v2419_v25 = vmul.f32 0.5, %v2418_v6 }
 0x4da   :  { %v3753_v17 = vsel %vm11393_vm11, %v3752_v18, %v3751_v61  ;;  %v2588_v26 = vmul.f32 %v9093_v41, %v2587_v5  ;;  %v9139_v48 = vmul.f32 %v8858_v42, %v2270_v29  ;;  %v2702_v38 = vmul.f32 %v9125_v7, %v11373_v16  ;;  %vm2404_vm9 = vmor %vm2402_vm12, %vm2403_vm13 }
 0x4db   :  { %v2410_v8 = vsub.f32 1.5, %v2409_v63  ;;  %v2579_v52 = vmul.f32 0.5, %v2578_v21  ;;  %v3756_v20 = vperm.slane %v2701_v19, %v11370_v13  ;;  %v2401_v34 = vmul.f32 %v9017_v4, %v2400_v50  ;;  %v11420_v21 = vld [vmem:[#allocation88_spill] sm:$0xff] }
 0x4dc   :  { %vm2412_vm14 = vweird.f32 %v8977_v55  ;;  %v2570_v15 = vsub.f32 1.5, %v2569_v46  ;;  %vm11394_vm7 = vcmask 589312   ;;  %v9148_v14 = vsel %vm2394_vm10, %v8999_v9, %v2391_v31 }
 0x4dd   :  { %v3755_v57 = vsel %vm11394_vm7, %v3754_v2, %v3753_v17  ;;  %vm2413_vm15 = vweird.f32 %v9035_v54  ;;  %v2429_v16 = vmul.f32 0.5, %v2428_v0  ;;  %v2420_v29 = vsub.f32 1.5, %v2419_v25 }
 0x4de   :  { %vm2572_vm0 = vweird.f32 %v8983_v51  ;;  %vm2573_vm11 = vweird.f32 %v9047_v58  ;;  %v2589_v18 = vmul.f32 0.5, %v2588_v26  ;;  %v3758_v6 = vperm.slane %v2702_v38, %v11369_v12  ;;  %vm2414_vm12 = vmor %vm2412_vm14, %vm2413_vm15 }
 0x4df   :  { %v2411_v5 = vmul.f32 %v9035_v54, %v2410_v8  ;;  %vm2422_vm7 = vweird.f32 %v8997_v24  ;;  %v2580_v9 = vsub.f32 1.5, %v2579_v52  ;;  %v2703_v49 = vmul.f32 %v9148_v14, %v11374_v23  ;;  %vm9167_vm13 = vmor %vm2572_vm0, %vm2573_vm11  ;;  %v11397_v23 = vld [vmem:[#allocation12_spill] sm:$0xff] }
 0x4e0   :  { %v9161_v61 = vsel %vm2404_vm9, %v9017_v4, %v2401_v34  ;;  %vm2423_vm10 = vweird.f32 %v9058_v37  ;;  %v2571_v51 = vmul.f32 %v9047_v58, %v2570_v15  ;;  %v2430_v63 = vsub.f32 1.5, %v2429_v16  ;;  %vm9178_vm14 = vmor %vm2262_vm2, %vm2263_vm1  ;;  %v11412_v15 = vld [vmem:[#allocation121_spill] sm:$0xff] }
 0x4e1   :  { %vm2582_vm5 = vweird.f32 %v9004_v27  ;;  %vm2583_vm8 = vweird.f32 %v9072_v32  ;;  %v370_v19 = vmul.f32 2.0, %v11397_v23  ;;  %vm11400_vm9 = vcmask 654912   ;;  %vm9192_vm0 = vmor %vm2422_vm7, %vm2423_vm10  ;;  %v11414_v16 = vld [vmem:[#allocation141_spill] sm:$0xff] }
 0x4e2   :  { %v3757_v55 = vsel %vm11400_vm9, %v3756_v20, %v3755_v57  ;;  %v2421_v50 = vmul.f32 %v9058_v37, %v2420_v29  ;;  %vm2432_vm15 = vweird.f32 %v9015_v40  ;;  %v2590_v46 = vsub.f32 1.5, %v2589_v18  ;;  %vm9208_vm11 = vmor %vm2582_vm5, %vm2583_vm8  ;;  %v11410_v20 = vld [vmem:[#allocation104_spill] sm:$0xff]  ;;  %v11415_v18 = vld [vmem:[#allocation21_spill] sm:$0xff] }
 0x4e3   :  { %v2704_v2 = vmul.f32 %v9161_v61, %v11377_v62  ;;  %v9188_v31 = vsel %vm2414_vm12, %v9035_v54, %v2411_v5  ;;  %vm2433_vm2 = vweird.f32 %v9081_v59  ;;  %v2581_v0 = vmul.f32 %v9072_v32, %v2580_v9  ;;  %v369_v54 = vpop.xlane.xlu2 %368  ;;  %vm9224_vm10 = vmor %vm2272_vm6, %vm2273_vm4  ;;  %v11411_v40 = vld [vmem:[#allocation36_spill] sm:$0xff] }
 0x4e4   :  { %vm3801_vm1 = vcmask 1041409   ;;  %v3760_v17 = vperm.slane %v2703_v49, %v11242_v30  ;;  %v9202_v62 = vsel %vm9167_vm13, %v9047_v58, %v2571_v51  ;;  %vm2592_vm7 = vweird.f32 %v9025_v56  ;;  %vm2434_vm6 = vmor %vm2432_vm15, %vm2433_vm2  ;;  %v11416_v5 = vld [vmem:[#allocation44_spill] sm:$0xff] }
 0x4e5   :  { %vm2593_vm12 = vweird.f32 %v9093_v41  ;;  %v9218_v25 = vsel %vm9178_vm14, %v8730_v43, %v8921_v10  ;;  %vm11407_vm8 = vcmask 720512   ;;  %v2431_v26 = vmul.f32 %v9081_v59, %v2430_v63  ;;  %v11417_v49 = vld [vmem:[#allocation72_spill] sm:$0xff] }
 0x4e6   :  { %v3759_v58 = vsel %vm11407_vm8, %v3758_v6, %v3757_v55  ;;  %v371_v38 = vmul.f32 %v370_v19, %v369_v54  ;;  %v11408_v8 = vperm.slane %v8811_v3, %v11369_v12  ;;  %vm11409_vm5 = vmmov %vm11407_vm8  ;;  %v2705_v43 = vmul.f32 %v9188_v31, %v11381_v53  ;;  %v11421_v19 = vld [vmem:[#allocation29_spill] sm:$0xff]  ;;  %v11430_v54 = vld [vmem:[#allocation142_spill] sm:$0xff] }
 0x4e7   :  { %v9240_v47 = vsel %vm9192_vm0, %v9058_v37, %v2421_v50  ;;  %v2591_v52 = vmul.f32 %v9093_v41, %v2590_v46  ;;  %v3762_v34 = vperm.slane %v2704_v2, %v11410_v20  ;;  %v2721_v3 = vmul.f32 %v9202_v62, %v8960_v1  ;;  %vm2594_vm4 = vmor %vm2592_vm7, %vm2593_vm12  ;;  %v11423_v46 = vld [vmem:[#allocation16_spill] sm:$0xff] }
 0x4e8   :  { %v3728_v10 = vsel %vm11409_vm5, %v11408_v8, %v8931_v60  ;;  %v9253_v60 = vsel %vm9208_vm11, %v9072_v32, %v2581_v0  ;;  %v372_v53 = vadd.f32 1.0, %v371_v38  ;;  %v3731_v37 = vperm.slane %v11411_v40, %v11410_v20  ;;  %v11424_v2 = vld [vmem:[#allocation24_spill] sm:$0xff]  ;;  %v11425_v0 = vld [vmem:[#allocation23_spill] sm:$0xff] }
 0x4e9   :  { %v2690_v57 = vmul.f32 %v9218_v25, %v11412_v15  ;;  %v9267_v1 = vsel %vm9224_vm10, %v8858_v42, %v9139_v48  ;;  %vm11413_vm13 = vcmask 786112   ;;  %v2706_v29 = vmul.f32 %v9240_v47, %v11414_v16  ;;  %v11437_v15 = vld [vmem:[#allocation147_spill] sm:$0xff]  ;;  %v11438_v16 = vld [vmem:[#allocation126_spill] sm:$0xff] }
 0x4ea   :  { %v3761_v32 = vsel %vm11413_vm13, %v3760_v17, %v3759_v58  ;;  %v9273_v56 = vsel %vm2434_vm6, %v9081_v59, %v2431_v26  ;;  %v374_v6 = vadd.f32 %v11415_v18, %v372_v53  ;;  %v380_v9 = vadd.f32 %v11416_v5, %v372_v53  ;;  %vm11419_vm14 = vmmov %vm11413_vm13  ;;  %v11426_v17 = vld [vmem:[#allocation113_spill] sm:$0xff]  ;;  %v11431_v58 = vld [vmem:[#allocation111_spill] sm:$0xff] }
 0x4eb   :  { %v11418_v51 = vperm.slane %v11417_v49, %v11242_v30  ;;  %v3764_v42 = vperm.slane %v2705_v43, %v11420_v21  ;;  %v2722_v48 = vmul.f32 %v9253_v60, %v11383_v28  ;;  %v9285_v23 = vsel %vm2594_vm4, %v9093_v41, %v2591_v52  ;;  %v11432_v26 = vld [vmem:[#allocation26_spill] sm:$0xff]  ;;  %v11441_v5 = vld [vmem:[#allocation39_spill] sm:$0xff] }
 0x4ec   :  { %v2691_v59 = vmul.f32 %v9267_v1, %v11421_v19  ;;  %vm11422_vm9 = vcmask 851712   ;;  %v3795_v55 = vperm.slane %v2721_v3, %v11420_v21  ;;  %v381_v50 = vmax.f32 %v380_v9, 1e-15  ;;  %399 = vperm.xlu0 %4366, %v374_v6   ;;  %v11434_v52 = vld [vmem:[#allocation98_spill] sm:$0xff] }
 0x4ed   :  { %v3730_v63 = vsel %vm11419_vm14, %v11418_v51, %v3728_v10  ;;  %v3763_v4 = vsel %vm11422_vm9, %v3762_v34, %v3761_v32  ;;  %v3675_v33 = vperm.slane %v11424_v2, %v11423_v46  ;;  %v11427_v24 = vperm.slane %v11426_v17, %v11420_v21  ;;  %vm11429_vm0 = vmmov %vm11422_vm9  ;;  %v11433_v10 = vld [vmem:[#allocation79_spill] sm:$0xff]  ;;  %v11444_v49 = vld [vmem:[#allocation46_spill] sm:$0xff] }
 0x4ee   :  { %vm11428_vm15 = vcmask 917312   ;;  %v3732_v41 = vsel %vm11429_vm0, %v3731_v37, %v3730_v63  ;;  %v2707_v27 = vmul.f32 %v9273_v56, %v11430_v54  ;;  %v3704_v38 = vperm.slane %v11432_v26, %v11431_v58  ;;  %v11436_v37 = vld [vmem:[#allocation20_spill] sm:$0xff] }
 0x4ef   :  { %v3703_v28 = vsel %vm11428_vm15, %v11427_v24, %v11425_v0  ;;  %v3766_v8 = vperm.slane %v2706_v29, %v11431_v58  ;;  %v2723_v43 = vmul.f32 %v9285_v23, %v11433_v10  ;;  %4658 = vrcp.f32 %v381_v50  ;;  %vm11435_vm2 = vmmov %vm11428_vm15  ;;  %v9342_v10 = vpop.permute.xlu1 %3390 }
 0x4f0   :  { %v3706_v34 = vperm.slane %v11434_v52, %v11423_v46  ;;  %v3735_v3 = vperm.slane %v2690_v57, %v11431_v58  ;;  %v3765_v53 = vsel %vm11435_vm2, %v3764_v42, %v3763_v4  ;;  %v3797_v40 = vperm.slane %v2722_v48, %v11431_v58  ;;  %vm11440_vm11 = vmmov %vm11435_vm2  ;;  %v11443_v57 = vld [vmem:[#allocation61_spill] sm:$0xff] }
 0x4f1   :  { %v3802_v32 = vsel %vm3801_vm1, %v11437_v15, %v11436_v37  ;;  %v11439_v29 = vperm.slane %v11438_v16, %v11420_v21  ;;  %v3737_v6 = vperm.slane %v2691_v59, %v11423_v46  ;;  %vm11442_vm7 = vmmov %vm11435_vm2  ;;  %vm3803_vm12 = vcmask 1042434   ;;  %v11447_v42 = vld [vmem:[#allocation49_spill] sm:$0xff] }
 0x4f2   :  { %v3796_v9 = vsel %vm11442_vm7, %v3795_v55, %v11441_v5  ;;  %v11445_v51 = vperm.slane %v11444_v49, %v11423_v46  ;;  %vm11446_vm10 = vcmask 1048512   ;;  %v3768_v19 = vperm.slane %v2707_v27, %v11423_v46 }
 0x4f3   :  { %v3734_v18 = vsel %vm11440_vm11, %v11439_v29, %v3732_v41  ;;  %vm11448_vm8 = vmmov %vm11446_vm10  ;;  %vm11449_vm5 = vcmask 982912   ;;  %v3799_v2 = vperm.slane %v2723_v43, %v11423_v46  ;;  %vm3805_vm4 = vcmask 1043459  }
 0x4f4   :  { %v3645_v63 = vsel %vm11446_vm10, %v11445_v51, %v11443_v57  ;;  %v3676_v48 = vsel %vm11448_vm8, %v3675_v33, %v11447_v42  ;;  %v3705_v4 = vsel %vm11449_vm5, %v3704_v38, %v3703_v28  ;;  %vm11450_vm6 = vmmov %vm11449_vm5  ;;  %vm3807_vm15 = vcmask 1044484   ;;  %v11457_v42 = vld [vmem:[#allocation103_spill] sm:$0xff] }
 0x4f5   :  { %v3767_v59 = vsel %vm11450_vm6, %v3766_v8, %v3765_v53  ;;  %vm11451_vm13 = vmmov %vm11448_vm8  ;;  %v4659_v24 = vpop.eup %4658  ;;  %v3804_v41 = vsel %vm3803_vm12, %v3645_v63, %v3802_v32  ;;  %vm3809_vm2 = vcmask 1045509   ;;  %vm3811_vm7 = vcmask 1046534  }
 0x4f6   :  { %v3707_v55 = vsel %vm11451_vm13, %v3706_v34, %v3705_v4  ;;  %vm11452_vm14 = vmmov %vm11449_vm5  ;;  %v3806_v54 = vsel %vm3805_vm4, %v3676_v48, %v3804_v41  ;;  %v383_v27 = vmul.f32 %v4659_v24, %v381_v50  ;;  %v393_v34 = vand.u32 2147483648, %v381_v50 }
 0x4f7   :  { %v3736_v0 = vsel %vm11452_vm14, %v3735_v3, %v3734_v18  ;;  %vm11453_vm9 = vmmov %vm11449_vm5  ;;  %v3808_v38 = vsel %vm3807_vm15, %v3707_v55, %v3806_v54  ;;  %vm388_vm5 = vweird.f32 %v4659_v24  ;;  %vm387_vm6 = vweird.f32 %v381_v50  ;;  %v4222_v57 = vpop.permute.xlu1 %4221 }
 0x4f8   :  { %v3798_v17 = vsel %vm11453_vm9, %v3797_v40, %v3796_v9  ;;  %vm11454_vm0 = vmmov %vm11448_vm8  ;;  %vm3813_vm8 = vcmask 1047559   ;;  %v384_v43 = vsub.f32 1.0, %v383_v27  ;;  %v391_v40 = vand.u32 2147483647, %v381_v50  ;;  %v9356_v50 = vpop.permute.xlu0 %3829 }
 0x4f9   :  { %v3738_v33 = vsel %vm11454_vm0, %v3737_v6, %v3736_v0  ;;  %vm11455_vm11 = vmmov %vm11454_vm0  ;;  %v394_v32 = vor.u32 1.1754944e-38, %v393_v34  ;;  %v9347_v6 = vpop.permute.xlu2 %3822  ;;  %vm11460_vm9 = vcmask 130048  }
 0x4fa   :  { %v3769_v28 = vsel %vm11455_vm11, %v3768_v19, %v3767_v59  ;;  %vm11456_vm10 = vmmov %vm11454_vm0  ;;  %v3810_v8 = vsel %vm3809_vm2, %v3738_v33, %v3808_v38  ;;  %v385_v53 = vmul.f32 %v4659_v24, %v384_v43  ;;  %vm392_vm14 = vcmp.eq.f32.partialorder %v391_v40, 8.507059e+37  ;;  %v11458_v19 = vld [vmem:[#allocation81_spill] sm:$0xff]  ;;  %v11459_v59 = vld [vmem:[#allocation87_spill] sm:$0xff] }
 0x4fb   :  { %v3800_v26 = vsel %vm11456_vm10, %v3799_v2, %v3798_v17  ;;  %v3812_v52 = vsel %vm3811_vm7, %v3769_v28, %v3810_v8  ;;  %vm389_vm13 = vmor %vm387_vm6, %vm388_vm5 }
 0x4fc   :  { %v3814_v3 = vsel %vm3813_vm8, %v3800_v26, %v3812_v52  ;;  %v386_v15 = vadd.f32 %v4659_v24, %v385_v53 }
 0x4fd   :  { %v3816_v37 = vmul.f32 %v3814_v3, %v9342_v10 }
 0x4fe   :  { %v390_v16 = vsel %vm389_vm13, %v4659_v24, %v386_v15 }
 0x4ff   :  { %v4358_v29 = vclamps-f32 %v3816_v37, 15.0  ;;  %v395_v18 = vsel %vm392_vm14, %v394_v32, %v390_v16  ;;  %v419_v2 = vpop.permute.xlu1 %418 }
 0x500   :  { %412 = vperm.xlu0 %4366, %v395_v18  }
 0x501   :  { %4660 = vtanh.f32 %v4358_v29  ;;  %v11461_v29 = vlaneseq }
 0x503   :  { %v468_v18 = vshrl.u32 %v11461_v29, 7 }
 0x507   :  { %v4661_v5 = vpop.eup %4660 }
 0x508   :  { %v9350_v9 = vmul.f32 %v4661_v5, %v9347_v6 }
 0x50a   :  { %v4224_v49 = vmul.f32 %v4222_v57, %v9350_v9  ;;  %v469_v57 = vadd.s32 8, %v468_v18 }
 0x50c   :  { %v9354_v51 = vmul.f32 %v4224_v49, %v9350_v9 }
 0x55e   :  { %v400_v63 = vpop.permute.xlu0 %399 }
 0x55f   :  { %v402_v48 = vmul.f32 %v400_v63, %v11457_v42  ;;  %v416_v4 = vmul.f32 %v400_v63, %v11458_v19  ;;  %v473_v42 = vmul.u32 2, %v469_v57 }
 0x561   :  { %v409_v55 = vadd.f32 %v11459_v59, %v402_v48  ;;  %v421_v0 = vadd.f32 %v419_v2, %v416_v4  ;;  %v481_v4 = vadd.s32 1, %v473_v42  ;;  %v11462_v2 = vld [vmem:[#allocation68_spill] sm:$0xff] }
 0x562   :  { %vm475_vm5 = vcmp.eq.s32.totalorder %v11462_v2, %v473_v42  ;;  %v4677_v42 = vld [vmem:[%s10483_s6 + $0x8] sm:$0xff] }
 0x563   :  { %vm483_vm14 = vcmp.eq.s32.totalorder %v11462_v2, %v481_v4 }
 0x572   :  { %v413_v17 = vpop.permute.xlu0 %412 }
 0x573   :  { %v9361_v24 = vmul.f32 %v413_v17, %v409_v55  ;;  %v9363_v41 = vmul.f32 %v421_v0, %v413_v17  ;;  %v4834_v55 = vmov 1.0  }
 0x574   :  { %4355 = vmatpush.msk.msra.mxu1 %vm475_vm5, %v4834_v55  ;;  %4352 = vmatpush.msk.msra.mxu0 %vm483_vm14, %v4834_v55  ;;  %vm11467_vm14 = vcmask 261120  }
 0x575   :  { %v423_v33 = vmul.f32 %v9361_v24, %v9361_v24  ;;  %v424_v28 = vmul.f32 %v9363_v41, %v9363_v41 }
 0x577   :  { %v425_v54 = vadd.f32 %v424_v28, %v423_v33  ;;  %v11463_v28 = vld [vmem:[#allocation14_spill] sm:$0xff] }
 0x579   :  { %v426_v27 = vsel %vm11460_vm9, %v425_v54, 0.0 }
 0x57a   :  { %427 = vadd.xlane.f32.xlu0 %v426_v27 }
 0x5ed   :  { %v428_v26 = vpop.xlane.xlu0 %427 }
 0x5ee   :  { %4662 = vrsqrt.f32 %v428_v26  ;;  %vm436_vm0 = vcmp.eq.f32.partialorder %v428_v26, inf  ;;  %v439_v40 = vand.u32 2147483648, %v428_v26  ;;  %vm438_vm11 = vcmp.eq.f32.partialorder %v428_v26, 0.0 }
 0x5f4   :  { %v4663_v38 = vpop.eup %4662 }
 0x5f5   :  { %v430_v8 = vmul.f32 %v4663_v38, %v428_v26 }
 0x5f7   :  { %v431_v43 = vmul.f32 %v4663_v38, %v430_v8 }
 0x5f9   :  { %v432_v52 = vmul.f32 0.5, %v431_v43  ;;  %v4674_v43 = vld [vmem:[#allocation3] sm:$0xff] }
 0x5fb   :  { %v433_v34 = vsub.f32 1.5, %v432_v52 }
 0x5fd   :  { %v434_v3 = vmul.f32 %v4663_v38, %v433_v34 }
 0x5ff   :  { %v435_v53 = vmul.f32 %v434_v3, %v428_v26 }
 0x601   :  { %v437_v37 = vsel %vm436_vm0, %v428_v26, %v435_v53  ;;  %v472_v53 = vmul.u32 2, %v468_v18 }
 0x602   :  { %v440_v15 = vsel %vm438_vm11, %v439_v40, %v437_v37  ;;  %vm11464_vm11 = vcmask 7168  }
 0x603   :  { %v441_v32 = vmax.f32 %v440_v15, 1e-15  ;;  %v480_v40 = vadd.s32 1, %v472_v53 }
 0x605   :  { %4664 = vrcp.f32 %v441_v32  ;;  %v454_v63 = vand.u32 2147483648, %v441_v32  ;;  %v452_v19 = vand.u32 2147483647, %v441_v32  ;;  %vm448_vm6 = vweird.f32 %v441_v32 }
 0x606   :  { %vm442_vm0 = vcmp.gt.f32.partialorder %v441_v32, %v11463_v28  ;;  %vm482_vm5 = vcmp.eq.s32.totalorder %v11462_v2, %v480_v40 }
 0x607   :  { %v455_v0 = vor.u32 1.1754944e-38, %v454_v63  ;;  %vm453_vm9 = vcmp.eq.f32.partialorder %v452_v19, 8.507059e+37  ;;  %4353 = vmatpush.msk.msra.mxu0 %vm482_vm5, %v4834_v55 }
 0x60b   :  { %v4665_v16 = vpop.eup %4664 }
 0x60c   :  { %v444_v5 = vmul.f32 %v4665_v16, %v441_v32  ;;  %vm449_vm10 = vweird.f32 %v4665_v16 }
 0x60d   :  { %vm450_vm13 = vmor %vm448_vm6, %vm449_vm10  ;;  %vm474_vm10 = vcmp.eq.s32.totalorder %v11462_v2, %v472_v53  ;;  %vm11465_vm6 = vcmask 130048   ;;  %v4683_v53 = vld [vmem:[%s10483_s6 + $0x38] sm:$0xff] }
 0x60e   :  { %v445_v49 = vsub.f32 1.0, %v444_v5  ;;  %4356 = vmatpush.msk.msra.mxu1 %vm474_vm10, %v4834_v55  ;;  %v4678_v55 = vld [vmem:[%s10483_s6 + $0x28] sm:$0xff] }
 0x610   :  { %v446_v48 = vmul.f32 %v4665_v16, %v445_v49  ;;  %v4676_v49 = vld [vmem:[%s10483_s6] sm:$0xff] }
 0x612   :  { %v447_v59 = vadd.f32 %v4665_v16, %v446_v48 }
 0x614   :  { %v451_v17 = vsel %vm450_vm13, %v4665_v16, %v447_v59  ;;  %vm11466_vm13 = vmmov %vm11465_vm6 }
 0x615   :  { %v456_v33 = vsel %vm453_vm9, %v455_v0, %v451_v17  ;;  %vm11468_vm9 = vmmov %vm11467_vm14  ;;  %v4679_v17 = vld [vmem:[%s10483_s6 + $0x18] sm:$0xff] }
 0x616   :  { %v457_v54 = vmul.f32 %v456_v33, %v11463_v28  ;;  %v4680_v28 = vld [vmem:[%s10483_s6 + $0x20] sm:$0xff] }
 0x618   :  { %v458_v27 = vsel %vm442_vm0, %v457_v54, 1.0  ;;  %vm11469_vm0 = vmmov %vm11468_vm9 }
 0x619   :  { %461 = vperm.xlu1 %4365, %v458_v27   ;;  %v466_v26 = vmul.f32 %v458_v27, %v441_v32  ;;  %vm11471_vm10 = vmmov %vm11469_vm0 }
 0x61a   :  { %vm11472_vm5 = vmmov %vm11469_vm0 }
 0x61b   :  { %v540_v38 = vmul.f32 %v466_v26, %v466_v26 }
 0x61d   :  { %541 = vst.msk [vmem:[#allocation6] sm:$0xff] %vm11464_vm11, %v540_v38  ;;  %vm11470_vm11 = vmmov %vm11469_vm0 }
 0x624   :  { %v674_v8 = vld [vmem:[#allocation6] sm:$0xff] }
 0x625   :  { %v4227_v52 = vmul.f32 %v4674_v43, %v674_v8  ;;  %v4681_v8 = vld [vmem:[%s10483_s6 + $0x40] sm:$0xff] }
 0x627   :  { %v9376_v34 = vsub.f32 1.0, %v4227_v52  ;;  %v4682_v52 = vld [vmem:[%s10483_s6 + $0x30] sm:$0xff] }
 0x629   :  { %v4236_v3 = vmul.f32 %v9376_v34, %v9376_v34 }
 0x62b   :  { %4239 = vperm.xlu0 %4366, %v4236_v3  }
 0x68b   :  { %v462_v37 = vpop.permute.xlu1 %461 }
 0x68c   :  { %v464_v15 = vmul.f32 %v462_v37, %v9361_v24  ;;  %v465_v32 = vmul.f32 %v462_v37, %v9363_v41  ;;  %v4675_v24 = vld [vmem:[%s10483_s6 + $0x10] sm:$0xff] }
 0x68e   :  { %4354 = vmatmul.msk.f32.vlgmr.msra.gmra.mxu0 %vm11465_vm6, %v465_v32  ;;  %4357 = vmatmul.msk.f32.vlgmr.msra.gmra.mxu1 %vm11466_vm13, %v464_v15  ;;  %vm11473_vm6 = vmmov %vm11469_vm0 }
 0x68f   :  { %vm11474_vm13 = vmmov %vm11469_vm0 }
 0x70b   :  { %v508_v16 = vpop.f32.mrf.mxu0  ;;  %v531_v29 = vpop.f32.mrf.mxu1 }
 0x70c   :  { %v532_v5 = vadd.f32 %v531_v29, %v508_v16  ;;  %v4684_v16 = vld [vmem:[%s10483_s6 + $0x58] sm:$0xff] }
 0x70e   :  { %535 = vst.msk [vmem:[#allocation2] sm:$0xff] %vm11467_vm14, %v532_v5  ;;  %vm11475_vm14 = vmmov %vm11469_vm0  ;;  %v4685_v5 = vld [vmem:[%s10483_s6 + $0x48] sm:$0xff] }
 0x715   :  { %v9387_v18 = vld [vmem:[#allocation2] sm:$0xff] }
 0x716   :  { %v9390_v57 = vperm.slane %v9387_v18, 0 }
 0x718   :  { %v2750_v41 = vmul.f32 %v4675_v24, %v9390_v57  ;;  %v2748_v63 = vmul.f32 %v4676_v49, %v9390_v57  ;;  %v2749_v48 = vmul.f32 %v4677_v42, %v9390_v57  ;;  %v2753_v0 = vmul.f32 %v4678_v55, %v9390_v57  ;;  %v4688_v55 = vld [vmem:[%s10483_s6 + $0x60] sm:$0xff] }
 0x719   :  { %v2751_v33 = vmul.f32 %v4679_v17, %v9390_v57  ;;  %v2752_v54 = vmul.f32 %v4680_v28, %v9390_v57  ;;  %v2756_v43 = vmul.f32 %v4681_v8, %v9390_v57  ;;  %v2754_v3 = vmul.f32 %v4682_v52, %v9390_v57  ;;  %v4689_v17 = vld [vmem:[%s10483_s6 + $0x68] sm:$0xff] }
 0x71a   :  { %v2882_v19 = vsel %vm11468_vm9, %v2750_v41, 0.0  ;;  %v2876_v4 = vsel %vm11469_vm0, %v2748_v63, 0.0  ;;  %v2879_v59 = vsel %vm11470_vm11, %v2749_v48, 0.0  ;;  %v2891_v27 = vsel %vm11471_vm10, %v2753_v0, 0.0  ;;  %vm11476_vm9 = vmmov %vm11469_vm0  ;;  %v4686_v41 = vld [vmem:[%s10483_s6 + $0x50] sm:$0xff] }
 0x71b   :  { %2883 = vadd.xlane.f32.xlu1 %v2882_v19  ;;  %2877 = vadd.xlane.f32.xlu2 %v2876_v4  ;;  %v2885_v26 = vsel %vm11472_vm5, %v2751_v33, 0.0  ;;  %v2888_v38 = vsel %vm11473_vm6, %v2752_v54, 0.0  ;;  %v2755_v40 = vmul.f32 %v4683_v53, %v9390_v57  ;;  %v2900_v37 = vsel %vm11474_vm13, %v2756_v43, 0.0  ;;  %vm11477_vm11 = vmmov %vm11469_vm0  ;;  %v4687_v4 = vld [vmem:[%s10483_s6 + $0x70] sm:$0xff]  ;;  %v4691_v43 = vld [vmem:[%s10483_s6 + $0x78] sm:$0xff] }
 0x71c   :  { %2880 = vadd.xlane.f32.xlu0 %v2879_v59  ;;  %v2894_v15 = vsel %vm11475_vm14, %v2754_v3, 0.0  ;;  %v2759_v29 = vmul.f32 %v4684_v16, %v9390_v57  ;;  %v2757_v24 = vmul.f32 %v4685_v5, %v9390_v57  ;;  %v2758_v49 = vmul.f32 %v4686_v41, %v9390_v57  ;;  %vm11478_vm10 = vmmov %vm11469_vm0  ;;  %v4692_v3 = vld [vmem:[%s10483_s6 + $0x80] sm:$0xff]  ;;  %v4694_v16 = vld [vmem:[%s10483_s6 + $0x90] sm:$0xff] }
 0x71d   :  { %v2897_v32 = vsel %vm11476_vm9, %v2755_v40, 0.0  ;;  %v2725_v19 = vrot.slane %v9387_v18, 1  ;;  %v2762_v59 = vmul.f32 %v4687_v4, %v9390_v57  ;;  %v2760_v0 = vmul.f32 %v4688_v55, %v9390_v57  ;;  %vm11479_vm5 = vmmov %vm11469_vm0  ;;  %v4695_v5 = vld [vmem:[%s10483_s6 + $0x98] sm:$0xff] }
 0x71e   :  { %v2909_v63 = vsel %vm11469_vm0, %v2759_v29, 0.0  ;;  %v2903_v42 = vsel %vm11477_vm11, %v2757_v24, 0.0  ;;  %v2906_v48 = vsel %vm11478_vm10, %v2758_v49, 0.0  ;;  %v2761_v33 = vmul.f32 %v4689_v17, %v9390_v57  ;;  %vm11480_vm6 = vmmov %vm11469_vm0 }
 0x71f   :  { %v9465_v28 = vperm.slane %v2725_v19, 0  ;;  %v2918_v54 = vsel %vm11479_vm5, %v2762_v59, 0.0  ;;  %vm11481_vm13 = vmmov %vm11469_vm0  ;;  %v2763_v52 = vmul.f32 %v4691_v43, %v9390_v57  ;;  %v4697_v19 = vld [vmem:[%s10483_s6 + $0xa8] sm:$0xff]  ;;  %v4698_v59 = vld [vmem:[%s10483_s6 + $0xb0] sm:$0xff] }
 0x720   :  { %vm11482_vm14 = vmmov %vm11469_vm0 }
 0x721   :  { %v2764_v53 = vmul.f32 %v4692_v3, %v9465_v28  ;;  %vm11483_vm9 = vmmov %vm11469_vm0  ;;  %v2766_v29 = vmul.f32 %v4694_v16, %v9465_v28  ;;  %v2767_v24 = vmul.f32 %v4695_v5, %v9465_v28  ;;  %v2769_v4 = vmul.f32 %v4697_v19, %v9465_v28  ;;  %v4704_v16 = vld [vmem:[%s10483_s6 + $0xe0] sm:$0xff] }
 0x722   :  { %vm11484_vm11 = vmmov %vm11469_vm0  ;;  %v2770_v55 = vmul.f32 %v4698_v59, %v9465_v28 }
 0x723   :  { %2892 = vadd.xlane.f32.xlu1 %v2891_v27  ;;  %2886 = vadd.xlane.f32.xlu2 %v2885_v26  ;;  %v2912_v27 = vsel %vm11480_vm6, %v2760_v0, 0.0  ;;  %v2915_v26 = vsel %vm11481_vm13, %v2761_v33, 0.0  ;;  %vm11485_vm10 = vmmov %vm11469_vm0 }
 0x724   :  { %2889 = vadd.xlane.f32.xlu0 %v2888_v38  ;;  %v4690_v38 = vld [vmem:[%s10483_s6 + $0x88] sm:$0xff]  ;;  %v2930_v49 = vsel %vm11485_vm10, %v2766_v29, 0.0  ;;  %vm11486_vm5 = vmmov %vm11469_vm0  ;;  %v2776_v29 = vmul.f32 %v4704_v16, %v9465_v28 }
 0x725   :  { %v2765_v8 = vmul.f32 %v4690_v38, %v9465_v28  ;;  %vm11487_vm6 = vmmov %vm11469_vm0 }
 0x726   :  { %vm11488_vm13 = vmmov %vm11469_vm0 }
 0x727   :  { %v2927_v40 = vsel %vm11482_vm14, %v2765_v8, 0.0  ;;  %v2939_v17 = vsel %vm11488_vm13, %v2769_v4, 0.0  ;;  %vm11489_vm14 = vmmov %vm11469_vm0  ;;  %v4701_v8 = vld [vmem:[%s10483_s6 + $0xc8] sm:$0xff]  ;;  %v4707_v4 = vld [vmem:[%s10483_s6 + $0xf8] sm:$0xff] }
 0x728   :  { %v2942_v33 = vsel %vm11489_vm14, %v2770_v55, 0.0  ;;  %v2773_v43 = vmul.f32 %v4701_v8, %v9465_v28  ;;  %vm11492_vm10 = vmmov %vm11469_vm0  ;;  %v2779_v59 = vmul.f32 %v4707_v4, %v9465_v28 }
 0x729   :  { %vm11495_vm13 = vmmov %vm11469_vm0 }
 0x72a   :  { %vm11496_vm14 = vmmov %vm11469_vm0 }
 0x72b   :  { %2901 = vadd.xlane.f32.xlu1 %v2900_v37  ;;  %2895 = vadd.xlane.f32.xlu2 %v2894_v15  ;;  %v2921_v37 = vsel %vm11483_vm9, %v2763_v52, 0.0  ;;  %v2924_v15 = vsel %vm11469_vm0, %v2764_v53, 0.0  ;;  %vm11490_vm9 = vmmov %vm11469_vm0 }
 0x72c   :  { %2898 = vadd.xlane.f32.xlu0 %v2897_v32  ;;  %v4693_v32 = vld [vmem:[%s10483_s6 + $0xa0] sm:$0xff] }
 0x72d   :  { %v2768_v57 = vmul.f32 %v4693_v32, %v9465_v28  ;;  %v4703_v32 = vld [vmem:[%s10483_s6 + $0xd8] sm:$0xff] }
 0x72f   :  { %v2936_v41 = vsel %vm11484_vm11, %v2768_v57, 0.0  ;;  %vm11491_vm11 = vmmov %vm11469_vm0  ;;  %v2775_v57 = vmul.f32 %v4703_v32, %v9465_v28 }
 0x730   :  { %v2951_v53 = vsel %vm11491_vm11, %v2773_v43, 0.0  ;;  %vm11498_vm11 = vmmov %vm11469_vm0 }
 0x733   :  { %2910 = vadd.xlane.f32.xlu1 %v2909_v63  ;;  %2904 = vadd.xlane.f32.xlu2 %v2903_v42  ;;  %v2933_v63 = vsel %vm11486_vm5, %v2767_v24, 0.0  ;;  %v4696_v42 = vld [vmem:[%s10483_s6 + $0xb8] sm:$0xff]  ;;  %vm11493_vm5 = vmmov %vm11469_vm0 }
 0x734   :  { %2907 = vadd.xlane.f32.xlu0 %v2906_v48  ;;  %v2771_v48 = vmul.f32 %v4696_v42, %v9465_v28 }
 0x736   :  { %v2945_v0 = vsel %vm11487_vm6, %v2771_v48, 0.0  ;;  %vm11494_vm6 = vmmov %vm11469_vm0  ;;  %v4706_v48 = vld [vmem:[%s10483_s6 + $0xf0] sm:$0xff] }
 0x737   :  { %v2778_v19 = vmul.f32 %v4706_v48, %v9465_v28 }
 0x73b   :  { %2919 = vadd.xlane.f32.xlu1 %v2918_v54  ;;  %2913 = vadd.xlane.f32.xlu2 %v2912_v27  ;;  %v4699_v54 = vld [vmem:[%s10483_s6 + $0xd0] sm:$0xff] }
 0x73c   :  { %2916 = vadd.xlane.f32.xlu0 %v2915_v26  ;;  %v2774_v27 = vmul.f32 %v4699_v54, %v9465_v28  ;;  %v4700_v26 = vld [vmem:[%s10483_s6 + $0xc0] sm:$0xff] }
 0x73d   :  { %v2772_v38 = vmul.f32 %v4700_v26, %v9465_v28  ;;  %v4710_v26 = vld [vmem:[%s10483_s6 + $0x110] sm:$0xff] }
 0x73e   :  { %v2954_v52 = vsel %vm11490_vm9, %v2774_v27, 0.0  ;;  %vm11497_vm9 = vmmov %vm11469_vm0  ;;  %v4709_v27 = vld [vmem:[%s10483_s6 + $0x108] sm:$0xff] }
 0x73f   :  { %v2948_v3 = vsel %vm11469_vm0, %v2772_v38, 0.0 }
 0x743   :  { %2928 = vadd.xlane.f32.xlu1 %v2927_v40  ;;  %2922 = vadd.xlane.f32.xlu2 %v2921_v37  ;;  %v2726_v40 = vrot.slane %v9387_v18, 2  ;;  %v4702_v37 = vld [vmem:[%s10483_s6 + $0xe8] sm:$0xff] }
 0x744   :  { %2925 = vadd.xlane.f32.xlu0 %v2924_v15  ;;  %v2777_v15 = vmul.f32 %v4702_v37, %v9465_v28 }
 0x745   :  { %v9543_v5 = vperm.slane %v2726_v40, 0  ;;  %v4712_v40 = vld [vmem:[%s10483_s6 + $0x120] sm:$0xff] }
 0x746   :  { %v2963_v24 = vsel %vm11492_vm10, %v2777_v15, 0.0  ;;  %vm11499_vm10 = vmmov %vm11469_vm0  ;;  %v4713_v15 = vld [vmem:[%s10483_s6 + $0x128] sm:$0xff] }
 0x747   :  { %v2781_v28 = vmul.f32 %v4709_v27, %v9543_v5  ;;  %v2782_v38 = vmul.f32 %v4710_v26, %v9543_v5  ;;  %v2784_v37 = vmul.f32 %v4712_v40, %v9543_v5  ;;  %v2785_v32 = vmul.f32 %v4713_v15, %v9543_v5  ;;  %v4719_v27 = vld [vmem:[%s10483_s6 + $0x158] sm:$0xff]  ;;  %v11508_v40 = vld [vmem:[#allocation86_spill] sm:$0xff] }
 0x749   :  { %v2975_v43 = vsel %vm11498_vm11, %v2781_v28, 0.0  ;;  %v2791_v28 = vmul.f32 %v4719_v27, %v9543_v5  ;;  %vm11505_vm11 = vmmov %vm11469_vm0 }
 0x74b   :  { %2937 = vadd.xlane.f32.xlu1 %v2936_v41  ;;  %2931 = vadd.xlane.f32.xlu2 %v2930_v49  ;;  %v2957_v41 = vsel %vm11493_vm5, %v2775_v57, 0.0  ;;  %v2960_v49 = vsel %vm11494_vm6, %v2776_v29, 0.0  ;;  %vm11500_vm5 = vmmov %vm11469_vm0 }
 0x74c   :  { %2934 = vadd.xlane.f32.xlu0 %v2933_v63  ;;  %v4705_v63 = vld [vmem:[%s10483_s6 + $0x100] sm:$0xff]  ;;  %vm11501_vm6 = vmmov %vm11469_vm0 }
 0x74d   :  { %v2780_v42 = vmul.f32 %v4705_v63, %v9543_v5  ;;  %v2984_v16 = vsel %vm11501_vm6, %v2784_v37, 0.0  ;;  %vm11513_vm6 = vmmov %vm11469_vm0 }
 0x74f   :  { %v2972_v55 = vsel %vm11495_vm13, %v2780_v42, 0.0  ;;  %vm11502_vm13 = vmmov %vm11469_vm0  ;;  %v4716_v42 = vld [vmem:[%s10483_s6 + $0x140] sm:$0xff] }
 0x750   :  { %v2987_v29 = vsel %vm11502_vm13, %v2785_v32, 0.0  ;;  %v2788_v48 = vmul.f32 %v4716_v42, %v9543_v5  ;;  %vm11514_vm13 = vmmov %vm11469_vm0 }
 0x753   :  { %2946 = vadd.xlane.f32.xlu1 %v2945_v0  ;;  %2940 = vadd.xlane.f32.xlu2 %v2939_v17  ;;  %v2966_v0 = vsel %vm11496_vm14, %v2778_v19, 0.0  ;;  %v2969_v17 = vsel %vm11497_vm9, %v2779_v59, 0.0  ;;  %vm11503_vm14 = vmmov %vm11469_vm0  ;;  %v2996_v59 = vsel %vm11469_vm0, %v2788_v48, 0.0  ;;  %v11511_v48 = vld [vmem:[#allocation70_spill] sm:$0xff] }
 0x754   :  { %2943 = vadd.xlane.f32.xlu0 %v2942_v33  ;;  %v4708_v33 = vld [vmem:[%s10483_s6 + $0x118] sm:$0xff]  ;;  %vm11504_vm9 = vmmov %vm11469_vm0 }
 0x755   :  { %v2783_v54 = vmul.f32 %v4708_v33, %v9543_v5  ;;  %v4718_v33 = vld [vmem:[%s10483_s6 + $0x150] sm:$0xff] }
 0x757   :  { %v2981_v8 = vsel %vm11469_vm0, %v2783_v54, 0.0  ;;  %v2790_v54 = vmul.f32 %v4718_v33, %v9543_v5 }
 0x75b   :  { %2955 = vadd.xlane.f32.xlu1 %v2954_v52  ;;  %2949 = vadd.xlane.f32.xlu2 %v2948_v3  ;;  %v2978_v52 = vsel %vm11499_vm10, %v2782_v38, 0.0  ;;  %v4711_v3 = vld [vmem:[%s10483_s6 + $0x130] sm:$0xff]  ;;  %vm11506_vm10 = vmmov %vm11469_vm0 }
 0x75c   :  { %2952 = vadd.xlane.f32.xlu0 %v2951_v53  ;;  %v2786_v53 = vmul.f32 %v4711_v3, %v9543_v5  ;;  %v3002_v38 = vsel %vm11506_vm10, %v2790_v54, 0.0  ;;  %v4720_v3 = vld [vmem:[%s10483_s6 + $0x178] sm:$0xff]  ;;  %vm11521_vm10 = vmmov %vm11469_vm0 }
 0x75e   :  { %v2990_v57 = vsel %vm11500_vm5, %v2786_v53, 0.0  ;;  %vm11507_vm5 = vmmov %vm11469_vm0  ;;  %v2795_v53 = vmul.f32 %v4720_v3, %v9543_v5  ;;  %v4724_v3 = vld [vmem:[%s10483_s6 + $0x180] sm:$0xff] }
 0x760   :  { %v3017_v33 = vsel %vm11513_vm6, %v2795_v53, 0.0  ;;  %vm11524_vm6 = vcmask 326912  }
 0x763   :  { %2964 = vadd.xlane.f32.xlu1 %v2963_v24  ;;  %2958 = vadd.xlane.f32.xlu2 %v2957_v41  ;;  %v4714_v24 = vld [vmem:[%s10483_s6 + $0x148] sm:$0xff] }
 0x764   :  { %2961 = vadd.xlane.f32.xlu0 %v2960_v49  ;;  %v2789_v41 = vmul.f32 %v4714_v24, %v9543_v5  ;;  %v4715_v49 = vld [vmem:[%s10483_s6 + $0x138] sm:$0xff] }
 0x765   :  { %v2787_v63 = vmul.f32 %v4715_v49, %v9543_v5 }
 0x766   :  { %v2999_v19 = vsel %vm11503_vm14, %v2789_v41, 0.0  ;;  %v11509_v41 = vld [vmem:[#allocation78_spill] sm:$0xff]  ;;  %vm11515_vm14 = vmmov %vm11469_vm0 }
 0x767   :  { %v2993_v4 = vsel %vm11504_vm9, %v2787_v63, 0.0  ;;  %v11510_v63 = vld [vmem:[#allocation82_spill] sm:$0xff]  ;;  %vm11516_vm9 = vcmask 195712  }
 0x76b   :  { %2973 = vadd.xlane.f32.xlu1 %v2972_v55  ;;  %2967 = vadd.xlane.f32.xlu2 %v2966_v0  ;;  %v4717_v55 = vld [vmem:[%s10483_s6 + $0x160] sm:$0xff] }
 0x76c   :  { %2970 = vadd.xlane.f32.xlu0 %v2969_v17  ;;  %v2792_v0 = vmul.f32 %v4717_v55, %v9543_v5  ;;  %v9612_v17 = vpop.permute.xlu0 %4239  ;;  %v11512_v55 = vld [vmem:[#allocation69_spill] sm:$0xff] }
 0x76e   :  { %v3008_v26 = vsel %vm11505_vm11, %v2792_v0, 0.0  ;;  %vm11520_vm11 = vmmov %vm11469_vm0 }
 0x773   :  { %2982 = vadd.xlane.f32.xlu1 %v2981_v8  ;;  %2976 = vadd.xlane.f32.xlu2 %v2975_v43  ;;  %v3005_v8 = vsel %vm11507_vm5, %v2791_v28, 0.0  ;;  %v2727_v43 = vrot.slane %v9387_v18, 3  ;;  %vm11523_vm5 = vcmask 261312  }
 0x774   :  { %2979 = vadd.xlane.f32.xlu0 %v2978_v52 }
 0x77b   :  { %2991 = vadd.xlane.f32.xlu1 %v2990_v57  ;;  %2985 = vadd.xlane.f32.xlu2 %v2984_v16  ;;  %v4721_v57 = vld [vmem:[%s10483_s6 + $0x168] sm:$0xff] }
 0x77c   :  { %2988 = vadd.xlane.f32.xlu0 %v2987_v29  ;;  %v2793_v16 = vmul.f32 %v4721_v57, %v9543_v5  ;;  %v4722_v29 = vld [vmem:[%s10483_s6 + $0x170] sm:$0xff]  ;;  %v11518_v57 = vld [vmem:[#allocation93_spill] sm:$0xff] }
 0x77d   :  { %v2794_v24 = vmul.f32 %v4722_v29, %v9543_v5  ;;  %v11519_v29 = vld [vmem:[#allocation85_spill] sm:$0xff] }
 0x77e   :  { %v3011_v54 = vsel %vm11514_vm13, %v2793_v16, 0.0  ;;  %vm11525_vm13 = vcmask 392512  }
 0x77f   :  { %v3014_v27 = vsel %vm11515_vm14, %v2794_v24, 0.0  ;;  %vm11529_vm14 = vmmov %vm11469_vm0 }
 0x783   :  { %3000 = vadd.xlane.f32.xlu1 %v2999_v19  ;;  %2994 = vadd.xlane.f32.xlu2 %v2993_v4  ;;  %v9642_v4 = vperm.slane %v2727_v43, 0 }
 0x784   :  { %2997 = vadd.xlane.f32.xlu0 %v2996_v59 }
 0x785   :  { %v2796_v53 = vmul.f32 %v4724_v3, %v9642_v4  ;;  %v4728_v3 = vld [vmem:[%s10483_s6 + $0x1a0] sm:$0xff] }
 0x78b   :  { %3009 = vadd.xlane.f32.xlu1 %v3008_v26  ;;  %3003 = vadd.xlane.f32.xlu2 %v3002_v38  ;;  %v4723_v38 = vld [vmem:[%s10483_s6 + $0x190] sm:$0xff] }
 0x78c   :  { %3006 = vadd.xlane.f32.xlu0 %v3005_v8  ;;  %v2798_v8 = vmul.f32 %v4723_v38, %v9642_v4 }
 0x78e   :  { %v2884_v52 = vpop.xlane.xlu1 %2883  ;;  %v2878_v15 = vpop.xlane.xlu2 %2877 }
 0x78f   :  { %v3262_v37 = vmul.f32 %v2884_v52, %v11508_v40  ;;  %v2881_v32 = vpop.xlane.xlu0 %2880  ;;  %v3260_v49 = vmul.f32 %v2878_v15, %v11509_v41  ;;  %v4725_v40 = vld [vmem:[%s10483_s6 + $0x188] sm:$0xff]  ;;  %v11517_v15 = vld [vmem:[#allocation99_spill] sm:$0xff] }
 0x790   :  { %v3261_v42 = vmul.f32 %v2881_v32, %v11510_v63  ;;  %v3026_v63 = vsel %vm11469_vm0, %v2798_v8, 0.0 }
 0x791   :  { %v3964_v19 = vperm.slane %v3262_v37, %v11511_v48  ;;  %v3961_v59 = vperm.slane %v3260_v49, %v11462_v2  ;;  %v2797_v37 = vmul.f32 %v4725_v40, %v9642_v4  ;;  %v11526_v40 = vld [vmem:[#allocation106_spill] sm:$0xff] }
 0x792   :  { %v3962_v0 = vperm.slane %v3261_v42, %v11512_v55  ;;  %v3020_v42 = vsel %vm11520_vm11, %v2796_v53, 0.0  ;;  %v2800_v53 = vmul.f32 %v4728_v3, %v9642_v4  ;;  %vm11531_vm11 = vcmask 458112   ;;  %v11534_v3 = vld [vmem:[#allocation114_spill] sm:$0xff] }
 0x793   :  { %3018 = vadd.xlane.f32.xlu1 %v3017_v33  ;;  %3012 = vadd.xlane.f32.xlu2 %v3011_v54 }
 0x794   :  { %v3963_v5 = vsel %vm3526_vm3, %v3962_v0, %v3961_v59  ;;  %3015 = vadd.xlane.f32.xlu0 %v3014_v27  ;;  %v11522_v59 = vld [vmem:[#allocation84_spill] sm:$0xff] }
 0x795   :  { %v3965_v28 = vsel %vm11516_vm9, %v3964_v19, %v3963_v5  ;;  %v3023_v19 = vsel %vm11521_vm10, %v2797_v37, 0.0  ;;  %vm11530_vm9 = vmmov %vm11469_vm0  ;;  %vm11532_vm10 = vcmask 523712  }
 0x796   :  { %v2893_v26 = vpop.xlane.xlu1 %2892  ;;  %v2887_v43 = vpop.xlane.xlu2 %2886 }
 0x797   :  { %v2890_v52 = vpop.xlane.xlu0 %2889  ;;  %v3265_v32 = vmul.f32 %v2893_v26, %v11517_v15  ;;  %v3263_v16 = vmul.f32 %v2887_v43, %v11518_v57  ;;  %v4726_v26 = vld [vmem:[%s10483_s6 + $0x1a8] sm:$0xff]  ;;  %v11527_v15 = vld [vmem:[#allocation94_spill] sm:$0xff]  ;;  %v11528_v57 = vld [vmem:[#allocation83_spill] sm:$0xff] }
 0x798   :  { %v3264_v24 = vmul.f32 %v2890_v52, %v11519_v29  ;;  %v2801_v38 = vmul.f32 %v4726_v26, %v9642_v4  ;;  %v4727_v52 = vld [vmem:[%s10483_s6 + $0x198] sm:$0xff] }
 0x799   :  { %v3966_v41 = vperm.slane %v3263_v16, %v10955_v36  ;;  %v3970_v0 = vperm.slane %v3265_v32, %v11522_v59 }
 0x79a   :  { %v3968_v49 = vperm.slane %v3264_v24, %v11059_v39 }
 0x79b   :  { %3027 = vadd.xlane.f32.xlu1 %v3026_v63  ;;  %v3967_v33 = vsel %vm11523_vm5, %v3966_v41, %v3965_v28  ;;  %3021 = vadd.xlane.f32.xlu2 %v3020_v42  ;;  %v2799_v28 = vmul.f32 %v4727_v52, %v9642_v4  ;;  %v3035_v41 = vsel %vm11529_vm14, %v2801_v38, 0.0  ;;  %v3032_v63 = vsel %vm11469_vm0, %v2800_v53, 0.0  ;;  %v4731_v52 = vld [vmem:[%s10483_s6 + $0x1b8] sm:$0xff]  ;;  %vm11539_vm14 = vmmov %vm11469_vm0 }
 0x79c   :  { %3024 = vadd.xlane.f32.xlu0 %v3023_v19  ;;  %v3969_v54 = vsel %vm11524_vm6, %v3968_v49, %v3967_v33  ;;  %vm11533_vm5 = vcmask 589312   ;;  %vm11537_vm6 = vmmov %vm11469_vm0 }
 0x79d   :  { %v3971_v5 = vsel %vm11525_vm13, %v3970_v0, %v3969_v54  ;;  %v3029_v49 = vsel %vm11530_vm9, %v2799_v28, 0.0  ;;  %v2803_v28 = vmul.f32 %v4731_v52, %v9642_v4  ;;  %vm11538_vm13 = vmmov %vm11469_vm0  ;;  %vm11540_vm9 = vcmask 654912   ;;  %v11543_v52 = vld [vmem:[#allocation123_spill] sm:$0xff] }
 0x79e   :  { %v2902_v27 = vpop.xlane.xlu1 %2901  ;;  %v2896_v8 = vpop.xlane.xlu2 %2895  ;;  %vm11541_vm0 = vcmask 720512  }
 0x79f   :  { %v2899_v43 = vpop.xlane.xlu0 %2898  ;;  %v3268_v37 = vmul.f32 %v2902_v27, %v11526_v40  ;;  %v3266_v32 = vmul.f32 %v2896_v8, %v11527_v15  ;;  %v4729_v27 = vld [vmem:[%s10483_s6 + $0x1c0] sm:$0xff]  ;;  %v11535_v40 = vld [vmem:[#allocation107_spill] sm:$0xff] }
 0x7a0   :  { %v3267_v16 = vmul.f32 %v2899_v43, %v11528_v57  ;;  %v2804_v26 = vmul.f32 %v4729_v27, %v9642_v4  ;;  %v4730_v43 = vld [vmem:[%s10483_s6 + $0x1b0] sm:$0xff]  ;;  %v11536_v15 = vld [vmem:[#allocation91_spill] sm:$0xff] }
 0x7a1   :  { %v3972_v29 = vperm.slane %v3266_v32, %v5892_v44  ;;  %v3976_v42 = vperm.slane %v3268_v37, %v11346_v22 }
 0x7a2   :  { %v3974_v24 = vperm.slane %v3267_v16, %v11344_v11 }
 0x7a3   :  { %3036 = vadd.xlane.f32.xlu1 %v3035_v41  ;;  %v3973_v19 = vsel %vm11531_vm11, %v3972_v29, %v3971_v5  ;;  %3030 = vadd.xlane.f32.xlu2 %v3029_v49  ;;  %v2802_v5 = vmul.f32 %v4730_v43, %v9642_v4  ;;  %v3044_v29 = vsel %vm11537_vm6, %v2804_v26, 0.0  ;;  %v3041_v41 = vsel %vm11539_vm14, %v2803_v28, 0.0  ;;  %v4734_v43 = vld [vmem:[%s10483_s6 + $0x1d0] sm:$0xff] }
 0x7a4   :  { %3033 = vadd.xlane.f32.xlu0 %v3032_v63  ;;  %v3975_v0 = vsel %vm11532_vm10, %v3974_v24, %v3973_v19  ;;  %vm11542_vm11 = vcmask 786112   ;;  %vm11546_vm10 = vmmov %vm11537_vm6  ;;  %vm11550_vm14 = vcmask 917312  }
 0x7a5   :  { %v3977_v54 = vsel %vm11533_vm5, %v3976_v42, %v3975_v0  ;;  %v3038_v24 = vsel %vm11538_vm13, %v2802_v5, 0.0  ;;  %v2806_v5 = vmul.f32 %v4734_v43, %v9642_v4  ;;  %vm11547_vm5 = vmmov %vm11537_vm6  ;;  %vm11549_vm13 = vcmask 851712  }
 0x7a6   :  { %v2911_v33 = vpop.xlane.xlu1 %2910  ;;  %v2905_v38 = vpop.xlane.xlu2 %2904  ;;  %vm11548_vm6 = vmmov %vm11547_vm5 }
 0x7a7   :  { %v2908_v8 = vpop.xlane.xlu0 %2907  ;;  %v3271_v53 = vmul.f32 %v2911_v33, %v11534_v3  ;;  %v3269_v37 = vmul.f32 %v2905_v38, %v11535_v40  ;;  %v4732_v33 = vld [vmem:[%s10483_s6 + $0x1d8] sm:$0xff]  ;;  %v11544_v3 = vld [vmem:[#allocation116_spill] sm:$0xff]  ;;  %v11545_v40 = vld [vmem:[#allocation105_spill] sm:$0xff] }
 0x7a8   :  { %v3270_v32 = vmul.f32 %v2908_v8, %v11536_v15  ;;  %v2807_v27 = vmul.f32 %v4732_v33, %v9642_v4  ;;  %v4733_v8 = vld [vmem:[%s10483_s6 + $0x1c8] sm:$0xff]  ;;  %v4735_v33 = vld [vmem:[%s10483_s6 + $0x1f0] sm:$0xff] }
 0x7a9   :  { %v3978_v57 = vperm.slane %v3269_v37, %v11370_v13  ;;  %v3982_v49 = vperm.slane %v3271_v53, %v11242_v30 }
 0x7aa   :  { %v3980_v16 = vperm.slane %v3270_v32, %v11369_v12 }
 0x7ab   :  { %3045 = vadd.xlane.f32.xlu1 %v3044_v29  ;;  %v3979_v63 = vsel %vm11540_vm9, %v3978_v57, %v3977_v54  ;;  %3039 = vadd.xlane.f32.xlu2 %v3038_v24  ;;  %v2805_v54 = vmul.f32 %v4733_v8, %v9642_v4  ;;  %v3053_v57 = vsel %vm11546_vm10, %v2807_v27, 0.0  ;;  %v3050_v29 = vsel %vm11548_vm6, %v2806_v5, 0.0  ;;  %v4737_v5 = vld [vmem:[%s10483_s6 + $0x1e8] sm:$0xff] }
 0x7ac   :  { %3042 = vadd.xlane.f32.xlu0 %v3041_v41  ;;  %v3981_v42 = vsel %vm11541_vm0, %v3980_v16, %v3979_v63  ;;  %v2728_v63 = vrot.slane %v9387_v18, 4  ;;  %vm11551_vm9 = vcmask 982912   ;;  %v2810_v27 = vmul.f32 %v4735_v33, %v9642_v4  ;;  %vm11555_vm0 = vmmov %vm11547_vm5 }
 0x7ad   :  { %v3983_v0 = vsel %vm11542_vm11, %v3982_v49, %v3981_v42  ;;  %v3047_v16 = vsel %vm11547_vm5, %v2805_v54, 0.0  ;;  %vm11556_vm11 = vmmov %vm11555_vm0  ;;  %vm11558_vm5 = vcmask 1048512  }
 0x7ae   :  { %v2920_v19 = vpop.xlane.xlu1 %2919  ;;  %v2914_v26 = vpop.xlane.xlu2 %2913  ;;  %vm11557_vm10 = vmmov %vm11555_vm0 }
 0x7af   :  { %v2917_v38 = vpop.xlane.xlu0 %2916  ;;  %v3274_v28 = vmul.f32 %v2920_v19, %v11543_v52  ;;  %v3272_v53 = vmul.f32 %v2914_v26, %v11544_v3  ;;  %v2809_v52 = vmul.f32 %v4737_v5, %v9642_v4  ;;  %v11560_v5 = vld [vmem:[#allocation22_spill] sm:$0xff]  ;;  %vm11562_vm6 = vmmov %vm11555_vm0 }
 0x7b0   :  { %v3273_v37 = vmul.f32 %v2917_v38, %v11545_v40  ;;  %v11552_v38 = vld [vmem:[#allocation118_spill] sm:$0xff] }
 0x7b1   :  { %v3984_v15 = vperm.slane %v3272_v53, %v11410_v20  ;;  %v3988_v24 = vperm.slane %v3274_v28, %v11431_v58  ;;  %v11553_v28 = vld [vmem:[#allocation25_spill] sm:$0xff]  ;;  %v11554_v53 = vld [vmem:[#allocation112_spill] sm:$0xff] }
 0x7b2   :  { %v3986_v32 = vperm.slane %v3273_v37, %v11420_v21 }
 0x7b3   :  { %3054 = vadd.xlane.f32.xlu1 %v3053_v57  ;;  %v3985_v41 = vsel %vm11549_vm13, %v3984_v15, %v3983_v0  ;;  %3048 = vadd.xlane.f32.xlu2 %v3047_v16  ;;  %v4736_v0 = vld [vmem:[%s10483_s6 + $0x1e0] sm:$0xff]  ;;  %v9764_v15 = vperm.slane %v2728_v63, 0  ;;  %v3062_v16 = vsel %vm11555_vm0, %v2810_v27, 0.0  ;;  %vm11563_vm13 = vmmov %vm11555_vm0 }
 0x7b4   :  { %3051 = vadd.xlane.f32.xlu0 %v3050_v29  ;;  %v3987_v49 = vsel %vm11550_vm14, %v3986_v32, %v3985_v41  ;;  %v2808_v43 = vmul.f32 %v4736_v0, %v9642_v4  ;;  %v11559_v0 = vld [vmem:[#allocation119_spill] sm:$0xff]  ;;  %vm11564_vm14 = vmmov %vm11555_vm0  ;;  %vm11566_vm0 = vcmask 261312  }
 0x7b5   :  { %v3989_v42 = vsel %vm11551_vm9, %v3988_v24, %v3987_v49  ;;  %v3059_v24 = vsel %vm11557_vm10, %v2809_v52, 0.0  ;;  %vm11565_vm9 = vcmask 195712   ;;  %vm11571_vm10 = vmmov %vm11562_vm6 }
 0x7b6   :  { %v2929_v19 = vpop.xlane.xlu1 %2928  ;;  %v2923_v26 = vpop.xlane.xlu2 %2922  ;;  %v3056_v29 = vsel %vm11556_vm11, %v2808_v43, 0.0  ;;  %vm11567_vm11 = vcmask 326912  }
 0x7b7   :  { %v3277_v8 = vmul.f32 %v2929_v19, %v11552_v38  ;;  %v2926_v54 = vpop.xlane.xlu0 %2925  ;;  %v3275_v3 = vmul.f32 %v2923_v26, %v11553_v28  ;;  %v4738_v19 = vld [vmem:[%s10483_s6 + $0x208] sm:$0xff]  ;;  %v4739_v38 = vld [vmem:[%s10483_s6 + $0x1f8] sm:$0xff]  ;;  %v11561_v28 = vld [vmem:[#allocation122_spill] sm:$0xff] }
 0x7b8   :  { %v3276_v40 = vmul.f32 %v2926_v54, %v11554_v53  ;;  %v2813_v33 = vmul.f32 %v4738_v19, %v9764_v15  ;;  %v4741_v19 = vld [vmem:[%s10483_s6 + $0x220] sm:$0xff] }
 0x7b9   :  { %v3993_v37 = vperm.slane %v3277_v8, %v11512_v55  ;;  %v3990_v32 = vperm.slane %v3275_v3, %v11423_v46  ;;  %v4740_v8 = vld [vmem:[%s10483_s6 + $0x200] sm:$0xff] }
 0x7ba   :  { %v3992_v57 = vperm.slane %v3276_v40, %v11462_v2  ;;  %v2812_v54 = vmul.f32 %v4740_v8, %v9764_v15 }
 0x7bb   :  { %3063 = vadd.xlane.f32.xlu1 %v3062_v16  ;;  %v9772_v41 = vsel %vm11558_vm5, %v3990_v32, %v3989_v42  ;;  %3057 = vadd.xlane.f32.xlu2 %v3056_v29  ;;  %v2811_v42 = vmul.f32 %v4739_v38, %v9642_v4  ;;  %vm11572_vm5 = vmmov %vm11562_vm6 }
 0x7bc   :  { %v3994_v49 = vsel %vm3526_vm3, %v3993_v37, %v3992_v57  ;;  %3060 = vadd.xlane.f32.xlu0 %v3059_v24  ;;  %v3071_v37 = vsel %vm11562_vm6, %v2813_v33, 0.0  ;;  %v3068_v32 = vsel %vm11564_vm14, %v2812_v54, 0.0  ;;  %v2816_v33 = vmul.f32 %v4741_v19, %v9764_v15  ;;  %v11568_v54 = vld [vmem:[#allocation125_spill] sm:$0xff]  ;;  %vm11573_vm6 = vmmov %vm11572_vm5  ;;  %v4744_v19 = vld [vmem:[%s10483_s6 + $0x238] sm:$0xff] }
 0x7bd   :  { %v3065_v4 = vsel %vm11563_vm13, %v2811_v42, 0.0  ;;  %v4743_v42 = vld [vmem:[%s10483_s6 + $0x218] sm:$0xff]  ;;  %vm11574_vm13 = vcmask 392512   ;;  %vm11575_vm14 = vcmask 458112  }
 0x7be   :  { %v2938_v63 = vpop.xlane.xlu1 %2937  ;;  %v2932_v27 = vpop.xlane.xlu2 %2931  ;;  %v2815_v8 = vmul.f32 %v4743_v42, %v9764_v15 }
 0x7bf   :  { %v2935_v26 = vpop.xlane.xlu0 %2934  ;;  %v3278_v43 = vmul.f32 %v2932_v27, %v11559_v0  ;;  %v3280_v52 = vmul.f32 %v2938_v63, %v11560_v5 }
 0x7c0   :  { %v3279_v3 = vmul.f32 %v2935_v26, %v11561_v28 }
 0x7c1   :  { %v3995_v53 = vperm.slane %v3278_v43, %v11511_v48  ;;  %v3999_v16 = vperm.slane %v3280_v52, %v11059_v39  ;;  %v11569_v43 = vld [vmem:[#allocation11_spill] sm:$0xff]  ;;  %v11570_v52 = vld [vmem:[#allocation73_spill] sm:$0xff] }
 0x7c2   :  { %v3997_v40 = vperm.slane %v3279_v3, %v10955_v36 }
 0x7c3   :  { %3072 = vadd.xlane.f32.xlu1 %v3071_v37  ;;  %v3996_v57 = vsel %vm11565_vm9, %v3995_v53, %v3994_v49  ;;  %3066 = vadd.xlane.f32.xlu2 %v3065_v4  ;;  %v4742_v49 = vld [vmem:[%s10483_s6 + $0x210] sm:$0xff]  ;;  %v3077_v4 = vsel %vm11573_vm6, %v2815_v8, 0.0  ;;  %vm11576_vm9 = vcmask 523712   ;;  %vm11584_vm6 = vcmask 654912  }
 0x7c4   :  { %3069 = vadd.xlane.f32.xlu0 %v3068_v32  ;;  %v3998_v29 = vsel %vm11566_vm0, %v3997_v40, %v3996_v57  ;;  %v2814_v38 = vmul.f32 %v4742_v49, %v9764_v15  ;;  %v3080_v40 = vsel %vm11571_vm10, %v2816_v33, 0.0  ;;  %v2819_v33 = vmul.f32 %v4744_v19, %v9764_v15  ;;  %v11577_v8 = vld [vmem:[#allocation18_spill] sm:$0xff]  ;;  %vm11580_vm0 = vmmov %vm11572_vm5 }
 0x7c5   :  { %v4000_v24 = vsel %vm11567_vm11, %v3999_v16, %v3998_v29  ;;  %vm11581_vm11 = vmmov %vm11580_vm0  ;;  %v4747_v19 = vld [vmem:[%s10483_s6 + $0x250] sm:$0xff] }
 0x7c6   :  { %v2947_v63 = vpop.xlane.xlu1 %2946  ;;  %v2941_v27 = vpop.xlane.xlu2 %2940  ;;  %v3074_v37 = vsel %vm11572_vm5, %v2814_v38, 0.0  ;;  %v4746_v38 = vld [vmem:[%s10483_s6 + $0x230] sm:$0xff]  ;;  %vm11582_vm10 = vmmov %vm11580_vm0  ;;  %vm11583_vm5 = vcmask 589312  }
 0x7c7   :  { %v2944_v26 = vpop.xlane.xlu0 %2943  ;;  %v3281_v0 = vmul.f32 %v2941_v27, %v11568_v54  ;;  %v3283_v5 = vmul.f32 %v2947_v63, %v11569_v43  ;;  %v2818_v42 = vmul.f32 %v4746_v38, %v9764_v15 }
 0x7c8   :  { %v3282_v28 = vmul.f32 %v2944_v26, %v11570_v52 }
 0x7c9   :  { %v4001_v3 = vperm.slane %v3281_v0, %v11522_v59  ;;  %v4005_v57 = vperm.slane %v3283_v5, %v11344_v11  ;;  %v11578_v0 = vld [vmem:[#allocation33_spill] sm:$0xff]  ;;  %v11579_v5 = vld [vmem:[#allocation134_spill] sm:$0xff] }
 0x7ca   :  { %v4003_v53 = vperm.slane %v3282_v28, %v5892_v44 }
 0x7cb   :  { %3081 = vadd.xlane.f32.xlu1 %v3080_v40  ;;  %v4002_v32 = vsel %vm11574_vm13, %v4001_v3, %v4000_v24  ;;  %3075 = vadd.xlane.f32.xlu2 %v3074_v37  ;;  %v4745_v24 = vld [vmem:[%s10483_s6 + $0x228] sm:$0xff]  ;;  %v3086_v37 = vsel %vm11582_vm10, %v2818_v42, 0.0  ;;  %vm11585_vm13 = vcmask 720512   ;;  %vm11592_vm10 = vcmask 851712  }
 0x7cc   :  { %3078 = vadd.xlane.f32.xlu0 %v3077_v4  ;;  %v4004_v16 = vsel %vm11575_vm14, %v4003_v53, %v4002_v32  ;;  %v2817_v49 = vmul.f32 %v4745_v24, %v9764_v15  ;;  %v3089_v53 = vsel %vm11580_vm0, %v2819_v33, 0.0  ;;  %v2822_v33 = vmul.f32 %v4747_v19, %v9764_v15  ;;  %v11586_v42 = vld [vmem:[#allocation133_spill] sm:$0xff]  ;;  %vm11589_vm14 = vmmov %vm11580_vm0 }
 0x7cd   :  { %v4006_v29 = vsel %vm11576_vm9, %v4005_v57, %v4004_v16  ;;  %vm11590_vm9 = vmmov %vm11580_vm0 }
 0x7ce   :  { %v2956_v63 = vpop.xlane.xlu1 %2955  ;;  %v2950_v27 = vpop.xlane.xlu2 %2949  ;;  %v3083_v40 = vsel %vm11581_vm11, %v2817_v49, 0.0  ;;  %v4749_v49 = vld [vmem:[%s10483_s6 + $0x248] sm:$0xff]  ;;  %vm11591_vm11 = vcmask 786112  }
 0x7cf   :  { %v2953_v26 = vpop.xlane.xlu0 %2952  ;;  %v3284_v54 = vmul.f32 %v2950_v27, %v11577_v8  ;;  %v3286_v43 = vmul.f32 %v2956_v63, %v11578_v0  ;;  %v2821_v38 = vmul.f32 %v4749_v49, %v9764_v15  ;;  %v4752_v49 = vld [vmem:[%s10483_s6 + $0x260] sm:$0xff] }
 0x7d0   :  { %v3285_v52 = vmul.f32 %v2953_v26, %v11579_v5 }
 0x7d1   :  { %v4007_v28 = vperm.slane %v3284_v54, %v11346_v22  ;;  %v4011_v32 = vperm.slane %v3286_v43, %v11369_v12  ;;  %v11587_v54 = vld [vmem:[#allocation15_spill] sm:$0xff]  ;;  %v11588_v43 = vld [vmem:[#allocation137_spill] sm:$0xff] }
 0x7d2   :  { %v4009_v3 = vperm.slane %v3285_v52, %v11370_v13 }
 0x7d3   :  { %3090 = vadd.xlane.f32.xlu1 %v3089_v53  ;;  %v4008_v4 = vsel %vm11583_vm5, %v4007_v28, %v4006_v29  ;;  %3084 = vadd.xlane.f32.xlu2 %v3083_v40  ;;  %v4748_v29 = vld [vmem:[%s10483_s6 + $0x240] sm:$0xff]  ;;  %v3095_v40 = vsel %vm11580_vm0, %v2821_v38, 0.0  ;;  %vm11593_vm5 = vcmask 917312   ;;  %v2824_v38 = vmul.f32 %v4752_v49, %v9764_v15  ;;  %v11602_v49 = vld [vmem:[#allocation38_spill] sm:$0xff] }
 0x7d4   :  { %3087 = vadd.xlane.f32.xlu0 %v3086_v37  ;;  %v4010_v57 = vsel %vm11584_vm6, %v4009_v3, %v4008_v4  ;;  %v2820_v24 = vmul.f32 %v4748_v29, %v9764_v15  ;;  %v3098_v3 = vsel %vm11589_vm14, %v2822_v33, 0.0  ;;  %v4750_v33 = vld [vmem:[%s10483_s6 + $0x268] sm:$0xff]  ;;  %vm11596_vm6 = vmmov %vm11580_vm0 }
 0x7d5   :  { %v4012_v16 = vsel %vm11585_vm13, %v4011_v32, %v4010_v57  ;;  %v2729_v57 = vrot.slane %v9387_v18, 5  ;;  %vm11597_vm13 = vmmov %vm11580_vm0 }
 0x7d6   :  { %v2965_v63 = vpop.xlane.xlu1 %2964  ;;  %v2959_v27 = vpop.xlane.xlu2 %2958  ;;  %v3092_v53 = vsel %vm11590_vm9, %v2820_v24, 0.0  ;;  %vm11598_vm14 = vmmov %vm11580_vm0  ;;  %vm11599_vm9 = vcmask 982912   ;;  %vm11600_vm0 = vcmask 1048512  }
 0x7d7   :  { %v2962_v26 = vpop.xlane.xlu0 %2961  ;;  %v3287_v8 = vmul.f32 %v2959_v27, %v11586_v42  ;;  %v3289_v0 = vmul.f32 %v2965_v63, %v11587_v54  ;;  %v2825_v27 = vmul.f32 %v4750_v33, %v9764_v15  ;;  %v11594_v42 = vld [vmem:[#allocation138_spill] sm:$0xff]  ;;  %v11595_v54 = vld [vmem:[#allocation145_spill] sm:$0xff] }
 0x7d8   :  { %v3288_v5 = vmul.f32 %v2962_v26, %v11588_v43  ;;  %v9886_v43 = vperm.slane %v2729_v57, 0 }
 0x7d9   :  { %v4013_v52 = vperm.slane %v3287_v8, %v11242_v30  ;;  %v4017_v4 = vperm.slane %v3289_v0, %v11420_v21 }
 0x7da   :  { %v4015_v28 = vperm.slane %v3288_v5, %v11410_v20 }
 0x7db   :  { %3099 = vadd.xlane.f32.xlu1 %v3098_v3  ;;  %v4014_v37 = vsel %vm11591_vm11, %v4013_v52, %v4012_v16  ;;  %3093 = vadd.xlane.f32.xlu2 %v3092_v53  ;;  %v4751_v16 = vld [vmem:[%s10483_s6 + $0x258] sm:$0xff]  ;;  %v3104_v53 = vsel %vm11598_vm14, %v2824_v38, 0.0 }
 0x7dc   :  { %3096 = vadd.xlane.f32.xlu0 %v3095_v40  ;;  %v4016_v32 = vsel %vm11592_vm10, %v4015_v28, %v4014_v37  ;;  %v2823_v24 = vmul.f32 %v4751_v16, %v9764_v15  ;;  %v3107_v28 = vsel %vm11596_vm6, %v2825_v27, 0.0  ;;  %v4753_v27 = vld [vmem:[%s10483_s6 + $0x280] sm:$0xff] }
 0x7dd   :  { %v4018_v63 = vsel %vm11593_vm5, %v4017_v4, %v4016_v32  ;;  %v11601_v4 = vld [vmem:[#allocation34_spill] sm:$0xff]  ;;  %vm11608_vm5 = vcmask 195712  }
 0x7de   :  { %v2974_v19 = vpop.xlane.xlu1 %2973  ;;  %v2968_v26 = vpop.xlane.xlu2 %2967  ;;  %v3101_v3 = vsel %vm11597_vm13, %v2823_v24, 0.0 }
 0x7df   :  { %v2971_v29 = vpop.xlane.xlu0 %2970  ;;  %v3290_v8 = vmul.f32 %v2968_v26, %v11594_v42  ;;  %v3292_v32 = vmul.f32 %v2974_v19, %v11601_v4  ;;  %v2828_v26 = vmul.f32 %v4753_v27, %v9886_v43  ;;  %v11603_v42 = vld [vmem:[#allocation35_spill] sm:$0xff] }
 0x7e0   :  { %v3291_v0 = vmul.f32 %v2971_v29, %v11595_v54  ;;  %v11604_v54 = vld [vmem:[#allocation139_spill] sm:$0xff] }
 0x7e1   :  { %v4019_v5 = vperm.slane %v3290_v8, %v11431_v58  ;;  %v4756_v27 = vld [vmem:[%s10483_s6 + $0x298] sm:$0xff] }
 0x7e2   :  { %v4021_v52 = vperm.slane %v3291_v0, %v11423_v46 }
 0x7e3   :  { %3108 = vadd.xlane.f32.xlu1 %v3107_v28  ;;  %v4020_v40 = vsel %vm11599_vm9, %v4019_v5, %v4018_v63  ;;  %3102 = vadd.xlane.f32.xlu2 %v3101_v3  ;;  %v4754_v63 = vld [vmem:[%s10483_s6 + $0x270] sm:$0xff]  ;;  %v4023_v5 = vperm.slane %v3292_v32, %v11462_v2 }
 0x7e4   :  { %3105 = vadd.xlane.f32.xlu0 %v3104_v53  ;;  %v4022_v37 = vsel %vm11600_vm0, %v4021_v52, %v4020_v40  ;;  %v2826_v24 = vmul.f32 %v4754_v63, %v9764_v15  ;;  %v4757_v63 = vld [vmem:[%s10483_s6 + $0x288] sm:$0xff]  ;;  %vm11616_vm0 = vcmask 326912  }
 0x7e5   :  { %v9898_v57 = vsel %vm3801_vm1, %v4022_v37, %v9772_v41  ;;  %v4755_v41 = vld [vmem:[%s10483_s6 + $0x278] sm:$0xff]  ;;  %vm11605_vm1 = vmmov %vm11596_vm6  ;;  %vm11609_vm6 = vcmask 261312  }
 0x7e6   :  { %v2983_v33 = vpop.xlane.xlu1 %2982  ;;  %v2977_v29 = vpop.xlane.xlu2 %2976  ;;  %v2827_v19 = vmul.f32 %v4755_v41, %v9764_v15  ;;  %v3116_v3 = vsel %vm11605_vm1, %v2828_v26, 0.0  ;;  %vm11606_vm11 = vmmov %vm11605_vm1  ;;  %v2831_v26 = vmul.f32 %v4756_v27, %v9886_v43  ;;  %v4758_v41 = vld [vmem:[%s10483_s6 + $0x290] sm:$0xff] }
 0x7e7   :  { %v2980_v16 = vpop.xlane.xlu0 %2979  ;;  %v3293_v38 = vmul.f32 %v2977_v29, %v11602_v49  ;;  %v3295_v8 = vmul.f32 %v2983_v33, %v11603_v42  ;;  %v3110_v53 = vsel %vm11606_vm11, %v2826_v24, 0.0  ;;  %vm11607_vm10 = vmmov %vm11605_vm1  ;;  %v2829_v24 = vmul.f32 %v4757_v63, %v9886_v43  ;;  %v11610_v49 = vld [vmem:[#allocation140_spill] sm:$0xff]  ;;  %v11611_v42 = vld [vmem:[#allocation127_spill] sm:$0xff] }
 0x7e8   :  { %v3294_v0 = vmul.f32 %v2980_v16, %v11604_v54  ;;  %v3113_v40 = vsel %vm11607_vm10, %v2827_v19, 0.0  ;;  %v2830_v19 = vmul.f32 %v4758_v41, %v9886_v43  ;;  %v11612_v54 = vld [vmem:[#allocation76_spill] sm:$0xff]  ;;  %vm11613_vm13 = vmmov %vm11605_vm1  ;;  %vm11618_vm11 = vcmask 458112   ;;  %v4759_v27 = vld [vmem:[%s10483_s6 + $0x2b0] sm:$0xff] }
 0x7e9   :  { %v4024_v52 = vperm.slane %v3293_v38, %v11512_v55  ;;  %v4028_v37 = vperm.slane %v3295_v8, %v10955_v36  ;;  %vm11614_vm14 = vmmov %vm11605_vm1 }
 0x7ea   :  { %v4026_v28 = vperm.slane %v3294_v0, %v11511_v48  ;;  %vm11615_vm9 = vmmov %vm11605_vm1  ;;  %vm11617_vm1 = vcmask 392512  }
 0x7eb   :  { %3117 = vadd.xlane.f32.xlu1 %v3116_v3  ;;  %v4025_v15 = vsel %vm3526_vm3, %v4024_v52, %v4023_v5  ;;  %3111 = vadd.xlane.f32.xlu2 %v3110_v53  ;;  %v3119_v3 = vsel %vm11614_vm14, %v2829_v24, 0.0  ;;  %v3122_v53 = vsel %vm11615_vm9, %v2830_v19, 0.0  ;;  %v4761_v24 = vld [vmem:[%s10483_s6 + $0x2a8] sm:$0xff]  ;;  %v11619_v19 = vld [vmem:[#allocation144_spill] sm:$0xff]  ;;  %vm11622_vm10 = vmmov %vm11615_vm9  ;;  %vm11626_vm14 = vcmask 589312  }
 0x7ec   :  { %3114 = vadd.xlane.f32.xlu0 %v3113_v40  ;;  %v4027_v4 = vsel %vm11608_vm5, %v4026_v28, %v4025_v15  ;;  %v3125_v28 = vsel %vm11613_vm13, %v2831_v26, 0.0  ;;  %v2834_v26 = vmul.f32 %v4759_v27, %v9886_v43  ;;  %v2833_v41 = vmul.f32 %v4761_v24, %v9886_v43  ;;  %vm11623_vm5 = vmmov %vm11615_vm9  ;;  %v4762_v27 = vld [vmem:[%s10483_s6 + $0x2c8] sm:$0xff] }
 0x7ed   :  { %v4029_v32 = vsel %vm11609_vm6, %v4028_v37, %v4027_v4  ;;  %vm11624_vm6 = vmmov %vm11623_vm5  ;;  %vm11625_vm13 = vcmask 523712   ;;  %vm11627_vm9 = vcmask 654912  }
 0x7ee   :  { %v2992_v33 = vpop.xlane.xlu1 %2991  ;;  %v2986_v29 = vpop.xlane.xlu2 %2985 }
 0x7ef   :  { %v2989_v16 = vpop.xlane.xlu0 %2988  ;;  %v3296_v38 = vmul.f32 %v2986_v29, %v11610_v49  ;;  %v3298_v8 = vmul.f32 %v2992_v33, %v11611_v42 }
 0x7f0   :  { %v3297_v0 = vmul.f32 %v2989_v16, %v11612_v54 }
 0x7f1   :  { %v4030_v5 = vperm.slane %v3296_v38, %v11059_v39  ;;  %v4034_v15 = vperm.slane %v3298_v8, %v5892_v44  ;;  %v11620_v38 = vld [vmem:[#allocation32_spill] sm:$0xff] }
 0x7f2   :  { %v4032_v52 = vperm.slane %v3297_v0, %v11522_v59  ;;  %v11621_v8 = vld [vmem:[#allocation156_spill] sm:$0xff] }
 0x7f3   :  { %3126 = vadd.xlane.f32.xlu1 %v3125_v28  ;;  %v4031_v40 = vsel %vm11616_vm0, %v4030_v5, %v4029_v32  ;;  %3120 = vadd.xlane.f32.xlu2 %v3119_v3  ;;  %v4760_v32 = vld [vmem:[%s10483_s6 + $0x2a0] sm:$0xff]  ;;  %v3131_v3 = vsel %vm11624_vm6, %v2833_v41, 0.0  ;;  %v11628_v41 = vld [vmem:[#allocation157_spill] sm:$0xff]  ;;  %vm11631_vm0 = vmmov %vm11623_vm5  ;;  %vm11636_vm6 = vcmask 851712  }
 0x7f4   :  { %3123 = vadd.xlane.f32.xlu0 %v3122_v53  ;;  %v4033_v37 = vsel %vm11617_vm1, %v4032_v52, %v4031_v40  ;;  %v2832_v63 = vmul.f32 %v4760_v32, %v9886_v43  ;;  %v3134_v52 = vsel %vm11622_vm10, %v2834_v26, 0.0  ;;  %v2837_v26 = vmul.f32 %v4762_v27, %v9886_v43  ;;  %vm11632_vm1 = vmmov %vm11631_vm0  ;;  %v4765_v27 = vld [vmem:[%s10483_s6 + $0x2e0] sm:$0xff] }
 0x7f5   :  { %v4035_v4 = vsel %vm11618_vm11, %v4034_v15, %v4033_v37  ;;  %vm11633_vm11 = vmmov %vm11631_vm0  ;;  %vm11634_vm10 = vcmask 720512  }
 0x7f6   :  { %v3001_v33 = vpop.xlane.xlu1 %3000  ;;  %v2995_v29 = vpop.xlane.xlu2 %2994  ;;  %v3128_v28 = vsel %vm11623_vm5, %v2832_v63, 0.0  ;;  %v4764_v63 = vld [vmem:[%s10483_s6 + $0x2c0] sm:$0xff]  ;;  %vm11635_vm5 = vcmask 786112  }
 0x7f7   :  { %v2998_v16 = vpop.xlane.xlu0 %2997  ;;  %v3299_v49 = vmul.f32 %v2995_v29, %v11619_v19  ;;  %v3301_v42 = vmul.f32 %v3001_v33, %v11620_v38  ;;  %v2836_v24 = vmul.f32 %v4764_v63, %v9886_v43 }
 0x7f8   :  { %v3300_v54 = vmul.f32 %v2998_v16, %v11621_v8 }
 0x7f9   :  { %v4036_v0 = vperm.slane %v3299_v49, %v11344_v11  ;;  %v4040_v40 = vperm.slane %v3301_v42, %v11370_v13  ;;  %v11629_v49 = vld [vmem:[#allocation13_spill] sm:$0xff]  ;;  %v11630_v42 = vld [vmem:[#allocation50_spill] sm:$0xff] }
 0x7fa   :  { %v4038_v5 = vperm.slane %v3300_v54, %v11346_v22 }
 0x7fb   :  { %3135 = vadd.xlane.f32.xlu1 %v3134_v52  ;;  %v4037_v53 = vsel %vm11625_vm13, %v4036_v0, %v4035_v4  ;;  %3129 = vadd.xlane.f32.xlu2 %v3128_v28  ;;  %v4763_v4 = vld [vmem:[%s10483_s6 + $0x2b8] sm:$0xff]  ;;  %v3140_v28 = vsel %vm11633_vm11, %v2836_v24, 0.0  ;;  %v11637_v24 = vld [vmem:[#allocation54_spill] sm:$0xff]  ;;  %vm11640_vm13 = vmmov %vm11631_vm0  ;;  %vm11645_vm11 = vcmask 1048512  }
 0x7fc   :  { %3132 = vadd.xlane.f32.xlu0 %v3131_v3  ;;  %v4039_v15 = vsel %vm11626_vm14, %v4038_v5, %v4037_v53  ;;  %v2835_v32 = vmul.f32 %v4763_v4, %v9886_v43  ;;  %v3143_v5 = vsel %vm11631_vm0, %v2837_v26, 0.0  ;;  %v2840_v26 = vmul.f32 %v4765_v27, %v9886_v43  ;;  %vm11641_vm14 = vmmov %vm11631_vm0 }
 0x7fd   :  { %v4041_v37 = vsel %vm11627_vm9, %v4040_v40, %v4039_v15  ;;  %vm11642_vm9 = vmmov %vm11631_vm0  ;;  %vm11643_vm0 = vcmask 917312  }
 0x7fe   :  { %v3010_v33 = vpop.xlane.xlu1 %3009  ;;  %v3004_v29 = vpop.xlane.xlu2 %3003  ;;  %v3137_v52 = vsel %vm11632_vm1, %v2835_v32, 0.0  ;;  %v4767_v32 = vld [vmem:[%s10483_s6 + $0x2d8] sm:$0xff]  ;;  %vm11644_vm1 = vcmask 982912  }
 0x7ff   :  { %v3007_v16 = vpop.xlane.xlu0 %3006  ;;  %v3302_v19 = vmul.f32 %v3004_v29, %v11628_v41  ;;  %v3304_v38 = vmul.f32 %v3010_v33, %v11629_v49  ;;  %v2839_v63 = vmul.f32 %v4767_v32, %v9886_v43  ;;  %v4769_v32 = vld [vmem:[%s10483_s6 + $0x2e8] sm:$0xff] }
 0x800   :  { %v3303_v8 = vmul.f32 %v3007_v16, %v11630_v42 }
 0x801   :  { %v4042_v54 = vperm.slane %v3302_v19, %v11369_v12  ;;  %v4046_v53 = vperm.slane %v3304_v38, %v11410_v20  ;;  %v11638_v19 = vld [vmem:[#allocation132_spill] sm:$0xff]  ;;  %v11639_v38 = vld [vmem:[#allocation41_spill] sm:$0xff] }
 0x802   :  { %v4044_v0 = vperm.slane %v3303_v8, %v11242_v30 }
 0x803   :  { %3144 = vadd.xlane.f32.xlu1 %v3143_v5  ;;  %v4043_v3 = vsel %vm11634_vm10, %v4042_v54, %v4041_v37  ;;  %3138 = vadd.xlane.f32.xlu2 %v3137_v52  ;;  %v4766_v37 = vld [vmem:[%s10483_s6 + $0x2d0] sm:$0xff]  ;;  %v3149_v52 = vsel %vm11642_vm9, %v2839_v63, 0.0  ;;  %v2841_v63 = vmul.f32 %v4769_v32, %v9886_v43  ;;  %vm11649_vm10 = vmmov %vm11642_vm9  ;;  %v4773_v32 = vld [vmem:[%s10483_s6 + $0x308] sm:$0xff] }
 0x804   :  { %3141 = vadd.xlane.f32.xlu0 %v3140_v28  ;;  %v4045_v40 = vsel %vm11635_vm5, %v4044_v0, %v4043_v3  ;;  %v2838_v4 = vmul.f32 %v4766_v37, %v9886_v43  ;;  %v3152_v0 = vsel %vm11640_vm13, %v2840_v26, 0.0  ;;  %v4768_v26 = vld [vmem:[%s10483_s6 + $0x2f8] sm:$0xff]  ;;  %v11646_v37 = vld [vmem:[#allocation146_spill] sm:$0xff]  ;;  %vm11650_vm5 = vmmov %vm11642_vm9  ;;  %vm11652_vm13 = vcmask 195712  }
 0x805   :  { %v4047_v15 = vsel %vm11636_vm6, %v4046_v53, %v4045_v40  ;;  %v2730_v40 = vrot.slane %v9387_v18, 6  ;;  %vm11651_vm6 = vmmov %vm11650_vm5 }
 0x806   :  { %v3019_v33 = vpop.xlane.xlu1 %3018  ;;  %v3013_v29 = vpop.xlane.xlu2 %3012  ;;  %v3146_v5 = vsel %vm11641_vm14, %v2838_v4, 0.0  ;;  %vm11656_vm14 = vmmov %vm11650_vm5 }
 0x807   :  { %v3016_v16 = vpop.xlane.xlu0 %3015  ;;  %v3305_v41 = vmul.f32 %v3013_v29, %v11637_v24  ;;  %v3307_v49 = vmul.f32 %v3019_v33, %v11638_v19  ;;  %v2843_v29 = vmul.f32 %v4768_v26, %v9886_v43  ;;  %v4770_v24 = vld [vmem:[%s10483_s6 + $0x2f0] sm:$0xff]  ;;  %v11647_v19 = vld [vmem:[#allocation31_spill] sm:$0xff]  ;;  %vm11657_vm9 = vmmov %vm11650_vm5 }
 0x808   :  { %v3306_v42 = vmul.f32 %v3016_v16, %v11639_v38  ;;  %v11648_v38 = vld [vmem:[#allocation148_spill] sm:$0xff]  ;;  %v4771_v26 = vld [vmem:[%s10483_s6 + $0x310] sm:$0xff] }
 0x809   :  { %v4048_v8 = vperm.slane %v3305_v41, %v11420_v21  ;;  %v4052_v3 = vperm.slane %v3307_v49, %v11423_v46  ;;  %v2842_v41 = vmul.f32 %v4770_v24, %v9886_v43 }
 0x80a   :  { %v4050_v54 = vperm.slane %v3306_v42, %v11431_v58 }
 0x80b   :  { %3153 = vadd.xlane.f32.xlu1 %v3152_v0  ;;  %v4049_v28 = vsel %vm11643_vm0, %v4048_v8, %v4047_v15  ;;  %3147 = vadd.xlane.f32.xlu2 %v3146_v5  ;;  %vm11658_vm0 = vmmov %vm11650_vm5 }
 0x80c   :  { %3150 = vadd.xlane.f32.xlu0 %v3149_v52  ;;  %v4051_v53 = vsel %vm11644_vm1, %v4050_v54, %v4049_v28  ;;  %v10038_v54 = vperm.slane %v2730_v40, 0  ;;  %v3161_v52 = vsel %vm11649_vm10, %v2843_v29, 0.0  ;;  %v3155_v28 = vsel %vm11650_vm5, %v2841_v63, 0.0  ;;  %v11653_v63 = vld [vmem:[#allocation40_spill] sm:$0xff]  ;;  %vm11666_vm5 = vmmov %vm11658_vm0 }
 0x80d   :  { %v4053_v33 = vsel %vm11645_vm11, %v4052_v3, %v4051_v53  ;;  %v3158_v3 = vsel %vm11651_vm6, %v2842_v41, 0.0  ;;  %v2731_v40 = vrot.slane %v9387_v18, 7  ;;  %v11654_v41 = vld [vmem:[#allocation52_spill] sm:$0xff]  ;;  %vm11659_vm1 = vcmask 261312   ;;  %vm11667_vm6 = vmmov %vm11658_vm0 }
 0x80e   :  { %v3028_v27 = vpop.xlane.xlu1 %3027  ;;  %v3022_v16 = vpop.xlane.xlu2 %3021  ;;  %v2846_v29 = vmul.f32 %v4771_v26, %v10038_v54  ;;  %v2845_v18 = vmul.f32 %v4773_v32, %v10038_v54  ;;  %vm11660_vm11 = vcmask 326912   ;;  %vm11661_vm10 = vcmask 392512  }
 0x80f   :  { %v3310_v15 = vmul.f32 %v3028_v27, %v11646_v37  ;;  %v3025_v4 = vpop.xlane.xlu0 %3024  ;;  %v3308_v49 = vmul.f32 %v3022_v16, %v11647_v19 }
 0x810   :  { %v3309_v42 = vmul.f32 %v3025_v4, %v11648_v38 }
 0x811   :  { %v4057_v8 = vperm.slane %v3310_v15, %v11511_v48  ;;  %v4054_v0 = vperm.slane %v3308_v49, %v11462_v2  ;;  %v4772_v15 = vld [vmem:[%s10483_s6 + $0x300] sm:$0xff]  ;;  %v11655_v49 = vld [vmem:[#allocation53_spill] sm:$0xff] }
 0x812   :  { %v4055_v5 = vperm.slane %v3309_v42, %v11512_v55  ;;  %v2844_v4 = vmul.f32 %v4772_v15, %v10038_v54  ;;  %v10063_v42 = vperm.slane %v2731_v40, 0  ;;  %v10074_v40 = vsel %vm3803_vm12, %v4053_v33, %v9898_v57  ;;  %v4776_v33 = vld [vmem:[%s10483_s6 + $0x380] sm:$0xff]  ;;  %vm11665_vm12 = vmmov %vm11658_vm0 }
 0x813   :  { %3162 = vadd.xlane.f32.xlu1 %v3161_v52  ;;  %3156 = vadd.xlane.f32.xlu2 %v3155_v28  ;;  %v3167_v28 = vsel %vm11658_vm0, %v2845_v18, 0.0  ;;  %v11662_v18 = vld [vmem:[#allocation55_spill] sm:$0xff] }
 0x814   :  { %v4056_v43 = vsel %vm3526_vm3, %v4055_v5, %v4054_v0  ;;  %3159 = vadd.xlane.f32.xlu0 %v3158_v3  ;;  %v3170_v5 = vsel %vm11656_vm14, %v2846_v29, 0.0  ;;  %v3164_v52 = vsel %vm11657_vm9, %v2844_v4, 0.0  ;;  %v4775_v4 = vld [vmem:[%s10483_s6 + $0x318] sm:$0xff]  ;;  %v2860_v32 = vmul.f32 %v4776_v33, %v10063_v42 }
 0x815   :  { %v4058_v53 = vsel %vm11652_vm13, %v4057_v8, %v4056_v43  ;;  %v2847_v57 = vmul.f32 %v4775_v4, %v10038_v54  ;;  %vm11668_vm13 = vcmask 458112   ;;  %vm11669_vm14 = vcmask 523712  }
 0x816   :  { %v3037_v27 = vpop.xlane.xlu1 %3036  ;;  %v3031_v16 = vpop.xlane.xlu2 %3030  ;;  %vm11670_vm9 = vcmask 589312  }
 0x817   :  { %v3034_v37 = vpop.xlane.xlu0 %3033  ;;  %v3311_v24 = vmul.f32 %v3031_v16, %v11653_v63  ;;  %v3313_v19 = vmul.f32 %v3037_v27, %v11654_v41  ;;  %v4774_v16 = vld [vmem:[%s10483_s6 + $0x388] sm:$0xff] }
 0x818   :  { %v3312_v38 = vmul.f32 %v3034_v37, %v11655_v49  ;;  %v2861_v37 = vmul.f32 %v4774_v16, %v10063_v42  ;;  %v4777_v16 = vld [vmem:[%s10483_s6 + $0x398] sm:$0xff] }
 0x819   :  { %v4059_v8 = vperm.slane %v3311_v24, %v10955_v36  ;;  %v4063_v43 = vperm.slane %v3313_v19, %v11522_v59  ;;  %v11663_v24 = vld [vmem:[#allocation45_spill] sm:$0xff]  ;;  %v11664_v19 = vld [vmem:[#allocation56_spill] sm:$0xff] }
 0x81a   :  { %v4061_v0 = vperm.slane %v3312_v38, %v11059_v39 }
 0x81b   :  { %3171 = vadd.xlane.f32.xlu1 %v3170_v5  ;;  %v4060_v3 = vsel %vm11659_vm1, %v4059_v8, %v4058_v53  ;;  %3165 = vadd.xlane.f32.xlu2 %v3164_v52  ;;  %v3173_v5 = vsel %vm11666_vm5, %v2847_v57, 0.0  ;;  %v3212_v52 = vsel %vm11667_vm6, %v2860_v32, 0.0  ;;  %v4779_v57 = vld [vmem:[%s10483_s6 + $0x320] sm:$0xff]  ;;  %v11671_v32 = vld [vmem:[#allocation62_spill] sm:$0xff]  ;;  %vm11674_vm1 = vmmov %vm11658_vm0  ;;  %vm11678_vm5 = vcmask 786112  }
 0x81c   :  { %3168 = vadd.xlane.f32.xlu0 %v3167_v28  ;;  %v4062_v27 = vsel %vm11660_vm11, %v4061_v0, %v4060_v3  ;;  %v3215_v0 = vsel %vm11665_vm12, %v2861_v37, 0.0  ;;  %v2863_v37 = vmul.f32 %v4777_v16, %v10063_v42  ;;  %v2848_v33 = vmul.f32 %v4779_v57, %v10038_v54  ;;  %vm11675_vm11 = vmmov %vm11658_vm0  ;;  %v4780_v16 = vld [vmem:[%s10483_s6 + $0x330] sm:$0xff] }
 0x81d   :  { %v4064_v26 = vsel %vm11661_vm10, %v4063_v43, %v4062_v27  ;;  %vm11676_vm10 = vcmask 654912   ;;  %vm11677_vm12 = vcmask 720512   ;;  %vm11682_vm6 = vmmov %vm11658_vm0 }
 0x81e   :  { %v3046_v29 = vpop.xlane.xlu1 %3045  ;;  %v3040_v53 = vpop.xlane.xlu2 %3039 }
 0x81f   :  { %v3043_v15 = vpop.xlane.xlu0 %3042  ;;  %v3314_v63 = vmul.f32 %v3040_v53, %v11662_v18  ;;  %v3316_v41 = vmul.f32 %v3046_v29, %v11663_v24 }
 0x820   :  { %v3315_v49 = vmul.f32 %v3043_v15, %v11664_v19 }
 0x821   :  { %v4065_v38 = vperm.slane %v3314_v63, %v5892_v44  ;;  %v4069_v3 = vperm.slane %v3316_v41, %v11346_v22  ;;  %v11672_v63 = vld [vmem:[#allocation143_spill] sm:$0xff]  ;;  %v11673_v41 = vld [vmem:[#allocation66_spill] sm:$0xff] }
 0x822   :  { %v4067_v8 = vperm.slane %v3315_v49, %v11344_v11 }
 0x823   :  { %3216 = vadd.xlane.f32.xlu1 %v3215_v0  ;;  %v4066_v28 = vsel %vm11668_vm13, %v4065_v38, %v4064_v26  ;;  %3174 = vadd.xlane.f32.xlu2 %v3173_v5  ;;  %v4778_v26 = vld [vmem:[%s10483_s6 + $0x390] sm:$0xff]  ;;  %v3176_v5 = vsel %vm11675_vm11, %v2848_v33, 0.0  ;;  %vm11683_vm13 = vmmov %vm11658_vm0 }
 0x824   :  { %3213 = vadd.xlane.f32.xlu0 %v3212_v52  ;;  %v4068_v43 = vsel %vm11669_vm14, %v4067_v8, %v4066_v28  ;;  %v2862_v4 = vmul.f32 %v4778_v26, %v10063_v42  ;;  %v3221_v8 = vsel %vm11658_vm0, %v2863_v37, 0.0  ;;  %v2850_v37 = vmul.f32 %v4780_v16, %v10038_v54  ;;  %v11679_v33 = vld [vmem:[#allocation74_spill] sm:$0xff]  ;;  %vm11684_vm14 = vmmov %vm11658_vm0 }
 0x825   :  { %v4070_v27 = vsel %vm11670_vm9, %v4069_v3, %v4068_v43  ;;  %vm11685_vm9 = vcmask 851712   ;;  %vm11686_vm0 = vcmask 917312   ;;  %v4783_v16 = vld [vmem:[%s10483_s6 + $0x3b0] sm:$0xff]  ;;  %vm11691_vm11 = vmmov %vm11682_vm6 }
 0x826   :  { %v3055_v29 = vpop.xlane.xlu1 %3054  ;;  %v3049_v53 = vpop.xlane.xlu2 %3048  ;;  %v3218_v0 = vsel %vm11674_vm1, %v2862_v4, 0.0  ;;  %v4782_v4 = vld [vmem:[%s10483_s6 + $0x3a0] sm:$0xff]  ;;  %vm11687_vm1 = vcmask 982912  }
 0x827   :  { %v3052_v15 = vpop.xlane.xlu0 %3051  ;;  %v3317_v18 = vmul.f32 %v3049_v53, %v11671_v32  ;;  %v3319_v24 = vmul.f32 %v3055_v29, %v11672_v63  ;;  %v2864_v57 = vmul.f32 %v4782_v4, %v10063_v42 }
 0x828   :  { %v3318_v19 = vmul.f32 %v3052_v15, %v11673_v41 }
 0x829   :  { %v4071_v49 = vperm.slane %v3317_v18, %v11370_v13  ;;  %v4075_v28 = vperm.slane %v3319_v24, %v11242_v30  ;;  %v11680_v18 = vld [vmem:[#allocation95_spill] sm:$0xff]  ;;  %v11681_v24 = vld [vmem:[#allocation80_spill] sm:$0xff] }
 0x82a   :  { %v4073_v38 = vperm.slane %v3318_v19, %v11369_v12 }
 0x82b   :  { %3222 = vadd.xlane.f32.xlu1 %v3221_v8  ;;  %v4072_v52 = vsel %vm11676_vm10, %v4071_v49, %v4070_v27  ;;  %3219 = vadd.xlane.f32.xlu2 %v3218_v0  ;;  %v4781_v27 = vld [vmem:[%s10483_s6 + $0x328] sm:$0xff]  ;;  %v3224_v0 = vsel %vm11684_vm14, %v2864_v57, 0.0  ;;  %v4785_v57 = vld [vmem:[%s10483_s6 + $0x338] sm:$0xff]  ;;  %vm11692_vm10 = vmmov %vm11682_vm6  ;;  %vm11701_vm14 = vcmask 195712  }
 0x82c   :  { %3177 = vadd.xlane.f32.xlu0 %v3176_v5  ;;  %v4074_v3 = vsel %vm11677_vm12, %v4073_v38, %v4072_v52  ;;  %v2849_v26 = vmul.f32 %v4781_v27, %v10038_v54  ;;  %v3182_v38 = vsel %vm11682_vm6, %v2850_v37, 0.0  ;;  %v2866_v37 = vmul.f32 %v4783_v16, %v10063_v42  ;;  %vm11693_vm12 = vmmov %vm11682_vm6  ;;  %v4786_v16 = vld [vmem:[%s10483_s6 + $0x360] sm:$0xff] }
 0x82d   :  { %v4076_v43 = vsel %vm11678_vm5, %v4075_v28, %v4074_v3  ;;  %vm11694_vm5 = vcmask 1048512  }
 0x82e   :  { %v3064_v29 = vpop.xlane.xlu1 %3063  ;;  %v3058_v53 = vpop.xlane.xlu2 %3057  ;;  %v3179_v8 = vsel %vm11683_vm13, %v2849_v26, 0.0 }
 0x82f   :  { %v3061_v15 = vpop.xlane.xlu0 %3060  ;;  %v3320_v32 = vmul.f32 %v3058_v53, %v11679_v33  ;;  %v3322_v63 = vmul.f32 %v3064_v29, %v11680_v18  ;;  %v2851_v33 = vmul.f32 %v4785_v57, %v10038_v54  ;;  %v11696_v57 = vld [vmem:[#allocation57_spill] sm:$0xff] }
 0x830   :  { %v3321_v41 = vmul.f32 %v3061_v15, %v11681_v24  ;;  %v11688_v15 = vld [vmem:[#allocation64_spill] sm:$0xff] }
 0x831   :  { %v4077_v19 = vperm.slane %v3320_v32, %v11410_v20  ;;  %v4081_v52 = vperm.slane %v3322_v63, %v11431_v58  ;;  %v11689_v32 = vld [vmem:[#allocation27_spill] sm:$0xff]  ;;  %v11690_v63 = vld [vmem:[#allocation60_spill] sm:$0xff] }
 0x832   :  { %v4079_v49 = vperm.slane %v3321_v41, %v11420_v21 }
 0x833   :  { %3183 = vadd.xlane.f32.xlu1 %v3182_v38  ;;  %v4078_v5 = vsel %vm11685_vm9, %v4077_v19, %v4076_v43  ;;  %3180 = vadd.xlane.f32.xlu2 %v3179_v8  ;;  %v4784_v43 = vld [vmem:[%s10483_s6 + $0x3a8] sm:$0xff]  ;;  %v3230_v38 = vsel %vm11691_vm11, %v2866_v37, 0.0  ;;  %v2856_v37 = vmul.f32 %v4786_v16, %v10038_v54  ;;  %vm11702_vm9 = vcmask 261312  }
 0x834   :  { %3225 = vadd.xlane.f32.xlu0 %v3224_v0  ;;  %v4080_v28 = vsel %vm11686_vm0, %v4079_v49, %v4078_v5  ;;  %v2865_v4 = vmul.f32 %v4784_v43, %v10063_v42  ;;  %v3185_v0 = vsel %vm11693_vm12, %v2851_v33, 0.0  ;;  %v11695_v43 = vld [vmem:[#allocation65_spill] sm:$0xff]  ;;  %vm11703_vm0 = vcmask 326912  }
 0x835   :  { %v4082_v3 = vsel %vm11687_vm1, %v4081_v52, %v4080_v28  ;;  %vm11710_vm12 = vcmask 458112  }
 0x836   :  { %v3073_v29 = vpop.xlane.xlu1 %3072  ;;  %v3067_v53 = vpop.xlane.xlu2 %3066  ;;  %v3227_v8 = vsel %vm11692_vm10, %v2865_v4, 0.0  ;;  %vm11709_vm10 = vcmask 392512  }
 0x837   :  { %v3325_v27 = vmul.f32 %v3073_v29, %v11688_v15  ;;  %v3070_v26 = vpop.xlane.xlu0 %3069  ;;  %v3323_v18 = vmul.f32 %v3067_v53, %v11689_v32  ;;  %v11697_v32 = vld [vmem:[#allocation67_spill] sm:$0xff] }
 0x838   :  { %v3324_v24 = vmul.f32 %v3070_v26, %v11690_v63 }
 0x839   :  { %v4086_v41 = vperm.slane %v3325_v27, %v11512_v55  ;;  %v4083_v19 = vperm.slane %v3323_v18, %v11423_v46 }
 0x83a   :  { %v4085_v49 = vperm.slane %v3324_v24, %v11462_v2 }
 0x83b   :  { %3231 = vadd.xlane.f32.xlu1 %v3230_v38  ;;  %v4084_v5 = vsel %vm11694_vm5, %v4083_v19, %v4082_v3  ;;  %3228 = vadd.xlane.f32.xlu2 %v3227_v8  ;;  %v4787_v3 = vld [vmem:[%s10483_s6 + $0x340] sm:$0xff]  ;;  %vm11711_vm5 = vcmask 523712  }
 0x83c   :  { %v4087_v52 = vsel %vm3526_vm3, %v4086_v41, %v4085_v49  ;;  %3186 = vadd.xlane.f32.xlu0 %v3185_v0  ;;  %v10175_v28 = vsel %vm3805_vm4, %v4084_v5, %v10074_v40  ;;  %v2852_v27 = vmul.f32 %v4787_v3, %v10038_v54  ;;  %v4788_v40 = vld [vmem:[%s10483_s6 + $0x3b8] sm:$0xff]  ;;  %vm11698_vm4 = vmmov %vm11682_vm6 }
 0x83d   :  { %v2867_v26 = vmul.f32 %v4788_v40, %v10063_v42  ;;  %v3200_v41 = vsel %vm11698_vm4, %v2856_v37, 0.0  ;;  %vm11699_vm6 = vmmov %vm11698_vm4  ;;  %v4789_v37 = vld [vmem:[%s10483_s6 + $0x348] sm:$0xff] }
 0x83e   :  { %v3082_v29 = vpop.xlane.xlu1 %3081  ;;  %v3076_v53 = vpop.xlane.xlu2 %3075  ;;  %v3188_v19 = vsel %vm11699_vm6, %v2852_v27, 0.0  ;;  %vm11700_vm13 = vmmov %vm11698_vm4  ;;  %v11704_v27 = vld [vmem:[#allocation58_spill] sm:$0xff] }
 0x83f   :  { %v3079_v15 = vpop.xlane.xlu0 %3078  ;;  %v3326_v4 = vmul.f32 %v3076_v53, %v11695_v43  ;;  %v3328_v33 = vmul.f32 %v3082_v29, %v11696_v57  ;;  %v3233_v49 = vsel %vm11700_vm13, %v2867_v26, 0.0  ;;  %v11705_v26 = vld [vmem:[#allocation75_spill] sm:$0xff]  ;;  %vm11707_vm1 = vmmov %vm11698_vm4  ;;  %vm11717_vm13 = vcmask 589312  }
 0x840   :  { %v3327_v18 = vmul.f32 %v3079_v15, %v11697_v32  ;;  %v2853_v15 = vmul.f32 %v4789_v37, %v10038_v54  ;;  %vm11708_vm11 = vmmov %vm11707_vm1  ;;  %v11712_v37 = vld [vmem:[#allocation89_spill] sm:$0xff] }
 0x841   :  { %v4088_v63 = vperm.slane %v3326_v4, %v11511_v48  ;;  %v4092_v8 = vperm.slane %v3328_v33, %v11059_v39  ;;  %v11706_v4 = vld [vmem:[#allocation71_spill] sm:$0xff]  ;;  %vm11715_vm4 = vmmov %vm11707_vm1 }
 0x842   :  { %v4090_v24 = vperm.slane %v3327_v18, %v10955_v36  ;;  %v3191_v18 = vsel %vm11707_vm1, %v2853_v15, 0.0  ;;  %vm11716_vm6 = vmmov %vm11707_vm1 }
 0x843   :  { %3201 = vadd.xlane.f32.xlu1 %v3200_v41  ;;  %v4089_v38 = vsel %vm11701_vm14, %v4088_v63, %v4087_v52  ;;  %3189 = vadd.xlane.f32.xlu2 %v3188_v19  ;;  %v4790_v52 = vld [vmem:[%s10483_s6 + $0x3c0] sm:$0xff]  ;;  %vm11718_vm14 = vcmask 654912  }
 0x844   :  { %3234 = vadd.xlane.f32.xlu0 %v3233_v49  ;;  %v4091_v0 = vsel %vm11702_vm9, %v4090_v24, %v4089_v38  ;;  %v2868_v3 = vmul.f32 %v4790_v52, %v10063_v42  ;;  %v11713_v52 = vld [vmem:[#allocation97_spill] sm:$0xff]  ;;  %vm11719_vm9 = vcmask 720512  }
 0x845   :  { %v4093_v5 = vsel %vm11703_vm0, %v4092_v8, %v4091_v0  ;;  %vm11723_vm0 = vmmov %vm11707_vm1 }
 0x846   :  { %v3091_v29 = vpop.xlane.xlu1 %3090  ;;  %v3085_v16 = vpop.xlane.xlu2 %3084  ;;  %v3236_v63 = vsel %vm11708_vm11, %v2868_v3, 0.0  ;;  %vm11724_vm1 = vmmov %vm11723_vm0  ;;  %vm11725_vm11 = vcmask 786112  }
 0x847   :  { %v3088_v53 = vpop.xlane.xlu0 %3087  ;;  %v3329_v40 = vmul.f32 %v3085_v16, %v11704_v27  ;;  %v3331_v43 = vmul.f32 %v3091_v29, %v11705_v26  ;;  %v4791_v29 = vld [vmem:[%s10483_s6 + $0x350] sm:$0xff]  ;;  %v11714_v27 = vld [vmem:[#allocation101_spill] sm:$0xff] }
 0x848   :  { %v3330_v57 = vmul.f32 %v3088_v53, %v11706_v4  ;;  %v2854_v16 = vmul.f32 %v4791_v29, %v10038_v54  ;;  %v11720_v29 = vld [vmem:[#allocation48_spill] sm:$0xff] }
 0x849   :  { %v4094_v33 = vperm.slane %v3329_v40, %v11522_v59  ;;  %v4098_v41 = vperm.slane %v3331_v43, %v11344_v11 }
 0x84a   :  { %v4096_v32 = vperm.slane %v3330_v57, %v5892_v44  ;;  %v3194_v4 = vsel %vm11715_vm4, %v2854_v16, 0.0  ;;  %vm11731_vm4 = vmmov %vm11723_vm0 }
 0x84b   :  { %v4095_v24 = vsel %vm11709_vm10, %v4094_v33, %v4093_v5  ;;  %3192 = vadd.xlane.f32.xlu2 %v3191_v18  ;;  %v4792_v5 = vld [vmem:[%s10483_s6 + $0x3c8] sm:$0xff]  ;;  %vm11726_vm10 = vcmask 851712  }
 0x84c   :  { %3237 = vadd.xlane.f32.xlu0 %v3236_v63  ;;  %v4097_v19 = vsel %vm11710_vm12, %v4096_v32, %v4095_v24  ;;  %v2869_v53 = vmul.f32 %v4792_v5, %v10063_v42  ;;  %v11721_v5 = vld [vmem:[#allocation108_spill] sm:$0xff]  ;;  %vm11727_vm12 = vcmask 917312  }
 0x84d   :  { %v4099_v49 = vsel %vm11711_vm5, %v4098_v41, %v4097_v19  ;;  %vm11730_vm5 = vmmov %vm11723_vm0 }
 0x84e   :  { %v3100_v38 = vpop.xlane.xlu1 %3099  ;;  %v3094_v8 = vpop.xlane.xlu2 %3093  ;;  %v3239_v57 = vsel %vm11716_vm6, %v2869_v53, 0.0  ;;  %vm11732_vm6 = vcmask 982912  }
 0x84f   :  { %v3097_v0 = vpop.xlane.xlu0 %3096  ;;  %v3332_v15 = vmul.f32 %v3094_v8, %v11712_v37  ;;  %v3334_v3 = vmul.f32 %v3100_v38, %v11713_v52  ;;  %v4793_v38 = vld [vmem:[%s10483_s6 + $0x358] sm:$0xff]  ;;  %v4795_v52 = vld [vmem:[#allocation3] sm:$0xff] }
 0x850   :  { %v3333_v40 = vmul.f32 %v3097_v0, %v11714_v27  ;;  %v2855_v8 = vmul.f32 %v4793_v38, %v10038_v54  ;;  %v11722_v37 = vld [vmem:[#allocation19_spill] sm:$0xff] }
 0x851   :  { %v4100_v26 = vperm.slane %v3332_v15, %v11346_v22  ;;  %v4104_v32 = vperm.slane %v3334_v3, %v11369_v12  ;;  %v4268_v3 = vmul.f32 %v4795_v52, %v4795_v52 }
 0x852   :  { %v4102_v43 = vperm.slane %v3333_v40, %v11370_v13 }
 0x853   :  { %v4101_v33 = vsel %vm11717_vm13, %v4100_v26, %v4099_v49  ;;  %3195 = vadd.xlane.f32.xlu2 %v3194_v4  ;;  %v4794_v49 = vld [vmem:[%s10483_s6 + $0x3d0] sm:$0xff]  ;;  %v3197_v26 = vsel %vm11723_vm0, %v2855_v8, 0.0  ;;  %vm11733_vm13 = vcmask 1048512  }
 0x854   :  { %3240 = vadd.xlane.f32.xlu0 %v3239_v57  ;;  %v4103_v18 = vsel %vm11718_vm14, %v4102_v43, %v4101_v33  ;;  %v2870_v0 = vmul.f32 %v4794_v49, %v10063_v42  ;;  %v11728_v49 = vld [vmem:[#allocation63_spill] sm:$0xff]  ;;  %vm11739_vm14 = vmmov %vm11723_vm0 }
 0x855   :  { %v4105_v63 = vsel %vm11719_vm9, %v4104_v32, %v4103_v18  ;;  %vm11740_vm9 = vcmask 195712  }
 0x856   :  { %v3109_v24 = vpop.xlane.xlu1 %3108  ;;  %v3103_v41 = vpop.xlane.xlu2 %3102  ;;  %v3242_v43 = vsel %vm11724_vm1, %v2870_v0, 0.0 }
 0x857   :  { %v3106_v19 = vpop.xlane.xlu0 %3105  ;;  %v3335_v16 = vmul.f32 %v3103_v41, %v11720_v29  ;;  %v3337_v53 = vmul.f32 %v3109_v24, %v11721_v5  ;;  %v11729_v29 = vld [vmem:[#allocation159_spill] sm:$0xff] }
 0x858   :  { %v3336_v15 = vmul.f32 %v3106_v19, %v11722_v37  ;;  %v4796_v19 = vld [vmem:[%s10483_s6 + $0x3d8] sm:$0xff] }
 0x859   :  { %v4106_v27 = vperm.slane %v3335_v16, %v11242_v30  ;;  %v4110_v57 = vperm.slane %v3337_v53, %v11420_v21  ;;  %v2871_v38 = vmul.f32 %v4796_v19, %v10063_v42 }
 0x85a   :  { %v4108_v40 = vperm.slane %v3336_v15, %v11410_v20 }
 0x85b   :  { %v4107_v4 = vsel %vm11725_vm11, %v4106_v27, %v4105_v63  ;;  %3198 = vadd.xlane.f32.xlu2 %v3197_v26  ;;  %v4797_v63 = vld [vmem:[%s10483_s6 + $0x368] sm:$0xff]  ;;  %v3245_v37 = vsel %vm11730_vm5, %v2871_v38, 0.0  ;;  %v11734_v27 = vld [vmem:[#allocation100_spill] sm:$0xff]  ;;  %v11736_v38 = vld [vmem:[#allocation115_spill] sm:$0xff]  ;;  %vm11748_vm5 = vcmask 458112  }
 0x85c   :  { %3243 = vadd.xlane.f32.xlu0 %v3242_v43  ;;  %v4109_v33 = vsel %vm11726_vm10, %v4108_v40, %v4107_v4  ;;  %4271 = vperm.xlu1 %4365, %v4268_v3   ;;  %v2857_v8 = vmul.f32 %v4797_v63, %v10038_v54  ;;  %v11737_v63 = vld [vmem:[#allocation102_spill] sm:$0xff]  ;;  %vm11745_vm11 = vmmov %vm11724_vm1  ;;  %vm11746_vm10 = vcmask 326912  }
 0x85d   :  { %v4111_v32 = vsel %vm11727_vm12, %v4110_v57, %v4109_v33  ;;  %v4798_v33 = vld [vmem:[%s10483_s6 + $0x3e0] sm:$0xff]  ;;  %vm11747_vm12 = vcmask 392512  }
 0x85e   :  { %v3118_v18 = vpop.xlane.xlu1 %3117  ;;  %v3112_v24 = vpop.xlane.xlu2 %3111  ;;  %v3203_v15 = vsel %vm11731_vm4, %v2857_v8, 0.0  ;;  %vm11751_vm4 = vmmov %vm11724_vm1 }
 0x85f   :  { %v3115_v41 = vpop.xlane.xlu0 %3114  ;;  %v3338_v0 = vmul.f32 %v3112_v24, %v11728_v49  ;;  %v3340_v40 = vmul.f32 %v3118_v18, %v11734_v27  ;;  %v2872_v24 = vmul.f32 %v4798_v33, %v10063_v42  ;;  %v11735_v18 = vld [vmem:[#allocation109_spill] sm:$0xff] }
 0x860   :  { %v3339_v16 = vmul.f32 %v3115_v41, %v11729_v29 }
 0x861   :  { %v4112_v5 = vperm.slane %v3338_v0, %v11431_v58  ;;  %v4116_v49 = vperm.slane %v3340_v40, %v11462_v2 }
 0x862   :  { %v4114_v53 = vperm.slane %v3339_v16, %v11423_v46 }
 0x863   :  { %v4113_v52 = vsel %vm11732_vm6, %v4112_v5, %v4111_v32  ;;  %3246 = vadd.xlane.f32.xlu2 %v3245_v37  ;;  %v4799_v32 = vld [vmem:[%s10483_s6 + $0x370] sm:$0xff]  ;;  %vm11752_vm6 = vmmov %vm11724_vm1 }
 0x864   :  { %3204 = vadd.xlane.f32.xlu0 %v3203_v15  ;;  %v4115_v3 = vsel %vm11733_vm13, %v4114_v53, %v4113_v52  ;;  %v2858_v41 = vmul.f32 %v4799_v32, %v10038_v54  ;;  %vm11753_vm13 = vcmask 523712  }
 0x865   :  { %v10277_v26 = vsel %vm3807_vm15, %v4115_v3, %v10175_v28  ;;  %vm11738_vm15 = vmmov %vm11723_vm0  ;;  %vm11741_vm0 = vcmask 261312  }
 0x866   :  { %v3127_v43 = vpop.xlane.xlu1 %3126  ;;  %v3121_v4 = vpop.xlane.xlu2 %3120  ;;  %v3248_v16 = vsel %vm11738_vm15, %v2872_v24, 0.0  ;;  %v3206_v5 = vsel %vm11739_vm14, %v2858_v41, 0.0  ;;  %v11742_v24 = vld [vmem:[#allocation110_spill] sm:$0xff]  ;;  %v11743_v41 = vld [vmem:[#allocation117_spill] sm:$0xff]  ;;  %vm11755_vm15 = vcmask 589312   ;;  %vm11758_vm14 = vcmask 654912  }
 0x867   :  { %v3124_v57 = vpop.xlane.xlu0 %3123  ;;  %v3341_v19 = vmul.f32 %v3121_v4, %v11735_v18  ;;  %v3343_v28 = vmul.f32 %v3127_v43, %v11736_v38  ;;  %v4800_v43 = vld [vmem:[%s10483_s6 + $0x3e8] sm:$0xff] }
 0x868   :  { %v3342_v8 = vmul.f32 %v3124_v57, %v11737_v63  ;;  %v2873_v4 = vmul.f32 %v4800_v43, %v10063_v42  ;;  %v4801_v57 = vld [vmem:[%s10483_s6 + $0x378] sm:$0xff] }
 0x869   :  { %v4117_v0 = vperm.slane %v3341_v19, %v11512_v55  ;;  %v4121_v37 = vperm.slane %v3343_v28, %v10955_v36  ;;  %v2859_v33 = vmul.f32 %v4801_v57, %v10038_v54  ;;  %v11744_v19 = vld [vmem:[#allocation120_spill] sm:$0xff] }
 0x86a   :  { %v4119_v29 = vperm.slane %v3342_v8, %v11511_v48  ;;  %v3251_v8 = vsel %vm11724_vm1, %v2873_v4, 0.0  ;;  %v11750_v4 = vld [vmem:[#allocation160_spill] sm:$0xff]  ;;  %vm11763_vm1 = vcmask 851712  }
 0x86b   :  { %v4118_v53 = vsel %vm3526_vm3, %v4117_v0, %v4116_v49  ;;  %3249 = vadd.xlane.f32.xlu2 %v3248_v16  ;;  %v3209_v49 = vsel %vm11745_vm11, %v2859_v33, 0.0  ;;  %vm11764_vm11 = vcmask 917312  }
 0x86c   :  { %3207 = vadd.xlane.f32.xlu0 %v3206_v5  ;;  %v4120_v15 = vsel %vm11740_vm9, %v4119_v29, %v4118_v53  ;;  %vm11759_vm9 = vcmask 720512  }
 0x86d   :  { %v4122_v52 = vsel %vm11741_vm0, %v4121_v37, %v4120_v15  ;;  %v4802_v15 = vld [vmem:[%s10483_s6 + $0x3f0] sm:$0xff]  ;;  %vm11761_vm0 = vcmask 786112  }
 0x86e   :  { %v3136_v3 = vpop.xlane.xlu1 %3135  ;;  %v3130_v27 = vpop.xlane.xlu2 %3129 }
 0x86f   :  { %v3133_v40 = vpop.xlane.xlu0 %3132  ;;  %v3344_v32 = vmul.f32 %v3130_v27, %v11742_v24  ;;  %v3346_v18 = vmul.f32 %v3136_v3, %v11743_v41  ;;  %v2874_v3 = vmul.f32 %v4802_v15, %v10063_v42 }
 0x870   :  { %v3345_v38 = vmul.f32 %v3133_v40, %v11744_v19  ;;  %v11749_v40 = vld [vmem:[#allocation10_spill] sm:$0xff]  ;;  %v11754_v19 = vld [vmem:[#allocation28_spill] sm:$0xff] }
 0x871   :  { %v4123_v28 = vperm.slane %v3344_v32, %v11059_v39  ;;  %v4127_v29 = vperm.slane %v3346_v18, %v5892_v44  ;;  %v3254_v32 = vsel %vm11751_vm4, %v2874_v3, 0.0 }
 0x872   :  { %v4125_v63 = vperm.slane %v3345_v38, %v11522_v59 }
 0x873   :  { %v4124_v0 = vsel %vm11746_vm10, %v4123_v28, %v4122_v52  ;;  %3252 = vadd.xlane.f32.xlu2 %v3251_v8  ;;  %v4803_v52 = vld [vmem:[%s10483_s6 + $0x3f8] sm:$0xff]  ;;  %vm11765_vm10 = vcmask 982912  }
 0x874   :  { %3210 = vadd.xlane.f32.xlu0 %v3209_v49  ;;  %v4126_v54 = vsel %vm11747_vm12, %v4125_v63, %v4124_v0  ;;  %v2875_v27 = vmul.f32 %v4803_v52, %v10063_v42  ;;  %v11756_v49 = vld [vmem:[#allocation30_spill] sm:$0xff]  ;;  %vm11770_vm12 = vcmask 195712  }
 0x875   :  { %v4128_v16 = vsel %vm11748_vm5, %v4127_v29, %v4126_v54  ;;  %v11757_v29 = vld [vmem:[#allocation90_spill] sm:$0xff]  ;;  %vm11773_vm5 = vcmask 261312   ;;  %vm11777_vm4 = vmmov %vm11770_vm12 }
 0x876   :  { %v3145_v5 = vpop.xlane.xlu1 %3144  ;;  %v3139_v53 = vpop.xlane.xlu2 %3138  ;;  %v3257_v41 = vsel %vm11752_vm6, %v2875_v27, 0.0  ;;  %vm11778_vm6 = vcmask 326912  }
 0x877   :  { %v3142_v37 = vpop.xlane.xlu0 %3141  ;;  %v3347_v43 = vmul.f32 %v3139_v53, %v11749_v40  ;;  %v3349_v38 = vmul.f32 %v3145_v5, %v11754_v19  ;;  %v11760_v5 = vld [vmem:[#allocation37_spill] sm:$0xff] }
 0x878   :  { %v3348_v57 = vmul.f32 %v3142_v37, %v11750_v4 }
 0x879   :  { %v4129_v33 = vperm.slane %v3347_v43, %v11344_v11  ;;  %v4133_v53 = vperm.slane %v3349_v38, %v11370_v13 }
 0x87a   :  { %v4131_v24 = vperm.slane %v3348_v57, %v11346_v22  ;;  %v11762_v57 = vld [vmem:[#allocation92_spill] sm:$0xff] }
 0x87b   :  { %v4130_v18 = vsel %vm11753_vm13, %v4129_v33, %v4128_v16  ;;  %3255 = vadd.xlane.f32.xlu2 %v3254_v32  ;;  %vm11779_vm13 = vmmov %vm11773_vm5 }
 0x87c   :  { %3258 = vadd.xlane.f32.xlu0 %v3257_v41  ;;  %v4132_v42 = vsel %vm11755_vm15, %v4131_v24, %v4130_v18  ;;  %vm11780_vm15 = vcmask 1048512  }
 0x87d   :  { %v4134_v16 = vsel %vm11758_vm14, %v4133_v53, %v4132_v42  ;;  %vm11785_vm14 = vcmask 392512  }
 0x87e   :  { %v3154_v28 = vpop.xlane.xlu1 %3153  ;;  %v3148_v63 = vpop.xlane.xlu2 %3147 }
 0x87f   :  { %v3151_v8 = vpop.xlane.xlu0 %3150  ;;  %v3350_v0 = vmul.f32 %v3148_v63, %v11756_v49  ;;  %v3352_v52 = vmul.f32 %v3154_v28, %v11760_v5  ;;  %v11766_v49 = vld [vmem:[#allocation128_spill] sm:$0xff] }
 0x880   :  { %v3351_v54 = vmul.f32 %v3151_v8, %v11757_v29  ;;  %v11767_v29 = vld [vmem:[#allocation129_spill] sm:$0xff] }
 0x881   :  { %v4135_v37 = vperm.slane %v3350_v0, %v11369_v12  ;;  %v4139_v32 = vperm.slane %v3352_v52, %v11410_v20 }
 0x882   :  { %v4137_v15 = vperm.slane %v3351_v54, %v11242_v30 }
 0x883   :  { %v4136_v3 = vsel %vm11759_vm9, %v4135_v37, %v4134_v16  ;;  %vm11790_vm9 = vcmask 523712  }
 0x884   :  { %v4138_v27 = vsel %vm11761_vm0, %v4137_v15, %v4136_v3  ;;  %v11768_v15 = vld [vmem:[#allocation77_spill] sm:$0xff]  ;;  %vm11791_vm0 = vcmask 589312  }
 0x885   :  { %v4140_v19 = vsel %vm11763_vm1, %v4139_v32, %v4138_v27  ;;  %vm11792_vm1 = vcmask 654912  }
 0x886   :  { %v3163_v40 = vpop.xlane.xlu1 %3162  ;;  %v3157_v43 = vpop.xlane.xlu2 %3156 }
 0x887   :  { %v3160_v4 = vpop.xlane.xlu0 %3159  ;;  %v3353_v33 = vmul.f32 %v3157_v43, %v11762_v57 }
 0x888   :  { %v3354_v24 = vmul.f32 %v3160_v4, %v9218_v25  ;;  %v4804_v25 = vld [vmem:[#allocation6] sm:$0xff] }
 0x889   :  { %v4141_v41 = vperm.slane %v3353_v33, %v11420_v21  ;;  %v11769_v4 = vld [vmem:[#allocation96_spill] sm:$0xff] }
 0x88a   :  { %v4143_v18 = vperm.slane %v3354_v24, %v11431_v58  ;;  %v4319_v33 = vld [vmem:[%s10484_s7] sm:$0xff] }
 0x88b   :  { %v4142_v38 = vsel %vm11764_vm11, %v4141_v41, %v4140_v19  ;;  %v11771_v41 = vld [vmem:[#allocation150_spill] sm:$0xff]  ;;  %v11772_v19 = vld [vmem:[#allocation149_spill] sm:$0xff]  ;;  %vm11798_vm11 = vmmov %vm11785_vm14 }
 0x88c   :  { %v4144_v42 = vsel %vm11765_vm10, %v4143_v18, %v4142_v38 }
 0x88e   :  { %v3172_v28 = vpop.xlane.xlu1 %3171  ;;  %v3166_v63 = vpop.xlane.xlu2 %3165 }
 0x88f   :  { %v3169_v8 = vpop.xlane.xlu0 %3168  ;;  %v3356_v0 = vmul.f32 %v3166_v63, %v11766_v49  ;;  %v3358_v16 = vmul.f32 %v3172_v28, %v11768_v15 }
 0x890   :  { %v3357_v54 = vmul.f32 %v3169_v8, %v11767_v29  ;;  %4232 = vperm.xlu0 %4366, %v4804_v25   ;;  %v11775_v25 = vld [vmem:[#allocation151_spill] sm:$0xff] }
 0x891   :  { %v4147_v53 = vperm.slane %v3356_v0, %v11462_v2  ;;  %v4150_v52 = vperm.slane %v3358_v16, %v11511_v48  ;;  %v11774_v0 = vld [vmem:[#allocation152_spill] sm:$0xff]  ;;  %v3355_v16 = vmul.f32 %v3163_v40, %v9267_v1 }
 0x892   :  { %v4148_v37 = vperm.slane %v3357_v54, %v11512_v55 }
 0x893   :  { %4248 = vperm.xlu2 %4367, %v9376_v34  }
 0x894   :  { %v4149_v3 = vsel %vm3526_vm3, %v4148_v37, %v4147_v53  ;;  %v11776_v37 = vld [vmem:[#allocation130_spill] sm:$0xff] }
 0x895   :  { %v4151_v32 = vsel %vm11770_vm12, %v4150_v52, %v4149_v3  ;;  %vm11801_vm12 = vcmask 720512  }
 0x896   :  { %v3217_v5 = vpop.xlane.xlu1 %3216  ;;  %v3175_v27 = vpop.xlane.xlu2 %3174 }
 0x897   :  { %v3214_v43 = vpop.xlane.xlu0 %3213  ;;  %v3359_v57 = vmul.f32 %v3175_v27, %v11769_v4  ;;  %v3373_v18 = vmul.f32 %v3217_v5, %v11771_v41 }
 0x898   :  { %v3372_v38 = vmul.f32 %v3214_v43, %v11772_v19  ;;  %v4145_v43 = vperm.slane %v3355_v16, %v11423_v46  ;;  %v11782_v19 = vld [vmem:[#allocation155_spill] sm:$0xff] }
 0x899   :  { %v4152_v24 = vperm.slane %v3359_v57, %v10955_v36  ;;  %v4179_v63 = vperm.slane %v3373_v18, %v11512_v55 }
 0x89a   :  { %v4178_v8 = vperm.slane %v3372_v38, %v11462_v2 }
 0x89b   :  { %v4153_v34 = vsel %vm11773_vm5, %v4152_v24, %v4151_v32  ;;  %4323 = vperm.xlu2 %4367, %v4319_v33   ;;  %v4146_v33 = vsel %vm11780_vm15, %v4145_v43, %v4144_v42  ;;  %vm11802_vm5 = vmmov %vm11790_vm9 }
 0x89c   :  { %v4180_v55 = vsel %vm3526_vm3, %v4179_v63, %v4178_v8  ;;  %vm11784_vm3 = vmmov %vm11778_vm6 }
 0x89d   :  { %vm11806_vm15 = vmmov %vm11792_vm1 }
 0x89e   :  { %v3223_v28 = vpop.xlane.xlu1 %3222  ;;  %v3220_v49 = vpop.xlane.xlu2 %3219 }
 0x89f   :  { %v3375_v29 = vmul.f32 %v3223_v28, %v11774_v0  ;;  %v3178_v54 = vpop.xlane.xlu0 %3177  ;;  %v3374_v53 = vmul.f32 %v3220_v49, %v11775_v25  ;;  %v11783_v28 = vld [vmem:[#allocation154_spill] sm:$0xff] }
 0x8a0   :  { %v3360_v15 = vmul.f32 %v3178_v54, %v11776_v37 }
 0x8a1   :  { %v4183_v3 = vperm.slane %v3375_v29, %v10955_v36  ;;  %v4181_v5 = vperm.slane %v3374_v53, %v11511_v48  ;;  %v10386_v36 = vsel %vm3809_vm2, %v4146_v33, %v10277_v26  ;;  %v11781_v48 = vld [vmem:[#allocation153_spill] sm:$0xff]  ;;  %vm11786_vm2 = vcmask 458112   ;;  %v11787_v53 = vld [vmem:[#allocation158_spill] sm:$0xff] }
 0x8a2   :  { %v4154_v52 = vperm.slane %v3360_v15, %v11059_v39  ;;  %v11788_v15 = vld [vmem:[#allocation43_spill] sm:$0xff]  ;;  %vm11800_vm10 = vmmov %vm11786_vm2 }
 0x8a3   :  { %v4182_v2 = vsel %vm11777_vm4, %v4181_v5, %v4180_v55  ;;  %vm11803_vm4 = vcmask 786112  }
 0x8a4   :  { %v4155_v27 = vsel %vm11778_vm6, %v4154_v52, %v4153_v34  ;;  %v4184_v4 = vsel %vm11779_vm13, %v4183_v3, %v4182_v2  ;;  %v11789_v2 = vld [vmem:[#allocation51_spill] sm:$0xff]  ;;  %vm11804_vm6 = vmmov %vm11791_vm0  ;;  %vm11805_vm13 = vcmask 851712  }
 0x8a6   :  { %v3184_v57 = vpop.xlane.xlu1 %3183  ;;  %v3181_v1 = vpop.xlane.xlu2 %3180 }
 0x8a7   :  { %v3226_v40 = vpop.xlane.xlu0 %3225 }
 0x8a8   :  { %v3376_v24 = vmul.f32 %v3226_v40, %v11781_v48 }
 0x8aa   :  { %v4185_v41 = vperm.slane %v3376_v24, %v11059_v39 }
 0x8ac   :  { %v4186_v49 = vsel %vm11784_vm3, %v4185_v41, %v4184_v4  ;;  %v11793_v41 = vld [vmem:[#allocation135_spill] sm:$0xff]  ;;  %vm11807_vm3 = vmmov %vm11801_vm12 }
 0x8ae   :  { %v3232_v32 = vpop.xlane.xlu1 %3231  ;;  %v3229_v18 = vpop.xlane.xlu2 %3228 }
 0x8af   :  { %v3378_v38 = vmul.f32 %v3232_v32, %v11782_v19  ;;  %v3187_v34 = vpop.xlane.xlu0 %3186  ;;  %v3377_v63 = vmul.f32 %v3229_v18, %v11783_v28  ;;  %v3361_v18 = vmul.f32 %v3181_v1, %v11793_v41  ;;  %v11794_v28 = vld [vmem:[#allocation136_spill] sm:$0xff] }
 0x8b1   :  { %v4189_v8 = vperm.slane %v3378_v38, %v5892_v44  ;;  %v4187_v42 = vperm.slane %v3377_v63, %v11522_v59  ;;  %v3362_v63 = vmul.f32 %v3184_v57, %v11794_v28 }
 0x8b3   :  { %v4188_v26 = vsel %vm11785_vm14, %v4187_v42, %v4186_v49  ;;  %v4156_v49 = vperm.slane %v3361_v18, %v11522_v59  ;;  %vm11808_vm14 = vmmov %vm11803_vm4 }
 0x8b4   :  { %v4190_v0 = vsel %vm11786_vm2, %v4189_v8, %v4188_v26  ;;  %v11795_v8 = vld [vmem:[#allocation17_spill] sm:$0xff]  ;;  %v11796_v26 = vld [vmem:[#allocation131_spill] sm:$0xff]  ;;  %vm11809_vm2 = vmmov %vm11805_vm13 }
 0x8b5   :  { %v4157_v57 = vsel %vm11798_vm11, %v4156_v49, %v4155_v27 }
 0x8b6   :  { %v3190_v29 = vpop.xlane.xlu2 %3189 }
 0x8b7   :  { %v3235_v54 = vpop.xlane.xlu0 %3234 }
 0x8b8   :  { %v3379_v37 = vmul.f32 %v3235_v54, %v11787_v53  ;;  %v11797_v54 = vld [vmem:[#allocation42_spill] sm:$0xff]  ;;  %v3364_v53 = vmul.f32 %v3190_v29, %v9086_v35  ;;  %v11799_v35 = vld [vmem:[#allocation47_spill] sm:$0xff] }
 0x8ba   :  { %v4191_v3 = vperm.slane %v3379_v37, %v11344_v11 }
 0x8bc   :  { %v4192_v4 = vsel %vm11790_vm9, %v4191_v3, %v4190_v0  ;;  %v3363_v0 = vmul.f32 %v3187_v34, %v11796_v26  ;;  %vm11810_vm9 = vcmask 917312  }
 0x8bd   :  { %vm11813_vm11 = vmmov %vm11810_vm9 }
 0x8be   :  { %v3193_v25 = vpop.xlane.xlu2 %3192  ;;  %v4160_v3 = vperm.slane %v3363_v0, %v11344_v11 }
 0x8bf   :  { %v3238_v39 = vpop.xlane.xlu0 %3237  ;;  %v3365_v37 = vmul.f32 %v3193_v25, %v9106_v45  ;;  %v3202_v25 = vpop.xlane.xlu1 %3201 }
 0x8c0   :  { %v3380_v16 = vmul.f32 %v3238_v39, %v11788_v15  ;;  %v4158_v15 = vperm.slane %v3362_v63, %v5892_v44 }
 0x8c1   :  { %v4164_v44 = vperm.slane %v3365_v37, %v11370_v13 }
 0x8c2   :  { %v4193_v5 = vperm.slane %v3380_v16, %v11346_v22 }
 0x8c4   :  { %v4194_v40 = vsel %vm11791_vm0, %v4193_v5, %v4192_v4  ;;  %vm11811_vm0 = vcmask 982912  }
 0x8c6   :  { %v3196_v52 = vpop.xlane.xlu2 %3195 }
 0x8c7   :  { %v3241_v55 = vpop.xlane.xlu0 %3240  ;;  %v3366_v1 = vmul.f32 %v3196_v52, %v9125_v7  ;;  %v4159_v7 = vsel %vm11800_vm10, %v4158_v15, %v4157_v57  ;;  %vm11814_vm10 = vmmov %vm11811_vm0 }
 0x8c8   :  { %v3381_v43 = vmul.f32 %v3241_v55, %v11789_v2  ;;  %v4162_v55 = vperm.slane %v3364_v53, %v11346_v22 }
 0x8c9   :  { %v4166_v52 = vperm.slane %v3366_v1, %v11369_v12 }
 0x8ca   :  { %v4195_v33 = vperm.slane %v3381_v43, %v11370_v13  ;;  %v3368_v13 = vmul.f32 %v3202_v25, %v9161_v61 }
 0x8cc   :  { %v4196_v48 = vsel %vm11792_vm1, %v4195_v33, %v4194_v40  ;;  %v4170_v41 = vperm.slane %v3368_v13, %v11410_v20  ;;  %vm11812_vm1 = vcmask 1048512  }
 0x8ce   :  { %v3199_v24 = vpop.xlane.xlu2 %3198  ;;  %v4272_v1 = vpop.permute.xlu1 %4271 }
 0x8cf   :  { %v3244_v32 = vpop.xlane.xlu0 %3243  ;;  %v3367_v59 = vmul.f32 %v3199_v24, %v9148_v14  ;;  %v4161_v14 = vsel %vm11802_vm5, %v4160_v3, %v4159_v7 }
 0x8d0   :  { %v3382_v42 = vmul.f32 %v3244_v32, %v11795_v8  ;;  %v4163_v4 = vsel %vm11804_vm6, %v4162_v55, %v4161_v14 }
 0x8d1   :  { %v4168_v2 = vperm.slane %v3367_v59, %v11242_v30  ;;  %v4165_v40 = vsel %vm11806_vm15, %v4164_v44, %v4163_v4 }
 0x8d2   :  { %v4197_v16 = vperm.slane %v3382_v42, %v11369_v12 }
 0x8d4   :  { %v4198_v27 = vsel %vm11801_vm12, %v4197_v16, %v4196_v48  ;;  %v4167_v48 = vsel %vm11807_vm3, %v4166_v52, %v4165_v40  ;;  %vm11815_vm12 = vmmov %vm11812_vm1 }
 0x8d5   :  { %v4169_v24 = vsel %vm11808_vm14, %v4168_v2, %v4167_v48 }
 0x8d6   :  { %v3247_v19 = vpop.xlane.xlu2 %3246 }
 0x8d7   :  { %v3205_v38 = vpop.xlane.xlu0 %3204  ;;  %v3383_v39 = vmul.f32 %v3247_v19, %v11797_v54  ;;  %v4171_v19 = vsel %vm11809_vm2, %v4170_v41, %v4169_v24 }
 0x8d8   :  { %v3369_v43 = vmul.f32 %v3205_v38, %v9188_v31 }
 0x8d9   :  { %v4199_v34 = vperm.slane %v3383_v39, %v11242_v30 }
 0x8da   :  { %v4172_v30 = vperm.slane %v3369_v43, %v11420_v21 }
 0x8db   :  { %v4200_v22 = vsel %vm11803_vm4, %v4199_v34, %v4198_v27 }
 0x8de   :  { %v3250_v5 = vpop.xlane.xlu2 %3249 }
 0x8df   :  { %v3384_v29 = vmul.f32 %v3250_v5, %v11799_v35  ;;  %v3208_v45 = vpop.xlane.xlu0 %3207 }
 0x8e0   :  { %v3370_v12 = vmul.f32 %v3208_v45, %v9240_v47  ;;  %v4173_v47 = vsel %vm11810_vm9, %v4172_v30, %v4171_v19 }
 0x8e1   :  { %v4201_v11 = vperm.slane %v3384_v29, %v11410_v20 }
 0x8e2   :  { %v4174_v31 = vperm.slane %v3370_v12, %v11431_v58 }
 0x8e3   :  { %v4202_v33 = vsel %vm11805_vm13, %v4201_v11, %v4200_v22 }
 0x8e4   :  { %v4175_v63 = vsel %vm11811_vm0, %v4174_v31, %v4173_v47 }
 0x8e6   :  { %v3253_v32 = vpop.xlane.xlu2 %3252 }
 0x8e7   :  { %v3211_v18 = vpop.xlane.xlu0 %3210  ;;  %v3385_v38 = vmul.f32 %v3253_v32, %v9202_v62 }
 0x8e8   :  { %v3371_v61 = vmul.f32 %v3211_v18, %v9273_v56 }
 0x8e9   :  { %v4203_v42 = vperm.slane %v3385_v38, %v11420_v21 }
 0x8ea   :  { %v4176_v28 = vperm.slane %v3371_v61, %v11423_v46 }
 0x8eb   :  { %v4204_v62 = vsel %vm11813_vm11, %v4203_v42, %v4202_v33 }
 0x8ec   :  { %v4177_v8 = vsel %vm11812_vm1, %v4176_v28, %v4175_v63 }
 0x8ed   :  { %v4214_v20 = vsel %vm3811_vm7, %v4177_v8, %v10386_v36  ;;  %v3832_v36 = vmul.f32 %v9356_v50, %v9350_v9 }
 0x8ee   :  { %v3256_v49 = vpop.xlane.xlu2 %3255 }
 0x8ef   :  { %v3386_v56 = vmul.f32 %v3256_v49, %v9253_v60  ;;  %v3259_v26 = vpop.xlane.xlu0 %3258 }
 0x8f0   :  { %v3387_v0 = vmul.f32 %v3259_v26, %v9285_v23 }
 0x8f1   :  { %v4205_v54 = vperm.slane %v3386_v56, %v11431_v58  ;;  %v4274_v58 = vmul.f32 %v4272_v1, %v9350_v9 }
 0x8f2   :  { %v4207_v39 = vperm.slane %v3387_v0, %v11423_v46  ;;  %v4242_v46 = vmul.f32 %v9612_v17, %v9350_v9 }
 0x8f3   :  { %v4206_v53 = vsel %vm11814_vm10, %v4205_v54, %v4204_v62  ;;  %v4275_v50 = vmul.f32 %v4274_v58, %v9350_v9 }
 0x8f4   :  { %v4208_v37 = vsel %vm11815_vm12, %v4207_v39, %v4206_v53  ;;  %v4243_v55 = vmul.f32 %v4242_v46, %v9350_v9 }
 0x8f5   :  { %v4215_v21 = vsel %vm3813_vm8, %v4208_v37, %v4214_v20 }
 0x8f6   :  { %v4217_v15 = vmul.f32 %v4215_v21, %v3832_v36  ;;  %v4249_v57 = vpop.permute.xlu2 %4248 }
 0x8f8   :  { %v4218_v60 = vsub.f32 1.0, %v4217_v15 }
 0x8fa   :  { %v4226_v23 = vadd.f32 %v9354_v51, %v4218_v60 }
 0x8fc   :  { %v4245_v16 = vmul.f32 2.0, %v4226_v23  ;;  %v4229_v34 = vmul.f32 %v4226_v23, %v4226_v23 }
 0x8fe   :  { %v4251_v3 = vmul.f32 %v4249_v57, %v4245_v16  ;;  %v4324_v15 = vpop.permute.xlu2 %4323 }
 0x900   :  { %v4252_v59 = vmul.f32 %v4251_v3, %v9350_v9 }
 0x902   :  { %v4233_v5 = vpop.permute.xlu0 %4232  ;;  %v4253_v35 = vmul.f32 %v4252_v59, %v4215_v21  ;;  %v4320_v21 = vld [vmem:[%s10485_s8] sm:$0xff] }
 0x903   :  { %v4235_v29 = vmul.f32 %v4233_v5, %v4229_v34  ;;  %v4276_v45 = vmul.f32 %v4275_v50, %v4233_v5  ;;  %v4326_v1 = vadd.f32 %v4324_v15, %v4320_v21 }
 0x905   :  { %v4244_v51 = vadd.f32 %v4243_v55, %v4235_v29  ;;  %v4277_v25 = vadd.f32 %v4276_v45, %v4218_v60 }
 0x907   :  { %v4254_v44 = vsub.f32 %v4244_v51, %v4253_v35  ;;  %v4278_v7 = vmax.f32 %v4277_v25, 1e-15 }
 0x909   :  { %v4255_v52 = vmax.f32 %v4254_v44, 0.0  ;;  %4666 = vrcp.f32 %v4278_v7  ;;  %v4290_v33 = vand.u32 2147483648, %v4278_v7  ;;  %vm4284_vm8 = vweird.f32 %v4278_v7 }
 0x90a   :  { %v4288_v12 = vand.u32 2147483647, %v4278_v7 }
 0x90b   :  { %4668 = vrsqrt.f32 %v4255_v52  ;;  %v4291_v30 = vor.u32 1.1754944e-38, %v4290_v33  ;;  %vm4263_vm4 = vcmp.eq.f32.partialorder %v4255_v52, inf  ;;  %v4266_v32 = vand.u32 2147483648, %v4255_v52 }
 0x90c   :  { %vm4289_vm6 = vcmp.eq.f32.partialorder %v4288_v12, 8.507059e+37  ;;  %vm4265_vm13 = vcmp.eq.f32.partialorder %v4255_v52, 0.0 }
 0x90f   :  { %v4667_v17 = vpop.eup %4666 }
 0x910   :  { %v4280_v27 = vmul.f32 %v4667_v17, %v4278_v7  ;;  %vm4285_vm7 = vweird.f32 %v4667_v17 }
 0x911   :  { %v4669_v11 = vpop.eup %4668  ;;  %vm4286_vm5 = vmor %vm4284_vm8, %vm4285_vm7 }
 0x912   :  { %v4257_v14 = vmul.f32 %v4669_v11, %v4255_v52  ;;  %v4281_v2 = vsub.f32 1.0, %v4280_v27 }
 0x914   :  { %v4282_v22 = vmul.f32 %v4667_v17, %v4281_v2  ;;  %v4258_v43 = vmul.f32 %v4669_v11, %v4257_v14 }
 0x916   :  { %v4259_v4 = vmul.f32 0.5, %v4258_v43  ;;  %v4283_v13 = vadd.f32 %v4667_v17, %v4282_v22 }
 0x918   :  { %v4260_v9 = vsub.f32 1.5, %v4259_v4  ;;  %v4287_v48 = vsel %vm4286_vm5, %v4667_v17, %v4283_v13 }
 0x919   :  { %v4292_v31 = vsel %vm4289_vm6, %v4291_v30, %v4287_v48 }
 0x91a   :  { %v4261_v40 = vmul.f32 %v4669_v11, %v4260_v9 }
 0x91c   :  { %v4262_v24 = vmul.f32 %v4261_v40, %v4255_v52 }
 0x91e   :  { %v4264_v41 = vsel %vm4263_vm4, %v4255_v52, %v4262_v24 }
 0x91f   :  { %v4267_v18 = vsel %vm4265_vm13, %v4266_v32, %v4264_v41 }
 0x920   :  { %v4293_v61 = vmul.f32 %v4292_v31, %v4267_v18 }
 0x922   :  { %v4294_v19 = vmul.f32 %v4293_v61, %v9342_v10 }
 0x924   :  { %v4359_v47 = vclamps-f32 %v4294_v19, 0.99999 }
 0x926   :  { %v4298_v38 = vsub.f32 1.0, %v4359_v47  ;;  %v4297_v0 = vadd.f32 1.0, %v4359_v47 }
 0x928   :  { %4670 = vrcp.f32 %v4298_v38  ;;  %v4310_v20 = vand.u32 2147483648, %v4298_v38  ;;  %v4308_v49 = vand.u32 2147483647, %v4298_v38  ;;  %vm4304_vm3 = vweird.f32 %v4298_v38 }
 0x92a   :  { %v4311_v26 = vor.u32 1.1754944e-38, %v4310_v20  ;;  %vm4309_vm2 = vcmp.eq.f32.partialorder %v4308_v49, 8.507059e+37 }
 0x92e   :  { %v4671_v28 = vpop.eup %4670 }
 0x92f   :  { %v4300_v63 = vmul.f32 %v4671_v28, %v4298_v38  ;;  %vm4305_vm15 = vweird.f32 %v4671_v28 }
 0x930   :  { %vm4306_vm14 = vmor %vm4304_vm3, %vm4305_vm15 }
 0x931   :  { %v4301_v8 = vsub.f32 1.0, %v4300_v63 }
 0x933   :  { %v4302_v42 = vmul.f32 %v4671_v28, %v4301_v8 }
 0x935   :  { %v4303_v56 = vadd.f32 %v4671_v28, %v4302_v42 }
 0x937   :  { %v4307_v54 = vsel %vm4306_vm14, %v4671_v28, %v4303_v56 }
 0x938   :  { %v4312_v62 = vsel %vm4309_vm2, %v4311_v26, %v4307_v54 }
 0x939   :  { %v4313_v39 = vmul.f32 %v4312_v62, %v4297_v0 }
 0x93b   :  { %4672 = vlog2.f32 %v4313_v39 }
 0x941   :  { %v4673_v10 = vpop.eup %4672 }
 0x942   :  { %v4315_v53 = vmul.f32 0.6931472, %v4673_v10 }
 0x944   :  { %v4316_v37 = vmul.f32 0.5, %v4315_v53 }
 0x946   :  { %v4317_v36 = vmul.f32 2.0, %v4316_v37 }
 0x948   :  { %v4318_v60 = vmul.f32 %v4317_v36, %v9347_v6 }
 0x94a   :  { %v4327_v23 = vmul.f32 %v4318_v60, %v4318_v60 }
 0x94c   :  { %v4328_v58 = vsub.f32 %v4326_v1, %v4327_v23 }
 0x94e   :  { %4329 = vst [vmem:[#allocation7] sm:$0xff] %v4328_v58 }
 0x94f   :  { %4340 = dma.vmem_to_hbm [thread:$0]  %s4336_s1, 128, %s4338_s3, [#allocation8]  }
 0x950   :  { %4829 = dma.done.wait [#allocation8], 128  }
 0x951   :  { %4830 = vsyncadd [#allocation8], 4294967168 }
 0x952   :  { %4345 = vsyncpa [#allocation8], 1 }

</bundles_post_ra>
